<compile_context>
chip_gen: v7x
topology: tpu7x:2x2x1
jax: 0.10.0
libtpu: 0.0.40
codegen_flags: <defaults>
</compile_context>

<pallas_src>
import functools
import math

import jax
import jax.numpy as jnp
from jax.experimental import pallas as pl
from jax.experimental.pallas import tpu as pltpu

_EPS = 1e-5
_VMEM_LIMIT = 32 * 1024 * 1024      # safe scoped-VMEM limit on v5e..v7x
_MAX_SINGLE_STEP_ROWS = 4096        # guard for the single-step fused conv path


# ---------------------------------------------------------------------------
# Pallas kernels
# ---------------------------------------------------------------------------
def _conv_bn_act_kernel(p_ref, w_ref, g_ref, b_ref, *rest, relu, eps, inv_m,
                        has_residual):
    """Fused conv-as-matmul + BatchNorm(batch stats) [+ residual] [+ ReLU].

    p_ref : (M, K) bf16  im2col patches
    w_ref : (K, C) bf16  conv weights (K = kh*kw*Cin)
    g_ref : (1, C) f32   BN gamma
    b_ref : (1, C) f32   BN beta
    rest  : [res_ref (M, C) bf16]?, o_ref (M, C) bf16
    """
    if has_residual:
        res_ref, o_ref = rest
    else:
        (o_ref,) = rest

    # Conv as a single MXU matmul, f32 accumulation.
    acc = jnp.dot(p_ref[...], w_ref[...], preferred_element_type=jnp.float32)

    # Exact PyTorch training-mode batch statistics (biased variance), f32.
    # NOTE: one-pass E[x^2]-E[x]^2 is fine for randomly-initialized nets; use a
    # shifted/two-pass scheme if reused with trained weights.
    mean = jnp.sum(acc, axis=0, keepdims=True) * inv_m
    var = jnp.sum(acc * acc, axis=0, keepdims=True) * inv_m - mean * mean
    scale = g_ref[...] * jax.lax.rsqrt(var + eps)
    shift = b_ref[...] - mean * scale

    out = acc * scale + shift
    if has_residual:
        out = out + res_ref[...].astype(jnp.float32)
    if relu:
        out = jnp.maximum(out, 0.0)
    o_ref[...] = out.astype(o_ref.dtype)           # bf16 activation store


def _pool_linear_kernel(x_ref, w_ref, b_ref, o_ref):
    """Fused global average pool (over H*W) + Linear (lane-padded classes)."""
    pooled = jnp.mean(x_ref[...].astype(jnp.float32), axis=1)        # (N, C)
    o_ref[...] = (jnp.dot(pooled, w_ref[...],
                          preferred_element_type=jnp.float32) + b_ref[...])


# ---------------------------------------------------------------------------
# Wrappers
# ---------------------------------------------------------------------------
def _fused_conv_bn(patches, w, gamma, beta, residual, relu):
    m, k = patches.shape
    c = w.shape[1]
    assert m <= _MAX_SINGLE_STEP_ROWS, "single-step fused conv: M too large"

    args = [patches, w, gamma, beta]
    in_specs = [
        pl.BlockSpec((m, k), lambda i: (0, 0)),
        pl.BlockSpec((k, c), lambda i: (0, 0)),
        pl.BlockSpec((1, c), lambda i: (0, 0)),
        pl.BlockSpec((1, c), lambda i: (0, 0)),
    ]
    if residual is not None:
        args.append(residual)
        in_specs.append(pl.BlockSpec((m, c), lambda i: (0, 0)))

    kern = functools.partial(_conv_bn_act_kernel, relu=relu, eps=_EPS,
                             inv_m=1.0 / m, has_residual=residual is not None)
    res_bytes = m * c * 2 if residual is not None else 0
    cost = pl.CostEstimate(
        flops=2 * m * k * c, transcendentals=c,
        bytes_accessed=m * k * 2 + k * c * 2 + 2 * c * 4 + m * c * 2 + res_bytes)

    return pl.pallas_call(
        kern,
        grid=(1,),
        in_specs=in_specs,
        out_specs=pl.BlockSpec((m, c), lambda i: (0, 0)),
        out_shape=jax.ShapeDtypeStruct((m, c), jnp.bfloat16),
        compiler_params=pltpu.CompilerParams(
            dimension_semantics=("arbitrary",),
            vmem_limit_bytes=_VMEM_LIMIT),
        cost_estimate=cost,
    )(*args)


def _im2col(x, kh, kw, stride, pad):
    """HBM im2col glue (tiny at this size); see TODO(synk) at file top."""
    n, h, w, c = x.shape
    ho = (h + 2 * pad - kh) // stride + 1
    wo = (w + 2 * pad - kw) // stride + 1
    if pad:
        x = jnp.pad(x, ((0, 0), (pad, pad), (pad, pad), (0, 0)))
    cols = [x[:, i:i + stride * ho:stride, j:j + stride * wo:stride, :]
            for i in range(kh) for j in range(kw)]
    patches = cols[0] if len(cols) == 1 else jnp.concatenate(cols, axis=-1)
    return patches.reshape(n * ho * wo, kh * kw * c), ho, wo


def conv_bn(x_nhwc, w_mat, kh, kw, stride, pad, gamma, beta,
            residual=None, relu=True):
    """Conv2d(bias=False) + BatchNorm2d(train-mode stats) [+res] [+ReLU]."""
    n = x_nhwc.shape[0]
    c_out = w_mat.shape[1]
    patches, ho, wo = _im2col(x_nhwc, kh, kw, stride, pad)
    res = None if residual is None else residual.reshape(-1, c_out)
    out = _fused_conv_bn(patches, w_mat, gamma, beta, res, relu)
    return out.reshape(n, ho, wo, c_out)


def pool_linear(x_nhwc, w_t, b):
    """F.avg_pool2d(x, W) + view + Linear, fused; classes padded to 128 lanes."""
    n, h, w, c = x_nhwc.shape
    ncp = w_t.shape[1]
    x3 = x_nhwc.reshape(n, h * w, c)
    return pl.pallas_call(
        _pool_linear_kernel,
        grid=(1,),
        in_specs=[
            pl.BlockSpec((n, h * w, c), lambda i: (0, 0, 0)),
            pl.BlockSpec((c, ncp), lambda i: (0, 0)),
            pl.BlockSpec((1, ncp), lambda i: (0, 0)),
        ],
        out_specs=pl.BlockSpec((n, ncp), lambda i: (0, 0)),
        out_shape=jax.ShapeDtypeStruct((n, ncp), jnp.float32),
        compiler_params=pltpu.CompilerParams(vmem_limit_bytes=_VMEM_LIMIT),
    )(x3, w_t, b)


# ---------------------------------------------------------------------------
# ResNet forward (BasicBlock, expansion=1) — mirrors the PyTorch module
# ---------------------------------------------------------------------------
def basic_block(x, p):
    s = p["stride"]
    out = conv_bn(x, p["conv1_w"], 3, 3, s, 1, p["bn1_g"], p["bn1_b"], relu=True)
    if "ds_w" in p:
        residual = conv_bn(x, p["ds_w"], 1, 1, s, 0, p["bn3_g"], p["bn3_b"],
                           relu=False)
    else:
        residual = x
    out = conv_bn(out, p["conv2_w"], 3, 3, 1, 1, p["bn2_g"], p["bn2_b"],
                  residual=residual, relu=True)
    return out


def resnet_forward(x_nchw, params):
    x = jnp.transpose(x_nchw, (0, 2, 3, 1))                      # NCHW -> NHWC
    # Pad RGB channels to 8 (zero channels; matching weight rows are zero).
    x = jnp.pad(x, ((0, 0), (0, 0), (0, 0),
                    (0, params["stem_cin_p"] - x.shape[-1])))
    x = x.astype(jnp.bfloat16)
    out = conv_bn(x, params["conv1_w"], 3, 3, 1, 1,
                  params["bn_g"], params["bn_b"], relu=True)
    for blk in params["layer1"] + params["layer2"] + params["layer3"]:
        out = basic_block(out, blk)
    logits = pool_linear(out, params["lin_w_t"], params["lin_b"])
    return logits[:, :params["num_classes"]]


# ---------------------------------------------------------------------------
# Deterministic parameter init (mirrors weights_init), packed for the kernels
# ---------------------------------------------------------------------------
def init_params(key, num_blocks=(1, 1, 1), num_classes=10):
    _outputs = [32, 64, 128]
    stem_cin, stem_cin_p = 3, 8
    keys = iter(jax.random.split(key, 64))

    def conv_w(cout, cin, k, cin_p=None):
        # kaiming_normal_(mode='fan_out', nonlinearity='relu'): std=sqrt(2/fan_out)
        cin_p = cin if cin_p is None else cin_p
        std = math.sqrt(2.0 / (cout * k * k))
        w = jax.random.normal(next(keys), (cout, cin, k, k), jnp.float32) * std
        w = jnp.transpose(w, (2, 3, 1, 0))                       # (k, k, cin, cout)
        if cin_p != cin:
            w = jnp.pad(w, ((0, 0), (0, 0), (0, cin_p - cin), (0, 0)))
        return w.reshape(k * k * cin_p, cout).astype(jnp.bfloat16)

    def bn_gb(c):  # BatchNorm2d(affine=True) after weights_init: gamma=1, beta=0
        return jnp.ones((1, c), jnp.float32), jnp.zeros((1, c), jnp.float32)

    g0, b0 = bn_gb(_outputs[0])
    params = {
        "stem_cin_p": stem_cin_p,
        "num_classes": num_classes,
        "conv1_w": conv_w(_outputs[0], stem_cin, 3, stem_cin_p),
        "bn_g": g0, "bn_b": b0,
    }
    in_planes = _outputs[0]
    layers = []
    for planes, nb, stride0 in zip(_outputs, num_blocks, (1, 2, 2)):
        blocks = []
        for s in [stride0] + [1] * (nb - 1):
            g1, b1 = bn_gb(planes)
            g2, b2 = bn_gb(planes)
            blk = {
                "stride": s,
                "conv1_w": conv_w(planes, in_planes, 3),
                "bn1_g": g1, "bn1_b": b1,
                "conv2_w": conv_w(planes, planes, 3),
                "bn2_g": g2, "bn2_b": b2,
            }
            if s != 1 or in_planes != planes:
                g3, b3 = bn_gb(planes)
                blk["ds_w"] = conv_w(planes, in_planes, 1)
                blk["bn3_g"] = g3
                blk["bn3_b"] = b3
            blocks.append(blk)
            in_planes = planes
        layers.append(blocks)
    params["layer1"], params["layer2"], params["layer3"] = layers

    # nn.Linear: weight ~ N(0, 0.01), bias = 0; stored transposed and padded to
    # 128 output lanes (zero columns) for a lane-dense final store.
    ncls_p = 128
    lin_w = jax.random.normal(next(keys), (num_classes, _outputs[2]),
                              jnp.float32) * 0.01
    lin_w_t = jnp.zeros((_outputs[2], ncls_p), jnp.float32)
    lin_w_t = lin_w_t.at[:, :num_classes].set(jnp.transpose(lin_w))
    params["lin_w_t"] = lin_w_t
    params["lin_b"] = jnp.zeros((1, ncls_p), jnp.float32)
    return params


if __name__ == "__main__":
    key = jax.random.PRNGKey(0)
    pkey, xkey = jax.random.split(key)
    # ResNet(BasicBlock, num_blocks=[1, 1, 1], num_classes=10), small input.
    params = init_params(pkey, num_blocks=(1, 1, 1), num_classes=10)
    x = jax.random.normal(xkey, (2, 3, 16, 16), jnp.float32)     # NCHW like PyTorch

    fwd = jax.jit(lambda inp: resnet_forward(inp, params))
    out = jax.block_until_ready(fwd(x))
    assert out.shape == (2, 10) and out.dtype == jnp.float32
    assert bool(jnp.all(jnp.isfinite(out)))
    print("KERNEL_OK")
</pallas_src>

<mosaic_0001>
module attributes {stable_mosaic.version = 11 : i64} {
  func.func @_conv_bn_act_kernel(%arg0: i32, %arg1: memref<512x72xbf16, #tpu.memory_space<vmem>>, %arg2: memref<72x32xbf16, #tpu.memory_space<vmem>>, %arg3: memref<1x32xf32, #tpu.memory_space<vmem>>, %arg4: memref<1x32xf32, #tpu.memory_space<vmem>>, %arg5: memref<512x32xbf16, #tpu.memory_space<vmem>>) attributes {dimension_semantics = [#tpu.dimension_semantics<arbitrary>], iteration_bounds = array<i64: 1>, scalar_prefetch = 0 : i64, scratch_operands = 0 : i64, tpu.core_type = #tpu.core_type<tc>, window_params = [{pipeline_mode = #tpu.pipeline_mode<synchronous>, transform_indices = @transform_0, window_bounds = array<i64: 512, 72>}, {pipeline_mode = #tpu.pipeline_mode<synchronous>, transform_indices = @transform_1, window_bounds = array<i64: 72, 32>}, {pipeline_mode = #tpu.pipeline_mode<synchronous>, transform_indices = @transform_2, window_bounds = array<i64: 1, 32>}, {pipeline_mode = #tpu.pipeline_mode<synchronous>, transform_indices = @transform_3, window_bounds = array<i64: 1, 32>}, {pipeline_mode = #tpu.pipeline_mode<synchronous>, transform_indices = @transform_4, window_bounds = array<i64: 512, 32>}]} {
    %c0 = arith.constant 0 : index
    %c0_0 = arith.constant 0 : index
    %0 = vector.load %arg1[%c0, %c0_0] : memref<512x72xbf16, #tpu.memory_space<vmem>>, vector<512x72xbf16>
    %c0_1 = arith.constant 0 : index
    %c0_2 = arith.constant 0 : index
    %1 = vector.load %arg2[%c0_1, %c0_2] : memref<72x32xbf16, #tpu.memory_space<vmem>>, vector<72x32xbf16>
    %cst = arith.constant dense<0.000000e+00> : vector<512x32xf32>
    %2 = tpu.matmul %0, %1, %cst {dimension_numbers = #tpu.dot_dimension_numbers<[1], [0], [0], [1], [0, 0, 1, 1], [], []>} : vector<512x72xbf16>, vector<72x32xbf16>, vector<512x32xf32> -> vector<512x32xf32>
    %cst_3 = arith.constant dense<0.000000e+00> : vector<32xf32>
    %3 = vector.multi_reduction <add>, %2, %cst_3 [0] : vector<512x32xf32> to vector<32xf32>
    %4 = vector.shape_cast %3 : vector<32xf32> to vector<1x32xf32>
    %cst_4 = arith.constant 0.001953125 : f32
    %5 = vector.broadcast %cst_4 : f32 to vector<1x32xf32>
    %6 = arith.mulf %4, %5 : vector<1x32xf32>
    %7 = arith.mulf %2, %2 : vector<512x32xf32>
    %cst_5 = arith.constant dense<0.000000e+00> : vector<32xf32>
    %8 = vector.multi_reduction <add>, %7, %cst_5 [0] : vector<512x32xf32> to vector<32xf32>
    %9 = vector.shape_cast %8 : vector<32xf32> to vector<1x32xf32>
    %cst_6 = arith.constant 0.001953125 : f32
    %10 = vector.broadcast %cst_6 : f32 to vector<1x32xf32>
    %11 = arith.mulf %9, %10 : vector<1x32xf32>
    %12 = arith.mulf %6, %6 : vector<1x32xf32>
    %13 = arith.subf %11, %12 : vector<1x32xf32>
    %c0_7 = arith.constant 0 : index
    %c0_8 = arith.constant 0 : index
    %14 = vector.load %arg3[%c0_7, %c0_8] : memref<1x32xf32, #tpu.memory_space<vmem>>, vector<1x32xf32>
    %cst_9 = arith.constant 9.99999974E-6 : f32
    %15 = vector.broadcast %cst_9 : f32 to vector<1x32xf32>
    %16 = arith.addf %13, %15 : vector<1x32xf32>
    %17 = math.rsqrt %16 : vector<1x32xf32>
    %18 = arith.mulf %14, %17 : vector<1x32xf32>
    %c0_10 = arith.constant 0 : index
    %c0_11 = arith.constant 0 : index
    %19 = vector.load %arg4[%c0_10, %c0_11] : memref<1x32xf32, #tpu.memory_space<vmem>>, vector<1x32xf32>
    %20 = arith.mulf %6, %18 : vector<1x32xf32>
    %21 = arith.subf %19, %20 : vector<1x32xf32>
    %22 = vector.broadcast %18 : vector<1x32xf32> to vector<512x32xf32>
    %23 = arith.mulf %2, %22 : vector<512x32xf32>
    %24 = vector.broadcast %21 : vector<1x32xf32> to vector<512x32xf32>
    %25 = arith.addf %23, %24 : vector<512x32xf32>
    %cst_12 = arith.constant 0.000000e+00 : f32
    %26 = vector.broadcast %cst_12 : f32 to vector<512x32xf32>
    %27 = arith.maximumf %25, %26 : vector<512x32xf32>
    %28 = arith.truncf %27 : vector<512x32xf32> to vector<512x32xbf16>
    %c0_13 = arith.constant 0 : index
    %c0_14 = arith.constant 0 : index
    %29 = vector.load %arg5[%c0_13, %c0_14] : memref<512x32xbf16, #tpu.memory_space<vmem>>, vector<512x32xbf16>
    tpu.vector_store %arg5[%c0_13, %c0_14], %28 {strides = array<i32>} : memref<512x32xbf16, #tpu.memory_space<vmem>>, vector<512x32xbf16>,
    return
  }
  func.func @transform_0(%arg0: i32) -> (i32, i32) {
    %c0_i32 = arith.constant 0 : i32
    %c0_i32_0 = arith.constant 0 : i32
    %c0_i32_1 = arith.constant 0 : i32
    return %c0_i32, %c0_i32_0 : i32, i32
  }
  func.func @transform_1(%arg0: i32) -> (i32, i32) {
    %c0_i32 = arith.constant 0 : i32
    %c0_i32_0 = arith.constant 0 : i32
    %c0_i32_1 = arith.constant 0 : i32
    return %c0_i32, %c0_i32_0 : i32, i32
  }
  func.func @transform_2(%arg0: i32) -> (i32, i32) {
    %c0_i32 = arith.constant 0 : i32
    %c0_i32_0 = arith.constant 0 : i32
    %c0_i32_1 = arith.constant 0 : i32
    return %c0_i32, %c0_i32_0 : i32, i32
  }
  func.func @transform_3(%arg0: i32) -> (i32, i32) {
    %c0_i32 = arith.constant 0 : i32
    %c0_i32_0 = arith.constant 0 : i32
    %c0_i32_1 = arith.constant 0 : i32
    return %c0_i32, %c0_i32_0 : i32, i32
  }
  func.func @transform_4(%arg0: i32) -> (i32, i32) {
    %c0_i32 = arith.constant 0 : i32
    %c0_i32_0 = arith.constant 0 : i32
    %c0_i32_1 = arith.constant 0 : i32
    return %c0_i32, %c0_i32_0 : i32, i32
  }
}

module attributes {stable_mosaic.version = 11 : i64} {
  func.func @_conv_bn_act_kernel(%arg0: i32, %arg1: memref<512x288xbf16, #tpu.memory_space<vmem>>, %arg2: memref<288x32xbf16, #tpu.memory_space<vmem>>, %arg3: memref<1x32xf32, #tpu.memory_space<vmem>>, %arg4: memref<1x32xf32, #tpu.memory_space<vmem>>, %arg5: memref<512x32xbf16, #tpu.memory_space<vmem>>) attributes {dimension_semantics = [#tpu.dimension_semantics<arbitrary>], iteration_bounds = array<i64: 1>, scalar_prefetch = 0 : i64, scratch_operands = 0 : i64, tpu.core_type = #tpu.core_type<tc>, window_params = [{pipeline_mode = #tpu.pipeline_mode<synchronous>, transform_indices = @transform_0, window_bounds = array<i64: 512, 288>}, {pipeline_mode = #tpu.pipeline_mode<synchronous>, transform_indices = @transform_1, window_bounds = array<i64: 288, 32>}, {pipeline_mode = #tpu.pipeline_mode<synchronous>, transform_indices = @transform_2, window_bounds = array<i64: 1, 32>}, {pipeline_mode = #tpu.pipeline_mode<synchronous>, transform_indices = @transform_3, window_bounds = array<i64: 1, 32>}, {pipeline_mode = #tpu.pipeline_mode<synchronous>, transform_indices = @transform_4, window_bounds = array<i64: 512, 32>}]} {
    %c0 = arith.constant 0 : index
    %c0_0 = arith.constant 0 : index
    %0 = vector.load %arg1[%c0, %c0_0] : memref<512x288xbf16, #tpu.memory_space<vmem>>, vector<512x288xbf16>
    %c0_1 = arith.constant 0 : index
    %c0_2 = arith.constant 0 : index
    %1 = vector.load %arg2[%c0_1, %c0_2] : memref<288x32xbf16, #tpu.memory_space<vmem>>, vector<288x32xbf16>
    %cst = arith.constant dense<0.000000e+00> : vector<512x32xf32>
    %2 = tpu.matmul %0, %1, %cst {dimension_numbers = #tpu.dot_dimension_numbers<[1], [0], [0], [1], [0, 0, 1, 1], [], []>} : vector<512x288xbf16>, vector<288x32xbf16>, vector<512x32xf32> -> vector<512x32xf32>
    %cst_3 = arith.constant dense<0.000000e+00> : vector<32xf32>
    %3 = vector.multi_reduction <add>, %2, %cst_3 [0] : vector<512x32xf32> to vector<32xf32>
    %4 = vector.shape_cast %3 : vector<32xf32> to vector<1x32xf32>
    %cst_4 = arith.constant 0.001953125 : f32
    %5 = vector.broadcast %cst_4 : f32 to vector<1x32xf32>
    %6 = arith.mulf %4, %5 : vector<1x32xf32>
    %7 = arith.mulf %2, %2 : vector<512x32xf32>
    %cst_5 = arith.constant dense<0.000000e+00> : vector<32xf32>
    %8 = vector.multi_reduction <add>, %7, %cst_5 [0] : vector<512x32xf32> to vector<32xf32>
    %9 = vector.shape_cast %8 : vector<32xf32> to vector<1x32xf32>
    %cst_6 = arith.constant 0.001953125 : f32
    %10 = vector.broadcast %cst_6 : f32 to vector<1x32xf32>
    %11 = arith.mulf %9, %10 : vector<1x32xf32>
    %12 = arith.mulf %6, %6 : vector<1x32xf32>
    %13 = arith.subf %11, %12 : vector<1x32xf32>
    %c0_7 = arith.constant 0 : index
    %c0_8 = arith.constant 0 : index
    %14 = vector.load %arg3[%c0_7, %c0_8] : memref<1x32xf32, #tpu.memory_space<vmem>>, vector<1x32xf32>
    %cst_9 = arith.constant 9.99999974E-6 : f32
    %15 = vector.broadcast %cst_9 : f32 to vector<1x32xf32>
    %16 = arith.addf %13, %15 : vector<1x32xf32>
    %17 = math.rsqrt %16 : vector<1x32xf32>
    %18 = arith.mulf %14, %17 : vector<1x32xf32>
    %c0_10 = arith.constant 0 : index
    %c0_11 = arith.constant 0 : index
    %19 = vector.load %arg4[%c0_10, %c0_11] : memref<1x32xf32, #tpu.memory_space<vmem>>, vector<1x32xf32>
    %20 = arith.mulf %6, %18 : vector<1x32xf32>
    %21 = arith.subf %19, %20 : vector<1x32xf32>
    %22 = vector.broadcast %18 : vector<1x32xf32> to vector<512x32xf32>
    %23 = arith.mulf %2, %22 : vector<512x32xf32>
    %24 = vector.broadcast %21 : vector<1x32xf32> to vector<512x32xf32>
    %25 = arith.addf %23, %24 : vector<512x32xf32>
    %cst_12 = arith.constant 0.000000e+00 : f32
    %26 = vector.broadcast %cst_12 : f32 to vector<512x32xf32>
    %27 = arith.maximumf %25, %26 : vector<512x32xf32>
    %28 = arith.truncf %27 : vector<512x32xf32> to vector<512x32xbf16>
    %c0_13 = arith.constant 0 : index
    %c0_14 = arith.constant 0 : index
    %29 = vector.load %arg5[%c0_13, %c0_14] : memref<512x32xbf16, #tpu.memory_space<vmem>>, vector<512x32xbf16>
    tpu.vector_store %arg5[%c0_13, %c0_14], %28 {strides = array<i32>} : memref<512x32xbf16, #tpu.memory_space<vmem>>, vector<512x32xbf16>,
    return
  }
  func.func @transform_0(%arg0: i32) -> (i32, i32) {
    %c0_i32 = arith.constant 0 : i32
    %c0_i32_0 = arith.constant 0 : i32
    %c0_i32_1 = arith.constant 0 : i32
    return %c0_i32, %c0_i32_0 : i32, i32
  }
  func.func @transform_1(%arg0: i32) -> (i32, i32) {
    %c0_i32 = arith.constant 0 : i32
    %c0_i32_0 = arith.constant 0 : i32
    %c0_i32_1 = arith.constant 0 : i32
    return %c0_i32, %c0_i32_0 : i32, i32
  }
  func.func @transform_2(%arg0: i32) -> (i32, i32) {
    %c0_i32 = arith.constant 0 : i32
    %c0_i32_0 = arith.constant 0 : i32
    %c0_i32_1 = arith.constant 0 : i32
    return %c0_i32, %c0_i32_0 : i32, i32
  }
  func.func @transform_3(%arg0: i32) -> (i32, i32) {
    %c0_i32 = arith.constant 0 : i32
    %c0_i32_0 = arith.constant 0 : i32
    %c0_i32_1 = arith.constant 0 : i32
    return %c0_i32, %c0_i32_0 : i32, i32
  }
  func.func @transform_4(%arg0: i32) -> (i32, i32) {
    %c0_i32 = arith.constant 0 : i32
    %c0_i32_0 = arith.constant 0 : i32
    %c0_i32_1 = arith.constant 0 : i32
    return %c0_i32, %c0_i32_0 : i32, i32
  }
}

module attributes {stable_mosaic.version = 11 : i64} {
  func.func @_conv_bn_act_kernel(%arg0: i32, %arg1: memref<512x288xbf16, #tpu.memory_space<vmem>>, %arg2: memref<288x32xbf16, #tpu.memory_space<vmem>>, %arg3: memref<1x32xf32, #tpu.memory_space<vmem>>, %arg4: memref<1x32xf32, #tpu.memory_space<vmem>>, %arg5: memref<512x32xbf16, #tpu.memory_space<vmem>>, %arg6: memref<512x32xbf16, #tpu.memory_space<vmem>>) attributes {dimension_semantics = [#tpu.dimension_semantics<arbitrary>], iteration_bounds = array<i64: 1>, scalar_prefetch = 0 : i64, scratch_operands = 0 : i64, tpu.core_type = #tpu.core_type<tc>, window_params = [{pipeline_mode = #tpu.pipeline_mode<synchronous>, transform_indices = @transform_0, window_bounds = array<i64: 512, 288>}, {pipeline_mode = #tpu.pipeline_mode<synchronous>, transform_indices = @transform_1, window_bounds = array<i64: 288, 32>}, {pipeline_mode = #tpu.pipeline_mode<synchronous>, transform_indices = @transform_2, window_bounds = array<i64: 1, 32>}, {pipeline_mode = #tpu.pipeline_mode<synchronous>, transform_indices = @transform_3, window_bounds = array<i64: 1, 32>}, {pipeline_mode = #tpu.pipeline_mode<synchronous>, transform_indices = @transform_4, window_bounds = array<i64: 512, 32>}, {pipeline_mode = #tpu.pipeline_mode<synchronous>, transform_indices = @transform_5, window_bounds = array<i64: 512, 32>}]} {
    %c0 = arith.constant 0 : index
    %c0_0 = arith.constant 0 : index
    %0 = vector.load %arg1[%c0, %c0_0] : memref<512x288xbf16, #tpu.memory_space<vmem>>, vector<512x288xbf16>
    %c0_1 = arith.constant 0 : index
    %c0_2 = arith.constant 0 : index
    %1 = vector.load %arg2[%c0_1, %c0_2] : memref<288x32xbf16, #tpu.memory_space<vmem>>, vector<288x32xbf16>
    %cst = arith.constant dense<0.000000e+00> : vector<512x32xf32>
    %2 = tpu.matmul %0, %1, %cst {dimension_numbers = #tpu.dot_dimension_numbers<[1], [0], [0], [1], [0, 0, 1, 1], [], []>} : vector<512x288xbf16>, vector<288x32xbf16>, vector<512x32xf32> -> vector<512x32xf32>
    %cst_3 = arith.constant dense<0.000000e+00> : vector<32xf32>
    %3 = vector.multi_reduction <add>, %2, %cst_3 [0] : vector<512x32xf32> to vector<32xf32>
    %4 = vector.shape_cast %3 : vector<32xf32> to vector<1x32xf32>
    %cst_4 = arith.constant 0.001953125 : f32
    %5 = vector.broadcast %cst_4 : f32 to vector<1x32xf32>
    %6 = arith.mulf %4, %5 : vector<1x32xf32>
    %7 = arith.mulf %2, %2 : vector<512x32xf32>
    %cst_5 = arith.constant dense<0.000000e+00> : vector<32xf32>
    %8 = vector.multi_reduction <add>, %7, %cst_5 [0] : vector<512x32xf32> to vector<32xf32>
    %9 = vector.shape_cast %8 : vector<32xf32> to vector<1x32xf32>
    %cst_6 = arith.constant 0.001953125 : f32
    %10 = vector.broadcast %cst_6 : f32 to vector<1x32xf32>
    %11 = arith.mulf %9, %10 : vector<1x32xf32>
    %12 = arith.mulf %6, %6 : vector<1x32xf32>
    %13 = arith.subf %11, %12 : vector<1x32xf32>
    %c0_7 = arith.constant 0 : index
    %c0_8 = arith.constant 0 : index
    %14 = vector.load %arg3[%c0_7, %c0_8] : memref<1x32xf32, #tpu.memory_space<vmem>>, vector<1x32xf32>
    %cst_9 = arith.constant 9.99999974E-6 : f32
    %15 = vector.broadcast %cst_9 : f32 to vector<1x32xf32>
    %16 = arith.addf %13, %15 : vector<1x32xf32>
    %17 = math.rsqrt %16 : vector<1x32xf32>
    %18 = arith.mulf %14, %17 : vector<1x32xf32>
    %c0_10 = arith.constant 0 : index
    %c0_11 = arith.constant 0 : index
    %19 = vector.load %arg4[%c0_10, %c0_11] : memref<1x32xf32, #tpu.memory_space<vmem>>, vector<1x32xf32>
    %20 = arith.mulf %6, %18 : vector<1x32xf32>
    %21 = arith.subf %19, %20 : vector<1x32xf32>
    %22 = vector.broadcast %18 : vector<1x32xf32> to vector<512x32xf32>
    %23 = arith.mulf %2, %22 : vector<512x32xf32>
    %24 = vector.broadcast %21 : vector<1x32xf32> to vector<512x32xf32>
    %25 = arith.addf %23, %24 : vector<512x32xf32>
    %c0_12 = arith.constant 0 : index
    %c0_13 = arith.constant 0 : index
    %26 = vector.load %arg5[%c0_12, %c0_13] : memref<512x32xbf16, #tpu.memory_space<vmem>>, vector<512x32xbf16>
    %27 = arith.extf %26 : vector<512x32xbf16> to vector<512x32xf32>
    %28 = arith.addf %25, %27 : vector<512x32xf32>
    %cst_14 = arith.constant 0.000000e+00 : f32
    %29 = vector.broadcast %cst_14 : f32 to vector<512x32xf32>
    %30 = arith.maximumf %28, %29 : vector<512x32xf32>
    %31 = arith.truncf %30 : vector<512x32xf32> to vector<512x32xbf16>
    %c0_15 = arith.constant 0 : index
    %c0_16 = arith.constant 0 : index
    %32 = vector.load %arg6[%c0_15, %c0_16] : memref<512x32xbf16, #tpu.memory_space<vmem>>, vector<512x32xbf16>
    tpu.vector_store %arg6[%c0_15, %c0_16], %31 {strides = array<i32>} : memref<512x32xbf16, #tpu.memory_space<vmem>>, vector<512x32xbf16>,
    return
  }
  func.func @transform_0(%arg0: i32) -> (i32, i32) {
    %c0_i32 = arith.constant 0 : i32
    %c0_i32_0 = arith.constant 0 : i32
    %c0_i32_1 = arith.constant 0 : i32
    return %c0_i32, %c0_i32_0 : i32, i32
  }
  func.func @transform_1(%arg0: i32) -> (i32, i32) {
    %c0_i32 = arith.constant 0 : i32
    %c0_i32_0 = arith.constant 0 : i32
    %c0_i32_1 = arith.constant 0 : i32
    return %c0_i32, %c0_i32_0 : i32, i32
  }
  func.func @transform_2(%arg0: i32) -> (i32, i32) {
    %c0_i32 = arith.constant 0 : i32
    %c0_i32_0 = arith.constant 0 : i32
    %c0_i32_1 = arith.constant 0 : i32
    return %c0_i32, %c0_i32_0 : i32, i32
  }
  func.func @transform_3(%arg0: i32) -> (i32, i32) {
    %c0_i32 = arith.constant 0 : i32
    %c0_i32_0 = arith.constant 0 : i32
    %c0_i32_1 = arith.constant 0 : i32
    return %c0_i32, %c0_i32_0 : i32, i32
  }
  func.func @transform_4(%arg0: i32) -> (i32, i32) {
    %c0_i32 = arith.constant 0 : i32
    %c0_i32_0 = arith.constant 0 : i32
    %c0_i32_1 = arith.constant 0 : i32
    return %c0_i32, %c0_i32_0 : i32, i32
  }
  func.func @transform_5(%arg0: i32) -> (i32, i32) {
    %c0_i32 = arith.constant 0 : i32
    %c0_i32_0 = arith.constant 0 : i32
    %c0_i32_1 = arith.constant 0 : i32
    return %c0_i32, %c0_i32_0 : i32, i32
  }
}

module attributes {stable_mosaic.version = 11 : i64} {
  func.func @_conv_bn_act_kernel(%arg0: i32, %arg1: memref<128x288xbf16, #tpu.memory_space<vmem>>, %arg2: memref<288x64xbf16, #tpu.memory_space<vmem>>, %arg3: memref<1x64xf32, #tpu.memory_space<vmem>>, %arg4: memref<1x64xf32, #tpu.memory_space<vmem>>, %arg5: memref<128x64xbf16, #tpu.memory_space<vmem>>) attributes {dimension_semantics = [#tpu.dimension_semantics<arbitrary>], iteration_bounds = array<i64: 1>, scalar_prefetch = 0 : i64, scratch_operands = 0 : i64, tpu.core_type = #tpu.core_type<tc>, window_params = [{pipeline_mode = #tpu.pipeline_mode<synchronous>, transform_indices = @transform_0, window_bounds = array<i64: 128, 288>}, {pipeline_mode = #tpu.pipeline_mode<synchronous>, transform_indices = @transform_1, window_bounds = array<i64: 288, 64>}, {pipeline_mode = #tpu.pipeline_mode<synchronous>, transform_indices = @transform_2, window_bounds = array<i64: 1, 64>}, {pipeline_mode = #tpu.pipeline_mode<synchronous>, transform_indices = @transform_3, window_bounds = array<i64: 1, 64>}, {pipeline_mode = #tpu.pipeline_mode<synchronous>, transform_indices = @transform_4, window_bounds = array<i64: 128, 64>}]} {
    %c0 = arith.constant 0 : index
    %c0_0 = arith.constant 0 : index
    %0 = vector.load %arg1[%c0, %c0_0] : memref<128x288xbf16, #tpu.memory_space<vmem>>, vector<128x288xbf16>
    %c0_1 = arith.constant 0 : index
    %c0_2 = arith.constant 0 : index
    %1 = vector.load %arg2[%c0_1, %c0_2] : memref<288x64xbf16, #tpu.memory_space<vmem>>, vector<288x64xbf16>
    %cst = arith.constant dense<0.000000e+00> : vector<128x64xf32>
    %2 = tpu.matmul %0, %1, %cst {dimension_numbers = #tpu.dot_dimension_numbers<[1], [0], [0], [1], [0, 0, 1, 1], [], []>} : vector<128x288xbf16>, vector<288x64xbf16>, vector<128x64xf32> -> vector<128x64xf32>
    %cst_3 = arith.constant dense<0.000000e+00> : vector<64xf32>
    %3 = vector.multi_reduction <add>, %2, %cst_3 [0] : vector<128x64xf32> to vector<64xf32>
    %4 = vector.shape_cast %3 : vector<64xf32> to vector<1x64xf32>
    %cst_4 = arith.constant 7.812500e-03 : f32
    %5 = vector.broadcast %cst_4 : f32 to vector<1x64xf32>
    %6 = arith.mulf %4, %5 : vector<1x64xf32>
    %7 = arith.mulf %2, %2 : vector<128x64xf32>
    %cst_5 = arith.constant dense<0.000000e+00> : vector<64xf32>
    %8 = vector.multi_reduction <add>, %7, %cst_5 [0] : vector<128x64xf32> to vector<64xf32>
    %9 = vector.shape_cast %8 : vector<64xf32> to vector<1x64xf32>
    %cst_6 = arith.constant 7.812500e-03 : f32
    %10 = vector.broadcast %cst_6 : f32 to vector<1x64xf32>
    %11 = arith.mulf %9, %10 : vector<1x64xf32>
    %12 = arith.mulf %6, %6 : vector<1x64xf32>
    %13 = arith.subf %11, %12 : vector<1x64xf32>
    %c0_7 = arith.constant 0 : index
    %c0_8 = arith.constant 0 : index
    %14 = vector.load %arg3[%c0_7, %c0_8] : memref<1x64xf32, #tpu.memory_space<vmem>>, vector<1x64xf32>
    %cst_9 = arith.constant 9.99999974E-6 : f32
    %15 = vector.broadcast %cst_9 : f32 to vector<1x64xf32>
    %16 = arith.addf %13, %15 : vector<1x64xf32>
    %17 = math.rsqrt %16 : vector<1x64xf32>
    %18 = arith.mulf %14, %17 : vector<1x64xf32>
    %c0_10 = arith.constant 0 : index
    %c0_11 = arith.constant 0 : index
    %19 = vector.load %arg4[%c0_10, %c0_11] : memref<1x64xf32, #tpu.memory_space<vmem>>, vector<1x64xf32>
    %20 = arith.mulf %6, %18 : vector<1x64xf32>
    %21 = arith.subf %19, %20 : vector<1x64xf32>
    %22 = vector.broadcast %18 : vector<1x64xf32> to vector<128x64xf32>
    %23 = arith.mulf %2, %22 : vector<128x64xf32>
    %24 = vector.broadcast %21 : vector<1x64xf32> to vector<128x64xf32>
    %25 = arith.addf %23, %24 : vector<128x64xf32>
    %cst_12 = arith.constant 0.000000e+00 : f32
    %26 = vector.broadcast %cst_12 : f32 to vector<128x64xf32>
    %27 = arith.maximumf %25, %26 : vector<128x64xf32>
    %28 = arith.truncf %27 : vector<128x64xf32> to vector<128x64xbf16>
    %c0_13 = arith.constant 0 : index
    %c0_14 = arith.constant 0 : index
    %29 = vector.load %arg5[%c0_13, %c0_14] : memref<128x64xbf16, #tpu.memory_space<vmem>>, vector<128x64xbf16>
    tpu.vector_store %arg5[%c0_13, %c0_14], %28 {strides = array<i32>} : memref<128x64xbf16, #tpu.memory_space<vmem>>, vector<128x64xbf16>,
    return
  }
  func.func @transform_0(%arg0: i32) -> (i32, i32) {
    %c0_i32 = arith.constant 0 : i32
    %c0_i32_0 = arith.constant 0 : i32
    %c0_i32_1 = arith.constant 0 : i32
    return %c0_i32, %c0_i32_0 : i32, i32
  }
  func.func @transform_1(%arg0: i32) -> (i32, i32) {
    %c0_i32 = arith.constant 0 : i32
    %c0_i32_0 = arith.constant 0 : i32
    %c0_i32_1 = arith.constant 0 : i32
    return %c0_i32, %c0_i32_0 : i32, i32
  }
  func.func @transform_2(%arg0: i32) -> (i32, i32) {
    %c0_i32 = arith.constant 0 : i32
    %c0_i32_0 = arith.constant 0 : i32
    %c0_i32_1 = arith.constant 0 : i32
    return %c0_i32, %c0_i32_0 : i32, i32
  }
  func.func @transform_3(%arg0: i32) -> (i32, i32) {
    %c0_i32 = arith.constant 0 : i32
    %c0_i32_0 = arith.constant 0 : i32
    %c0_i32_1 = arith.constant 0 : i32
    return %c0_i32, %c0_i32_0 : i32, i32
  }
  func.func @transform_4(%arg0: i32) -> (i32, i32) {
    %c0_i32 = arith.constant 0 : i32
    %c0_i32_0 = arith.constant 0 : i32
    %c0_i32_1 = arith.constant 0 : i32
    return %c0_i32, %c0_i32_0 : i32, i32
  }
}

module attributes {stable_mosaic.version = 11 : i64} {
  func.func @_conv_bn_act_kernel(%arg0: i32, %arg1: memref<128x32xbf16, #tpu.memory_space<vmem>>, %arg2: memref<32x64xbf16, #tpu.memory_space<vmem>>, %arg3: memref<1x64xf32, #tpu.memory_space<vmem>>, %arg4: memref<1x64xf32, #tpu.memory_space<vmem>>, %arg5: memref<128x64xbf16, #tpu.memory_space<vmem>>) attributes {dimension_semantics = [#tpu.dimension_semantics<arbitrary>], iteration_bounds = array<i64: 1>, scalar_prefetch = 0 : i64, scratch_operands = 0 : i64, tpu.core_type = #tpu.core_type<tc>, window_params = [{pipeline_mode = #tpu.pipeline_mode<synchronous>, transform_indices = @transform_0, window_bounds = array<i64: 128, 32>}, {pipeline_mode = #tpu.pipeline_mode<synchronous>, transform_indices = @transform_1, window_bounds = array<i64: 32, 64>}, {pipeline_mode = #tpu.pipeline_mode<synchronous>, transform_indices = @transform_2, window_bounds = array<i64: 1, 64>}, {pipeline_mode = #tpu.pipeline_mode<synchronous>, transform_indices = @transform_3, window_bounds = array<i64: 1, 64>}, {pipeline_mode = #tpu.pipeline_mode<synchronous>, transform_indices = @transform_4, window_bounds = array<i64: 128, 64>}]} {
    %c0 = arith.constant 0 : index
    %c0_0 = arith.constant 0 : index
    %0 = vector.load %arg1[%c0, %c0_0] : memref<128x32xbf16, #tpu.memory_space<vmem>>, vector<128x32xbf16>
    %c0_1 = arith.constant 0 : index
    %c0_2 = arith.constant 0 : index
    %1 = vector.load %arg2[%c0_1, %c0_2] : memref<32x64xbf16, #tpu.memory_space<vmem>>, vector<32x64xbf16>
    %cst = arith.constant dense<0.000000e+00> : vector<128x64xf32>
    %2 = tpu.matmul %0, %1, %cst {dimension_numbers = #tpu.dot_dimension_numbers<[1], [0], [0], [1], [0, 0, 1, 1], [], []>} : vector<128x32xbf16>, vector<32x64xbf16>, vector<128x64xf32> -> vector<128x64xf32>
    %cst_3 = arith.constant dense<0.000000e+00> : vector<64xf32>
    %3 = vector.multi_reduction <add>, %2, %cst_3 [0] : vector<128x64xf32> to vector<64xf32>
    %4 = vector.shape_cast %3 : vector<64xf32> to vector<1x64xf32>
    %cst_4 = arith.constant 7.812500e-03 : f32
    %5 = vector.broadcast %cst_4 : f32 to vector<1x64xf32>
    %6 = arith.mulf %4, %5 : vector<1x64xf32>
    %7 = arith.mulf %2, %2 : vector<128x64xf32>
    %cst_5 = arith.constant dense<0.000000e+00> : vector<64xf32>
    %8 = vector.multi_reduction <add>, %7, %cst_5 [0] : vector<128x64xf32> to vector<64xf32>
    %9 = vector.shape_cast %8 : vector<64xf32> to vector<1x64xf32>
    %cst_6 = arith.constant 7.812500e-03 : f32
    %10 = vector.broadcast %cst_6 : f32 to vector<1x64xf32>
    %11 = arith.mulf %9, %10 : vector<1x64xf32>
    %12 = arith.mulf %6, %6 : vector<1x64xf32>
    %13 = arith.subf %11, %12 : vector<1x64xf32>
    %c0_7 = arith.constant 0 : index
    %c0_8 = arith.constant 0 : index
    %14 = vector.load %arg3[%c0_7, %c0_8] : memref<1x64xf32, #tpu.memory_space<vmem>>, vector<1x64xf32>
    %cst_9 = arith.constant 9.99999974E-6 : f32
    %15 = vector.broadcast %cst_9 : f32 to vector<1x64xf32>
    %16 = arith.addf %13, %15 : vector<1x64xf32>
    %17 = math.rsqrt %16 : vector<1x64xf32>
    %18 = arith.mulf %14, %17 : vector<1x64xf32>
    %c0_10 = arith.constant 0 : index
    %c0_11 = arith.constant 0 : index
    %19 = vector.load %arg4[%c0_10, %c0_11] : memref<1x64xf32, #tpu.memory_space<vmem>>, vector<1x64xf32>
    %20 = arith.mulf %6, %18 : vector<1x64xf32>
    %21 = arith.subf %19, %20 : vector<1x64xf32>
    %22 = vector.broadcast %18 : vector<1x64xf32> to vector<128x64xf32>
    %23 = arith.mulf %2, %22 : vector<128x64xf32>
    %24 = vector.broadcast %21 : vector<1x64xf32> to vector<128x64xf32>
    %25 = arith.addf %23, %24 : vector<128x64xf32>
    %26 = arith.truncf %25 : vector<128x64xf32> to vector<128x64xbf16>
    %c0_12 = arith.constant 0 : index
    %c0_13 = arith.constant 0 : index
    %27 = vector.load %arg5[%c0_12, %c0_13] : memref<128x64xbf16, #tpu.memory_space<vmem>>, vector<128x64xbf16>
    tpu.vector_store %arg5[%c0_12, %c0_13], %26 {strides = array<i32>} : memref<128x64xbf16, #tpu.memory_space<vmem>>, vector<128x64xbf16>,
    return
  }
  func.func @transform_0(%arg0: i32) -> (i32, i32) {
    %c0_i32 = arith.constant 0 : i32
    %c0_i32_0 = arith.constant 0 : i32
    %c0_i32_1 = arith.constant 0 : i32
    return %c0_i32, %c0_i32_0 : i32, i32
  }
  func.func @transform_1(%arg0: i32) -> (i32, i32) {
    %c0_i32 = arith.constant 0 : i32
    %c0_i32_0 = arith.constant 0 : i32
    %c0_i32_1 = arith.constant 0 : i32
    return %c0_i32, %c0_i32_0 : i32, i32
  }
  func.func @transform_2(%arg0: i32) -> (i32, i32) {
    %c0_i32 = arith.constant 0 : i32
    %c0_i32_0 = arith.constant 0 : i32
    %c0_i32_1 = arith.constant 0 : i32
    return %c0_i32, %c0_i32_0 : i32, i32
  }
  func.func @transform_3(%arg0: i32) -> (i32, i32) {
    %c0_i32 = arith.constant 0 : i32
    %c0_i32_0 = arith.constant 0 : i32
    %c0_i32_1 = arith.constant 0 : i32
    return %c0_i32, %c0_i32_0 : i32, i32
  }
  func.func @transform_4(%arg0: i32) -> (i32, i32) {
    %c0_i32 = arith.constant 0 : i32
    %c0_i32_0 = arith.constant 0 : i32
    %c0_i32_1 = arith.constant 0 : i32
    return %c0_i32, %c0_i32_0 : i32, i32
  }
}

module attributes {stable_mosaic.version = 11 : i64} {
  func.func @_conv_bn_act_kernel(%arg0: i32, %arg1: memref<128x576xbf16, #tpu.memory_space<vmem>>, %arg2: memref<576x64xbf16, #tpu.memory_space<vmem>>, %arg3: memref<1x64xf32, #tpu.memory_space<vmem>>, %arg4: memref<1x64xf32, #tpu.memory_space<vmem>>, %arg5: memref<128x64xbf16, #tpu.memory_space<vmem>>, %arg6: memref<128x64xbf16, #tpu.memory_space<vmem>>) attributes {dimension_semantics = [#tpu.dimension_semantics<arbitrary>], iteration_bounds = array<i64: 1>, scalar_prefetch = 0 : i64, scratch_operands = 0 : i64, tpu.core_type = #tpu.core_type<tc>, window_params = [{pipeline_mode = #tpu.pipeline_mode<synchronous>, transform_indices = @transform_0, window_bounds = array<i64: 128, 576>}, {pipeline_mode = #tpu.pipeline_mode<synchronous>, transform_indices = @transform_1, window_bounds = array<i64: 576, 64>}, {pipeline_mode = #tpu.pipeline_mode<synchronous>, transform_indices = @transform_2, window_bounds = array<i64: 1, 64>}, {pipeline_mode = #tpu.pipeline_mode<synchronous>, transform_indices = @transform_3, window_bounds = array<i64: 1, 64>}, {pipeline_mode = #tpu.pipeline_mode<synchronous>, transform_indices = @transform_4, window_bounds = array<i64: 128, 64>}, {pipeline_mode = #tpu.pipeline_mode<synchronous>, transform_indices = @transform_5, window_bounds = array<i64: 128, 64>}]} {
    %c0 = arith.constant 0 : index
    %c0_0 = arith.constant 0 : index
    %0 = vector.load %arg1[%c0, %c0_0] : memref<128x576xbf16, #tpu.memory_space<vmem>>, vector<128x576xbf16>
    %c0_1 = arith.constant 0 : index
    %c0_2 = arith.constant 0 : index
    %1 = vector.load %arg2[%c0_1, %c0_2] : memref<576x64xbf16, #tpu.memory_space<vmem>>, vector<576x64xbf16>
    %cst = arith.constant dense<0.000000e+00> : vector<128x64xf32>
    %2 = tpu.matmul %0, %1, %cst {dimension_numbers = #tpu.dot_dimension_numbers<[1], [0], [0], [1], [0, 0, 1, 1], [], []>} : vector<128x576xbf16>, vector<576x64xbf16>, vector<128x64xf32> -> vector<128x64xf32>
    %cst_3 = arith.constant dense<0.000000e+00> : vector<64xf32>
    %3 = vector.multi_reduction <add>, %2, %cst_3 [0] : vector<128x64xf32> to vector<64xf32>
    %4 = vector.shape_cast %3 : vector<64xf32> to vector<1x64xf32>
    %cst_4 = arith.constant 7.812500e-03 : f32
    %5 = vector.broadcast %cst_4 : f32 to vector<1x64xf32>
    %6 = arith.mulf %4, %5 : vector<1x64xf32>
    %7 = arith.mulf %2, %2 : vector<128x64xf32>
    %cst_5 = arith.constant dense<0.000000e+00> : vector<64xf32>
    %8 = vector.multi_reduction <add>, %7, %cst_5 [0] : vector<128x64xf32> to vector<64xf32>
    %9 = vector.shape_cast %8 : vector<64xf32> to vector<1x64xf32>
    %cst_6 = arith.constant 7.812500e-03 : f32
    %10 = vector.broadcast %cst_6 : f32 to vector<1x64xf32>
    %11 = arith.mulf %9, %10 : vector<1x64xf32>
    %12 = arith.mulf %6, %6 : vector<1x64xf32>
    %13 = arith.subf %11, %12 : vector<1x64xf32>
    %c0_7 = arith.constant 0 : index
    %c0_8 = arith.constant 0 : index
    %14 = vector.load %arg3[%c0_7, %c0_8] : memref<1x64xf32, #tpu.memory_space<vmem>>, vector<1x64xf32>
    %cst_9 = arith.constant 9.99999974E-6 : f32
    %15 = vector.broadcast %cst_9 : f32 to vector<1x64xf32>
    %16 = arith.addf %13, %15 : vector<1x64xf32>
    %17 = math.rsqrt %16 : vector<1x64xf32>
    %18 = arith.mulf %14, %17 : vector<1x64xf32>
    %c0_10 = arith.constant 0 : index
    %c0_11 = arith.constant 0 : index
    %19 = vector.load %arg4[%c0_10, %c0_11] : memref<1x64xf32, #tpu.memory_space<vmem>>, vector<1x64xf32>
    %20 = arith.mulf %6, %18 : vector<1x64xf32>
    %21 = arith.subf %19, %20 : vector<1x64xf32>
    %22 = vector.broadcast %18 : vector<1x64xf32> to vector<128x64xf32>
    %23 = arith.mulf %2, %22 : vector<128x64xf32>
    %24 = vector.broadcast %21 : vector<1x64xf32> to vector<128x64xf32>
    %25 = arith.addf %23, %24 : vector<128x64xf32>
    %c0_12 = arith.constant 0 : index
    %c0_13 = arith.constant 0 : index
    %26 = vector.load %arg5[%c0_12, %c0_13] : memref<128x64xbf16, #tpu.memory_space<vmem>>, vector<128x64xbf16>
    %27 = arith.extf %26 : vector<128x64xbf16> to vector<128x64xf32>
    %28 = arith.addf %25, %27 : vector<128x64xf32>
    %cst_14 = arith.constant 0.000000e+00 : f32
    %29 = vector.broadcast %cst_14 : f32 to vector<128x64xf32>
    %30 = arith.maximumf %28, %29 : vector<128x64xf32>
    %31 = arith.truncf %30 : vector<128x64xf32> to vector<128x64xbf16>
    %c0_15 = arith.constant 0 : index
    %c0_16 = arith.constant 0 : index
    %32 = vector.load %arg6[%c0_15, %c0_16] : memref<128x64xbf16, #tpu.memory_space<vmem>>, vector<128x64xbf16>
    tpu.vector_store %arg6[%c0_15, %c0_16], %31 {strides = array<i32>} : memref<128x64xbf16, #tpu.memory_space<vmem>>, vector<128x64xbf16>,
    return
  }
  func.func @transform_0(%arg0: i32) -> (i32, i32) {
    %c0_i32 = arith.constant 0 : i32
    %c0_i32_0 = arith.constant 0 : i32
    %c0_i32_1 = arith.constant 0 : i32
    return %c0_i32, %c0_i32_0 : i32, i32
  }
  func.func @transform_1(%arg0: i32) -> (i32, i32) {
    %c0_i32 = arith.constant 0 : i32
    %c0_i32_0 = arith.constant 0 : i32
    %c0_i32_1 = arith.constant 0 : i32
    return %c0_i32, %c0_i32_0 : i32, i32
  }
  func.func @transform_2(%arg0: i32) -> (i32, i32) {
    %c0_i32 = arith.constant 0 : i32
    %c0_i32_0 = arith.constant 0 : i32
    %c0_i32_1 = arith.constant 0 : i32
    return %c0_i32, %c0_i32_0 : i32, i32
  }
  func.func @transform_3(%arg0: i32) -> (i32, i32) {
    %c0_i32 = arith.constant 0 : i32
    %c0_i32_0 = arith.constant 0 : i32
    %c0_i32_1 = arith.constant 0 : i32
    return %c0_i32, %c0_i32_0 : i32, i32
  }
  func.func @transform_4(%arg0: i32) -> (i32, i32) {
    %c0_i32 = arith.constant 0 : i32
    %c0_i32_0 = arith.constant 0 : i32
    %c0_i32_1 = arith.constant 0 : i32
    return %c0_i32, %c0_i32_0 : i32, i32
  }
  func.func @transform_5(%arg0: i32) -> (i32, i32) {
    %c0_i32 = arith.constant 0 : i32
    %c0_i32_0 = arith.constant 0 : i32
    %c0_i32_1 = arith.constant 0 : i32
    return %c0_i32, %c0_i32_0 : i32, i32
  }
}

module attributes {stable_mosaic.version = 11 : i64} {
  func.func @_conv_bn_act_kernel(%arg0: i32, %arg1: memref<32x576xbf16, #tpu.memory_space<vmem>>, %arg2: memref<576x128xbf16, #tpu.memory_space<vmem>>, %arg3: memref<1x128xf32, #tpu.memory_space<vmem>>, %arg4: memref<1x128xf32, #tpu.memory_space<vmem>>, %arg5: memref<32x128xbf16, #tpu.memory_space<vmem>>) attributes {dimension_semantics = [#tpu.dimension_semantics<arbitrary>], iteration_bounds = array<i64: 1>, scalar_prefetch = 0 : i64, scratch_operands = 0 : i64, tpu.core_type = #tpu.core_type<tc>, window_params = [{pipeline_mode = #tpu.pipeline_mode<synchronous>, transform_indices = @transform_0, window_bounds = array<i64: 32, 576>}, {pipeline_mode = #tpu.pipeline_mode<synchronous>, transform_indices = @transform_1, window_bounds = array<i64: 576, 128>}, {pipeline_mode = #tpu.pipeline_mode<synchronous>, transform_indices = @transform_2, window_bounds = array<i64: 1, 128>}, {pipeline_mode = #tpu.pipeline_mode<synchronous>, transform_indices = @transform_3, window_bounds = array<i64: 1, 128>}, {pipeline_mode = #tpu.pipeline_mode<synchronous>, transform_indices = @transform_4, window_bounds = array<i64: 32, 128>}]} {
    %c0 = arith.constant 0 : index
    %c0_0 = arith.constant 0 : index
    %0 = vector.load %arg1[%c0, %c0_0] : memref<32x576xbf16, #tpu.memory_space<vmem>>, vector<32x576xbf16>
    %c0_1 = arith.constant 0 : index
    %c0_2 = arith.constant 0 : index
    %1 = vector.load %arg2[%c0_1, %c0_2] : memref<576x128xbf16, #tpu.memory_space<vmem>>, vector<576x128xbf16>
    %cst = arith.constant dense<0.000000e+00> : vector<32x128xf32>
    %2 = tpu.matmul %0, %1, %cst {dimension_numbers = #tpu.dot_dimension_numbers<[1], [0], [0], [1], [0, 0, 1, 1], [], []>} : vector<32x576xbf16>, vector<576x128xbf16>, vector<32x128xf32> -> vector<32x128xf32>
    %cst_3 = arith.constant dense<0.000000e+00> : vector<128xf32>
    %3 = vector.multi_reduction <add>, %2, %cst_3 [0] : vector<32x128xf32> to vector<128xf32>
    %4 = vector.shape_cast %3 : vector<128xf32> to vector<1x128xf32>
    %cst_4 = arith.constant 3.125000e-02 : f32
    %5 = vector.broadcast %cst_4 : f32 to vector<1x128xf32>
    %6 = arith.mulf %4, %5 : vector<1x128xf32>
    %7 = arith.mulf %2, %2 : vector<32x128xf32>
    %cst_5 = arith.constant dense<0.000000e+00> : vector<128xf32>
    %8 = vector.multi_reduction <add>, %7, %cst_5 [0] : vector<32x128xf32> to vector<128xf32>
    %9 = vector.shape_cast %8 : vector<128xf32> to vector<1x128xf32>
    %cst_6 = arith.constant 3.125000e-02 : f32
    %10 = vector.broadcast %cst_6 : f32 to vector<1x128xf32>
    %11 = arith.mulf %9, %10 : vector<1x128xf32>
    %12 = arith.mulf %6, %6 : vector<1x128xf32>
    %13 = arith.subf %11, %12 : vector<1x128xf32>
    %c0_7 = arith.constant 0 : index
    %c0_8 = arith.constant 0 : index
    %14 = vector.load %arg3[%c0_7, %c0_8] : memref<1x128xf32, #tpu.memory_space<vmem>>, vector<1x128xf32>
    %cst_9 = arith.constant 9.99999974E-6 : f32
    %15 = vector.broadcast %cst_9 : f32 to vector<1x128xf32>
    %16 = arith.addf %13, %15 : vector<1x128xf32>
    %17 = math.rsqrt %16 : vector<1x128xf32>
    %18 = arith.mulf %14, %17 : vector<1x128xf32>
    %c0_10 = arith.constant 0 : index
    %c0_11 = arith.constant 0 : index
    %19 = vector.load %arg4[%c0_10, %c0_11] : memref<1x128xf32, #tpu.memory_space<vmem>>, vector<1x128xf32>
    %20 = arith.mulf %6, %18 : vector<1x128xf32>
    %21 = arith.subf %19, %20 : vector<1x128xf32>
    %22 = vector.broadcast %18 : vector<1x128xf32> to vector<32x128xf32>
    %23 = arith.mulf %2, %22 : vector<32x128xf32>
    %24 = vector.broadcast %21 : vector<1x128xf32> to vector<32x128xf32>
    %25 = arith.addf %23, %24 : vector<32x128xf32>
    %cst_12 = arith.constant 0.000000e+00 : f32
    %26 = vector.broadcast %cst_12 : f32 to vector<32x128xf32>
    %27 = arith.maximumf %25, %26 : vector<32x128xf32>
    %28 = arith.truncf %27 : vector<32x128xf32> to vector<32x128xbf16>
    %c0_13 = arith.constant 0 : index
    %c0_14 = arith.constant 0 : index
    %29 = vector.load %arg5[%c0_13, %c0_14] : memref<32x128xbf16, #tpu.memory_space<vmem>>, vector<32x128xbf16>
    tpu.vector_store %arg5[%c0_13, %c0_14], %28 {strides = array<i32>} : memref<32x128xbf16, #tpu.memory_space<vmem>>, vector<32x128xbf16>,
    return
  }
  func.func @transform_0(%arg0: i32) -> (i32, i32) {
    %c0_i32 = arith.constant 0 : i32
    %c0_i32_0 = arith.constant 0 : i32
    %c0_i32_1 = arith.constant 0 : i32
    return %c0_i32, %c0_i32_0 : i32, i32
  }
  func.func @transform_1(%arg0: i32) -> (i32, i32) {
    %c0_i32 = arith.constant 0 : i32
    %c0_i32_0 = arith.constant 0 : i32
    %c0_i32_1 = arith.constant 0 : i32
    return %c0_i32, %c0_i32_0 : i32, i32
  }
  func.func @transform_2(%arg0: i32) -> (i32, i32) {
    %c0_i32 = arith.constant 0 : i32
    %c0_i32_0 = arith.constant 0 : i32
    %c0_i32_1 = arith.constant 0 : i32
    return %c0_i32, %c0_i32_0 : i32, i32
  }
  func.func @transform_3(%arg0: i32) -> (i32, i32) {
    %c0_i32 = arith.constant 0 : i32
    %c0_i32_0 = arith.constant 0 : i32
    %c0_i32_1 = arith.constant 0 : i32
    return %c0_i32, %c0_i32_0 : i32, i32
  }
  func.func @transform_4(%arg0: i32) -> (i32, i32) {
    %c0_i32 = arith.constant 0 : i32
    %c0_i32_0 = arith.constant 0 : i32
    %c0_i32_1 = arith.constant 0 : i32
    return %c0_i32, %c0_i32_0 : i32, i32
  }
}

module attributes {stable_mosaic.version = 11 : i64} {
  func.func @_conv_bn_act_kernel(%arg0: i32, %arg1: memref<32x64xbf16, #tpu.memory_space<vmem>>, %arg2: memref<64x128xbf16, #tpu.memory_space<vmem>>, %arg3: memref<1x128xf32, #tpu.memory_space<vmem>>, %arg4: memref<1x128xf32, #tpu.memory_space<vmem>>, %arg5: memref<32x128xbf16, #tpu.memory_space<vmem>>) attributes {dimension_semantics = [#tpu.dimension_semantics<arbitrary>], iteration_bounds = array<i64: 1>, scalar_prefetch = 0 : i64, scratch_operands = 0 : i64, tpu.core_type = #tpu.core_type<tc>, window_params = [{pipeline_mode = #tpu.pipeline_mode<synchronous>, transform_indices = @transform_0, window_bounds = array<i64: 32, 64>}, {pipeline_mode = #tpu.pipeline_mode<synchronous>, transform_indices = @transform_1, window_bounds = array<i64: 64, 128>}, {pipeline_mode = #tpu.pipeline_mode<synchronous>, transform_indices = @transform_2, window_bounds = array<i64: 1, 128>}, {pipeline_mode = #tpu.pipeline_mode<synchronous>, transform_indices = @transform_3, window_bounds = array<i64: 1, 128>}, {pipeline_mode = #tpu.pipeline_mode<synchronous>, transform_indices = @transform_4, window_bounds = array<i64: 32, 128>}]} {
    %c0 = arith.constant 0 : index
    %c0_0 = arith.constant 0 : index
    %0 = vector.load %arg1[%c0, %c0_0] : memref<32x64xbf16, #tpu.memory_space<vmem>>, vector<32x64xbf16>
    %c0_1 = arith.constant 0 : index
    %c0_2 = arith.constant 0 : index
    %1 = vector.load %arg2[%c0_1, %c0_2] : memref<64x128xbf16, #tpu.memory_space<vmem>>, vector<64x128xbf16>
    %cst = arith.constant dense<0.000000e+00> : vector<32x128xf32>
    %2 = tpu.matmul %0, %1, %cst {dimension_numbers = #tpu.dot_dimension_numbers<[1], [0], [0], [1], [0, 0, 1, 1], [], []>} : vector<32x64xbf16>, vector<64x128xbf16>, vector<32x128xf32> -> vector<32x128xf32>
    %cst_3 = arith.constant dense<0.000000e+00> : vector<128xf32>
    %3 = vector.multi_reduction <add>, %2, %cst_3 [0] : vector<32x128xf32> to vector<128xf32>
    %4 = vector.shape_cast %3 : vector<128xf32> to vector<1x128xf32>
    %cst_4 = arith.constant 3.125000e-02 : f32
    %5 = vector.broadcast %cst_4 : f32 to vector<1x128xf32>
    %6 = arith.mulf %4, %5 : vector<1x128xf32>
    %7 = arith.mulf %2, %2 : vector<32x128xf32>
    %cst_5 = arith.constant dense<0.000000e+00> : vector<128xf32>
    %8 = vector.multi_reduction <add>, %7, %cst_5 [0] : vector<32x128xf32> to vector<128xf32>
    %9 = vector.shape_cast %8 : vector<128xf32> to vector<1x128xf32>
    %cst_6 = arith.constant 3.125000e-02 : f32
    %10 = vector.broadcast %cst_6 : f32 to vector<1x128xf32>
    %11 = arith.mulf %9, %10 : vector<1x128xf32>
    %12 = arith.mulf %6, %6 : vector<1x128xf32>
    %13 = arith.subf %11, %12 : vector<1x128xf32>
    %c0_7 = arith.constant 0 : index
    %c0_8 = arith.constant 0 : index
    %14 = vector.load %arg3[%c0_7, %c0_8] : memref<1x128xf32, #tpu.memory_space<vmem>>, vector<1x128xf32>
    %cst_9 = arith.constant 9.99999974E-6 : f32
    %15 = vector.broadcast %cst_9 : f32 to vector<1x128xf32>
    %16 = arith.addf %13, %15 : vector<1x128xf32>
    %17 = math.rsqrt %16 : vector<1x128xf32>
    %18 = arith.mulf %14, %17 : vector<1x128xf32>
    %c0_10 = arith.constant 0 : index
    %c0_11 = arith.constant 0 : index
    %19 = vector.load %arg4[%c0_10, %c0_11] : memref<1x128xf32, #tpu.memory_space<vmem>>, vector<1x128xf32>
    %20 = arith.mulf %6, %18 : vector<1x128xf32>
    %21 = arith.subf %19, %20 : vector<1x128xf32>
    %22 = vector.broadcast %18 : vector<1x128xf32> to vector<32x128xf32>
    %23 = arith.mulf %2, %22 : vector<32x128xf32>
    %24 = vector.broadcast %21 : vector<1x128xf32> to vector<32x128xf32>
    %25 = arith.addf %23, %24 : vector<32x128xf32>
    %26 = arith.truncf %25 : vector<32x128xf32> to vector<32x128xbf16>
    %c0_12 = arith.constant 0 : index
    %c0_13 = arith.constant 0 : index
    %27 = vector.load %arg5[%c0_12, %c0_13] : memref<32x128xbf16, #tpu.memory_space<vmem>>, vector<32x128xbf16>
    tpu.vector_store %arg5[%c0_12, %c0_13], %26 {strides = array<i32>} : memref<32x128xbf16, #tpu.memory_space<vmem>>, vector<32x128xbf16>,
    return
  }
  func.func @transform_0(%arg0: i32) -> (i32, i32) {
    %c0_i32 = arith.constant 0 : i32
    %c0_i32_0 = arith.constant 0 : i32
    %c0_i32_1 = arith.constant 0 : i32
    return %c0_i32, %c0_i32_0 : i32, i32
  }
  func.func @transform_1(%arg0: i32) -> (i32, i32) {
    %c0_i32 = arith.constant 0 : i32
    %c0_i32_0 = arith.constant 0 : i32
    %c0_i32_1 = arith.constant 0 : i32
    return %c0_i32, %c0_i32_0 : i32, i32
  }
  func.func @transform_2(%arg0: i32) -> (i32, i32) {
    %c0_i32 = arith.constant 0 : i32
    %c0_i32_0 = arith.constant 0 : i32
    %c0_i32_1 = arith.constant 0 : i32
    return %c0_i32, %c0_i32_0 : i32, i32
  }
  func.func @transform_3(%arg0: i32) -> (i32, i32) {
    %c0_i32 = arith.constant 0 : i32
    %c0_i32_0 = arith.constant 0 : i32
    %c0_i32_1 = arith.constant 0 : i32
    return %c0_i32, %c0_i32_0 : i32, i32
  }
  func.func @transform_4(%arg0: i32) -> (i32, i32) {
    %c0_i32 = arith.constant 0 : i32
    %c0_i32_0 = arith.constant 0 : i32
    %c0_i32_1 = arith.constant 0 : i32
    return %c0_i32, %c0_i32_0 : i32, i32
  }
}

module attributes {stable_mosaic.version = 11 : i64} {
  func.func @_conv_bn_act_kernel(%arg0: i32, %arg1: memref<32x1152xbf16, #tpu.memory_space<vmem>>, %arg2: memref<1152x128xbf16, #tpu.memory_space<vmem>>, %arg3: memref<1x128xf32, #tpu.memory_space<vmem>>, %arg4: memref<1x128xf32, #tpu.memory_space<vmem>>, %arg5: memref<32x128xbf16, #tpu.memory_space<vmem>>, %arg6: memref<32x128xbf16, #tpu.memory_space<vmem>>) attributes {dimension_semantics = [#tpu.dimension_semantics<arbitrary>], iteration_bounds = array<i64: 1>, scalar_prefetch = 0 : i64, scratch_operands = 0 : i64, tpu.core_type = #tpu.core_type<tc>, window_params = [{pipeline_mode = #tpu.pipeline_mode<synchronous>, transform_indices = @transform_0, window_bounds = array<i64: 32, 1152>}, {pipeline_mode = #tpu.pipeline_mode<synchronous>, transform_indices = @transform_1, window_bounds = array<i64: 1152, 128>}, {pipeline_mode = #tpu.pipeline_mode<synchronous>, transform_indices = @transform_2, window_bounds = array<i64: 1, 128>}, {pipeline_mode = #tpu.pipeline_mode<synchronous>, transform_indices = @transform_3, window_bounds = array<i64: 1, 128>}, {pipeline_mode = #tpu.pipeline_mode<synchronous>, transform_indices = @transform_4, window_bounds = array<i64: 32, 128>}, {pipeline_mode = #tpu.pipeline_mode<synchronous>, transform_indices = @transform_5, window_bounds = array<i64: 32, 128>}]} {
    %c0 = arith.constant 0 : index
    %c0_0 = arith.constant 0 : index
    %0 = vector.load %arg1[%c0, %c0_0] : memref<32x1152xbf16, #tpu.memory_space<vmem>>, vector<32x1152xbf16>
    %c0_1 = arith.constant 0 : index
    %c0_2 = arith.constant 0 : index
    %1 = vector.load %arg2[%c0_1, %c0_2] : memref<1152x128xbf16, #tpu.memory_space<vmem>>, vector<1152x128xbf16>
    %cst = arith.constant dense<0.000000e+00> : vector<32x128xf32>
    %2 = tpu.matmul %0, %1, %cst {dimension_numbers = #tpu.dot_dimension_numbers<[1], [0], [0], [1], [0, 0, 1, 1], [], []>} : vector<32x1152xbf16>, vector<1152x128xbf16>, vector<32x128xf32> -> vector<32x128xf32>
    %cst_3 = arith.constant dense<0.000000e+00> : vector<128xf32>
    %3 = vector.multi_reduction <add>, %2, %cst_3 [0] : vector<32x128xf32> to vector<128xf32>
    %4 = vector.shape_cast %3 : vector<128xf32> to vector<1x128xf32>
    %cst_4 = arith.constant 3.125000e-02 : f32
    %5 = vector.broadcast %cst_4 : f32 to vector<1x128xf32>
    %6 = arith.mulf %4, %5 : vector<1x128xf32>
    %7 = arith.mulf %2, %2 : vector<32x128xf32>
    %cst_5 = arith.constant dense<0.000000e+00> : vector<128xf32>
    %8 = vector.multi_reduction <add>, %7, %cst_5 [0] : vector<32x128xf32> to vector<128xf32>
    %9 = vector.shape_cast %8 : vector<128xf32> to vector<1x128xf32>
    %cst_6 = arith.constant 3.125000e-02 : f32
    %10 = vector.broadcast %cst_6 : f32 to vector<1x128xf32>
    %11 = arith.mulf %9, %10 : vector<1x128xf32>
    %12 = arith.mulf %6, %6 : vector<1x128xf32>
    %13 = arith.subf %11, %12 : vector<1x128xf32>
    %c0_7 = arith.constant 0 : index
    %c0_8 = arith.constant 0 : index
    %14 = vector.load %arg3[%c0_7, %c0_8] : memref<1x128xf32, #tpu.memory_space<vmem>>, vector<1x128xf32>
    %cst_9 = arith.constant 9.99999974E-6 : f32
    %15 = vector.broadcast %cst_9 : f32 to vector<1x128xf32>
    %16 = arith.addf %13, %15 : vector<1x128xf32>
    %17 = math.rsqrt %16 : vector<1x128xf32>
    %18 = arith.mulf %14, %17 : vector<1x128xf32>
    %c0_10 = arith.constant 0 : index
    %c0_11 = arith.constant 0 : index
    %19 = vector.load %arg4[%c0_10, %c0_11] : memref<1x128xf32, #tpu.memory_space<vmem>>, vector<1x128xf32>
    %20 = arith.mulf %6, %18 : vector<1x128xf32>
    %21 = arith.subf %19, %20 : vector<1x128xf32>
    %22 = vector.broadcast %18 : vector<1x128xf32> to vector<32x128xf32>
    %23 = arith.mulf %2, %22 : vector<32x128xf32>
    %24 = vector.broadcast %21 : vector<1x128xf32> to vector<32x128xf32>
    %25 = arith.addf %23, %24 : vector<32x128xf32>
    %c0_12 = arith.constant 0 : index
    %c0_13 = arith.constant 0 : index
    %26 = vector.load %arg5[%c0_12, %c0_13] : memref<32x128xbf16, #tpu.memory_space<vmem>>, vector<32x128xbf16>
    %27 = arith.extf %26 : vector<32x128xbf16> to vector<32x128xf32>
    %28 = arith.addf %25, %27 : vector<32x128xf32>
    %cst_14 = arith.constant 0.000000e+00 : f32
    %29 = vector.broadcast %cst_14 : f32 to vector<32x128xf32>
    %30 = arith.maximumf %28, %29 : vector<32x128xf32>
    %31 = arith.truncf %30 : vector<32x128xf32> to vector<32x128xbf16>
    %c0_15 = arith.constant 0 : index
    %c0_16 = arith.constant 0 : index
    %32 = vector.load %arg6[%c0_15, %c0_16] : memref<32x128xbf16, #tpu.memory_space<vmem>>, vector<32x128xbf16>
    tpu.vector_store %arg6[%c0_15, %c0_16], %31 {strides = array<i32>} : memref<32x128xbf16, #tpu.memory_space<vmem>>, vector<32x128xbf16>,
    return
  }
  func.func @transform_0(%arg0: i32) -> (i32, i32) {
    %c0_i32 = arith.constant 0 : i32
    %c0_i32_0 = arith.constant 0 : i32
    %c0_i32_1 = arith.constant 0 : i32
    return %c0_i32, %c0_i32_0 : i32, i32
  }
  func.func @transform_1(%arg0: i32) -> (i32, i32) {
    %c0_i32 = arith.constant 0 : i32
    %c0_i32_0 = arith.constant 0 : i32
    %c0_i32_1 = arith.constant 0 : i32
    return %c0_i32, %c0_i32_0 : i32, i32
  }
  func.func @transform_2(%arg0: i32) -> (i32, i32) {
    %c0_i32 = arith.constant 0 : i32
    %c0_i32_0 = arith.constant 0 : i32
    %c0_i32_1 = arith.constant 0 : i32
    return %c0_i32, %c0_i32_0 : i32, i32
  }
  func.func @transform_3(%arg0: i32) -> (i32, i32) {
    %c0_i32 = arith.constant 0 : i32
    %c0_i32_0 = arith.constant 0 : i32
    %c0_i32_1 = arith.constant 0 : i32
    return %c0_i32, %c0_i32_0 : i32, i32
  }
  func.func @transform_4(%arg0: i32) -> (i32, i32) {
    %c0_i32 = arith.constant 0 : i32
    %c0_i32_0 = arith.constant 0 : i32
    %c0_i32_1 = arith.constant 0 : i32
    return %c0_i32, %c0_i32_0 : i32, i32
  }
  func.func @transform_5(%arg0: i32) -> (i32, i32) {
    %c0_i32 = arith.constant 0 : i32
    %c0_i32_0 = arith.constant 0 : i32
    %c0_i32_1 = arith.constant 0 : i32
    return %c0_i32, %c0_i32_0 : i32, i32
  }
}

module attributes {stable_mosaic.version = 11 : i64} {
  func.func @_pool_linear_kernel(%arg0: i32, %arg1: memref<2x16x128xbf16, #tpu.memory_space<vmem>>, %arg2: memref<128x128xf32, #tpu.memory_space<vmem>>, %arg3: memref<1x128xf32, #tpu.memory_space<vmem>>, %arg4: memref<2x128xf32, #tpu.memory_space<vmem>>) attributes {dimension_semantics = [#tpu.dimension_semantics<arbitrary>], iteration_bounds = array<i64: 1>, scalar_prefetch = 0 : i64, scratch_operands = 0 : i64, tpu.core_type = #tpu.core_type<tc>, window_params = [{pipeline_mode = #tpu.pipeline_mode<synchronous>, transform_indices = @transform_0, window_bounds = array<i64: 2, 16, 128>}, {pipeline_mode = #tpu.pipeline_mode<synchronous>, transform_indices = @transform_1, window_bounds = array<i64: 128, 128>}, {pipeline_mode = #tpu.pipeline_mode<synchronous>, transform_indices = @transform_2, window_bounds = array<i64: 1, 128>}, {pipeline_mode = #tpu.pipeline_mode<synchronous>, transform_indices = @transform_3, window_bounds = array<i64: 2, 128>}]} {
    %c0 = arith.constant 0 : index
    %c0_0 = arith.constant 0 : index
    %c0_1 = arith.constant 0 : index
    %0 = vector.load %arg1[%c0, %c0_0, %c0_1] : memref<2x16x128xbf16, #tpu.memory_space<vmem>>, vector<2x16x128xbf16>
    %1 = arith.extf %0 : vector<2x16x128xbf16> to vector<2x16x128xf32>
    %cst = arith.constant dense<0.000000e+00> : vector<2x128xf32>
    %2 = vector.multi_reduction <add>, %1, %cst [1] : vector<2x16x128xf32> to vector<2x128xf32>
    %cst_2 = arith.constant 1.600000e+01 : f32
    %3 = vector.broadcast %cst_2 : f32 to vector<2x128xf32>
    %4 = arith.divf %2, %3 : vector<2x128xf32>
    %c0_3 = arith.constant 0 : index
    %c0_4 = arith.constant 0 : index
    %5 = vector.load %arg2[%c0_3, %c0_4] : memref<128x128xf32, #tpu.memory_space<vmem>>, vector<128x128xf32>
    %cst_5 = arith.constant dense<0.000000e+00> : vector<2x128xf32>
    %6 = tpu.matmul %4, %5, %cst_5 {dimension_numbers = #tpu.dot_dimension_numbers<[1], [0], [0], [1], [0, 0, 1, 1], [], []>} : vector<2x128xf32>, vector<128x128xf32>, vector<2x128xf32> -> vector<2x128xf32>
    %c0_6 = arith.constant 0 : index
    %c0_7 = arith.constant 0 : index
    %7 = vector.load %arg3[%c0_6, %c0_7] : memref<1x128xf32, #tpu.memory_space<vmem>>, vector<1x128xf32>
    %8 = vector.broadcast %7 : vector<1x128xf32> to vector<2x128xf32>
    %9 = arith.addf %6, %8 : vector<2x128xf32>
    %c0_8 = arith.constant 0 : index
    %c0_9 = arith.constant 0 : index
    %10 = vector.load %arg4[%c0_8, %c0_9] : memref<2x128xf32, #tpu.memory_space<vmem>>, vector<2x128xf32>
    tpu.vector_store %arg4[%c0_8, %c0_9], %9 {strides = array<i32>} : memref<2x128xf32, #tpu.memory_space<vmem>>, vector<2x128xf32>,
    return
  }
  func.func @transform_0(%arg0: i32) -> (i32, i32, i32) {
    %c0_i32 = arith.constant 0 : i32
    %c0_i32_0 = arith.constant 0 : i32
    %c0_i32_1 = arith.constant 0 : i32
    %c0_i32_2 = arith.constant 0 : i32
    return %c0_i32, %c0_i32_0, %c0_i32_1 : i32, i32, i32
  }
  func.func @transform_1(%arg0: i32) -> (i32, i32) {
    %c0_i32 = arith.constant 0 : i32
    %c0_i32_0 = arith.constant 0 : i32
    %c0_i32_1 = arith.constant 0 : i32
    return %c0_i32, %c0_i32_0 : i32, i32
  }
  func.func @transform_2(%arg0: i32) -> (i32, i32) {
    %c0_i32 = arith.constant 0 : i32
    %c0_i32_0 = arith.constant 0 : i32
    %c0_i32_1 = arith.constant 0 : i32
    return %c0_i32, %c0_i32_0 : i32, i32
  }
  func.func @transform_3(%arg0: i32) -> (i32, i32) {
    %c0_i32 = arith.constant 0 : i32
    %c0_i32_0 = arith.constant 0 : i32
    %c0_i32_1 = arith.constant 0 : i32
    return %c0_i32, %c0_i32_0 : i32, i32
  }
}

</mosaic_0001>

<bundles_post_ra>
// kernel: _lambda_.10
= control target key start
LH: loop header
LB: loop body
LE: loop exit
PB: predicated region body
PF: predicated region fallthrough
CT: control target
= control target key end

     0   :  { %vm278_vm0 = vcmask 588800   ;;  %vm375_vm1 = vcmask 1043456   ;;  %vm668_vm2 = vcmask 261120   ;;  %vm1470_vm3 = vcmask 257024   ;;  %s3564_s1 = inlined_call_operand.vmem [shape: bf16[72,32], index: 1, kind: input, shape index: {}]   ;;  %s3565_s0 = inlined_call_operand.vmem [shape: bf16[512,72], index: 0, kind: input, shape index: {}]   ;;  %s3566_s2 = inlined_call_operand.vmem [shape: f32[1,32], index: 2, kind: input, shape index: {}]   ;;  %s3567_s3 = inlined_call_operand.vmem [shape: f32[1,32], index: 3, kind: input, shape index: {}]   ;;  %s3568_s4 = inlined_call_operand.vmem [shape: bf16[512,32], index: 4, kind: output, shape index: {}]  }
   0x1   :  { %v1859_v0 = vld [vmem:[%s3564_s1] sm:$0xff]   ;;  %v1860_v1 = vld [vmem:[%s3564_s1 + $0x8] sm:$0xff]   ;;  %v1861_v2 = vld [vmem:[%s3564_s1 + $0x10] sm:$0xff]  }
   0x2   :  { %1773 = vmatprep.subr.bf16.mxu0 %v1859_v0  ;;  %1847 = vmatprep.subr.bf16.mxu1 %v1859_v0  ;;  %v1864_v3 = vld [vmem:[%s3565_s0] sm:$0xff]   ;;  %v1862_v4 = vld [vmem:[%s3564_s1 + $0x18] sm:$0xff]   ;;  %v1865_v7 = vld [vmem:[%s3565_s0 + $0x8] sm:$0xff]  }
   0x3   :  { %1774 = vmatpush3.bf16.msra.mxu0 %v1859_v0  ;;  %1852 = vmatpush3.bf16.msra.mxu1 %v1859_v0  ;;  %v1863_v5 = vld [vmem:[%s3564_s1 + $0x20] ss:$0 sps:$4 sm:$0xff]   ;;  %v1866_v8 = vld [vmem:[%s3565_s0 + $0x10] sm:$0xff]   ;;  %v1881_v10 = vld [vmem:[%s3565_s0 + $0x88] sm:$0xff]  }
   0x4   :  { %1775 = vmatprep.subr.bf16.mxu0 %v1860_v1  ;;  %1848 = vmatprep.subr.bf16.mxu1 %v1860_v1  ;;  %v377_v6 = vsel %vm375_vm1, %v1863_v5, 0  ;;  %v1880_v9 = vld [vmem:[%s3565_s0 + $0x80] sm:$0xff]   ;;  %v1882_v11 = vld [vmem:[%s3565_s0 + $0x90] sm:$0xff]   ;;  %v1867_v12 = vld [vmem:[%s3565_s0 + $0x18] sm:$0xff]  }
   0x5   :  { %1783 = vmatprep.mubr.msk.bf16.mxu0 %vm278_vm0, %v1864_v3  ;;  %1815 = vmatprep.mubr.msk.bf16.mxu1 %vm278_vm0, %v1880_v9  ;;  %v1868_v13 = vld [vmem:[%s3565_s0 + $0x20] sm:$0xff]   ;;  %v1883_v14 = vld [vmem:[%s3565_s0 + $0x98] sm:$0xff]   ;;  %v1869_v16 = vld [vmem:[%s3565_s0 + $0x28] sm:$0xff]  }
   0x6   :  { %v1884_v15 = vld [vmem:[%s3565_s0 + $0xa0] sm:$0xff]   ;;  %v1870_v17 = vld [vmem:[%s3565_s0 + $0x30] sm:$0xff]   ;;  %v1885_v18 = vld [vmem:[%s3565_s0 + $0xa8] sm:$0xff]  }
   0x7   :  { %1776 = vmatpush3.bf16.msra.mxu0 %v1860_v1  ;;  %1853 = vmatpush3.bf16.msra.mxu1 %v1860_v1  ;;  %v1886_v19 = vld [vmem:[%s3565_s0 + $0xb0] sm:$0xff]   ;;  %v1871_v20 = vld [vmem:[%s3565_s0 + $0x38] sm:$0xff]   ;;  %v1872_v21 = vld [vmem:[%s3565_s0 + $0x40] sm:$0xff]  }
   0x8   :  { %1777 = vmatprep.subr.bf16.mxu0 %v1861_v2  ;;  %1849 = vmatprep.subr.bf16.mxu1 %v1861_v2  ;;  %v1887_v22 = vld [vmem:[%s3565_s0 + $0xb8] sm:$0xff]   ;;  %v1888_v23 = vld [vmem:[%s3565_s0 + $0xc0] sm:$0xff]   ;;  %v1873_v24 = vld [vmem:[%s3565_s0 + $0x48] sm:$0xff]  }
   0x9   :  { %v1874_v25 = vld [vmem:[%s3565_s0 + $0x50] sm:$0xff]   ;;  %v1889_v26 = vld [vmem:[%s3565_s0 + $0xc8] sm:$0xff]   ;;  %v1875_v28 = vld [vmem:[%s3565_s0 + $0x58] sm:$0xff]  }
   0xa   :  { %v1890_v27 = vld [vmem:[%s3565_s0 + $0xd0] sm:$0xff]   ;;  %v1876_v29 = vld [vmem:[%s3565_s0 + $0x60] sm:$0xff]   ;;  %v1891_v30 = vld [vmem:[%s3565_s0 + $0xd8] sm:$0xff]  }
   0xb   :  { %1778 = vmatpush3.bf16.msra.mxu0 %v1861_v2  ;;  %1854 = vmatpush3.bf16.msra.mxu1 %v1861_v2  ;;  %v1892_v31 = vld [vmem:[%s3565_s0 + $0xe0] sm:$0xff]   ;;  %v1877_v32 = vld [vmem:[%s3565_s0 + $0x68] sm:$0xff]   ;;  %v1878_v33 = vld [vmem:[%s3565_s0 + $0x70] sm:$0xff]  }
   0xc   :  { %1779 = vmatprep.subr.bf16.mxu0 %v1862_v4  ;;  %1850 = vmatprep.subr.bf16.mxu1 %v1862_v4  ;;  %v1893_v34 = vld [vmem:[%s3565_s0 + $0xe8] sm:$0xff]   ;;  %v1894_v35 = vld [vmem:[%s3565_s0 + $0xf0] sm:$0xff]   ;;  %v1879_v36 = vld [vmem:[%s3565_s0 + $0x78] sm:$0xff]  }
   0xd   :  { %v1895_v37 = vld [vmem:[%s3565_s0 + $0xf8] sm:$0xff]  }
   0xf   :  { %1780 = vmatpush3.bf16.msra.mxu0 %v1862_v4  ;;  %1855 = vmatpush3.bf16.msra.mxu1 %v1862_v4 }
  0x10   :  { %1857 = vmatprep.subr.msk.bf16.mxu0 %vm375_vm1, %v1863_v5  ;;  %1858 = vmatprep.subr.msk.bf16.mxu1 %vm375_vm1, %v1863_v5 }
  0x13   :  { %1782 = vmatpush3.bf16.msra.mxu0 %v377_v6  ;;  %1856 = vmatpush3.bf16.msra.mxu1 %v377_v6 }
  0x16   :  { %1784 = vmatmul.mubr.msk.bf16.vlgmr.msra.gmra.mrb[0].mxu0 %vm278_vm0, %v1865_v7  ;;  %1816 = vmatmul.mubr.msk.bf16.vlgmr.msra.gmra.mrb[0].mxu1 %vm278_vm0, %v1881_v10 }
  0x17   :  { %1787 = vmatprep.mubr.msk.bf16.mxu0 %vm278_vm0, %v1866_v8  ;;  %1819 = vmatprep.mubr.msk.bf16.mxu1 %vm278_vm0, %v1882_v11 }
  0x1e   :  { %1788 = vmatmul.mubr.msk.bf16.gmra.mrb[4].mxu0 %vm278_vm0, %v1867_v12  ;;  %1820 = vmatmul.mubr.msk.bf16.gmra.mrb[4].mxu1 %vm278_vm0, %v1883_v14 }
  0x1f   :  { %1791 = vmatprep.mubr.msk.bf16.mxu0 %vm278_vm0, %v1868_v13  ;;  %1823 = vmatprep.mubr.msk.bf16.mxu1 %vm278_vm0, %v1884_v15 }
  0x26   :  { %1792 = vmatmul.mubr.msk.bf16.gmra.mrb[8].mxu0 %vm278_vm0, %v1869_v16  ;;  %1824 = vmatmul.mubr.msk.bf16.gmra.mrb[8].mxu1 %vm278_vm0, %v1885_v18 }
  0x27   :  { %1795 = vmatprep.mubr.msk.bf16.mxu0 %vm278_vm0, %v1870_v17  ;;  %1827 = vmatprep.mubr.msk.bf16.mxu1 %vm278_vm0, %v1886_v19 }
  0x2e   :  { %1796 = vmatmul.mubr.msk.bf16.gmra.mrb[12].mxu0 %vm278_vm0, %v1871_v20  ;;  %1828 = vmatmul.mubr.msk.bf16.gmra.mrb[12].mxu1 %vm278_vm0, %v1887_v22 }
  0x2f   :  { %1799 = vmatprep.mubr.msk.bf16.mxu0 %vm278_vm0, %v1872_v21  ;;  %1831 = vmatprep.mubr.msk.bf16.mxu1 %vm278_vm0, %v1888_v23 }
  0x36   :  { %1800 = vmatmul.mubr.msk.bf16.gmra.mrb[16].mxu0 %vm278_vm0, %v1873_v24  ;;  %1832 = vmatmul.mubr.msk.bf16.gmra.mrb[16].mxu1 %vm278_vm0, %v1889_v26 }
  0x37   :  { %1803 = vmatprep.mubr.msk.bf16.mxu0 %vm278_vm0, %v1874_v25  ;;  %1835 = vmatprep.mubr.msk.bf16.mxu1 %vm278_vm0, %v1890_v27 }
  0x3e   :  { %1804 = vmatmul.mubr.msk.bf16.gmra.mrb[20].mxu0 %vm278_vm0, %v1875_v28  ;;  %1836 = vmatmul.mubr.msk.bf16.gmra.mrb[20].mxu1 %vm278_vm0, %v1891_v30 }
  0x3f   :  { %1807 = vmatprep.mubr.msk.bf16.mxu0 %vm278_vm0, %v1876_v29  ;;  %1839 = vmatprep.mubr.msk.bf16.mxu1 %vm278_vm0, %v1892_v31 }
  0x46   :  { %1808 = vmatmul.mubr.msk.bf16.gmra.mrb[24].mxu0 %vm278_vm0, %v1877_v32  ;;  %1840 = vmatmul.mubr.msk.bf16.gmra.mrb[24].mxu1 %vm278_vm0, %v1893_v34 }
  0x47   :  { %1811 = vmatprep.mubr.msk.bf16.mxu0 %vm278_vm0, %v1878_v33  ;;  %1843 = vmatprep.mubr.msk.bf16.mxu1 %vm278_vm0, %v1894_v35 }
  0x4e   :  { %1812 = vmatmul.mubr.msk.bf16.gmra.mrb[28].mxu0 %vm278_vm0, %v1879_v36  ;;  %1844 = vmatmul.mubr.msk.bf16.gmra.mrb[28].mxu1 %vm278_vm0, %v1895_v37 }
  0xe9   :  { %v2066_v38 = vpop.f32.mrb[0].mxu0  ;;  %v2074_v42 = vpop.f32.mrb[0].mxu1 }
  0xea   :  { %v2068_v39 = vpop.f32.mrb[1].mxu0  ;;  %v2078_v44 = vpop.f32.mrb[1].mxu1  ;;  %v805_v45 = vmul.f32 %v2066_v38, %v2066_v38  ;;  %v672_v52 = vsel %vm668_vm2, %v2066_v38, 0.0 }
  0xeb   :  { %v803_v40 = vmul.f32 %v2068_v39, %v2068_v39  ;;  %v2072_v41 = vpop.f32.mrb[2].mxu0  ;;  %v669_v46 = vsel %vm668_vm2, %v2068_v39, 0.0  ;;  %v2088_v49 = vpop.f32.mrb[2].mxu1 }
  0xec   :  { %v2076_v43 = vpop.f32.mrb[3].mxu0  ;;  %v2090_v51 = vpop.f32.mrb[3].mxu1  ;;  %v806_v54 = vmul.f32 %v2072_v41, %v2072_v41  ;;  %v870_v58 = vsel %vm668_vm2, %v805_v45, 0.0  ;;  %v674_v59 = vsel %vm668_vm2, %v2072_v41, 0.0 }
  0xed   :  { %v670_v47 = vsel %vm668_vm2, %v2076_v43, 0.0  ;;  %v804_v48 = vmul.f32 %v2076_v43, %v2076_v43  ;;  %v867_v53 = vsel %vm668_vm2, %v803_v40, 0.0 }
  0xee   :  { %v671_v50 = vadd.f32 %v670_v47, %v669_v46  ;;  %v872_v0 = vsel %vm668_vm2, %v806_v54, 0.0 }
  0xef   :  { %v868_v55 = vsel %vm668_vm2, %v804_v48, 0.0 }
  0xf0   :  { %v673_v56 = vadd.f32 %v672_v52, %v671_v50  ;;  %v869_v57 = vadd.f32 %v868_v55, %v867_v53 }
  0xf1   :  { %v2101_v60 = vpop.f32.mrb[4].mxu0  ;;  %v2112_v4 = vpop.f32.mrb[4].mxu1 }
  0xf2   :  { %v871_v61 = vadd.f32 %v870_v58, %v869_v57  ;;  %v2103_v62 = vpop.f32.mrb[5].mxu0  ;;  %v675_v63 = vadd.f32 %v674_v59, %v673_v56  ;;  %v2116_v8 = vpop.f32.mrb[5].mxu1  ;;  %v809_v9 = vmul.f32 %v2101_v60, %v2101_v60  ;;  %v680_v17 = vsel %vm668_vm2, %v2101_v60, 0.0 }
  0xf3   :  { %v676_v1 = vsel %vm668_vm2, %v2103_v62, 0.0  ;;  %v807_v2 = vmul.f32 %v2103_v62, %v2103_v62  ;;  %v2110_v3 = vpop.f32.mrb[6].mxu0  ;;  %v2125_v13 = vpop.f32.mrb[6].mxu1 }
  0xf4   :  { %v677_v5 = vadd.f32 %v676_v1, %v675_v63  ;;  %v873_v6 = vadd.f32 %v872_v0, %v871_v61  ;;  %v2114_v7 = vpop.f32.mrb[7].mxu0  ;;  %v2127_v16 = vpop.f32.mrb[7].mxu1  ;;  %v810_v18 = vmul.f32 %v2110_v3, %v2110_v3  ;;  %v878_v22 = vsel %vm668_vm2, %v809_v9, 0.0 }
  0xf5   :  { %v874_v10 = vsel %vm668_vm2, %v807_v2, 0.0  ;;  %v678_v11 = vsel %vm668_vm2, %v2114_v7, 0.0  ;;  %v808_v12 = vmul.f32 %v2114_v7, %v2114_v7  ;;  %v682_v23 = vsel %vm668_vm2, %v2110_v3, 0.0 }
  0xf6   :  { %v875_v14 = vadd.f32 %v874_v10, %v873_v6  ;;  %v679_v15 = vadd.f32 %v678_v11, %v677_v5  ;;  %v880_v28 = vsel %vm668_vm2, %v810_v18, 0.0 }
  0xf7   :  { %v876_v19 = vsel %vm668_vm2, %v808_v12, 0.0 }
  0xf8   :  { %v681_v20 = vadd.f32 %v680_v17, %v679_v15  ;;  %v877_v21 = vadd.f32 %v876_v19, %v875_v14 }
  0xf9   :  { %v2137_v24 = vpop.f32.mrb[8].mxu0  ;;  %v2148_v32 = vpop.f32.mrb[8].mxu1 }
  0xfa   :  { %v879_v25 = vadd.f32 %v878_v22, %v877_v21  ;;  %v2139_v26 = vpop.f32.mrb[9].mxu0  ;;  %v683_v27 = vadd.f32 %v682_v23, %v681_v20  ;;  %v2152_v36 = vpop.f32.mrb[9].mxu1  ;;  %v813_v37 = vmul.f32 %v2137_v24, %v2137_v24  ;;  %v688_v53 = vsel %vm668_vm2, %v2137_v24, 0.0 }
  0xfb   :  { %v684_v29 = vsel %vm668_vm2, %v2139_v26, 0.0  ;;  %v811_v30 = vmul.f32 %v2139_v26, %v2139_v26  ;;  %v2146_v31 = vpop.f32.mrb[10].mxu0  ;;  %v2161_v47 = vpop.f32.mrb[10].mxu1 }
  0xfc   :  { %v685_v33 = vadd.f32 %v684_v29, %v683_v27  ;;  %v881_v34 = vadd.f32 %v880_v28, %v879_v25  ;;  %v2150_v35 = vpop.f32.mrb[11].mxu0  ;;  %v2163_v52 = vpop.f32.mrb[11].mxu1  ;;  %v814_v54 = vmul.f32 %v2146_v31, %v2146_v31  ;;  %v886_v58 = vsel %vm668_vm2, %v813_v37, 0.0 }
  0xfd   :  { %v882_v40 = vsel %vm668_vm2, %v811_v30, 0.0  ;;  %v686_v45 = vsel %vm668_vm2, %v2150_v35, 0.0  ;;  %v812_v46 = vmul.f32 %v2150_v35, %v2150_v35  ;;  %v690_v59 = vsel %vm668_vm2, %v2146_v31, 0.0 }
  0xfe   :  { %v883_v48 = vadd.f32 %v882_v40, %v881_v34  ;;  %v687_v50 = vadd.f32 %v686_v45, %v685_v33  ;;  %v888_v2 = vsel %vm668_vm2, %v814_v54, 0.0 }
  0xff   :  { %v884_v55 = vsel %vm668_vm2, %v812_v46, 0.0 }
 0x100   :  { %v689_v56 = vadd.f32 %v688_v53, %v687_v50  ;;  %v885_v57 = vadd.f32 %v884_v55, %v883_v48 }
 0x101   :  { %v2173_v61 = vpop.f32.mrb[12].mxu0  ;;  %v2184_v10 = vpop.f32.mrb[12].mxu1 }
 0x102   :  { %3611 = vst [vmem:[#allocation2_spill] sm:$0xff] %v2173_v61  ;;  %v887_v63 = vadd.f32 %v886_v58, %v885_v57  ;;  %v2175_v0 = vpop.f32.mrb[13].mxu0  ;;  %v691_v1 = vadd.f32 %v690_v59, %v689_v56  ;;  %v2188_v15 = vpop.f32.mrb[13].mxu1  ;;  %v817_v17 = vmul.f32 %v2173_v61, %v2173_v61  ;;  %v696_v27 = vsel %vm668_vm2, %v2173_v61, 0.0 }
 0x103   :  { %v692_v5 = vsel %vm668_vm2, %v2175_v0, 0.0  ;;  %v815_v6 = vmul.f32 %v2175_v0, %v2175_v0  ;;  %v2182_v9 = vpop.f32.mrb[14].mxu0  ;;  %v2197_v21 = vpop.f32.mrb[14].mxu1 }
 0x104   :  { %3612 = vst [vmem:[#allocation3_spill] sm:$0xff] %v2182_v9  ;;  %v693_v11 = vadd.f32 %v692_v5, %v691_v1  ;;  %v889_v12 = vadd.f32 %v888_v2, %v887_v63  ;;  %v2186_v14 = vpop.f32.mrb[15].mxu0  ;;  %v2199_v25 = vpop.f32.mrb[15].mxu1  ;;  %v818_v28 = vmul.f32 %v2182_v9, %v2182_v9  ;;  %v894_v34 = vsel %vm668_vm2, %v817_v17, 0.0 }
 0x105   :  { %3613 = vst [vmem:[#allocation4_spill] sm:$0xff] %v2186_v14  ;;  %v890_v18 = vsel %vm668_vm2, %v815_v6, 0.0  ;;  %v694_v19 = vsel %vm668_vm2, %v2186_v14, 0.0  ;;  %v816_v20 = vmul.f32 %v2186_v14, %v2186_v14  ;;  %v698_v37 = vsel %vm668_vm2, %v2182_v9, 0.0 }
 0x106   :  { %v891_v22 = vadd.f32 %v890_v18, %v889_v12  ;;  %v695_v23 = vadd.f32 %v694_v19, %v693_v11  ;;  %v896_v50 = vsel %vm668_vm2, %v818_v28, 0.0 }
 0x107   :  { %v892_v29 = vsel %vm668_vm2, %v816_v20, 0.0 }
 0x108   :  { %v697_v30 = vadd.f32 %v696_v27, %v695_v23  ;;  %v893_v33 = vadd.f32 %v892_v29, %v891_v22 }
 0x109   :  { %v2209_v40 = vpop.f32.mrb[16].mxu0  ;;  %v2220_v56 = vpop.f32.mrb[16].mxu1 }
 0x10a   :  { %3614 = vst [vmem:[#allocation5_spill] sm:$0xff] %v2209_v40  ;;  %v895_v45 = vadd.f32 %v894_v34, %v893_v33  ;;  %v2211_v46 = vpop.f32.mrb[17].mxu0  ;;  %v699_v48 = vadd.f32 %v698_v37, %v697_v30  ;;  %v2224_v63 = vpop.f32.mrb[17].mxu1  ;;  %v821_v1 = vmul.f32 %v2209_v40, %v2209_v40  ;;  %v704_v19 = vsel %vm668_vm2, %v2209_v40, 0.0 }
 0x10b   :  { %3615 = vst [vmem:[#allocation6_spill] sm:$0xff] %v2211_v46  ;;  %v700_v53 = vsel %vm668_vm2, %v2211_v46, 0.0  ;;  %v819_v54 = vmul.f32 %v2211_v46, %v2211_v46  ;;  %v2218_v55 = vpop.f32.mrb[18].mxu0  ;;  %v2233_v11 = vpop.f32.mrb[18].mxu1 }
 0x10c   :  { %3616 = vst [vmem:[#allocation7_spill] sm:$0xff] %v2218_v55  ;;  %v701_v57 = vadd.f32 %v700_v53, %v699_v48  ;;  %v897_v58 = vadd.f32 %v896_v50, %v895_v45  ;;  %v2222_v59 = vpop.f32.mrb[19].mxu0  ;;  %v2235_v18 = vpop.f32.mrb[19].mxu1  ;;  %v822_v20 = vmul.f32 %v2218_v55, %v2218_v55  ;;  %v902_v28 = vsel %vm668_vm2, %v821_v1, 0.0 }
 0x10d   :  { %3617 = vst [vmem:[#allocation8_spill] sm:$0xff] %v2222_v59  ;;  %v898_v2 = vsel %vm668_vm2, %v819_v54, 0.0  ;;  %v702_v5 = vsel %vm668_vm2, %v2222_v59, 0.0  ;;  %v820_v6 = vmul.f32 %v2222_v59, %v2222_v59  ;;  %v706_v29 = vsel %vm668_vm2, %v2218_v55, 0.0 }
 0x10e   :  { %v899_v12 = vadd.f32 %v898_v2, %v897_v58  ;;  %v703_v17 = vadd.f32 %v702_v5, %v701_v57  ;;  %v904_v45 = vsel %vm668_vm2, %v822_v20, 0.0  ;;  %v835_v59 = vmul.f32 %v2078_v44, %v2078_v44 }
 0x10f   :  { %v900_v22 = vsel %vm668_vm2, %v820_v6, 0.0 }
 0x110   :  { %v705_v23 = vadd.f32 %v704_v19, %v703_v17  ;;  %v901_v27 = vadd.f32 %v900_v22, %v899_v12  ;;  %v930_v61 = vsel %vm668_vm2, %v835_v59, 0.0 }
 0x111   :  { %v2245_v30 = vpop.f32.mrb[20].mxu0  ;;  %v2256_v54 = vpop.f32.mrb[20].mxu1 }
 0x112   :  { %3618 = vst [vmem:[#allocation9_spill] sm:$0xff] %v2245_v30  ;;  %v903_v33 = vadd.f32 %v902_v28, %v901_v27  ;;  %v2247_v34 = vpop.f32.mrb[21].mxu0  ;;  %v707_v37 = vadd.f32 %v706_v29, %v705_v23  ;;  %v2260_v2 = vpop.f32.mrb[21].mxu1  ;;  %v825_v5 = vmul.f32 %v2245_v30, %v2245_v30  ;;  %v712_v27 = vsel %vm668_vm2, %v2245_v30, 0.0 }
 0x113   :  { %3619 = vst [vmem:[#allocation10_spill] sm:$0xff] %v2247_v34  ;;  %v708_v48 = vsel %vm668_vm2, %v2247_v34, 0.0  ;;  %v823_v50 = vmul.f32 %v2247_v34, %v2247_v34  ;;  %v2254_v53 = vpop.f32.mrb[22].mxu0  ;;  %v2269_v19 = vpop.f32.mrb[22].mxu1 }
 0x114   :  { %3620 = vst [vmem:[#allocation11_spill] sm:$0xff] %v2254_v53  ;;  %v709_v57 = vadd.f32 %v708_v48, %v707_v37  ;;  %v905_v58 = vadd.f32 %v904_v45, %v903_v33  ;;  %v2258_v1 = vpop.f32.mrb[23].mxu0  ;;  %v2271_v23 = vpop.f32.mrb[23].mxu1  ;;  %v826_v28 = vmul.f32 %v2254_v53, %v2254_v53  ;;  %v910_v45 = vsel %vm668_vm2, %v825_v5, 0.0 }
 0x115   :  { %3621 = vst [vmem:[#allocation12_spill] sm:$0xff] %v2258_v1  ;;  %v906_v6 = vsel %vm668_vm2, %v823_v50, 0.0  ;;  %v710_v12 = vsel %vm668_vm2, %v2258_v1, 0.0  ;;  %v824_v17 = vmul.f32 %v2258_v1, %v2258_v1  ;;  %v714_v48 = vsel %vm668_vm2, %v2254_v53, 0.0 }
 0x116   :  { %v907_v20 = vadd.f32 %v906_v6, %v905_v58  ;;  %v711_v22 = vadd.f32 %v710_v12, %v709_v57  ;;  %v912_v12 = vsel %vm668_vm2, %v826_v28, 0.0 }
 0x117   :  { %v908_v29 = vsel %vm668_vm2, %v824_v17, 0.0 }
 0x118   :  { %v713_v33 = vadd.f32 %v712_v27, %v711_v22  ;;  %v909_v37 = vadd.f32 %v908_v29, %v907_v20 }
 0x119   :  { %v2281_v50 = vpop.f32.mrb[24].mxu0  ;;  %v2292_v5 = vpop.f32.mrb[24].mxu1 }
 0x11a   :  { %3622 = vst [vmem:[#allocation13_spill] sm:$0xff] %v2281_v50  ;;  %v911_v57 = vadd.f32 %v910_v45, %v909_v37  ;;  %v2283_v58 = vpop.f32.mrb[25].mxu0  ;;  %v715_v6 = vadd.f32 %v714_v48, %v713_v33  ;;  %3625 = vst [vmem:[#allocation16_spill] sm:$0xff] %v2292_v5  ;;  %v2296_v37 = vpop.f32.mrb[25].mxu1  ;;  %v829_v33 = vmul.f32 %v2281_v50, %v2281_v50 }
 0x11b   :  { %3623 = vst [vmem:[#allocation14_spill] sm:$0xff] %v2283_v58  ;;  %v716_v30 = vsel %vm668_vm2, %v2283_v58, 0.0  ;;  %v827_v17 = vmul.f32 %v2283_v58, %v2283_v58  ;;  %v2290_v20 = vpop.f32.mrb[26].mxu0  ;;  %v2305_v58 = vpop.f32.mrb[26].mxu1 }
 0x11c   :  { %3624 = vst [vmem:[#allocation15_spill] sm:$0xff] %v2290_v20  ;;  %v717_v22 = vadd.f32 %v716_v30, %v715_v6  ;;  %v913_v27 = vadd.f32 %v912_v12, %v911_v57  ;;  %v2294_v29 = vpop.f32.mrb[27].mxu0  ;;  %3627 = vst [vmem:[#allocation18_spill] sm:$0xff] %v2305_v58  ;;  %v2307_v57 = vpop.f32.mrb[27].mxu1  ;;  %v720_v6 = vsel %vm668_vm2, %v2281_v50, 0.0  ;;  %v830_v12 = vmul.f32 %v2290_v20, %v2290_v20 }
 0x11d   :  { %3626 = vst [vmem:[#allocation17_spill] sm:$0xff] %v2294_v29  ;;  %v914_v28 = vsel %vm668_vm2, %v827_v17, 0.0  ;;  %v718_v45 = vsel %vm668_vm2, %v2294_v29, 0.0  ;;  %v828_v48 = vmul.f32 %v2294_v29, %v2294_v29  ;;  %v918_v55 = vsel %vm668_vm2, %v829_v33, 0.0 }
 0x11e   :  { %v915_v53 = vadd.f32 %v914_v28, %v913_v27  ;;  %v719_v30 = vadd.f32 %v718_v45, %v717_v22  ;;  %v722_v29 = vsel %vm668_vm2, %v2290_v20, 0.0  ;;  %v920_v45 = vsel %vm668_vm2, %v830_v12, 0.0 }
 0x11f   :  { %v916_v17 = vsel %vm668_vm2, %v828_v48, 0.0 }
 0x120   :  { %v721_v1 = vadd.f32 %v720_v6, %v719_v30  ;;  %v917_v34 = vadd.f32 %v916_v17, %v915_v53 }
 0x121   :  { %v2317_v40 = vpop.f32.mrb[28].mxu0  ;;  %v2328_v33 = vpop.f32.mrb[28].mxu1 }
 0x122   :  { %3628 = vst [vmem:[#allocation19_spill] sm:$0xff] %v2317_v40  ;;  %v919_v22 = vadd.f32 %v918_v55, %v917_v34  ;;  %v2319_v27 = vpop.f32.mrb[29].mxu0  ;;  %v723_v28 = vadd.f32 %v722_v29, %v721_v1  ;;  %3630 = vst [vmem:[#allocation21_spill] sm:$0xff] %v2328_v33  ;;  %v2332_v55 = vpop.f32.mrb[29].mxu1  ;;  %v833_v34 = vmul.f32 %v2317_v40, %v2317_v40 }
 0x123   :  { %3629 = vst [vmem:[#allocation20_spill] sm:$0xff] %v2319_v27  ;;  %v724_v50 = vsel %vm668_vm2, %v2319_v27, 0.0  ;;  %v831_v48 = vmul.f32 %v2319_v27, %v2319_v27  ;;  %v2326_v53 = vpop.f32.mrb[30].mxu0  ;;  %3632 = vst [vmem:[#allocation23_spill] sm:$0xff] %v2332_v55  ;;  %v2341_v27 = vpop.f32.mrb[30].mxu1 }
 0x124   :  { %v725_v30 = vadd.f32 %v724_v50, %v723_v28  ;;  %v921_v6 = vadd.f32 %v920_v45, %v919_v22  ;;  %v2330_v17 = vpop.f32.mrb[31].mxu0  ;;  %3633 = vst [vmem:[#allocation24_spill] sm:$0xff] %v2341_v27  ;;  %v2343_v22 = vpop.f32.mrb[31].mxu1  ;;  %v728_v28 = vsel %vm668_vm2, %v2317_v40, 0.0  ;;  %v834_v45 = vmul.f32 %v2326_v53, %v2326_v53 }
 0x125   :  { %3631 = vst [vmem:[#allocation22_spill] sm:$0xff] %v2330_v17  ;;  %v922_v1 = vsel %vm668_vm2, %v831_v48, 0.0  ;;  %v726_v29 = vsel %vm668_vm2, %v2330_v17, 0.0  ;;  %v832_v12 = vmul.f32 %v2330_v17, %v2330_v17  ;;  %3634 = vst [vmem:[#allocation25_spill] sm:$0xff] %v2343_v22  ;;  %v926_v17 = vsel %vm668_vm2, %v833_v34, 0.0 }
 0x126   :  { %v923_v20 = vadd.f32 %v922_v1, %v921_v6  ;;  %v727_v50 = vadd.f32 %v726_v29, %v725_v30  ;;  %v730_v30 = vsel %vm668_vm2, %v2326_v53, 0.0  ;;  %v732_v6 = vsel %vm668_vm2, %v2078_v44, 0.0 }
 0x127   :  { %v924_v48 = vsel %vm668_vm2, %v832_v12, 0.0  ;;  %v928_v40 = vsel %vm668_vm2, %v834_v45, 0.0  ;;  %v836_v12 = vmul.f32 %v2090_v51, %v2090_v51  ;;  %v734_v34 = vsel %vm668_vm2, %v2090_v51, 0.0 }
 0x128   :  { %v729_v46 = vadd.f32 %v728_v28, %v727_v50  ;;  %v925_v9 = vadd.f32 %v924_v48, %v923_v20  ;;  %v837_v20 = vmul.f32 %v2074_v42, %v2074_v42 }
 0x129   :  { %v932_v59 = vsel %vm668_vm2, %v836_v12, 0.0  ;;  %v840_v12 = vmul.f32 %v2127_v16, %v2127_v16 }
 0x12a   :  { %v927_v1 = vadd.f32 %v926_v17, %v925_v9  ;;  %v731_v29 = vadd.f32 %v730_v30, %v729_v46  ;;  %v736_v9 = vsel %vm668_vm2, %v2074_v42, 0.0  ;;  %v838_v46 = vmul.f32 %v2088_v49, %v2088_v49 }
 0x12b   :  { %v839_v17 = vmul.f32 %v2116_v8, %v2116_v8  ;;  %v934_v30 = vsel %vm668_vm2, %v837_v20, 0.0  ;;  %v841_v20 = vmul.f32 %v2112_v4, %v2112_v4 }
 0x12c   :  { %v733_v14 = vadd.f32 %v732_v6, %v731_v29  ;;  %v929_v50 = vadd.f32 %v928_v40, %v927_v1  ;;  %v738_v6 = vsel %vm668_vm2, %v2088_v49, 0.0  ;;  %v936_v29 = vsel %vm668_vm2, %v838_v46, 0.0 }
 0x12d   :  { %v842_v46 = vmul.f32 %v2125_v13, %v2125_v13 }
 0x12e   :  { %v931_v28 = vadd.f32 %v930_v61, %v929_v50  ;;  %v735_v48 = vadd.f32 %v734_v34, %v733_v14  ;;  %v740_v61 = vsel %vm668_vm2, %v2116_v8, 0.0  ;;  %v938_v50 = vsel %vm668_vm2, %v839_v17, 0.0 }
 0x12f   :  { %v940_v17 = vsel %vm668_vm2, %v840_v12, 0.0  ;;  %v844_v12 = vmul.f32 %v2163_v52, %v2163_v52 }
 0x130   :  { %v737_v40 = vadd.f32 %v736_v9, %v735_v48  ;;  %v933_v45 = vadd.f32 %v932_v59, %v931_v28  ;;  %v742_v28 = vsel %vm668_vm2, %v2127_v16, 0.0 }
 0x132   :  { %v935_v14 = vadd.f32 %v934_v30, %v933_v45  ;;  %v739_v1 = vadd.f32 %v738_v6, %v737_v40  ;;  %v744_v40 = vsel %vm668_vm2, %v2112_v4, 0.0  ;;  %v843_v45 = vmul.f32 %v2152_v36, %v2152_v36 }
 0x134   :  { %v741_v34 = vadd.f32 %v740_v61, %v739_v1  ;;  %v937_v48 = vadd.f32 %v936_v29, %v935_v14  ;;  %v942_v61 = vsel %vm668_vm2, %v841_v20, 0.0  ;;  %v746_v14 = vsel %vm668_vm2, %v2125_v13, 0.0 }
 0x135   :  { %v748_v1 = vsel %vm668_vm2, %v2152_v36, 0.0  ;;  %v845_v20 = vmul.f32 %v2148_v32, %v2148_v32 }
 0x136   :  { %v939_v9 = vadd.f32 %v938_v50, %v937_v48  ;;  %v743_v59 = vadd.f32 %v742_v28, %v741_v34  ;;  %v944_v34 = vsel %vm668_vm2, %v842_v46, 0.0  ;;  %v946_v48 = vsel %vm668_vm2, %v843_v45, 0.0 }
 0x137   :  { %v846_v46 = vmul.f32 %v2161_v47, %v2161_v47  ;;  %v948_v45 = vsel %vm668_vm2, %v844_v12, 0.0  ;;  %v848_v12 = vmul.f32 %v2199_v25, %v2199_v25 }
 0x138   :  { %v745_v30 = vadd.f32 %v744_v40, %v743_v59  ;;  %v941_v6 = vadd.f32 %v940_v17, %v939_v9  ;;  %v750_v9 = vsel %vm668_vm2, %v2163_v52, 0.0 }
 0x13a   :  { %v943_v29 = vadd.f32 %v942_v61, %v941_v6  ;;  %v747_v50 = vadd.f32 %v746_v14, %v745_v30  ;;  %v752_v30 = vsel %vm668_vm2, %v2148_v32, 0.0  ;;  %v847_v6 = vmul.f32 %v2188_v15, %v2188_v15 }
 0x13c   :  { %v749_v28 = vadd.f32 %v748_v1, %v747_v50  ;;  %v945_v59 = vadd.f32 %v944_v34, %v943_v29  ;;  %v950_v1 = vsel %vm668_vm2, %v845_v20, 0.0  ;;  %v754_v29 = vsel %vm668_vm2, %v2161_v47, 0.0 }
 0x13d   :  { %v756_v50 = vsel %vm668_vm2, %v2188_v15, 0.0  ;;  %v849_v20 = vmul.f32 %v2184_v10, %v2184_v10 }
 0x13e   :  { %v947_v40 = vadd.f32 %v946_v48, %v945_v59  ;;  %v751_v17 = vadd.f32 %v750_v9, %v749_v28  ;;  %v952_v28 = vsel %vm668_vm2, %v846_v46, 0.0  ;;  %v954_v59 = vsel %vm668_vm2, %v847_v6, 0.0 }
 0x13f   :  { %v850_v46 = vmul.f32 %v2197_v21, %v2197_v21  ;;  %v956_v6 = vsel %vm668_vm2, %v848_v12, 0.0  ;;  %v852_v12 = vmul.f32 %v2235_v18, %v2235_v18 }
 0x140   :  { %v753_v61 = vadd.f32 %v752_v30, %v751_v17  ;;  %v949_v14 = vadd.f32 %v948_v45, %v947_v40  ;;  %v758_v40 = vsel %vm668_vm2, %v2199_v25, 0.0 }
 0x142   :  { %v951_v34 = vadd.f32 %v950_v1, %v949_v14  ;;  %v755_v48 = vadd.f32 %v754_v29, %v753_v61  ;;  %v760_v61 = vsel %vm668_vm2, %v2184_v10, 0.0  ;;  %v851_v14 = vmul.f32 %v2224_v63, %v2224_v63 }
 0x144   :  { %v757_v9 = vadd.f32 %v756_v50, %v755_v48  ;;  %v953_v17 = vadd.f32 %v952_v28, %v951_v34  ;;  %v958_v50 = vsel %vm668_vm2, %v849_v20, 0.0  ;;  %v762_v34 = vsel %vm668_vm2, %v2197_v21, 0.0 }
 0x145   :  { %v764_v48 = vsel %vm668_vm2, %v2224_v63, 0.0  ;;  %v853_v20 = vmul.f32 %v2220_v56, %v2220_v56 }
 0x146   :  { %v955_v30 = vadd.f32 %v954_v59, %v953_v17  ;;  %v759_v45 = vadd.f32 %v758_v40, %v757_v9  ;;  %v960_v9 = vsel %vm668_vm2, %v850_v46, 0.0  ;;  %v962_v17 = vsel %vm668_vm2, %v851_v14, 0.0 }
 0x147   :  { %v854_v46 = vmul.f32 %v2233_v11, %v2233_v11  ;;  %v964_v14 = vsel %vm668_vm2, %v852_v12, 0.0  ;;  %v856_v12 = vmul.f32 %v2271_v23, %v2271_v23 }
 0x148   :  { %v761_v1 = vadd.f32 %v760_v61, %v759_v45  ;;  %v957_v29 = vadd.f32 %v956_v6, %v955_v30  ;;  %v766_v30 = vsel %vm668_vm2, %v2235_v18, 0.0 }
 0x14a   :  { %v959_v28 = vadd.f32 %v958_v50, %v957_v29  ;;  %v763_v59 = vadd.f32 %v762_v34, %v761_v1  ;;  %v768_v1 = vsel %vm668_vm2, %v2220_v56, 0.0  ;;  %v855_v29 = vmul.f32 %v2260_v2, %v2260_v2 }
 0x14c   :  { %v765_v40 = vadd.f32 %v764_v48, %v763_v59  ;;  %v961_v45 = vadd.f32 %v960_v9, %v959_v28  ;;  %v966_v48 = vsel %vm668_vm2, %v853_v20, 0.0  ;;  %v770_v28 = vsel %vm668_vm2, %v2233_v11, 0.0 }
 0x14d   :  { %v772_v59 = vsel %vm668_vm2, %v2260_v2, 0.0  ;;  %v857_v20 = vmul.f32 %v2256_v54, %v2256_v54 }
 0x14e   :  { %v963_v61 = vadd.f32 %v962_v17, %v961_v45  ;;  %v767_v6 = vadd.f32 %v766_v30, %v765_v40  ;;  %v968_v40 = vsel %vm668_vm2, %v854_v46, 0.0  ;;  %v970_v45 = vsel %vm668_vm2, %v855_v29, 0.0 }
 0x14f   :  { %v858_v46 = vmul.f32 %v2269_v19, %v2269_v19  ;;  %v972_v29 = vsel %vm668_vm2, %v856_v12, 0.0  ;;  %v860_v12 = vmul.f32 %v2307_v57, %v2307_v57 }
 0x150   :  { %v769_v50 = vadd.f32 %v768_v1, %v767_v6  ;;  %v965_v34 = vadd.f32 %v964_v14, %v963_v61  ;;  %v774_v61 = vsel %vm668_vm2, %v2271_v23, 0.0 }
 0x152   :  { %v967_v9 = vadd.f32 %v966_v48, %v965_v34  ;;  %v771_v17 = vadd.f32 %v770_v28, %v769_v50  ;;  %v776_v50 = vsel %vm668_vm2, %v2256_v54, 0.0  ;;  %v859_v34 = vmul.f32 %v2296_v37, %v2296_v37 }
 0x154   :  { %v773_v30 = vadd.f32 %v772_v59, %v771_v17  ;;  %v969_v6 = vadd.f32 %v968_v40, %v967_v9  ;;  %v974_v59 = vsel %vm668_vm2, %v857_v20, 0.0  ;;  %v778_v9 = vsel %vm668_vm2, %v2269_v19, 0.0 }
 0x155   :  { %v780_v17 = vsel %vm668_vm2, %v2296_v37, 0.0  ;;  %v861_v20 = vmul.f32 %v2292_v5, %v2292_v5 }
 0x156   :  { %v971_v1 = vadd.f32 %v970_v45, %v969_v6  ;;  %v775_v14 = vadd.f32 %v774_v61, %v773_v30  ;;  %v976_v30 = vsel %vm668_vm2, %v858_v46, 0.0  ;;  %v978_v6 = vsel %vm668_vm2, %v859_v34, 0.0 }
 0x157   :  { %v862_v46 = vmul.f32 %v2305_v58, %v2305_v58  ;;  %v980_v34 = vsel %vm668_vm2, %v860_v12, 0.0  ;;  %v864_v12 = vmul.f32 %v2343_v22, %v2343_v22 }
 0x158   :  { %v777_v48 = vadd.f32 %v776_v50, %v775_v14  ;;  %v973_v28 = vadd.f32 %v972_v29, %v971_v1  ;;  %v782_v1 = vsel %vm668_vm2, %v2307_v57, 0.0 }
 0x15a   :  { %v975_v40 = vadd.f32 %v974_v59, %v973_v28  ;;  %v779_v45 = vadd.f32 %v778_v9, %v777_v48  ;;  %v784_v48 = vsel %vm668_vm2, %v2292_v5, 0.0  ;;  %v863_v28 = vmul.f32 %v2332_v55, %v2332_v55 }
 0x15c   :  { %v781_v61 = vadd.f32 %v780_v17, %v779_v45  ;;  %v977_v14 = vadd.f32 %v976_v30, %v975_v40  ;;  %v982_v17 = vsel %vm668_vm2, %v861_v20, 0.0  ;;  %v786_v40 = vsel %vm668_vm2, %v2305_v58, 0.0 }
 0x15d   :  { %v788_v45 = vsel %vm668_vm2, %v2332_v55, 0.0  ;;  %v865_v20 = vmul.f32 %v2328_v33, %v2328_v33 }
 0x15e   :  { %v979_v50 = vadd.f32 %v978_v6, %v977_v14  ;;  %v783_v29 = vadd.f32 %v782_v1, %v781_v61  ;;  %v984_v61 = vsel %vm668_vm2, %v862_v46, 0.0  ;;  %v986_v14 = vsel %vm668_vm2, %v863_v28, 0.0 }
 0x15f   :  { %v866_v46 = vmul.f32 %v2341_v27, %v2341_v27  ;;  %v988_v28 = vsel %vm668_vm2, %v864_v12, 0.0 }
 0x160   :  { %v785_v59 = vadd.f32 %v784_v48, %v783_v29  ;;  %v981_v9 = vadd.f32 %v980_v34, %v979_v50  ;;  %v790_v50 = vsel %vm668_vm2, %v2343_v22, 0.0 }
 0x162   :  { %v983_v30 = vadd.f32 %v982_v17, %v981_v9  ;;  %v787_v6 = vadd.f32 %v786_v40, %v785_v59  ;;  %v792_v59 = vsel %vm668_vm2, %v2328_v33, 0.0  ;;  %v990_v40 = vsel %vm668_vm2, %v865_v20, 0.0 }
 0x164   :  { %v789_v1 = vadd.f32 %v788_v45, %v787_v6  ;;  %v985_v29 = vadd.f32 %v984_v61, %v983_v30  ;;  %v794_v45 = vsel %vm668_vm2, %v2341_v27, 0.0  ;;  %v992_v61 = vsel %vm668_vm2, %v866_v46, 0.0 }
 0x165   :  { %v1011_v46 = vlaneseq }
 0x166   :  { %v987_v48 = vadd.f32 %v986_v14, %v985_v29  ;;  %v791_v34 = vadd.f32 %v790_v50, %v789_v1 }
 0x168   :  { %v793_v9 = vadd.f32 %v792_v59, %v791_v34  ;;  %v989_v17 = vadd.f32 %v988_v28, %v987_v48 }
 0x16a   :  { %v795_v30 = vadd.f32 %v794_v45, %v793_v9  ;;  %v991_v6 = vadd.f32 %v990_v40, %v989_v17  ;;  %v2514_v40 = vshrl.u32 %v1011_v46, 7  ;;  %v1003_v45 = vld [vmem:[%s3566_s2] sm:$0x1] }
 0x16b   :  { %v3642_v46 = vld [vmem:[#allocation10_spill] sm:$0xff] }
 0x16c   :  { %v796_v14 = vrot.slane %v795_v30, 4  ;;  %v993_v1 = vadd.f32 %v992_v61, %v991_v6 }
 0x16e   :  { %v797_v29 = vadd.f32 %v796_v14, %v795_v30  ;;  %v994_v50 = vrot.slane %v993_v1, 4 }
 0x170   :  { %v798_v33 = vrot.slane %v797_v29, 2  ;;  %v995_v22 = vadd.f32 %v994_v50, %v993_v1  ;;  %v3635_v50 = vld [vmem:[#allocation4_spill] sm:$0xff] }
 0x172   :  { %v799_v55 = vadd.f32 %v798_v33, %v797_v29  ;;  %v996_v58 = vrot.slane %v995_v22, 2  ;;  %v3593_v33 = vsub.s32 0, %v2514_v40 }
 0x174   :  { %v800_v12 = vrot.slane %v799_v55, 1  ;;  %v997_v34 = vadd.f32 %v996_v58, %v995_v22 }
 0x176   :  { %v801_v48 = vadd.f32 %v800_v12, %v799_v55  ;;  %v998_v59 = vrot.slane %v997_v34, 1  ;;  %v2523_v55 = vld [vmem:[%s3567_s3] sm:$0x1] }
 0x177   :  { %v3636_v12 = vld [vmem:[#allocation2_spill] sm:$0xff] }
 0x178   :  { %v802_v20 = vmul.f32 0.001953125, %v801_v48  ;;  %v999_v28 = vadd.f32 %v998_v59, %v997_v34  ;;  %v3637_v34 = vld [vmem:[#allocation3_spill] sm:$0xff]  ;;  %v3638_v48 = vld [vmem:[#allocation6_spill] sm:$0xff]  ;;  %v3639_v59 = vld [vmem:[#allocation8_spill] sm:$0xff] }
 0x17a   :  { %v1000_v5 = vmul.f32 0.001953125, %v999_v28  ;;  %v1001_v27 = vmul.f32 %v802_v20, %v802_v20 }
 0x17c   :  { %v1002_v9 = vsub.f32 %v1000_v5, %v1001_v27  ;;  %v3651_v27 = vld [vmem:[#allocation13_spill] sm:$0xff] }
 0x17e   :  { %v1004_v17 = vadd.f32 1e-05, %v1002_v9  ;;  %v3641_v9 = vld [vmem:[#allocation7_spill] sm:$0xff] }
 0x180   :  { %1896 = vrsqrt.f32 %v1004_v17 }
 0x18a   :  { %v1897_v30 = vpop.eup %1896 }
 0x18b   :  { %v1006_v58 = vmul.f32 %v1897_v30, %v1003_v45  ;;  %v3643_v30 = vld [vmem:[#allocation12_spill] sm:$0xff] }
 0x18d   :  { %v2525_v22 = vmul.f32 %v1006_v58, %v802_v20  ;;  %v2529_v5 = vrot.slane %v1006_v58, %v3593_v33  ;;  %v3640_v20 = vld [vmem:[#allocation5_spill] sm:$0xff]  ;;  %v3652_v33 = vld [vmem:[#allocation15_spill] sm:$0xff] }
 0x18f   :  { %v2535_v6 = vmul.f32 %v2529_v5, %v2068_v39  ;;  %v2539_v61 = vmul.f32 %v2529_v5, %v2076_v43  ;;  %v2543_v14 = vmul.f32 %v2066_v38, %v2529_v5  ;;  %v2547_v1 = vmul.f32 %v2072_v41, %v2529_v5 }
 0x190   :  { %v2551_v29 = vmul.f32 %v2529_v5, %v2103_v62  ;;  %v2555_v39 = vmul.f32 %v2529_v5, %v2114_v7  ;;  %v2559_v43 = vmul.f32 %v2101_v60, %v2529_v5  ;;  %v2563_v38 = vmul.f32 %v2110_v3, %v2529_v5 }
 0x191   :  { %v2567_v41 = vmul.f32 %v2529_v5, %v2139_v26  ;;  %v2571_v62 = vmul.f32 %v2529_v5, %v2150_v35  ;;  %v2575_v7 = vmul.f32 %v2137_v24, %v2529_v5  ;;  %v2579_v60 = vmul.f32 %v2146_v31, %v2529_v5 }
 0x192   :  { %v2583_v3 = vmul.f32 %v2529_v5, %v2175_v0  ;;  %v2587_v26 = vmul.f32 %v2529_v5, %v3635_v50  ;;  %v2591_v35 = vmul.f32 %v3636_v12, %v2529_v5  ;;  %v2595_v24 = vmul.f32 %v3637_v34, %v2529_v5  ;;  %v3644_v50 = vld [vmem:[#allocation9_spill] sm:$0xff]  ;;  %v3646_v34 = vld [vmem:[#allocation11_spill] sm:$0xff] }
 0x193   :  { %v2599_v31 = vmul.f32 %v2529_v5, %v3638_v48  ;;  %v2603_v0 = vmul.f32 %v2529_v5, %v3639_v59  ;;  %v2607_v28 = vmul.f32 %v3640_v20, %v2529_v5  ;;  %v2611_v17 = vmul.f32 %v3641_v9, %v2529_v5  ;;  %v3648_v59 = vld [vmem:[#allocation14_spill] sm:$0xff]  ;;  %v3650_v9 = vld [vmem:[#allocation17_spill] sm:$0xff] }
 0x194   :  { %v2615_v45 = vmul.f32 %v2529_v5, %v3642_v46  ;;  %v2619_v58 = vmul.f32 %v2529_v5, %v3643_v30  ;;  %v2623_v12 = vmul.f32 %v3644_v50, %v2529_v5  ;;  %v2627_v48 = vmul.f32 %v3646_v34, %v2529_v5 }
 0x195   :  { %v2631_v20 = vmul.f32 %v2529_v5, %v3648_v59  ;;  %v2635_v46 = vmul.f32 %v2529_v5, %v3650_v9  ;;  %v2639_v30 = vmul.f32 %v3651_v27, %v2529_v5  ;;  %v2643_v50 = vmul.f32 %v3652_v33, %v2529_v5 }
 0x196   :  { %3645 = vst [vmem:[#allocation4_spill] sm:$0xff] %v2623_v12  ;;  %3647 = vst [vmem:[#allocation2_spill] sm:$0xff] %v2627_v48  ;;  %v3653_v12 = vld [vmem:[#allocation20_spill] sm:$0xff]  ;;  %v3654_v48 = vld [vmem:[#allocation22_spill] sm:$0xff]  ;;  %v2659_v27 = vmul.f32 %v2326_v53, %v2529_v5  ;;  %v2663_v33 = vmul.f32 %v2529_v5, %v2078_v44  ;;  %v2679_v53 = vmul.f32 %v2529_v5, %v2116_v8 }
 0x197   :  { %3649 = vst [vmem:[#allocation3_spill] sm:$0xff] %v2631_v20  ;;  %v2647_v34 = vmul.f32 %v2529_v5, %v3653_v12  ;;  %v2651_v59 = vmul.f32 %v2529_v5, %v3654_v48  ;;  %v3655_v20 = vld [vmem:[#allocation19_spill] sm:$0xff]  ;;  %v2667_v12 = vmul.f32 %v2529_v5, %v2090_v51  ;;  %v2671_v48 = vmul.f32 %v2074_v42, %v2529_v5 }
 0x198   :  { %v2655_v9 = vmul.f32 %v3655_v20, %v2529_v5  ;;  %v2675_v20 = vmul.f32 %v2088_v49, %v2529_v5  ;;  %v2683_v44 = vmul.f32 %v2529_v5, %v2127_v16  ;;  %v2687_v51 = vmul.f32 %v2112_v4, %v2529_v5 }
 0x199   :  { %v2691_v42 = vmul.f32 %v2125_v13, %v2529_v5  ;;  %v2695_v49 = vmul.f32 %v2529_v5, %v2152_v36  ;;  %v2699_v8 = vmul.f32 %v2529_v5, %v2163_v52  ;;  %v2703_v16 = vmul.f32 %v2148_v32, %v2529_v5 }
 0x19a   :  { %v2707_v4 = vmul.f32 %v2161_v47, %v2529_v5  ;;  %v2711_v13 = vmul.f32 %v2529_v5, %v2188_v15  ;;  %v2715_v36 = vmul.f32 %v2529_v5, %v2199_v25  ;;  %v2719_v52 = vmul.f32 %v2184_v10, %v2529_v5 }
 0x19b   :  { %v2723_v32 = vmul.f32 %v2197_v21, %v2529_v5  ;;  %v2727_v47 = vmul.f32 %v2529_v5, %v2224_v63  ;;  %v2731_v15 = vmul.f32 %v2529_v5, %v2235_v18  ;;  %v2735_v25 = vmul.f32 %v2220_v56, %v2529_v5 }
 0x19c   :  { %v2739_v10 = vmul.f32 %v2233_v11, %v2529_v5  ;;  %v2743_v21 = vmul.f32 %v2529_v5, %v2260_v2  ;;  %v2747_v63 = vmul.f32 %v2529_v5, %v2271_v23  ;;  %v2751_v18 = vmul.f32 %v2256_v54, %v2529_v5 }
 0x19d   :  { %v2755_v56 = vmul.f32 %v2269_v19, %v2529_v5  ;;  %v2759_v11 = vmul.f32 %v2529_v5, %v2296_v37  ;;  %v2763_v2 = vmul.f32 %v2529_v5, %v2307_v57 }
 0x19e   :  { %3656 = vst [vmem:[#allocation6_spill] sm:$0xff] %v2743_v21  ;;  %3657 = vst [vmem:[#allocation8_spill] sm:$0xff] %v2747_v63  ;;  %v3662_v21 = vld [vmem:[#allocation16_spill] sm:$0xff]  ;;  %v3664_v63 = vld [vmem:[#allocation18_spill] sm:$0xff] }
 0x19f   :  { %3658 = vst [vmem:[#allocation5_spill] sm:$0xff] %v2751_v18  ;;  %3659 = vst [vmem:[#allocation7_spill] sm:$0xff] %v2755_v56  ;;  %v2767_v23 = vmul.f32 %v3662_v21, %v2529_v5  ;;  %v2771_v54 = vmul.f32 %v3664_v63, %v2529_v5  ;;  %v3666_v18 = vld [vmem:[#allocation23_spill] sm:$0xff]  ;;  %v3667_v56 = vld [vmem:[#allocation25_spill] sm:$0xff]  ;;  %v3671_v63 = vsub.f32 %v2523_v55, %v2525_v22 }
 0x1a0   :  { %3660 = vst [vmem:[#allocation10_spill] sm:$0xff] %v2759_v11  ;;  %3661 = vst [vmem:[#allocation12_spill] sm:$0xff] %v2763_v2  ;;  %v2775_v19 = vmul.f32 %v2529_v5, %v3666_v18  ;;  %v2779_v37 = vmul.f32 %v2529_v5, %v3667_v56  ;;  %v3668_v11 = vld [vmem:[#allocation21_spill] sm:$0xff]  ;;  %v3669_v2 = vld [vmem:[#allocation24_spill] sm:$0xff] }
 0x1a1   :  { %3663 = vst [vmem:[#allocation9_spill] sm:$0xff] %v2767_v23  ;;  %3665 = vst [vmem:[#allocation11_spill] sm:$0xff] %v2771_v54  ;;  %v2783_v57 = vmul.f32 %v3668_v11, %v2529_v5  ;;  %v2787_v21 = vmul.f32 %v3669_v2, %v2529_v5  ;;  %v3670_v23 = vsub.s32 0, %v2514_v40  ;;  %v3674_v2 = vld [vmem:[#allocation3_spill] sm:$0xff] }
 0x1a3   :  { %v2794_v54 = vrot.slane %v3671_v63, %v3670_v23 }
 0x1a5   :  { %v2798_v18 = vadd.f32 %v2794_v54, %v2535_v6  ;;  %v2802_v56 = vadd.f32 %v2794_v54, %v2539_v61  ;;  %v2806_v11 = vadd.f32 %v2794_v54, %v2543_v14  ;;  %v2810_v40 = vadd.f32 %v2794_v54, %v2547_v1 }
 0x1a6   :  { %v2814_v55 = vadd.f32 %v2794_v54, %v2551_v29  ;;  %v2818_v22 = vadd.f32 %v2794_v54, %v2555_v39  ;;  %v2822_v5 = vadd.f32 %v2794_v54, %v2559_v43  ;;  %v2826_v6 = vadd.f32 %v2794_v54, %v2563_v38 }
 0x1a7   :  { %v2830_v61 = vadd.f32 %v2794_v54, %v2567_v41  ;;  %v2834_v14 = vadd.f32 %v2794_v54, %v2571_v62  ;;  %v2838_v1 = vadd.f32 %v2794_v54, %v2575_v7  ;;  %v2842_v29 = vadd.f32 %v2794_v54, %v2579_v60 }
 0x1a8   :  { %v2846_v39 = vadd.f32 %v2794_v54, %v2583_v3  ;;  %v2850_v43 = vadd.f32 %v2794_v54, %v2587_v26  ;;  %v2854_v38 = vadd.f32 %v2794_v54, %v2591_v35  ;;  %v2858_v41 = vadd.f32 %v2794_v54, %v2595_v24  ;;  %v3672_v24 = vld [vmem:[#allocation4_spill] sm:$0xff] }
 0x1a9   :  { %v2862_v62 = vadd.f32 %v2794_v54, %v2599_v31  ;;  %v2866_v7 = vadd.f32 %v2794_v54, %v2603_v0  ;;  %v2870_v60 = vadd.f32 %v2794_v54, %v2607_v28  ;;  %v2874_v3 = vadd.f32 %v2794_v54, %v2611_v17  ;;  %v3673_v0 = vld [vmem:[#allocation2_spill] sm:$0xff] }
 0x1aa   :  { %v2878_v26 = vadd.f32 %v2794_v54, %v2615_v45  ;;  %v2882_v35 = vadd.f32 %v2794_v54, %v2619_v58  ;;  %v2886_v31 = vadd.f32 %v2794_v54, %v3672_v24  ;;  %v2890_v28 = vadd.f32 %v2794_v54, %v3673_v0  ;;  %v3685_v0 = vld [vmem:[#allocation6_spill] sm:$0xff] }
 0x1ab   :  { %v2894_v17 = vadd.f32 %v2794_v54, %v3674_v2  ;;  %v2898_v45 = vadd.f32 %v2794_v54, %v2635_v46  ;;  %v2902_v58 = vadd.f32 %v2794_v54, %v2639_v30  ;;  %v2906_v23 = vadd.f32 %v2794_v54, %v2643_v50  ;;  %v3687_v2 = vld [vmem:[#allocation8_spill] sm:$0xff] }
 0x1ac   :  { %v2910_v63 = vadd.f32 %v2794_v54, %v2647_v34  ;;  %v2914_v24 = vadd.f32 %v2794_v54, %v2651_v59  ;;  %v2918_v46 = vadd.f32 %v2794_v54, %v2655_v9  ;;  %v2922_v30 = vadd.f32 %v2794_v54, %v2659_v27 }
 0x1ad   :  { %v2926_v50 = vadd.f32 %v2794_v54, %v2663_v33  ;;  %v2930_v34 = vadd.f32 %v2794_v54, %v2667_v12  ;;  %v2934_v59 = vadd.f32 %v2794_v54, %v2671_v48  ;;  %v2938_v9 = vadd.f32 %v2794_v54, %v2675_v20 }
 0x1ae   :  { %v2942_v27 = vadd.f32 %v2794_v54, %v2679_v53  ;;  %v2946_v33 = vadd.f32 %v2794_v54, %v2683_v44  ;;  %v2950_v12 = vadd.f32 %v2794_v54, %v2687_v51  ;;  %v2954_v48 = vadd.f32 %v2794_v54, %v2691_v42 }
 0x1af   :  { %v2958_v20 = vadd.f32 %v2794_v54, %v2695_v49  ;;  %v2962_v53 = vadd.f32 %v2794_v54, %v2699_v8  ;;  %v2966_v44 = vadd.f32 %v2794_v54, %v2703_v16  ;;  %v2970_v51 = vadd.f32 %v2794_v54, %v2707_v4 }
 0x1b0   :  { %3675 = vst [vmem:[#allocation14_spill] sm:$0xff] %v2950_v12  ;;  %3676 = vst [vmem:[#allocation17_spill] sm:$0xff] %v2954_v48  ;;  %v2974_v42 = vadd.f32 %v2794_v54, %v2711_v13  ;;  %v2978_v49 = vadd.f32 %v2794_v54, %v2715_v36  ;;  %v2982_v8 = vadd.f32 %v2794_v54, %v2719_v52 }
 0x1b1   :  { %3677 = vst [vmem:[#allocation13_spill] sm:$0xff] %v2958_v20  ;;  %3678 = vst [vmem:[#allocation15_spill] sm:$0xff] %v2962_v53  ;;  %v2986_v16 = vadd.f32 %v2794_v54, %v2723_v32  ;;  %v2990_v4 = vadd.f32 %v2794_v54, %v2727_v47  ;;  %v2994_v13 = vadd.f32 %v2794_v54, %v2731_v15 }
 0x1b2   :  { %3679 = vst [vmem:[#allocation20_spill] sm:$0xff] %v2966_v44  ;;  %v2998_v36 = vadd.f32 %v2794_v54, %v2735_v25  ;;  %v3002_v52 = vadd.f32 %v2794_v54, %v2739_v10  ;;  %v3006_v32 = vadd.f32 %v2794_v54, %v3685_v0  ;;  %v3010_v47 = vadd.f32 %v2794_v54, %v3687_v2 }
 0x1b3   :  { %3680 = vst [vmem:[#allocation22_spill] sm:$0xff] %v2986_v16  ;;  %3681 = vst [vmem:[#allocation19_spill] sm:$0xff] %v2990_v4  ;;  %v3689_v4 = vld [vmem:[#allocation5_spill] sm:$0xff] }
 0x1b4   :  { %3682 = vst [vmem:[#allocation16_spill] sm:$0xff] %v2994_v13  ;;  %3683 = vst [vmem:[#allocation18_spill] sm:$0xff] %v2998_v36  ;;  %v3014_v15 = vadd.f32 %v2794_v54, %v3689_v4  ;;  %v3690_v13 = vld [vmem:[#allocation7_spill] sm:$0xff]  ;;  %v3691_v36 = vld [vmem:[#allocation10_spill] sm:$0xff] }
 0x1b5   :  { %3684 = vst [vmem:[#allocation23_spill] sm:$0xff] %v3002_v52  ;;  %3686 = vst [vmem:[#allocation25_spill] sm:$0xff] %v3006_v32  ;;  %v3018_v25 = vadd.f32 %v2794_v54, %v3690_v13  ;;  %v3022_v10 = vadd.f32 %v2794_v54, %v3691_v36  ;;  %v3692_v52 = vld [vmem:[#allocation12_spill] sm:$0xff]  ;;  %v3693_v32 = vld [vmem:[#allocation9_spill] sm:$0xff]  ;;  %v3038_v13 = vadd.f32 %v2794_v54, %v2775_v19 }
 0x1b6   :  { %3688 = vst [vmem:[#allocation21_spill] sm:$0xff] %v3010_v47  ;;  %v3026_v0 = vadd.f32 %v2794_v54, %v3692_v52  ;;  %v3030_v2 = vadd.f32 %v2794_v54, %v3693_v32  ;;  %v3695_v47 = vld [vmem:[#allocation11_spill] sm:$0xff]  ;;  %v3042_v36 = vadd.f32 %v2794_v54, %v2779_v37  ;;  %v3046_v52 = vadd.f32 %v2794_v54, %v2783_v57 }
 0x1b7   :  { %v3034_v4 = vadd.f32 %v2794_v54, %v3695_v47  ;;  %3697 = vst [vmem:[#allocation2_spill] sm:$0xff] %v3038_v13  ;;  %v3050_v32 = vadd.f32 %v2794_v54, %v2787_v21  ;;  %v3708_v12 = vmov %v3038_v13  ;;  %v3711_v13 = vmax.f32 %v2798_v18, 0.0 }
 0x1b8   :  { %3694 = vst [vmem:[#allocation24_spill] sm:$0xff] %v3030_v2  ;;  %3698 = vst [vmem:[#allocation3_spill] sm:$0xff] %v3042_v36  ;;  %v3709_v48 = vmov %v3042_v36  ;;  %v3710_v20 = vmov %v3046_v52  ;;  %v3712_v36 = vmax.f32 %v2802_v56, 0.0  ;;  %v3714_v21 = vmax.f32 %v2810_v40, 0.0 }
 0x1b9   :  { %3696 = vst [vmem:[#allocation4_spill] sm:$0xff] %v3034_v4  ;;  %3699 = vst [vmem:[#allocation6_spill] sm:$0xff] %v3046_v52  ;;  %v3707_v2 = vmov %v3034_v4  ;;  %v1672_v37 = vpack.c.bf16 %v3711_v13, %v3711_v13  ;;  %v3713_v52 = vmax.f32 %v2806_v11, 0.0  ;;  %v3715_v4 = vmax.f32 %v2814_v55, 0.0 }
 0x1ba   :  { %v1673_v57 = vpack.c.bf16 %v3712_v36, %v3712_v36  ;;  %v1675_v47 = vpack.c.bf16 %v3714_v21, %v3714_v21  ;;  %v3716_v18 = vmax.f32 %v2818_v22, 0.0  ;;  %v3717_v56 = vmax.f32 %v2822_v5, 0.0 }
 0x1bb   :  { %v1674_v54 = vpack.c.bf16 %v3713_v52, %v3713_v52  ;;  %v1676_v19 = vpack.c.bf16 %v3715_v4, %v3715_v4  ;;  %v3718_v11 = vmax.f32 %v2826_v6, 0.0  ;;  %v3719_v40 = vmax.f32 %v2830_v61, 0.0  ;;  %1471 = vst.msk [vmem:[%s3568_s4] sm:$0xf] %vm1470_vm3, %v1672_v37 }
 0x1bc   :  { %v3704_v53 = vld [vmem:[#allocation25_spill] sm:$0xff]  ;;  %v1677_v13 = vpack.c.bf16 %v3716_v18, %v3716_v18  ;;  %v1678_v36 = vpack.c.bf16 %v3717_v56, %v3717_v56  ;;  %v3720_v55 = vmax.f32 %v2834_v14, 0.0  ;;  %v3721_v22 = vmax.f32 %v2838_v1, 0.0  ;;  %1472 = vst.msk [vmem:[%s3568_s4 + $0x4] sm:$0xf] %vm1470_vm3, %v1673_v57 }
 0x1bd   :  { %v3705_v44 = vld [vmem:[#allocation21_spill] sm:$0xff]  ;;  %v1679_v52 = vpack.c.bf16 %v3718_v11, %v3718_v11  ;;  %v1680_v21 = vpack.c.bf16 %v3719_v40, %v3719_v40  ;;  %v3722_v5 = vmax.f32 %v2842_v29, 0.0  ;;  %1473 = vst.msk [vmem:[%s3568_s4 + $0x8] sm:$0xf] %vm1470_vm3, %v1674_v54  ;;  %1474 = vst.msk [vmem:[%s3568_s4 + $0xc] sm:$0xf] %vm1470_vm3, %v1675_v47 }
 0x1be   :  { %v1681_v4 = vpack.c.bf16 %v3720_v55, %v3720_v55  ;;  %v1682_v18 = vpack.c.bf16 %v3721_v22, %v3721_v22  ;;  %v3723_v6 = vmax.f32 %v2846_v39, 0.0  ;;  %v3724_v14 = vmax.f32 %v2850_v43, 0.0  ;;  %1475 = vst.msk [vmem:[%s3568_s4 + $0x10] sm:$0xf] %vm1470_vm3, %v1676_v19  ;;  %1476 = vst.msk [vmem:[%s3568_s4 + $0x14] sm:$0xf] %vm1470_vm3, %v1677_v13 }
 0x1bf   :  { %v3706_v16 = vld [vmem:[#allocation24_spill] sm:$0xff]  ;;  %v1683_v56 = vpack.c.bf16 %v3722_v5, %v3722_v5  ;;  %v3725_v29 = vmax.f32 %v2854_v38, 0.0  ;;  %v3726_v57 = vmax.f32 %v2858_v41, 0.0  ;;  %1477 = vst.msk [vmem:[%s3568_s4 + $0x18] sm:$0xf] %vm1470_vm3, %v1678_v36  ;;  %v3727_v39 = vmax.f32 %v2862_v62, 0.0 }
 0x1c0   :  { %v1684_v61 = vpack.c.bf16 %v3723_v6, %v3723_v6  ;;  %v1685_v1 = vpack.c.bf16 %v3724_v14, %v3724_v14  ;;  %1478 = vst.msk [vmem:[%s3568_s4 + $0x1c] sm:$0xf] %vm1470_vm3, %v1679_v52  ;;  %v3728_v38 = vmax.f32 %v2866_v7, 0.0  ;;  %v3729_v47 = vmax.f32 %v2870_v60, 0.0  ;;  %1479 = vst.msk [vmem:[%s3568_s4 + $0x20] sm:$0xf] %vm1470_vm3, %v1680_v21 }
 0x1c1   :  { %v1686_v37 = vpack.c.bf16 %v3725_v29, %v3725_v29  ;;  %v1687_v54 = vpack.c.bf16 %v3726_v57, %v3726_v57  ;;  %v1688_v43 = vpack.c.bf16 %v3727_v39, %v3727_v39  ;;  %v3730_v13 = vmax.f32 %v2874_v3, 0.0  ;;  %1480 = vst.msk [vmem:[%s3568_s4 + $0x24] sm:$0xf] %vm1470_vm3, %v1681_v4  ;;  %1481 = vst.msk [vmem:[%s3568_s4 + $0x28] sm:$0xf] %vm1470_vm3, %v1682_v18  ;;  %v3749_v57 = vld [vmem:[#allocation14_spill] sm:$0xff] }
 0x1c2   :  { %v1689_v41 = vpack.c.bf16 %v3728_v38, %v3728_v38  ;;  %v1690_v19 = vpack.c.bf16 %v3729_v47, %v3729_v47  ;;  %1482 = vst.msk [vmem:[%s3568_s4 + $0x2c] sm:$0xf] %vm1470_vm3, %v1683_v56  ;;  %v3731_v62 = vmax.f32 %v2878_v26, 0.0  ;;  %v3732_v60 = vmax.f32 %v2882_v35, 0.0  ;;  %1483 = vst.msk [vmem:[%s3568_s4 + $0x30] sm:$0xf] %vm1470_vm3, %v1684_v61 }
 0x1c3   :  { %v1691_v36 = vpack.c.bf16 %v3730_v13, %v3730_v13  ;;  %v3733_v11 = vmax.f32 %v2886_v31, 0.0  ;;  %v3734_v40 = vmax.f32 %v2890_v28, 0.0  ;;  %1484 = vst.msk [vmem:[%s3568_s4 + $0x34] sm:$0xf] %vm1470_vm3, %v1685_v1  ;;  %1485 = vst.msk [vmem:[%s3568_s4 + $0x38] sm:$0xf] %vm1470_vm3, %v1686_v37 }
 0x1c4   :  { %v1692_v7 = vpack.c.bf16 %v3731_v62, %v3731_v62  ;;  %v1693_v3 = vpack.c.bf16 %v3732_v60, %v3732_v60  ;;  %1486 = vst.msk [vmem:[%s3568_s4 + $0x3c] sm:$0xf] %vm1470_vm3, %v1687_v54  ;;  %v3735_v26 = vmax.f32 %v2894_v17, 0.0  ;;  %v3736_v31 = vmax.f32 %v2898_v45, 0.0  ;;  %1487 = vst.msk [vmem:[%s3568_s4 + $0x40] sm:$0xf] %vm1470_vm3, %v1688_v43 }
 0x1c5   :  { %v1694_v52 = vpack.c.bf16 %v3733_v11, %v3733_v11  ;;  %v1695_v21 = vpack.c.bf16 %v3734_v40, %v3734_v40  ;;  %v3737_v55 = vmax.f32 %v2902_v58, 0.0  ;;  %v3738_v22 = vmax.f32 %v2906_v23, 0.0  ;;  %1488 = vst.msk [vmem:[%s3568_s4 + $0x44] sm:$0xf] %vm1470_vm3, %v1689_v41  ;;  %1489 = vst.msk [vmem:[%s3568_s4 + $0x48] sm:$0xf] %vm1470_vm3, %v1690_v19 }
 0x1c6   :  { %v1696_v35 = vpack.c.bf16 %v3735_v26, %v3735_v26  ;;  %v1697_v28 = vpack.c.bf16 %v3736_v31, %v3736_v31  ;;  %1490 = vst.msk [vmem:[%s3568_s4 + $0x4c] sm:$0xf] %vm1470_vm3, %v1691_v36  ;;  %v3739_v17 = vmax.f32 %v2910_v63, 0.0  ;;  %v3740_v58 = vmax.f32 %v2914_v24, 0.0  ;;  %1491 = vst.msk [vmem:[%s3568_s4 + $0x50] sm:$0xf] %vm1470_vm3, %v1692_v7 }
 0x1c7   :  { %v1698_v4 = vpack.c.bf16 %v3737_v55, %v3737_v55  ;;  %v1699_v18 = vpack.c.bf16 %v3738_v22, %v3738_v22  ;;  %v3741_v5 = vmax.f32 %v2918_v46, 0.0  ;;  %v3742_v6 = vmax.f32 %v2922_v30, 0.0  ;;  %1492 = vst.msk [vmem:[%s3568_s4 + $0x54] sm:$0xf] %vm1470_vm3, %v1693_v3  ;;  %1493 = vst.msk [vmem:[%s3568_s4 + $0x58] sm:$0xf] %vm1470_vm3, %v1694_v52 }
 0x1c8   :  { %v1700_v45 = vpack.c.bf16 %v3739_v17, %v3739_v17  ;;  %v1701_v23 = vpack.c.bf16 %v3740_v58, %v3740_v58  ;;  %1494 = vst.msk [vmem:[%s3568_s4 + $0x5c] sm:$0xf] %vm1470_vm3, %v1695_v21  ;;  %v3743_v63 = vmax.f32 %v2926_v50, 0.0  ;;  %v3744_v46 = vmax.f32 %v2930_v34, 0.0  ;;  %1495 = vst.msk [vmem:[%s3568_s4 + $0x60] sm:$0xf] %vm1470_vm3, %v1696_v35 }
 0x1c9   :  { %v1702_v56 = vpack.c.bf16 %v3741_v5, %v3741_v5  ;;  %v1703_v61 = vpack.c.bf16 %v3742_v6, %v3742_v6  ;;  %v3745_v14 = vmax.f32 %v2934_v59, 0.0  ;;  %v3746_v29 = vmax.f32 %v2938_v9, 0.0  ;;  %1496 = vst.msk [vmem:[%s3568_s4 + $0x64] sm:$0xf] %vm1470_vm3, %v1697_v28  ;;  %1497 = vst.msk [vmem:[%s3568_s4 + $0x68] sm:$0xf] %vm1470_vm3, %v1698_v4 }
 0x1ca   :  { %v1704_v24 = vpack.c.bf16 %v3743_v63, %v3743_v63  ;;  %v1705_v30 = vpack.c.bf16 %v3744_v46, %v3744_v46  ;;  %1498 = vst.msk [vmem:[%s3568_s4 + $0x6c] sm:$0xf] %vm1470_vm3, %v1699_v18  ;;  %v3747_v50 = vmax.f32 %v2942_v27, 0.0  ;;  %v3748_v59 = vmax.f32 %v2946_v33, 0.0  ;;  %v3751_v43 = vld [vmem:[#allocation17_spill] sm:$0xff]  ;;  %v3755_v19 = vld [vmem:[#allocation15_spill] sm:$0xff] }
 0x1cb   :  { %v1706_v1 = vpack.c.bf16 %v3745_v14, %v3745_v14  ;;  %v1707_v37 = vpack.c.bf16 %v3746_v29, %v3746_v29  ;;  %v3750_v54 = vmax.f32 %v3749_v57, 0.0  ;;  %v3752_v38 = vmax.f32 %v3751_v43, 0.0  ;;  %1499 = vst.msk [vmem:[%s3568_s4 + $0x70] sm:$0xf] %vm1470_vm3, %v1700_v45  ;;  %1500 = vst.msk [vmem:[%s3568_s4 + $0x74] sm:$0xf] %vm1470_vm3, %v1701_v23 }
 0x1cc   :  { %v1708_v34 = vpack.c.bf16 %v3747_v50, %v3747_v50  ;;  %v1709_v9 = vpack.c.bf16 %v3748_v59, %v3748_v59  ;;  %1501 = vst.msk [vmem:[%s3568_s4 + $0x78] sm:$0xf] %vm1470_vm3, %v1702_v56  ;;  %1502 = vst.msk [vmem:[%s3568_s4 + $0x7c] sm:$0xf] %vm1470_vm3, %v1703_v61  ;;  %v3753_v27 = vld [vmem:[#allocation13_spill] sm:$0xff]  ;;  %v3756_v13 = vmax.f32 %v3755_v19, 0.0 }
 0x1cd   :  { %v1710_v39 = vpack.c.bf16 %v3750_v54, %v3750_v54  ;;  %v1711_v41 = vpack.c.bf16 %v3752_v38, %v3752_v38  ;;  %v3754_v33 = vmax.f32 %v3753_v27, 0.0  ;;  %v3757_v62 = vld [vmem:[#allocation20_spill] sm:$0xff]  ;;  %v3759_v3 = vmax.f32 %v2970_v51, 0.0  ;;  %1503 = vst.msk [vmem:[%s3568_s4 + $0x80] sm:$0xf] %vm1470_vm3, %v1704_v24  ;;  %v3763_v31 = vld [vmem:[#allocation22_spill] sm:$0xff] }
 0x1ce   :  { %v1713_v36 = vpack.c.bf16 %v3756_v13, %v3756_v13  ;;  %v3758_v7 = vmax.f32 %v3757_v62, 0.0  ;;  %1504 = vst.msk [vmem:[%s3568_s4 + $0x84] sm:$0xf] %vm1470_vm3, %v1705_v30  ;;  %1505 = vst.msk [vmem:[%s3568_s4 + $0x88] sm:$0xf] %vm1470_vm3, %v1706_v1  ;;  %v3760_v51 = vmax.f32 %v2974_v42, 0.0 }
 0x1cf   :  { %v1712_v47 = vpack.c.bf16 %v3754_v33, %v3754_v33  ;;  %v1715_v11 = vpack.c.bf16 %v3759_v3, %v3759_v3  ;;  %1506 = vst.msk [vmem:[%s3568_s4 + $0x8c] sm:$0xf] %vm1470_vm3, %v1707_v37  ;;  %v3761_v40 = vmax.f32 %v2978_v49, 0.0  ;;  %v3762_v26 = vmax.f32 %v2982_v8, 0.0  ;;  %1507 = vst.msk [vmem:[%s3568_s4 + $0x90] sm:$0xf] %vm1470_vm3, %v1708_v34 }
 0x1d0   :  { %v1714_v60 = vpack.c.bf16 %v3758_v7, %v3758_v7  ;;  %v1716_v52 = vpack.c.bf16 %v3760_v51, %v3760_v51  ;;  %v3764_v28 = vmax.f32 %v3763_v31, 0.0  ;;  %1508 = vst.msk [vmem:[%s3568_s4 + $0x94] sm:$0xf] %vm1470_vm3, %v1709_v9  ;;  %1509 = vst.msk [vmem:[%s3568_s4 + $0x98] sm:$0xf] %vm1470_vm3, %v1710_v39  ;;  %v3765_v42 = vld [vmem:[#allocation19_spill] sm:$0xff] }
 0x1d1   :  { %v1717_v21 = vpack.c.bf16 %v3761_v40, %v3761_v40  ;;  %v1718_v35 = vpack.c.bf16 %v3762_v26, %v3762_v26  ;;  %1510 = vst.msk [vmem:[%s3568_s4 + $0x9c] sm:$0xf] %vm1470_vm3, %v1711_v41  ;;  %v3766_v49 = vmax.f32 %v3765_v42, 0.0  ;;  %v3767_v4 = vld [vmem:[#allocation16_spill] sm:$0xff]  ;;  %v3769_v17 = vld [vmem:[#allocation18_spill] sm:$0xff]  ;;  %v3771_v23 = vld [vmem:[#allocation23_spill] sm:$0xff] }
 0x1d2   :  { %v1719_v55 = vpack.c.bf16 %v3764_v28, %v3764_v28  ;;  %v3768_v22 = vmax.f32 %v3767_v4, 0.0  ;;  %v3770_v45 = vmax.f32 %v3769_v17, 0.0  ;;  %v3772_v5 = vmax.f32 %v3771_v23, 0.0  ;;  %1511 = vst.msk [vmem:[%s3568_s4 + $0xa0] sm:$0xf] %vm1470_vm3, %v1712_v47 }
 0x1d3   :  { %v1720_v8 = vpack.c.bf16 %v3766_v49, %v3766_v49  ;;  %1512 = vst.msk [vmem:[%s3568_s4 + $0xa4] sm:$0xf] %vm1470_vm3, %v1713_v36  ;;  %1513 = vst.msk [vmem:[%s3568_s4 + $0xa8] sm:$0xf] %vm1470_vm3, %v1714_v60  ;;  %v3773_v6 = vmax.f32 %v3704_v53, 0.0  ;;  %v3774_v63 = vmax.f32 %v3705_v44, 0.0 }
 0x1d4   :  { %v1721_v18 = vpack.c.bf16 %v3768_v22, %v3768_v22  ;;  %v1722_v58 = vpack.c.bf16 %v3770_v45, %v3770_v45  ;;  %v1723_v56 = vpack.c.bf16 %v3772_v5, %v3772_v5  ;;  %1514 = vst.msk [vmem:[%s3568_s4 + $0xac] sm:$0xf] %vm1470_vm3, %v1715_v11  ;;  %v3775_v46 = vmax.f32 %v3014_v15, 0.0  ;;  %1515 = vst.msk [vmem:[%s3568_s4 + $0xb0] sm:$0xf] %vm1470_vm3, %v1716_v52 }
 0x1d5   :  { %v1724_v61 = vpack.c.bf16 %v3773_v6, %v3773_v6  ;;  %v1725_v24 = vpack.c.bf16 %v3774_v63, %v3774_v63  ;;  %v3776_v14 = vmax.f32 %v3018_v25, 0.0  ;;  %1516 = vst.msk [vmem:[%s3568_s4 + $0xb4] sm:$0xf] %vm1470_vm3, %v1717_v21  ;;  %1517 = vst.msk [vmem:[%s3568_s4 + $0xb8] sm:$0xf] %vm1470_vm3, %v1718_v35  ;;  %v3777_v53 = vmax.f32 %v3022_v10, 0.0 }
 0x1d6   :  { %v1726_v30 = vpack.c.bf16 %v3775_v46, %v3775_v46  ;;  %1518 = vst.msk [vmem:[%s3568_s4 + $0xbc] sm:$0xf] %vm1470_vm3, %v1719_v55  ;;  %v3778_v15 = vmax.f32 %v3026_v0, 0.0  ;;  %v3779_v29 = vmax.f32 %v3706_v16, 0.0  ;;  %v3780_v50 = vmax.f32 %v3707_v2, 0.0 }
 0x1d7   :  { %v1727_v1 = vpack.c.bf16 %v3776_v14, %v3776_v14  ;;  %v1728_v44 = vpack.c.bf16 %v3777_v53, %v3777_v53  ;;  %1519 = vst.msk [vmem:[%s3568_s4 + $0xc0] sm:$0xf] %vm1470_vm3, %v1720_v8  ;;  %1520 = vst.msk [vmem:[%s3568_s4 + $0xc4] sm:$0xf] %vm1470_vm3, %v1721_v18  ;;  %v3781_v16 = vmax.f32 %v3708_v12, 0.0  ;;  %v3782_v0 = vmax.f32 %v3709_v48, 0.0 }
 0x1d8   :  { %v1729_v25 = vpack.c.bf16 %v3778_v15, %v3778_v15  ;;  %v1730_v37 = vpack.c.bf16 %v3779_v29, %v3779_v29  ;;  %v1731_v34 = vpack.c.bf16 %v3780_v50, %v3780_v50  ;;  %1521 = vst.msk [vmem:[%s3568_s4 + $0xc8] sm:$0xf] %vm1470_vm3, %v1722_v58  ;;  %1522 = vst.msk [vmem:[%s3568_s4 + $0xcc] sm:$0xf] %vm1470_vm3, %v1723_v56  ;;  %v3783_v59 = vmax.f32 %v3710_v20, 0.0 }
 0x1d9   :  { %v1732_v10 = vpack.c.bf16 %v3781_v16, %v3781_v16  ;;  %v1733_v2 = vpack.c.bf16 %v3782_v0, %v3782_v0  ;;  %v3784_v57 = vmax.f32 %v3050_v32, 0.0  ;;  %1523 = vst.msk [vmem:[%s3568_s4 + $0xd0] sm:$0xf] %vm1470_vm3, %v1724_v61  ;;  %1524 = vst.msk [vmem:[%s3568_s4 + $0xd4] sm:$0xf] %vm1470_vm3, %v1725_v24 }
 0x1da   :  { %v1734_v9 = vpack.c.bf16 %v3783_v59, %v3783_v59  ;;  %1525 = vst.msk [vmem:[%s3568_s4 + $0xd8] sm:$0xf] %vm1470_vm3, %v1726_v30  ;;  %1526 = vst.msk [vmem:[%s3568_s4 + $0xdc] sm:$0xf] %vm1470_vm3, %v1727_v1 }
 0x1db   :  { %v1735_v54 = vpack.c.bf16 %v3784_v57, %v3784_v57  ;;  %1527 = vst.msk [vmem:[%s3568_s4 + $0xe0] sm:$0xf] %vm1470_vm3, %v1728_v44  ;;  %1528 = vst.msk [vmem:[%s3568_s4 + $0xe4] sm:$0xf] %vm1470_vm3, %v1729_v25 }
 0x1dc   :  { %1529 = vst.msk [vmem:[%s3568_s4 + $0xe8] sm:$0xf] %vm1470_vm3, %v1730_v37  ;;  %1530 = vst.msk [vmem:[%s3568_s4 + $0xec] sm:$0xf] %vm1470_vm3, %v1731_v34 }
 0x1dd   :  { %1531 = vst.msk [vmem:[%s3568_s4 + $0xf0] sm:$0xf] %vm1470_vm3, %v1732_v10  ;;  %1532 = vst.msk [vmem:[%s3568_s4 + $0xf4] sm:$0xf] %vm1470_vm3, %v1733_v2 }
 0x1de   :  { %1533 = vst.msk [vmem:[%s3568_s4 + $0xf8] sm:$0xf] %vm1470_vm3, %v1734_v9  ;;  %1534 = vst.msk [vmem:[%s3568_s4 + $0xfc] sm:$0xf] %vm1470_vm3, %v1735_v54 }

// kernel: _lambda_.11
= control target key start
LH: loop header
LB: loop body
LE: loop exit
PB: predicated region body
PF: predicated region fallthrough
CT: control target
= control target key end

     0   :  { %v2872_v0 = vmov 0   ;;  %vm770_vm0 = vcmask 261120   ;;  %vm2246_vm1 = vcmask 257024   ;;  %s4919_s1 = inlined_call_operand.vmem [shape: bf16[288,32], index: 1, kind: input, shape index: {}]   ;;  %s4920_s0 = inlined_call_operand.vmem [shape: bf16[512,288], index: 0, kind: input, shape index: {}]   ;;  %s4921_s2 = inlined_call_operand.vmem [shape: f32[1,32], index: 2, kind: input, shape index: {}]   ;;  %s4922_s3 = inlined_call_operand.vmem [shape: f32[1,32], index: 3, kind: input, shape index: {}]   ;;  %s4923_s4 = inlined_call_operand.vmem [shape: bf16[512,32], index: 4, kind: output, shape index: {}]  }
   0x1   :  { %867 = vmatprep.subr.bf16.mxu0 %v2872_v0  ;;  %2691 = vmatprep.subr.bf16.mxu1 %v2872_v0  ;;  %v2724_v1 = vld [vmem:[%s4919_s1] sm:$0xff]   ;;  %v2725_v2 = vld [vmem:[%s4919_s1 + $0x8] sm:$0xff]   ;;  %v2726_v3 = vld [vmem:[%s4919_s1 + $0x10] sm:$0xff]  }
   0x2   :  { %868 = vmatpush1.bf16.msra.mxu0 %v2724_v1  ;;  %2707 = vmatpush1.bf16.msra.mxu1 %v2724_v1  ;;  %v2727_v4 = vld [vmem:[%s4919_s1 + $0x18] sm:$0xff]   ;;  %v2728_v5 = vld [vmem:[%s4919_s1 + $0x20] sm:$0xff]   ;;  %v2729_v7 = vld [vmem:[%s4919_s1 + $0x28] sm:$0xff]  }
   0x3   :  { %869 = vmatprep.subr.bf16.mxu0 %v2872_v0  ;;  %2692 = vmatprep.subr.bf16.mxu1 %v2872_v0  ;;  %v2742_v6 = vld [vmem:[%s4920_s0 + $0x4] ss:$12 sps:$4 sm:$0xff]   ;;  %v2731_v10 = vld [vmem:[%s4919_s1 + $0x38] sm:$0xff]   ;;  %v2733_v12 = vld [vmem:[%s4919_s1 + $0x48] sm:$0xff]  }
   0x4   :  { %v2745_v8 = vld [vmem:[%s4920_s0 + $0x244] ss:$12 sps:$4 sm:$0xff]   ;;  %899 = vmatprep.mubr.bf16.mxu0 %v2742_v6  ;;  %v2735_v14 = vld [vmem:[%s4919_s1 + $0x58] sm:$0xff]   ;;  %v2737_v16 = vld [vmem:[%s4919_s1 + $0x68] sm:$0xff]  }
   0x5   :  { %1091 = vmatprep.mubr.bf16.mxu1 %v2745_v8  ;;  %v2730_v9 = vld [vmem:[%s4919_s1 + $0x30] sm:$0xff]   ;;  %v2732_v11 = vld [vmem:[%s4919_s1 + $0x40] sm:$0xff]   ;;  %v2739_v18 = vld [vmem:[%s4919_s1 + $0x78] sm:$0xff]  }
   0x6   :  { %870 = vmatpush1.bf16.msra.mxu0 %v2725_v2  ;;  %2708 = vmatpush1.bf16.msra.mxu1 %v2725_v2  ;;  %v2734_v13 = vld [vmem:[%s4919_s1 + $0x50] sm:$0xff]   ;;  %v2736_v15 = vld [vmem:[%s4919_s1 + $0x60] sm:$0xff]   ;;  %v2746_v22 = vld [vmem:[%s4920_s0 + $0x1c] ss:$12 sps:$4 sm:$0xff]  }
   0x7   :  { %871 = vmatprep.subr.bf16.mxu0 %v2872_v0  ;;  %2693 = vmatprep.subr.bf16.mxu1 %v2872_v0  ;;  %v2738_v17 = vld [vmem:[%s4919_s1 + $0x70] sm:$0xff]   ;;  %v2764_v19 = vld [vmem:[%s4919_s1 + $0x80] sm:$0xff]   ;;  %v2748_v23 = vld [vmem:[%s4920_s0 + $0x25c] ss:$12 sps:$4 sm:$0xff]  }
   0x8   :  { %v2740_v20 = vld [vmem:[%s4920_s0] ss:$12 sps:$4 sm:$0xff]   ;;  %v2750_v25 = vld [vmem:[%s4920_s0 + $0x18] ss:$12 sps:$4 sm:$0xff]   ;;  %v2756_v29 = vld [vmem:[%s4920_s0 + $0x30] ss:$12 sps:$4 sm:$0xff]  }
   0x9   :  { %v2743_v21 = vld [vmem:[%s4920_s0 + $0x240] ss:$12 sps:$4 sm:$0xff]   ;;  %v2751_v26 = vld [vmem:[%s4920_s0 + $0x258] ss:$12 sps:$4 sm:$0xff]   ;;  %v2757_v30 = vld [vmem:[%s4920_s0 + $0x270] ss:$12 sps:$4 sm:$0xff]  }
   0xa   :  { %872 = vmatpush1.bf16.msra.mxu0 %v2726_v3  ;;  %2709 = vmatpush1.bf16.msra.mxu1 %v2726_v3  ;;  %v2789_v24 = vld [vmem:[%s4919_s1 + $0x88] sm:$0xff]   ;;  %v2752_v27 = vld [vmem:[%s4920_s0 + $0x34] ss:$12 sps:$4 sm:$0xff]   ;;  %v2765_v35 = vld [vmem:[%s4920_s0 + $0x64] ss:$12 sps:$4 sm:$0xff]  }
   0xb   :  { %873 = vmatprep.subr.bf16.mxu0 %v2872_v0  ;;  %2694 = vmatprep.subr.bf16.mxu1 %v2872_v0  ;;  %v2754_v28 = vld [vmem:[%s4920_s0 + $0x274] ss:$12 sps:$4 sm:$0xff]   ;;  %v2758_v31 = vld [vmem:[%s4920_s0 + $0x4c] ss:$12 sps:$4 sm:$0xff]   ;;  %v2767_v36 = vld [vmem:[%s4920_s0 + $0x2a4] ss:$12 sps:$4 sm:$0xff]  }
   0xc   :  { %v2760_v32 = vld [vmem:[%s4920_s0 + $0x28c] ss:$12 sps:$4 sm:$0xff]   ;;  %v2762_v33 = vld [vmem:[%s4920_s0 + $0x48] ss:$12 sps:$4 sm:$0xff]   ;;  %v2781_v45 = vld [vmem:[%s4920_s0 + $0x90] ss:$12 sps:$4 sm:$0xff]  }
   0xd   :  { %v2763_v34 = vld [vmem:[%s4920_s0 + $0x288] ss:$12 sps:$4 sm:$0xff]   ;;  %v2769_v37 = vld [vmem:[%s4920_s0 + $0x60] ss:$12 sps:$4 sm:$0xff]   ;;  %v2775_v41 = vld [vmem:[%s4920_s0 + $0x78] ss:$12 sps:$4 sm:$0xff]  }
   0xe   :  { %874 = vmatpush1.bf16.msra.mxu0 %v2727_v4  ;;  %2710 = vmatpush1.bf16.msra.mxu1 %v2727_v4  ;;  %v2770_v38 = vld [vmem:[%s4920_s0 + $0x2a0] ss:$12 sps:$4 sm:$0xff]   ;;  %v2771_v39 = vld [vmem:[%s4920_s0 + $0x7c] ss:$12 sps:$4 sm:$0xff]   ;;  %v2776_v42 = vld [vmem:[%s4920_s0 + $0x2b8] ss:$12 sps:$4 sm:$0xff]  }
   0xf   :  { %875 = vmatprep.subr.bf16.mxu0 %v2872_v0  ;;  %2695 = vmatprep.subr.bf16.mxu1 %v2872_v0  ;;  %v2773_v40 = vld [vmem:[%s4920_s0 + $0x2bc] ss:$12 sps:$4 sm:$0xff]   ;;  %v2777_v43 = vld [vmem:[%s4920_s0 + $0x94] ss:$12 sps:$4 sm:$0xff]   ;;  %v2783_v47 = vld [vmem:[%s4920_s0 + $0xac] ss:$12 sps:$4 sm:$0xff]  }
  0x10   :  { %v2779_v44 = vld [vmem:[%s4920_s0 + $0x2d4] ss:$12 sps:$4 sm:$0xff]   ;;  %v2782_v46 = vld [vmem:[%s4920_s0 + $0x2d0] ss:$12 sps:$4 sm:$0xff]   ;;  %v2785_v48 = vld [vmem:[%s4920_s0 + $0x2ec] ss:$12 sps:$4 sm:$0xff]  }
  0x11   :  { %v2787_v49 = vld [vmem:[%s4920_s0 + $0xa8] ss:$12 sps:$4 sm:$0xff]   ;;  %v2790_v51 = vld [vmem:[%s4920_s0 + $0xc4] ss:$12 sps:$4 sm:$0xff]   ;;  %v2793_v53 = vld [vmem:[%s4920_s0 + $0xc0] ss:$12 sps:$4 sm:$0xff]  }
  0x12   :  { %876 = vmatpush1.bf16.msra.mxu0 %v2728_v5  ;;  %2711 = vmatpush1.bf16.msra.mxu1 %v2728_v5  ;;  %v2788_v50 = vld [vmem:[%s4920_s0 + $0x2e8] ss:$12 sps:$4 sm:$0xff]   ;;  %v2794_v54 = vld [vmem:[%s4920_s0 + $0x20] ss:$12 sps:$4 sm:$0xff]   ;;  %v2797_v56 = vld [vmem:[%s4920_s0 + $0x38] ss:$12 sps:$4 sm:$0xff]  }
  0x13   :  { %877 = vmatprep.subr.bf16.mxu0 %v2872_v0  ;;  %2696 = vmatprep.subr.bf16.mxu1 %v2872_v0  ;;  %v2792_v52 = vld [vmem:[%s4920_s0 + $0x8] ss:$12 sps:$4 sm:$0xff]   ;;  %v2798_v57 = vld [vmem:[%s4920_s0 + $0xd8] ss:$12 sps:$4 sm:$0xff]   ;;  %v2799_v58 = vld [vmem:[%s4920_s0 + $0x50] ss:$12 sps:$4 sm:$0xff]  }
  0x14   :  { %v2795_v55 = vld [vmem:[%s4920_s0 + $0xdc] ss:$12 sps:$4 sm:$0xff]   ;;  %v2800_v59 = vld [vmem:[%s4920_s0 + $0xf4] ss:$12 sps:$4 sm:$0xff]   ;;  %v2805_v63 = vld [vmem:[%s4920_s0 + $0x10c] ss:$12 sps:$4 sm:$0xff]  }
  0x15   :  { %v2802_v60 = vld [vmem:[%s4920_s0 + $0x68] ss:$12 sps:$4 sm:$0xff]   ;;  %v2803_v61 = vld [vmem:[%s4920_s0 + $0xf0] ss:$12 sps:$4 sm:$0xff]   ;;  %v2804_v62 = vld [vmem:[%s4920_s0 + $0x80] ss:$12 sps:$4 sm:$0xff]  }
  0x16   :  { %878 = vmatpush1.bf16.msra.mxu0 %v2729_v7  ;;  %2712 = vmatpush1.bf16.msra.mxu1 %v2729_v7  ;;  %v2808_v1 = vld [vmem:[%s4920_s0 + $0x108] ss:$12 sps:$4 sm:$0xff]   ;;  %v2809_v2 = vld [vmem:[%s4920_s0 + $0xb0] ss:$12 sps:$4 sm:$0xff]   ;;  %v2813_v5 = vld [vmem:[%s4920_s0 + $0x120] ss:$12 sps:$4 sm:$0xff]  }
  0x17   :  { %879 = vmatprep.subr.bf16.mxu0 %v2872_v0  ;;  %2697 = vmatprep.subr.bf16.mxu1 %v2872_v0  ;;  %v2810_v3 = vld [vmem:[%s4920_s0 + $0x124] ss:$12 sps:$4 sm:$0xff]   ;;  %v2812_v4 = vld [vmem:[%s4920_s0 + $0xc8] ss:$12 sps:$4 sm:$0xff]   ;;  %v2814_v6 = vld [vmem:[%s4920_s0 + $0xe0] ss:$12 sps:$4 sm:$0xff]  }
  0x18   :  { %v2815_v7 = vld [vmem:[%s4920_s0 + $0x13c] ss:$12 sps:$4 sm:$0xff]   ;;  %v2817_v8 = vld [vmem:[%s4920_s0 + $0xf8] ss:$12 sps:$4 sm:$0xff]  }
  0x1a   :  { %880 = vmatpush1.bf16.msra.mxu0 %v2730_v9  ;;  %2713 = vmatpush1.bf16.msra.mxu1 %v2730_v9  ;;  %v2818_v9 = vld [vmem:[%s4920_s0 + $0x138] ss:$12 sps:$4 sm:$0xff]  }
  0x1b   :  { %881 = vmatprep.subr.bf16.mxu0 %v2872_v0  ;;  %2698 = vmatprep.subr.bf16.mxu1 %v2872_v0 }
  0x1e   :  { %882 = vmatpush1.bf16.msra.mxu0 %v2731_v10  ;;  %2714 = vmatpush1.bf16.msra.mxu1 %v2731_v10  ;;  %v2819_v10 = vld [vmem:[%s4920_s0 + $0x110] ss:$12 sps:$4 sm:$0xff]  }
  0x1f   :  { %883 = vmatprep.subr.bf16.mxu0 %v2872_v0  ;;  %2699 = vmatprep.subr.bf16.mxu1 %v2872_v0 }
  0x22   :  { %884 = vmatpush1.bf16.msra.mxu0 %v2732_v11  ;;  %2715 = vmatpush1.bf16.msra.mxu1 %v2732_v11  ;;  %v2820_v11 = vld [vmem:[%s4920_s0 + $0x154] ss:$12 sps:$4 sm:$0xff]  }
  0x23   :  { %885 = vmatprep.subr.bf16.mxu0 %v2872_v0  ;;  %2700 = vmatprep.subr.bf16.mxu1 %v2872_v0 }
  0x26   :  { %886 = vmatpush1.bf16.msra.mxu0 %v2733_v12  ;;  %2716 = vmatpush1.bf16.msra.mxu1 %v2733_v12  ;;  %v2822_v12 = vld [vmem:[%s4920_s0 + $0x128] ss:$12 sps:$4 sm:$0xff]  }
  0x27   :  { %887 = vmatprep.subr.bf16.mxu0 %v2872_v0  ;;  %2701 = vmatprep.subr.bf16.mxu1 %v2872_v0 }
  0x2a   :  { %888 = vmatpush1.bf16.msra.mxu0 %v2734_v13  ;;  %2717 = vmatpush1.bf16.msra.mxu1 %v2734_v13  ;;  %v2823_v13 = vld [vmem:[%s4920_s0 + $0x150] ss:$12 sps:$4 sm:$0xff]  }
  0x2b   :  { %889 = vmatprep.subr.bf16.mxu0 %v2872_v0  ;;  %2702 = vmatprep.subr.bf16.mxu1 %v2872_v0 }
  0x2e   :  { %890 = vmatpush1.bf16.msra.mxu0 %v2735_v14  ;;  %2718 = vmatpush1.bf16.msra.mxu1 %v2735_v14  ;;  %v2824_v14 = vld [vmem:[%s4920_s0 + $0x140] ss:$12 sps:$4 sm:$0xff]  }
  0x2f   :  { %891 = vmatprep.subr.bf16.mxu0 %v2872_v0  ;;  %2703 = vmatprep.subr.bf16.mxu1 %v2872_v0 }
  0x32   :  { %892 = vmatpush1.bf16.msra.mxu0 %v2736_v15  ;;  %2719 = vmatpush1.bf16.msra.mxu1 %v2736_v15  ;;  %v2825_v15 = vld [vmem:[%s4920_s0 + $0x16c] ss:$12 sps:$4 sm:$0xff]  }
  0x33   :  { %893 = vmatprep.subr.bf16.mxu0 %v2872_v0  ;;  %2704 = vmatprep.subr.bf16.mxu1 %v2872_v0 }
  0x36   :  { %894 = vmatpush1.bf16.msra.mxu0 %v2737_v16  ;;  %2720 = vmatpush1.bf16.msra.mxu1 %v2737_v16  ;;  %v2827_v16 = vld [vmem:[%s4920_s0 + $0x158] ss:$12 sps:$4 sm:$0xff]  }
  0x37   :  { %895 = vmatprep.subr.bf16.mxu0 %v2872_v0  ;;  %2705 = vmatprep.subr.bf16.mxu1 %v2872_v0 }
  0x3a   :  { %896 = vmatpush1.bf16.msra.mxu0 %v2738_v17  ;;  %2721 = vmatpush1.bf16.msra.mxu1 %v2738_v17  ;;  %v2828_v17 = vld [vmem:[%s4920_s0 + $0x168] ss:$12 sps:$4 sm:$0xff]  }
  0x3b   :  { %897 = vmatprep.subr.bf16.mxu0 %v2872_v0  ;;  %2706 = vmatprep.subr.bf16.mxu1 %v2872_v0  ;;  %v2807_v0 = vld [vmem:[%s4920_s0 + $0x98] ss:$12 sps:$4 sm:$0xff]  }
  0x3e   :  { %898 = vmatpush1.bf16.msra.mxu0 %v2739_v18  ;;  %2722 = vmatpush1.bf16.msra.mxu1 %v2739_v18  ;;  %v2829_v18 = vld [vmem:[%s4920_s0 + $0x170] ss:$12 sps:$4 sm:$0xff]  }
  0x3f   :  { %2623 = vmatprep.subr.bf16.mxu1 %v2764_v19 }
  0x41   :  { %900 = vmatmul.mubr.bf16.vlgmr.msra.gmra.mrb[0].mxu0 %v2740_v20  ;;  %1092 = vmatmul.mubr.bf16.vlgmr.msra.gmra.mrb[0].mxu1 %v2743_v21  ;;  %v2832_v20 = vld [vmem:[%s4920_s0 + $0x188] ss:$12 sps:$4 sm:$0xff]   ;;  %v2833_v21 = vld [vmem:[%s4920_s0 + $0x180] ss:$12 sps:$4 sm:$0xff]  }
  0x42   :  { %907 = vmatprep.mubr.bf16.mxu0 %v2746_v22  ;;  %1099 = vmatprep.mubr.bf16.mxu1 %v2748_v23  ;;  %v2834_v22 = vld [vmem:[%s4920_s0 + $0x1a0] ss:$12 sps:$4 sm:$0xff]   ;;  %v2835_v23 = vld [vmem:[%s4920_s0 + $0x19c] ss:$12 sps:$4 sm:$0xff]  }
  0x43   :  { %2624 = vmatpush3.bf16.msra.mxu1 %v2764_v19  ;;  %v2830_v19 = vld [vmem:[%s4920_s0 + $0x184] ss:$12 sps:$4 sm:$0xff]  }
  0x44   :  { %2625 = vmatprep.subr.bf16.mxu1 %v2789_v24 }
  0x47   :  { %2626 = vmatpush3.bf16.msra.mxu1 %v2789_v24  ;;  %v2837_v24 = vld [vmem:[%s4920_s0 + $0x1b8] ss:$12 sps:$4 sm:$0xff]  }
  0x49   :  { %908 = vmatmul.mubr.bf16.gmra.mrb[4].mxu0 %v2750_v25  ;;  %1100 = vmatmul.mubr.bf16.gmra.mrb[4].mxu1 %v2751_v26  ;;  %v2838_v25 = vld [vmem:[%s4920_s0 + $0x198] ss:$12 sps:$4 sm:$0xff]   ;;  %v2839_v26 = vld [vmem:[%s4920_s0 + $0x1d0] ss:$12 sps:$4 sm:$0xff]  }
  0x4a   :  { %915 = vmatprep.mubr.bf16.mxu0 %v2752_v27  ;;  %1107 = vmatprep.mubr.bf16.mxu1 %v2754_v28  ;;  %v2840_v27 = vld [vmem:[%s4920_s0 + $0x1b4] ss:$12 sps:$4 sm:$0xff]  }
  0x4b   :  { %v2842_v28 = vld [vmem:[%s4920_s0 + $0x1e8] ss:$12 sps:$4 sm:$0xff]  }
  0x51   :  { %916 = vmatmul.mubr.bf16.gmra.mrb[8].mxu0 %v2756_v29  ;;  %1108 = vmatmul.mubr.bf16.gmra.mrb[8].mxu1 %v2757_v30  ;;  %v2843_v29 = vld [vmem:[%s4920_s0 + $0x1b0] ss:$12 sps:$4 sm:$0xff]   ;;  %v2844_v30 = vld [vmem:[%s4920_s0 + $0x200] ss:$12 sps:$4 sm:$0xff]  }
  0x52   :  { %923 = vmatprep.mubr.bf16.mxu0 %v2758_v31  ;;  %1115 = vmatprep.mubr.bf16.mxu1 %v2760_v32  ;;  %v2845_v31 = vld [vmem:[%s4920_s0 + $0x1cc] ss:$12 sps:$4 sm:$0xff]  }
  0x53   :  { %v2847_v32 = vld [vmem:[%s4920_s0 + $0x218] ss:$12 sps:$4 sm:$0xff]  }
  0x59   :  { %924 = vmatmul.mubr.bf16.gmra.mrb[12].mxu0 %v2762_v33  ;;  %1116 = vmatmul.mubr.bf16.gmra.mrb[12].mxu1 %v2763_v34  ;;  %v2848_v33 = vld [vmem:[%s4920_s0 + $0x1c8] ss:$12 sps:$4 sm:$0xff]   ;;  %v2849_v34 = vld [vmem:[%s4920_s0 + $0x230] ss:$12 sps:$4 sm:$0xff]  }
  0x5a   :  { %931 = vmatprep.mubr.bf16.mxu0 %v2765_v35  ;;  %1123 = vmatprep.mubr.bf16.mxu1 %v2767_v36  ;;  %v2850_v35 = vld [vmem:[%s4920_s0 + $0x1e4] ss:$12 sps:$4 sm:$0xff]   ;;  %v2852_v36 = vld [vmem:[%s4920_s0 + $0x248] ss:$12 sps:$4 sm:$0xff]  }
  0x61   :  { %932 = vmatmul.mubr.bf16.gmra.mrb[16].mxu0 %v2769_v37  ;;  %1124 = vmatmul.mubr.bf16.gmra.mrb[16].mxu1 %v2770_v38  ;;  %v2853_v37 = vld [vmem:[%s4920_s0 + $0x1e0] ss:$12 sps:$4 sm:$0xff]  }
  0x62   :  { %939 = vmatprep.mubr.bf16.mxu0 %v2771_v39  ;;  %1131 = vmatprep.mubr.bf16.mxu1 %v2773_v40  ;;  %v2854_v38 = vld [vmem:[%s4920_s0 + $0x260] ss:$12 sps:$4 sm:$0xff]   ;;  %v2855_v39 = vld [vmem:[%s4920_s0 + $0x1fc] ss:$12 sps:$4 sm:$0xff]   ;;  %v2857_v40 = vld [vmem:[%s4920_s0 + $0x278] ss:$12 sps:$4 sm:$0xff]  }
  0x69   :  { %940 = vmatmul.mubr.bf16.gmra.mrb[20].mxu0 %v2775_v41  ;;  %1132 = vmatmul.mubr.bf16.gmra.mrb[20].mxu1 %v2776_v42  ;;  %v2858_v41 = vld [vmem:[%s4920_s0 + $0x1f8] ss:$12 sps:$4 sm:$0xff]   ;;  %v2859_v42 = vld [vmem:[%s4920_s0 + $0x290] ss:$12 sps:$4 sm:$0xff]  }
  0x6a   :  { %947 = vmatprep.mubr.bf16.mxu0 %v2777_v43  ;;  %1139 = vmatprep.mubr.bf16.mxu1 %v2779_v44  ;;  %v2860_v43 = vld [vmem:[%s4920_s0 + $0x214] ss:$12 sps:$4 sm:$0xff]  }
  0x6b   :  { %v2862_v44 = vld [vmem:[%s4920_s0 + $0x2a8] ss:$12 sps:$4 sm:$0xff]  }
  0x71   :  { %948 = vmatmul.mubr.bf16.gmra.mrb[24].mxu0 %v2781_v45  ;;  %1140 = vmatmul.mubr.bf16.gmra.mrb[24].mxu1 %v2782_v46  ;;  %v2863_v45 = vld [vmem:[%s4920_s0 + $0x210] ss:$12 sps:$4 sm:$0xff]   ;;  %v2864_v46 = vld [vmem:[%s4920_s0 + $0x2c0] ss:$12 sps:$4 sm:$0xff]  }
  0x72   :  { %955 = vmatprep.mubr.bf16.mxu0 %v2783_v47  ;;  %1147 = vmatprep.mubr.bf16.mxu1 %v2785_v48  ;;  %v2865_v47 = vld [vmem:[%s4920_s0 + $0x22c] ss:$12 sps:$4 sm:$0xff]  }
  0x73   :  { %v2867_v48 = vld [vmem:[%s4920_s0 + $0x2d8] ss:$12 sps:$4 sm:$0xff]  }
  0x79   :  { %956 = vmatmul.mubr.bf16.gmra.mrb[28].mxu0 %v2787_v49  ;;  %1148 = vmatmul.mubr.bf16.gmra.mrb[28].mxu1 %v2788_v50  ;;  %v2868_v49 = vld [vmem:[%s4920_s0 + $0x228] ss:$12 sps:$4 sm:$0xff]   ;;  %v2869_v50 = vld [vmem:[%s4920_s0 + $0x2f0] ss:$12 sps:$4 sm:$0xff]  }
  0x7a   :  { %963 = vmatprep.mubr.bf16.mxu0 %v2790_v51  ;;  %2627 = vmatprep.mubr.msk.bf16.mxu1 %vm770_vm0, %v2792_v52 }
  0x81   :  { %964 = vmatmul.mubr.bf16.gmra.mrb[32].mxu0 %v2793_v53  ;;  %2628 = vmatmul.mubr.msk.bf16.vlgmr.msra.gmra.mrb[32].mxu1 %vm770_vm0, %v2794_v54 }
  0x82   :  { %971 = vmatprep.mubr.bf16.mxu0 %v2795_v55  ;;  %2631 = vmatprep.mubr.msk.bf16.mxu1 %vm770_vm0, %v2797_v56 }
  0x89   :  { %972 = vmatmul.mubr.bf16.gmra.mrb[36].mxu0 %v2798_v57  ;;  %2632 = vmatmul.mubr.msk.bf16.gmra.mrb[36].mxu1 %vm770_vm0, %v2799_v58 }
  0x8a   :  { %979 = vmatprep.mubr.bf16.mxu0 %v2800_v59  ;;  %2635 = vmatprep.mubr.msk.bf16.mxu1 %vm770_vm0, %v2802_v60 }
  0x91   :  { %980 = vmatmul.mubr.bf16.gmra.mrb[40].mxu0 %v2803_v61  ;;  %2636 = vmatmul.mubr.msk.bf16.gmra.mrb[40].mxu1 %vm770_vm0, %v2804_v62 }
  0x92   :  { %987 = vmatprep.mubr.bf16.mxu0 %v2805_v63  ;;  %2639 = vmatprep.mubr.msk.bf16.mxu1 %vm770_vm0, %v2807_v0 }
  0x99   :  { %988 = vmatmul.mubr.bf16.gmra.mrb[44].mxu0 %v2808_v1  ;;  %2640 = vmatmul.mubr.msk.bf16.gmra.mrb[44].mxu1 %vm770_vm0, %v2809_v2 }
  0x9a   :  { %995 = vmatprep.mubr.bf16.mxu0 %v2810_v3  ;;  %2643 = vmatprep.mubr.msk.bf16.mxu1 %vm770_vm0, %v2812_v4 }
  0xa1   :  { %996 = vmatmul.mubr.bf16.gmra.mrb[48].mxu0 %v2813_v5  ;;  %2644 = vmatmul.mubr.msk.bf16.gmra.mrb[48].mxu1 %vm770_vm0, %v2814_v6 }
  0xa2   :  { %1003 = vmatprep.mubr.bf16.mxu0 %v2815_v7  ;;  %2647 = vmatprep.mubr.msk.bf16.mxu1 %vm770_vm0, %v2817_v8 }
  0xa9   :  { %1004 = vmatmul.mubr.bf16.gmra.mrb[52].mxu0 %v2818_v9  ;;  %2648 = vmatmul.mubr.msk.bf16.gmra.mrb[52].mxu1 %vm770_vm0, %v2819_v10 }
  0xaa   :  { %1011 = vmatprep.mubr.bf16.mxu0 %v2820_v11  ;;  %2651 = vmatprep.mubr.msk.bf16.mxu1 %vm770_vm0, %v2822_v12 }
  0xb1   :  { %1012 = vmatmul.mubr.bf16.gmra.mrb[56].mxu0 %v2823_v13  ;;  %2652 = vmatmul.mubr.msk.bf16.gmra.mrb[56].mxu1 %vm770_vm0, %v2824_v14 }
  0xb2   :  { %1019 = vmatprep.mubr.bf16.mxu0 %v2825_v15  ;;  %2655 = vmatprep.mubr.msk.bf16.mxu1 %vm770_vm0, %v2827_v16 }
  0xb9   :  { %1020 = vmatmul.mubr.bf16.gmra.mrb[60].mxu0 %v2828_v17  ;;  %2656 = vmatmul.mubr.msk.bf16.gmra.mrb[60].mxu1 %vm770_vm0, %v2829_v18 }
  0xba   :  { %1027 = vmatprep.mubr.bf16.mxu0 %v2830_v19  ;;  %2659 = vmatprep.mubr.msk.bf16.mxu1 %vm770_vm0, %v2832_v20 }
  0xc1   :  { %1028 = vmatmul.mubr.bf16.gmra.mrb[64].mxu0 %v2833_v21  ;;  %2660 = vmatmul.mubr.msk.bf16.gmra.mrb[64].mxu1 %vm770_vm0, %v2834_v22 }
  0xc2   :  { %1035 = vmatprep.mubr.bf16.mxu0 %v2835_v23  ;;  %2663 = vmatprep.mubr.msk.bf16.mxu1 %vm770_vm0, %v2837_v24 }
  0xc9   :  { %1036 = vmatmul.mubr.bf16.gmra.mrb[68].mxu0 %v2838_v25  ;;  %2664 = vmatmul.mubr.msk.bf16.gmra.mrb[68].mxu1 %vm770_vm0, %v2839_v26 }
  0xca   :  { %1043 = vmatprep.mubr.bf16.mxu0 %v2840_v27  ;;  %2667 = vmatprep.mubr.msk.bf16.mxu1 %vm770_vm0, %v2842_v28 }
  0xd1   :  { %1044 = vmatmul.mubr.bf16.gmra.mrb[72].mxu0 %v2843_v29  ;;  %2668 = vmatmul.mubr.msk.bf16.gmra.mrb[72].mxu1 %vm770_vm0, %v2844_v30 }
  0xd2   :  { %1051 = vmatprep.mubr.bf16.mxu0 %v2845_v31  ;;  %2671 = vmatprep.mubr.msk.bf16.mxu1 %vm770_vm0, %v2847_v32 }
  0xd9   :  { %1052 = vmatmul.mubr.bf16.gmra.mrb[76].mxu0 %v2848_v33  ;;  %2672 = vmatmul.mubr.msk.bf16.gmra.mrb[76].mxu1 %vm770_vm0, %v2849_v34 }
  0xda   :  { %1059 = vmatprep.mubr.bf16.mxu0 %v2850_v35  ;;  %2675 = vmatprep.mubr.msk.bf16.mxu1 %vm770_vm0, %v2852_v36 }
  0xe1   :  { %1060 = vmatmul.mubr.bf16.gmra.mrb[80].mxu0 %v2853_v37  ;;  %2676 = vmatmul.mubr.msk.bf16.gmra.mrb[80].mxu1 %vm770_vm0, %v2854_v38 }
  0xe2   :  { %1067 = vmatprep.mubr.bf16.mxu0 %v2855_v39  ;;  %2679 = vmatprep.mubr.msk.bf16.mxu1 %vm770_vm0, %v2857_v40 }
  0xe9   :  { %1068 = vmatmul.mubr.bf16.gmra.mrb[84].mxu0 %v2858_v41  ;;  %2680 = vmatmul.mubr.msk.bf16.gmra.mrb[84].mxu1 %vm770_vm0, %v2859_v42 }
  0xea   :  { %1075 = vmatprep.mubr.bf16.mxu0 %v2860_v43  ;;  %2683 = vmatprep.mubr.msk.bf16.mxu1 %vm770_vm0, %v2862_v44 }
  0xf1   :  { %1076 = vmatmul.mubr.bf16.gmra.mrb[88].mxu0 %v2863_v45  ;;  %2684 = vmatmul.mubr.msk.bf16.gmra.mrb[88].mxu1 %vm770_vm0, %v2864_v46 }
  0xf2   :  { %1083 = vmatprep.mubr.bf16.mxu0 %v2865_v47  ;;  %2687 = vmatprep.mubr.msk.bf16.mxu1 %vm770_vm0, %v2867_v48 }
  0xf9   :  { %1084 = vmatmul.mubr.bf16.gmra.mrb[92].mxu0 %v2868_v49  ;;  %2688 = vmatmul.mubr.msk.bf16.gmra.mrb[92].mxu1 %vm770_vm0, %v2869_v50 }
 0x114   :  { %v3304_v51 = vpop.f32.mrb[0].mxu0  ;;  %v3306_v52 = vpop.f32.mrb[0].mxu1 }
 0x115   :  { %v903_v53 = vpop.f32.mrb[1].mxu0  ;;  %v1095_v54 = vpop.f32.mrb[1].mxu1 }
 0x116   :  { %v3308_v55 = vpop.f32.mrb[2].mxu0  ;;  %v3310_v56 = vpop.f32.mrb[2].mxu1 }
 0x117   :  { %v906_v57 = vpop.f32.mrb[3].mxu0  ;;  %v1098_v58 = vpop.f32.mrb[3].mxu1 }
 0x11c   :  { %v909_v59 = vpop.f32.mrb[4].mxu0  ;;  %v3312_v60 = vpop.f32.mrb[4].mxu1 }
 0x11d   :  { %v911_v61 = vpop.f32.mrb[5].mxu0  ;;  %v1103_v62 = vpop.f32.mrb[5].mxu1 }
 0x11e   :  { %v912_v63 = vpop.f32.mrb[6].mxu0  ;;  %v3314_v0 = vpop.f32.mrb[6].mxu1 }
 0x11f   :  { %v914_v1 = vpop.f32.mrb[7].mxu0  ;;  %v1106_v2 = vpop.f32.mrb[7].mxu1 }
 0x124   :  { %v3316_v3 = vpop.f32.mrb[8].mxu0  ;;  %v3318_v4 = vpop.f32.mrb[8].mxu1 }
 0x125   :  { %v919_v5 = vpop.f32.mrb[9].mxu0  ;;  %v1111_v6 = vpop.f32.mrb[9].mxu1 }
 0x126   :  { %v3320_v7 = vpop.f32.mrb[10].mxu0  ;;  %v3322_v8 = vpop.f32.mrb[10].mxu1 }
 0x127   :  { %v922_v9 = vpop.f32.mrb[11].mxu0  ;;  %v1114_v10 = vpop.f32.mrb[11].mxu1 }
 0x12c   :  { %v3324_v11 = vpop.f32.mrb[12].mxu0  ;;  %v3326_v12 = vpop.f32.mrb[12].mxu1 }
 0x12d   :  { %v927_v13 = vpop.f32.mrb[13].mxu0  ;;  %v1119_v14 = vpop.f32.mrb[13].mxu1 }
 0x12e   :  { %v3328_v15 = vpop.f32.mrb[14].mxu0  ;;  %v3330_v16 = vpop.f32.mrb[14].mxu1 }
 0x12f   :  { %v930_v17 = vpop.f32.mrb[15].mxu0  ;;  %v1122_v18 = vpop.f32.mrb[15].mxu1 }
 0x134   :  { %v3332_v19 = vpop.f32.mrb[16].mxu0  ;;  %v3334_v20 = vpop.f32.mrb[16].mxu1 }
 0x135   :  { %v935_v21 = vpop.f32.mrb[17].mxu0  ;;  %v1127_v22 = vpop.f32.mrb[17].mxu1 }
 0x136   :  { %v3336_v23 = vpop.f32.mrb[18].mxu0  ;;  %v3338_v24 = vpop.f32.mrb[18].mxu1 }
 0x137   :  { %v938_v25 = vpop.f32.mrb[19].mxu0  ;;  %v1130_v26 = vpop.f32.mrb[19].mxu1 }
 0x13c   :  { %v3340_v27 = vpop.f32.mrb[20].mxu0  ;;  %v3342_v28 = vpop.f32.mrb[20].mxu1 }
 0x13d   :  { %v943_v29 = vpop.f32.mrb[21].mxu0  ;;  %v1135_v30 = vpop.f32.mrb[21].mxu1 }
 0x13e   :  { %v3344_v31 = vpop.f32.mrb[22].mxu0  ;;  %v3346_v32 = vpop.f32.mrb[22].mxu1 }
 0x13f   :  { %v946_v33 = vpop.f32.mrb[23].mxu0  ;;  %v1138_v34 = vpop.f32.mrb[23].mxu1 }
 0x144   :  { %v3348_v35 = vpop.f32.mrb[24].mxu0  ;;  %v3350_v36 = vpop.f32.mrb[24].mxu1 }
 0x145   :  { %v951_v37 = vpop.f32.mrb[25].mxu0  ;;  %v1143_v38 = vpop.f32.mrb[25].mxu1 }
 0x146   :  { %v3352_v39 = vpop.f32.mrb[26].mxu0  ;;  %v3354_v40 = vpop.f32.mrb[26].mxu1 }
 0x147   :  { %v954_v41 = vpop.f32.mrb[27].mxu0  ;;  %v1146_v42 = vpop.f32.mrb[27].mxu1 }
 0x14c   :  { %v3356_v43 = vpop.f32.mrb[28].mxu0  ;;  %v3358_v44 = vpop.f32.mrb[28].mxu1 }
 0x14d   :  { %v959_v45 = vpop.f32.mrb[29].mxu0  ;;  %v1151_v46 = vpop.f32.mrb[29].mxu1 }
 0x14e   :  { %v3360_v47 = vpop.f32.mrb[30].mxu0  ;;  %v3362_v48 = vpop.f32.mrb[30].mxu1 }
 0x14f   :  { %v962_v49 = vpop.f32.mrb[31].mxu0  ;;  %v1154_v50 = vpop.f32.mrb[31].mxu1 }
 0x154   :  { %v3364_v53 = vpop.f32.mrb[32].mxu0  ;;  %v2629_v54 = vpop.f32.mrb[32].mxu1 }
 0x155   :  { %v3366_v57 = vadd.f32 %v2629_v54, %v909_v59  ;;  %v967_v58 = vpop.f32.mrb[33].mxu0  ;;  %v1190_v61 = vpop.f32.mrb[33].mxu1 }
 0x156   :  { %v3369_v62 = vadd.f32 %v1190_v61, %v3304_v51  ;;  %v3371_v1 = vpop.f32.mrb[34].mxu0  ;;  %v2630_v2 = vpop.f32.mrb[34].mxu1 }
 0x157   :  { %v3373_v5 = vadd.f32 %v2630_v2, %v912_v63  ;;  %v970_v6 = vpop.f32.mrb[35].mxu0  ;;  %v1193_v9 = vpop.f32.mrb[35].mxu1  ;;  %v1581_v59 = vmul.f32 %v3366_v57, %v3366_v57 }
 0x158   :  { %v1579_v10 = vmul.f32 %v3369_v62, %v3369_v62  ;;  %v3378_v13 = vadd.f32 %v1193_v9, %v3308_v55  ;;  %v1445_v51 = vsel %vm770_vm0, %v3369_v62, 0.0  ;;  %v1448_v55 = vsel %vm770_vm0, %v3366_v57, 0.0 }
 0x159   :  { %v1582_v17 = vmul.f32 %v3373_v5, %v3373_v5  ;;  %v1646_v38 = vsel %vm770_vm0, %v1581_v59, 0.0  ;;  %v1450_v41 = vsel %vm770_vm0, %v3373_v5, 0.0 }
 0x15a   :  { %v1446_v14 = vsel %vm770_vm0, %v3378_v13, 0.0  ;;  %v1580_v63 = vmul.f32 %v3378_v13, %v3378_v13  ;;  %v1643_v21 = vsel %vm770_vm0, %v1579_v10, 0.0 }
 0x15b   :  { %v1447_v18 = vadd.f32 %v1446_v14, %v1445_v51  ;;  %v1648_v49 = vsel %vm770_vm0, %v1582_v17, 0.0 }
 0x15c   :  { %v1644_v22 = vsel %vm770_vm0, %v1580_v63, 0.0  ;;  %v3394_v25 = vpop.f32.mrb[36].mxu0  ;;  %v2633_v26 = vpop.f32.mrb[36].mxu1 }
 0x15d   :  { %v1449_v29 = vadd.f32 %v1448_v55, %v1447_v18  ;;  %v1645_v30 = vadd.f32 %v1644_v22, %v1643_v21  ;;  %v3397_v33 = vadd.f32 %v2633_v26, %v3324_v11  ;;  %v975_v34 = vpop.f32.mrb[37].mxu0  ;;  %v1206_v37 = vpop.f32.mrb[37].mxu1 }
 0x15e   :  { %v3403_v42 = vadd.f32 %v1206_v37, %v3316_v3  ;;  %v3405_v45 = vpop.f32.mrb[38].mxu0  ;;  %v2634_v46 = vpop.f32.mrb[38].mxu1 }
 0x15f   :  { %v1451_v50 = vadd.f32 %v1450_v41, %v1449_v29  ;;  %v1647_v54 = vadd.f32 %v1646_v38, %v1645_v30  ;;  %v978_v58 = vpop.f32.mrb[39].mxu0  ;;  %v1209_v11 = vpop.f32.mrb[39].mxu1  ;;  %v3413_v6 = vadd.f32 %v2634_v46, %v3328_v15  ;;  %v1585_v14 = vmul.f32 %v3397_v33, %v3397_v33 }
 0x160   :  { %v1452_v61 = vsel %vm770_vm0, %v3403_v42, 0.0  ;;  %v1583_v2 = vmul.f32 %v3403_v42, %v3403_v42  ;;  %v3416_v3 = vadd.f32 %v1209_v11, %v3320_v7  ;;  %v1456_v15 = vsel %vm770_vm0, %v3397_v33, 0.0 }
 0x161   :  { %v1649_v9 = vadd.f32 %v1648_v49, %v1647_v54  ;;  %v1453_v10 = vadd.f32 %v1452_v61, %v1451_v50  ;;  %v1586_v21 = vmul.f32 %v3413_v6, %v3413_v6  ;;  %v1458_v37 = vsel %vm770_vm0, %v3413_v6, 0.0 }
 0x162   :  { %v1650_v59 = vsel %vm770_vm0, %v1583_v2, 0.0  ;;  %v1454_v51 = vsel %vm770_vm0, %v3416_v3, 0.0  ;;  %v1584_v18 = vmul.f32 %v3416_v3, %v3416_v3  ;;  %v1654_v50 = vsel %vm770_vm0, %v1585_v14, 0.0 }
 0x163   :  { %v1651_v63 = vadd.f32 %v1650_v59, %v1649_v9  ;;  %v1455_v17 = vadd.f32 %v1454_v51, %v1453_v10  ;;  %v1656_v10 = vsel %vm770_vm0, %v1586_v21, 0.0 }
 0x164   :  { %v3427_v7 = vpop.f32.mrb[40].mxu0  ;;  %v2637_v55 = vpop.f32.mrb[40].mxu1  ;;  %v1652_v26 = vsel %vm770_vm0, %v1584_v18, 0.0 }
 0x165   :  { %v1457_v22 = vadd.f32 %v1456_v15, %v1455_v17  ;;  %v3433_v29 = vadd.f32 %v2637_v55, %v3340_v27  ;;  %v983_v30 = vpop.f32.mrb[41].mxu0  ;;  %v1222_v34 = vpop.f32.mrb[41].mxu1  ;;  %v1653_v38 = vadd.f32 %v1652_v26, %v1651_v63 }
 0x166   :  { %v3438_v41 = vadd.f32 %v1222_v34, %v3332_v19  ;;  %v3440_v46 = vpop.f32.mrb[42].mxu0  ;;  %v2638_v49 = vpop.f32.mrb[42].mxu1 }
 0x167   :  { %v1459_v54 = vadd.f32 %v1458_v37, %v1457_v22  ;;  %v3444_v58 = vadd.f32 %v2638_v49, %v3344_v31  ;;  %v986_v27 = vpop.f32.mrb[43].mxu0  ;;  %v1225_v11 = vpop.f32.mrb[43].mxu1  ;;  %v1655_v61 = vadd.f32 %v1654_v50, %v1653_v38  ;;  %v1589_v17 = vmul.f32 %v3433_v29, %v3433_v29 }
 0x168   :  { %v1460_v2 = vsel %vm770_vm0, %v3438_v41, 0.0  ;;  %v1587_v9 = vmul.f32 %v3438_v41, %v3438_v41  ;;  %v3451_v19 = vadd.f32 %v1225_v11, %v3336_v23  ;;  %v1464_v23 = vsel %vm770_vm0, %v3433_v29, 0.0 }
 0x169   :  { %v1461_v59 = vadd.f32 %v1460_v2, %v1459_v54  ;;  %v1657_v51 = vadd.f32 %v1656_v10, %v1655_v61  ;;  %v1590_v26 = vmul.f32 %v3444_v58, %v3444_v58  ;;  %v1466_v49 = vsel %vm770_vm0, %v3444_v58, 0.0 }
 0x16a   :  { %v1658_v14 = vsel %vm770_vm0, %v1587_v9, 0.0  ;;  %v1462_v31 = vsel %vm770_vm0, %v3451_v19, 0.0  ;;  %v1588_v63 = vmul.f32 %v3451_v19, %v3451_v19  ;;  %v1662_v61 = vsel %vm770_vm0, %v1589_v17, 0.0 }
 0x16b   :  { %v1463_v18 = vadd.f32 %v1462_v31, %v1461_v59  ;;  %v1659_v15 = vadd.f32 %v1658_v14, %v1657_v51  ;;  %v1664_v31 = vsel %vm770_vm0, %v1590_v26, 0.0 }
 0x16c   :  { %v1660_v55 = vsel %vm770_vm0, %v1588_v63, 0.0  ;;  %v3464_v21 = vpop.f32.mrb[44].mxu0  ;;  %v2641_v22 = vpop.f32.mrb[44].mxu1 }
 0x16d   :  { %v1465_v30 = vadd.f32 %v1464_v23, %v1463_v18  ;;  %v3469_v34 = vadd.f32 %v2641_v22, %v3356_v43  ;;  %v991_v37 = vpop.f32.mrb[45].mxu0  ;;  %v1238_v38 = vpop.f32.mrb[45].mxu1  ;;  %v1661_v50 = vadd.f32 %v1660_v55, %v1659_v15 }
 0x16e   :  { %v3474_v54 = vadd.f32 %v1238_v38, %v3348_v35  ;;  %v3476_v27 = vpop.f32.mrb[46].mxu0  ;;  %v2642_v11 = vpop.f32.mrb[46].mxu1 }
 0x16f   :  { %v1467_v2 = vadd.f32 %v1466_v49, %v1465_v30  ;;  %v3480_v9 = vadd.f32 %v2642_v11, %v3360_v47  ;;  %v994_v43 = vpop.f32.mrb[47].mxu0  ;;  %v1241_v10 = vpop.f32.mrb[47].mxu1  ;;  %v1663_v59 = vadd.f32 %v1662_v61, %v1661_v50  ;;  %v1593_v15 = vmul.f32 %v3469_v34, %v3469_v34 }
 0x170   :  { %v1468_v51 = vsel %vm770_vm0, %v3474_v54, 0.0  ;;  %v1591_v14 = vmul.f32 %v3474_v54, %v3474_v54  ;;  %v3487_v35 = vadd.f32 %v1241_v10, %v3352_v39  ;;  %v1472_v39 = vsel %vm770_vm0, %v3469_v34, 0.0 }
 0x171   :  { %v1469_v63 = vadd.f32 %v1468_v51, %v1467_v2  ;;  %v1665_v17 = vadd.f32 %v1664_v31, %v1663_v59  ;;  %v1594_v38 = vmul.f32 %v3480_v9, %v3480_v9  ;;  %v1474_v2 = vsel %vm770_vm0, %v3480_v9, 0.0 }
 0x172   :  { %v1666_v18 = vsel %vm770_vm0, %v1591_v14, 0.0  ;;  %v1470_v47 = vsel %vm770_vm0, %v3487_v35, 0.0  ;;  %v1592_v23 = vmul.f32 %v3487_v35, %v3487_v35  ;;  %v1670_v14 = vsel %vm770_vm0, %v1593_v15, 0.0 }
 0x173   :  { %v1471_v55 = vadd.f32 %v1470_v47, %v1469_v63  ;;  %v1667_v22 = vadd.f32 %v1666_v18, %v1665_v17 }
 0x174   :  { %v1668_v26 = vsel %vm770_vm0, %v1592_v23, 0.0  ;;  %v3500_v30 = vpop.f32.mrb[48].mxu0  ;;  %v2645_v37 = vpop.f32.mrb[48].mxu1 }
 0x175   :  { %v1473_v49 = vadd.f32 %v1472_v39, %v1471_v55  ;;  %v3505_v50 = vadd.f32 %v2645_v37, %v3394_v25  ;;  %v999_v11 = vpop.f32.mrb[49].mxu0  ;;  %v1254_v61 = vpop.f32.mrb[49].mxu1  ;;  %v1669_v43 = vadd.f32 %v1668_v26, %v1667_v22  ;;  %v1672_v55 = vsel %vm770_vm0, %v1594_v38, 0.0 }
 0x176   :  { %v3510_v10 = vadd.f32 %v1254_v61, %v3364_v53  ;;  %v3512_v59 = vpop.f32.mrb[50].mxu0  ;;  %v2646_v51 = vpop.f32.mrb[50].mxu1 }
 0x177   :  { %4968 = vst [vmem:[#allocation2_spill] sm:$0xff] %v3505_v50  ;;  %v1475_v31 = vadd.f32 %v1474_v2, %v1473_v49  ;;  %v3516_v63 = vadd.f32 %v2646_v51, %v3405_v45  ;;  %v1002_v25 = vpop.f32.mrb[51].mxu0  ;;  %v1257_v17 = vpop.f32.mrb[51].mxu1  ;;  %v1671_v18 = vadd.f32 %v1670_v14, %v1669_v43  ;;  %v1597_v37 = vmul.f32 %v3505_v50, %v3505_v50 }
 0x178   :  { %v1476_v47 = vsel %vm770_vm0, %v3510_v10, 0.0  ;;  %v1595_v23 = vmul.f32 %v3510_v10, %v3510_v10  ;;  %v3523_v53 = vadd.f32 %v1257_v17, %v3371_v1  ;;  %v1480_v1 = vsel %vm770_vm0, %v3505_v50, 0.0 }
 0x179   :  { %4969 = vst [vmem:[#allocation3_spill] sm:$0xff] %v3516_v63  ;;  %v1477_v39 = vadd.f32 %v1476_v47, %v1475_v31  ;;  %v1673_v15 = vadd.f32 %v1672_v55, %v1671_v18  ;;  %v1598_v43 = vmul.f32 %v3516_v63, %v3516_v63  ;;  %v1482_v17 = vsel %vm770_vm0, %v3516_v63, 0.0 }
 0x17a   :  { %v1674_v22 = vsel %vm770_vm0, %v1595_v23, 0.0  ;;  %v1478_v45 = vsel %vm770_vm0, %v3523_v53, 0.0  ;;  %v1596_v26 = vmul.f32 %v3523_v53, %v3523_v53 }
 0x17b   :  { %v1479_v49 = vadd.f32 %v1478_v45, %v1477_v39  ;;  %v1675_v11 = vadd.f32 %v1674_v22, %v1673_v15  ;;  %v1678_v39 = vsel %vm770_vm0, %v1597_v37, 0.0 }
 0x17c   :  { %v1676_v38 = vsel %vm770_vm0, %v1596_v26, 0.0  ;;  %v1005_v61 = vpop.f32.mrb[52].mxu0  ;;  %v2649_v2 = vpop.f32.mrb[52].mxu1 }
 0x17d   :  { %v1481_v51 = vadd.f32 %v1480_v1, %v1479_v49  ;;  %v3539_v14 = vadd.f32 %v2649_v2, %v3464_v21  ;;  %v1007_v31 = vpop.f32.mrb[53].mxu0  ;;  %v1270_v25 = vpop.f32.mrb[53].mxu1  ;;  %v1677_v18 = vadd.f32 %v1676_v38, %v1675_v11  ;;  %v1680_v11 = vsel %vm770_vm0, %v1598_v43, 0.0 }
 0x17e   :  { %v3544_v47 = vadd.f32 %v1270_v25, %v3427_v7  ;;  %v1008_v23 = vpop.f32.mrb[54].mxu0  ;;  %v2650_v55 = vpop.f32.mrb[54].mxu1 }
 0x17f   :  { %4970 = vst [vmem:[#allocation4_spill] sm:$0xff] %v3539_v14  ;;  %v1483_v15 = vadd.f32 %v1482_v17, %v1481_v51  ;;  %v3548_v22 = vadd.f32 %v2650_v55, %v3476_v27  ;;  %v1010_v45 = vpop.f32.mrb[55].mxu0  ;;  %v1273_v21 = vpop.f32.mrb[55].mxu1  ;;  %v1679_v26 = vadd.f32 %v1678_v39, %v1677_v18  ;;  %v1601_v31 = vmul.f32 %v3539_v14, %v3539_v14 }
 0x180   :  { %4971 = vst [vmem:[#allocation5_spill] sm:$0xff] %v3544_v47  ;;  %v1484_v49 = vsel %vm770_vm0, %v3544_v47, 0.0  ;;  %v1599_v1 = vmul.f32 %v3544_v47, %v3544_v47  ;;  %v3555_v7 = vadd.f32 %v1273_v21, %v3440_v46  ;;  %v1488_v46 = vsel %vm770_vm0, %v3539_v14, 0.0 }
 0x181   :  { %4972 = vst [vmem:[#allocation6_spill] sm:$0xff] %v3548_v22  ;;  %v1485_v38 = vadd.f32 %v1484_v49, %v1483_v15  ;;  %v1681_v37 = vadd.f32 %v1680_v11, %v1679_v26  ;;  %v1602_v39 = vmul.f32 %v3548_v22, %v3548_v22  ;;  %v1490_v49 = vsel %vm770_vm0, %v3548_v22, 0.0 }
 0x182   :  { %4973 = vst [vmem:[#allocation7_spill] sm:$0xff] %v3555_v7  ;;  %v1682_v2 = vsel %vm770_vm0, %v1599_v1, 0.0  ;;  %v1486_v27 = vsel %vm770_vm0, %v3555_v7, 0.0  ;;  %v1600_v51 = vmul.f32 %v3555_v7, %v3555_v7 }
 0x183   :  { %v1487_v25 = vadd.f32 %v1486_v27, %v1485_v38  ;;  %v1683_v17 = vadd.f32 %v1682_v2, %v1681_v37  ;;  %v1686_v2 = vsel %vm770_vm0, %v1601_v31, 0.0 }
 0x184   :  { %v1684_v43 = vsel %vm770_vm0, %v1600_v51, 0.0  ;;  %v1013_v18 = vpop.f32.mrb[56].mxu0  ;;  %v2653_v55 = vpop.f32.mrb[56].mxu1 }
 0x185   :  { %v1489_v15 = vadd.f32 %v1488_v46, %v1487_v25  ;;  %v3570_v45 = vadd.f32 %v2653_v55, %v1005_v61  ;;  %v1015_v21 = vpop.f32.mrb[57].mxu0  ;;  %v1286_v26 = vpop.f32.mrb[57].mxu1  ;;  %v1685_v1 = vadd.f32 %v1684_v43, %v1683_v17 }
 0x186   :  { %v3575_v11 = vadd.f32 %v1286_v26, %v3500_v30  ;;  %v1016_v38 = vpop.f32.mrb[58].mxu0  ;;  %v2654_v37 = vpop.f32.mrb[58].mxu1  ;;  %v1688_v30 = vsel %vm770_vm0, %v1602_v39, 0.0 }
 0x187   :  { %4974 = vst [vmem:[#allocation8_spill] sm:$0xff] %v3570_v45  ;;  %v1491_v27 = vadd.f32 %v1490_v49, %v1489_v15  ;;  %v3578_v51 = vadd.f32 %v2654_v37, %v1008_v23  ;;  %v1018_v14 = vpop.f32.mrb[59].mxu0  ;;  %v1289_v25 = vpop.f32.mrb[59].mxu1  ;;  %v1687_v61 = vadd.f32 %v1686_v2, %v1685_v1  ;;  %v1605_v15 = vmul.f32 %v3570_v45, %v3570_v45 }
 0x188   :  { %4975 = vst [vmem:[#allocation9_spill] sm:$0xff] %v3575_v11  ;;  %v1492_v46 = vsel %vm770_vm0, %v3575_v11, 0.0  ;;  %v1603_v55 = vmul.f32 %v3575_v11, %v3575_v11  ;;  %v3585_v17 = vadd.f32 %v1289_v25, %v3512_v59  ;;  %v1496_v39 = vsel %vm770_vm0, %v3570_v45, 0.0 }
 0x189   :  { %4976 = vst [vmem:[#allocation10_spill] sm:$0xff] %v3578_v51  ;;  %v1493_v43 = vadd.f32 %v1492_v46, %v1491_v27  ;;  %v1689_v21 = vadd.f32 %v1688_v30, %v1687_v61 }
 0x18a   :  { %4977 = vst [vmem:[#allocation11_spill] sm:$0xff] %v3585_v17  ;;  %v1690_v31 = vsel %vm770_vm0, %v1603_v55, 0.0  ;;  %v1494_v14 = vsel %vm770_vm0, %v3585_v17, 0.0  ;;  %v1604_v23 = vmul.f32 %v3585_v17, %v3585_v17 }
 0x18b   :  { %v1495_v26 = vadd.f32 %v1494_v14, %v1493_v43  ;;  %v1691_v49 = vadd.f32 %v1690_v31, %v1689_v21  ;;  %v1694_v43 = vsel %vm770_vm0, %v1605_v15, 0.0  ;;  %v1606_v21 = vmul.f32 %v3578_v51, %v3578_v51 }
 0x18c   :  { %v1692_v59 = vsel %vm770_vm0, %v1604_v23, 0.0  ;;  %v1021_v1 = vpop.f32.mrb[60].mxu0  ;;  %v2657_v37 = vpop.f32.mrb[60].mxu1 }
 0x18d   :  { %v3598_v2 = vadd.f32 %v2657_v37, %v1021_v1  ;;  %v1023_v27 = vpop.f32.mrb[61].mxu0  ;;  %v1302_v25 = vpop.f32.mrb[61].mxu1  ;;  %v1497_v61 = vadd.f32 %v1496_v39, %v1495_v26  ;;  %v1693_v46 = vadd.f32 %v1692_v59, %v1691_v49  ;;  %v1498_v26 = vsel %vm770_vm0, %v3578_v51, 0.0 }
 0x18e   :  { %v3600_v55 = vadd.f32 %v1302_v25, %v1013_v18  ;;  %v1024_v30 = vpop.f32.mrb[62].mxu0  ;;  %v2658_v17 = vpop.f32.mrb[62].mxu1  ;;  %v1696_v59 = vsel %vm770_vm0, %v1606_v21, 0.0 }
 0x18f   :  { %4978 = vst [vmem:[#allocation12_spill] sm:$0xff] %v3598_v2  ;;  %v3605_v31 = vadd.f32 %v2658_v17, %v1024_v30  ;;  %v1026_v14 = vpop.f32.mrb[63].mxu0  ;;  %v1305_v23 = vpop.f32.mrb[63].mxu1  ;;  %v1695_v45 = vadd.f32 %v1694_v43, %v1693_v46  ;;  %v1499_v49 = vadd.f32 %v1498_v26, %v1497_v61 }
 0x190   :  { %4979 = vst [vmem:[#allocation13_spill] sm:$0xff] %v3600_v55  ;;  %v3607_v1 = vadd.f32 %v1305_v23, %v1016_v38  ;;  %v1607_v18 = vmul.f32 %v3600_v55, %v3600_v55  ;;  %v1500_v15 = vsel %vm770_vm0, %v3600_v55, 0.0 }
 0x191   :  { %4980 = vst [vmem:[#allocation14_spill] sm:$0xff] %v3605_v31  ;;  %v1697_v37 = vadd.f32 %v1696_v59, %v1695_v45  ;;  %v1501_v30 = vadd.f32 %v1500_v15, %v1499_v49 }
 0x192   :  { %4981 = vst [vmem:[#allocation15_spill] sm:$0xff] %v3607_v1  ;;  %v1698_v27 = vsel %vm770_vm0, %v1607_v18, 0.0  ;;  %v1608_v38 = vmul.f32 %v3607_v1, %v3607_v1  ;;  %v1502_v21 = vsel %vm770_vm0, %v3607_v1, 0.0 }
 0x193   :  { %v1699_v45 = vadd.f32 %v1698_v27, %v1697_v37  ;;  %v1503_v55 = vadd.f32 %v1502_v21, %v1501_v30 }
 0x194   :  { %v1029_v17 = vpop.f32.mrb[64].mxu0  ;;  %v2661_v39 = vpop.f32.mrb[64].mxu1  ;;  %v1700_v18 = vsel %vm770_vm0, %v1608_v38, 0.0  ;;  %v1610_v38 = vmul.f32 %v3605_v31, %v3605_v31 }
 0x195   :  { %v1031_v25 = vpop.f32.mrb[65].mxu0  ;;  %v1318_v46 = vpop.f32.mrb[65].mxu1  ;;  %v1701_v51 = vadd.f32 %v1700_v18, %v1699_v45  ;;  %v1506_v18 = vsel %vm770_vm0, %v3605_v31, 0.0 }
 0x196   :  { %v3619_v43 = vadd.f32 %v1318_v46, %v1029_v17  ;;  %v1032_v14 = vpop.f32.mrb[66].mxu0  ;;  %v2662_v61 = vpop.f32.mrb[66].mxu1  ;;  %v1609_v25 = vmul.f32 %v3598_v2, %v3598_v2  ;;  %v1504_v17 = vsel %vm770_vm0, %v3598_v2, 0.0 }
 0x197   :  { %v1034_v23 = vpop.f32.mrb[67].mxu0  ;;  %v1321_v26 = vpop.f32.mrb[67].mxu1  ;;  %v1505_v11 = vadd.f32 %v1504_v17, %v1503_v55  ;;  %v1704_v55 = vsel %vm770_vm0, %v1610_v38, 0.0 }
 0x198   :  { %4982 = vst [vmem:[#allocation16_spill] sm:$0xff] %v3619_v43  ;;  %v3623_v59 = vadd.f32 %v1321_v26, %v1032_v14  ;;  %v1702_v14 = vsel %vm770_vm0, %v1609_v25, 0.0  ;;  %v1508_v25 = vsel %vm770_vm0, %v3619_v43, 0.0 }
 0x199   :  { %v1703_v45 = vadd.f32 %v1702_v14, %v1701_v51 }
 0x19a   :  { %4983 = vst [vmem:[#allocation17_spill] sm:$0xff] %v3623_v59  ;;  %v1612_v51 = vmul.f32 %v3623_v59, %v3623_v59  ;;  %v1510_v38 = vsel %vm770_vm0, %v3623_v59, 0.0 }
 0x19c   :  { %v1037_v49 = vpop.f32.mrb[68].mxu0  ;;  %v2665_v15 = vpop.f32.mrb[68].mxu1 }
 0x19d   :  { %v3630_v46 = vadd.f32 %v2661_v39, %v1037_v49  ;;  %v1039_v1 = vpop.f32.mrb[69].mxu0  ;;  %v1334_v23 = vpop.f32.mrb[69].mxu1  ;;  %v1507_v39 = vadd.f32 %v1506_v18, %v1505_v11  ;;  %v1705_v49 = vadd.f32 %v1704_v55, %v1703_v45 }
 0x19e   :  { %v1040_v37 = vpop.f32.mrb[70].mxu0  ;;  %v2666_v27 = vpop.f32.mrb[70].mxu1  ;;  %v1611_v1 = vmul.f32 %v3619_v43, %v3619_v43 }
 0x19f   :  { %4984 = vst [vmem:[#allocation18_spill] sm:$0xff] %v3630_v46  ;;  %v3635_v30 = vadd.f32 %v2662_v61, %v1040_v37  ;;  %v1042_v21 = vpop.f32.mrb[71].mxu0  ;;  %v1337_v26 = vpop.f32.mrb[71].mxu1  ;;  %v1509_v31 = vadd.f32 %v1508_v25, %v1507_v39  ;;  %v1613_v45 = vmul.f32 %v3630_v46, %v3630_v46 }
 0x1a0   :  { %v1706_v61 = vsel %vm770_vm0, %v1611_v1, 0.0 }
 0x1a1   :  { %4985 = vst [vmem:[#allocation19_spill] sm:$0xff] %v3635_v30  ;;  %v1707_v22 = vadd.f32 %v1706_v61, %v1705_v49  ;;  %v1511_v39 = vadd.f32 %v1510_v38, %v1509_v31  ;;  %v1710_v25 = vsel %vm770_vm0, %v1613_v45, 0.0 }
 0x1a4   :  { %v1045_v17 = vpop.f32.mrb[72].mxu0  ;;  %v3644_v2 = vpop.f32.mrb[72].mxu1 }
 0x1a5   :  { %v3649_v37 = vadd.f32 %v1334_v23, %v1045_v17  ;;  %v1047_v14 = vpop.f32.mrb[73].mxu0  ;;  %v1350_v21 = vpop.f32.mrb[73].mxu1  ;;  %v1708_v23 = vsel %vm770_vm0, %v1612_v51, 0.0  ;;  %v1512_v17 = vsel %vm770_vm0, %v3630_v46, 0.0 }
 0x1a6   :  { %v1048_v11 = vpop.f32.mrb[74].mxu0  ;;  %v3651_v18 = vpop.f32.mrb[74].mxu1  ;;  %v1614_v14 = vmul.f32 %v3635_v30, %v3635_v30  ;;  %v1709_v59 = vadd.f32 %v1708_v23, %v1707_v22  ;;  %v1513_v7 = vadd.f32 %v1512_v17, %v1511_v39 }
 0x1a7   :  { %4986 = vst [vmem:[#allocation20_spill] sm:$0xff] %v3649_v37  ;;  %v3657_v55 = vadd.f32 %v1337_v26, %v1048_v11  ;;  %v1050_v1 = vpop.f32.mrb[75].mxu0  ;;  %v1353_v43 = vpop.f32.mrb[75].mxu1  ;;  %v1514_v26 = vsel %vm770_vm0, %v3635_v30, 0.0  ;;  %v1615_v49 = vmul.f32 %v3649_v37, %v3649_v37 }
 0x1a8   :  { %v1711_v11 = vadd.f32 %v1710_v25, %v1709_v59  ;;  %v1712_v22 = vsel %vm770_vm0, %v1614_v14, 0.0  ;;  %v1516_v1 = vsel %vm770_vm0, %v3649_v37, 0.0  ;;  %v1515_v30 = vadd.f32 %v1514_v26, %v1513_v7 }
 0x1a9   :  { %4987 = vst [vmem:[#allocation21_spill] sm:$0xff] %v3657_v55 }
 0x1aa   :  { %v1713_v59 = vadd.f32 %v1712_v22, %v1711_v11  ;;  %v1517_v25 = vadd.f32 %v1516_v1, %v1515_v30 }
 0x1ac   :  { %v1053_v47 = vpop.f32.mrb[76].mxu0  ;;  %v3665_v63 = vpop.f32.mrb[76].mxu1 }
 0x1ad   :  { %v3671_v61 = vadd.f32 %v2665_v15, %v1053_v47  ;;  %v1055_v51 = vpop.f32.mrb[77].mxu0  ;;  %v3673_v31 = vpop.f32.mrb[77].mxu1  ;;  %v1714_v47 = vsel %vm770_vm0, %v1615_v49, 0.0  ;;  %v1616_v15 = vmul.f32 %v3657_v55, %v3657_v55 }
 0x1ae   :  { %v1056_v38 = vpop.f32.mrb[78].mxu0  ;;  %v3675_v45 = vpop.f32.mrb[78].mxu1  ;;  %v1518_v51 = vsel %vm770_vm0, %v3657_v55, 0.0  ;;  %v1715_v37 = vadd.f32 %v1714_v47, %v1713_v59 }
 0x1af   :  { %4988 = vst [vmem:[#allocation22_spill] sm:$0xff] %v3671_v61  ;;  %v3680_v23 = vadd.f32 %v2666_v27, %v1056_v38  ;;  %v1058_v17 = vpop.f32.mrb[79].mxu0  ;;  %v3682_v39 = vpop.f32.mrb[79].mxu1  ;;  %v1617_v14 = vmul.f32 %v3671_v61, %v3671_v61  ;;  %v1520_v7 = vsel %vm770_vm0, %v3671_v61, 0.0  ;;  %v1519_v22 = vadd.f32 %v1518_v51, %v1517_v25 }
 0x1b0   :  { %v1716_v17 = vsel %vm770_vm0, %v1616_v15, 0.0 }
 0x1b1   :  { %v1718_v59 = vsel %vm770_vm0, %v1617_v14, 0.0  ;;  %v1618_v15 = vmul.f32 %v3680_v23, %v3680_v23 }
 0x1b4   :  { %v1061_v27 = vpop.f32.mrb[80].mxu0  ;;  %v2677_v38 = vpop.f32.mrb[80].mxu1 }
 0x1b5   :  { %v3694_v26 = vadd.f32 %v1350_v21, %v1061_v27  ;;  %v3697_v49 = vadd.f32 %v2677_v38, %v3312_v60  ;;  %v1063_v30 = vpop.f32.mrb[81].mxu0  ;;  %v1382_v11 = vpop.f32.mrb[81].mxu1  ;;  %v1717_v21 = vadd.f32 %v1716_v17, %v1715_v37  ;;  %v1521_v27 = vadd.f32 %v1520_v7, %v1519_v22 }
 0x1b6   :  { %v3700_v1 = vadd.f32 %v1382_v11, %v3306_v52  ;;  %v1064_v55 = vpop.f32.mrb[82].mxu0  ;;  %v2678_v47 = vpop.f32.mrb[82].mxu1  ;;  %v1522_v60 = vsel %vm770_vm0, %v3680_v23, 0.0 }
 0x1b7   :  { %v1066_v46 = vpop.f32.mrb[83].mxu0  ;;  %v1385_v61 = vpop.f32.mrb[83].mxu1  ;;  %v3705_v50 = vadd.f32 %v1353_v43, %v1064_v55  ;;  %v1619_v52 = vmul.f32 %v3694_v26, %v3694_v26  ;;  %v3712_v25 = vadd.f32 %v2678_v47, %v3314_v0  ;;  %v1719_v14 = vadd.f32 %v1718_v59, %v1717_v21 }
 0x1b8   :  { %v3715_v51 = vadd.f32 %v1385_v61, %v3310_v56  ;;  %v1720_v46 = vsel %vm770_vm0, %v1618_v15, 0.0  ;;  %v1524_v37 = vsel %vm770_vm0, %v3694_v26, 0.0  ;;  %v1523_v43 = vadd.f32 %v1522_v60, %v1521_v27 }
 0x1b9   :  { %v1722_v17 = vsel %vm770_vm0, %v1619_v52, 0.0  ;;  %v1620_v7 = vmul.f32 %v3705_v50, %v3705_v50  ;;  %v1721_v11 = vadd.f32 %v1720_v46, %v1719_v14  ;;  %v1526_v21 = vsel %vm770_vm0, %v3705_v50, 0.0 }
 0x1ba   :  { %v1525_v22 = vadd.f32 %v1524_v37, %v1523_v43 }
 0x1bb   :  { %v1723_v52 = vadd.f32 %v1722_v17, %v1721_v11  ;;  %v1724_v14 = vsel %vm770_vm0, %v1620_v7, 0.0 }
 0x1bc   :  { %v1069_v55 = vpop.f32.mrb[84].mxu0  ;;  %v2681_v38 = vpop.f32.mrb[84].mxu1  ;;  %v1527_v43 = vadd.f32 %v1526_v21, %v1525_v22 }
 0x1bd   :  { %v3724_v0 = vadd.f32 %v3644_v2, %v1069_v55  ;;  %v3727_v56 = vadd.f32 %v2681_v38, %v3326_v12  ;;  %v1071_v61 = vpop.f32.mrb[85].mxu0  ;;  %v1398_v30 = vpop.f32.mrb[85].mxu1  ;;  %v1725_v17 = vadd.f32 %v1724_v14, %v1723_v52 }
 0x1be   :  { %v3730_v47 = vadd.f32 %v1398_v30, %v3318_v4  ;;  %v1072_v59 = vpop.f32.mrb[86].mxu0  ;;  %v2682_v15 = vpop.f32.mrb[86].mxu1 }
 0x1bf   :  { %v1621_v27 = vmul.f32 %v3724_v0, %v3724_v0  ;;  %v1074_v2 = vpop.f32.mrb[87].mxu0  ;;  %v1401_v60 = vpop.f32.mrb[87].mxu1  ;;  %v3737_v12 = vadd.f32 %v3651_v18, %v1072_v59  ;;  %v1528_v4 = vsel %vm770_vm0, %v3724_v0, 0.0  ;;  %v3743_v46 = vadd.f32 %v2682_v15, %v3330_v16 }
 0x1c0   :  { %v3746_v37 = vadd.f32 %v1401_v60, %v3322_v8  ;;  %v1529_v18 = vadd.f32 %v1528_v4, %v1527_v43 }
 0x1c1   :  { %4989 = vst [vmem:[#allocation23_spill] sm:$0xff] %v3743_v46  ;;  %v1726_v55 = vsel %vm770_vm0, %v1621_v27, 0.0  ;;  %v1622_v38 = vmul.f32 %v3737_v12, %v3737_v12  ;;  %v1530_v7 = vsel %vm770_vm0, %v3737_v12, 0.0 }
 0x1c2   :  { %v1727_v59 = vadd.f32 %v1726_v55, %v1725_v17 }
 0x1c3   :  { %v1728_v2 = vsel %vm770_vm0, %v1622_v38, 0.0 }
 0x1c4   :  { %v1077_v61 = vpop.f32.mrb[88].mxu0  ;;  %v2685_v30 = vpop.f32.mrb[88].mxu1  ;;  %v1729_v38 = vadd.f32 %v1728_v2, %v1727_v59 }
 0x1c5   :  { %v3754_v11 = vadd.f32 %v3673_v31, %v1077_v61  ;;  %v3757_v16 = vadd.f32 %v2685_v30, %v3342_v28  ;;  %v1079_v8 = vpop.f32.mrb[89].mxu0  ;;  %v1414_v22 = vpop.f32.mrb[89].mxu1  ;;  %v1531_v28 = vadd.f32 %v1530_v7, %v1529_v18 }
 0x1c6   :  { %v3760_v15 = vadd.f32 %v1414_v22, %v3334_v20  ;;  %v1080_v21 = vpop.f32.mrb[90].mxu0  ;;  %v2686_v27 = vpop.f32.mrb[90].mxu1 }
 0x1c7   :  { %v1532_v60 = vsel %vm770_vm0, %v3754_v11, 0.0  ;;  %v1623_v31 = vmul.f32 %v3754_v11, %v3754_v11  ;;  %v1082_v52 = vpop.f32.mrb[91].mxu0  ;;  %v1417_v14 = vpop.f32.mrb[91].mxu1  ;;  %v3768_v4 = vadd.f32 %v3682_v39, %v1080_v21  ;;  %v3772_v20 = vadd.f32 %v2686_v27, %v3346_v32 }
 0x1c8   :  { %4990 = vst [vmem:[#allocation24_spill] sm:$0xff] %v3760_v15  ;;  %v3775_v55 = vadd.f32 %v1417_v14, %v3338_v24  ;;  %v1533_v17 = vadd.f32 %v1532_v60, %v1531_v28 }
 0x1c9   :  { %v1730_v43 = vsel %vm770_vm0, %v1623_v31, 0.0  ;;  %v1624_v61 = vmul.f32 %v3768_v4, %v3768_v4  ;;  %v1534_v30 = vsel %vm770_vm0, %v3768_v4, 0.0 }
 0x1ca   :  { %4991 = vst [vmem:[#allocation25_spill] sm:$0xff] %v3775_v55  ;;  %v1731_v18 = vadd.f32 %v1730_v43, %v1729_v38  ;;  %v1535_v21 = vadd.f32 %v1534_v30, %v1533_v17 }
 0x1cb   :  { %v1732_v8 = vsel %vm770_vm0, %v1624_v61, 0.0  ;;  %v1627_v61 = vmul.f32 %v3700_v1, %v3700_v1 }
 0x1cc   :  { %v1085_v7 = vpop.f32.mrb[92].mxu0  ;;  %v2689_v39 = vpop.f32.mrb[92].mxu1  ;;  %v1733_v28 = vadd.f32 %v1732_v8, %v1731_v18 }
 0x1cd   :  { %v3783_v22 = vadd.f32 %v3665_v63, %v1085_v7  ;;  %v3786_v32 = vadd.f32 %v2689_v39, %v3358_v44  ;;  %v1087_v24 = vpop.f32.mrb[93].mxu0  ;;  %v1430_v59 = vpop.f32.mrb[93].mxu1  ;;  %v1540_v39 = vsel %vm770_vm0, %v3700_v1, 0.0 }
 0x1ce   :  { %v3789_v27 = vadd.f32 %v1430_v59, %v3350_v36  ;;  %v1088_v2 = vpop.f32.mrb[94].mxu0  ;;  %v2690_v60 = vpop.f32.mrb[94].mxu1  ;;  %v1629_v59 = vmul.f32 %v3697_v49, %v3697_v49 }
 0x1cf   :  { %v1536_v31 = vsel %vm770_vm0, %v3783_v22, 0.0  ;;  %v1625_v52 = vmul.f32 %v3783_v22, %v3783_v22  ;;  %v1090_v14 = vpop.f32.mrb[95].mxu0  ;;  %v1433_v63 = vpop.f32.mrb[95].mxu1  ;;  %v3796_v44 = vadd.f32 %v3675_v45, %v1088_v2  ;;  %v3800_v36 = vadd.f32 %v2690_v60, %v3362_v48 }
 0x1d0   :  { %v1537_v43 = vadd.f32 %v1536_v31, %v1535_v21  ;;  %v3803_v17 = vadd.f32 %v1433_v63, %v3354_v40  ;;  %v1628_v48 = vmul.f32 %v3715_v51, %v3715_v51  ;;  %v1738_v21 = vsel %vm770_vm0, %v1627_v61, 0.0 }
 0x1d1   :  { %v1734_v38 = vsel %vm770_vm0, %v1625_v52, 0.0  ;;  %v1538_v7 = vsel %vm770_vm0, %v3796_v44, 0.0  ;;  %v1626_v18 = vmul.f32 %v3796_v44, %v3796_v44  ;;  %v1542_v2 = vsel %vm770_vm0, %v3715_v51, 0.0 }
 0x1d2   :  { %v1735_v30 = vadd.f32 %v1734_v38, %v1733_v28  ;;  %v1539_v45 = vadd.f32 %v1538_v7, %v1537_v43  ;;  %v1544_v52 = vsel %vm770_vm0, %v3697_v49, 0.0  ;;  %v1630_v14 = vmul.f32 %v3712_v25, %v3712_v25 }
 0x1d3   :  { %v1736_v40 = vsel %vm770_vm0, %v1626_v18, 0.0  ;;  %v1740_v63 = vsel %vm770_vm0, %v1628_v48, 0.0  ;;  %v1742_v38 = vsel %vm770_vm0, %v1629_v59, 0.0  ;;  %v1546_v61 = vsel %vm770_vm0, %v3712_v25, 0.0 }
 0x1d4   :  { %v1541_v8 = vadd.f32 %v1540_v39, %v1539_v45  ;;  %v1737_v24 = vadd.f32 %v1736_v40, %v1735_v30  ;;  %v1631_v30 = vmul.f32 %v3730_v47, %v3730_v47  ;;  %v1744_v45 = vsel %vm770_vm0, %v1630_v14, 0.0 }
 0x1d5   :  { %v1548_v39 = vsel %vm770_vm0, %v3730_v47, 0.0  ;;  %v1632_v48 = vmul.f32 %v3746_v37, %v3746_v37 }
 0x1d6   :  { %v1543_v60 = vadd.f32 %v1542_v2, %v1541_v8  ;;  %v1739_v31 = vadd.f32 %v1738_v21, %v1737_v24  ;;  %v1633_v24 = vmul.f32 %v3727_v56, %v3727_v56  ;;  %v1746_v59 = vsel %vm770_vm0, %v1631_v30, 0.0 }
 0x1d7   :  { %v1550_v21 = vsel %vm770_vm0, %v3746_v37, 0.0  ;;  %v1748_v14 = vsel %vm770_vm0, %v1632_v48, 0.0 }
 0x1d8   :  { %v1545_v28 = vadd.f32 %v1544_v52, %v1543_v60  ;;  %v1741_v43 = vadd.f32 %v1740_v63, %v1739_v31  ;;  %v1552_v31 = vsel %vm770_vm0, %v3727_v56, 0.0  ;;  %v1634_v52 = vmul.f32 %v3743_v46, %v3743_v46 }
 0x1da   :  { %v1547_v7 = vadd.f32 %v1546_v61, %v1545_v28  ;;  %v1743_v18 = vadd.f32 %v1742_v38, %v1741_v43  ;;  %v1750_v43 = vsel %vm770_vm0, %v1633_v24, 0.0  ;;  %v1554_v38 = vsel %vm770_vm0, %v3743_v46, 0.0 }
 0x1db   :  { %v1635_v61 = vmul.f32 %v3760_v15, %v3760_v15 }
 0x1dc   :  { %v1549_v40 = vadd.f32 %v1548_v39, %v1547_v7  ;;  %v1745_v8 = vadd.f32 %v1744_v45, %v1743_v18  ;;  %v1752_v18 = vsel %vm770_vm0, %v1634_v52, 0.0  ;;  %v1556_v45 = vsel %vm770_vm0, %v3760_v15, 0.0 }
 0x1dd   :  { %v1636_v39 = vmul.f32 %v3775_v55, %v3775_v55  ;;  %v1754_v24 = vsel %vm770_vm0, %v1635_v61, 0.0 }
 0x1de   :  { %v1551_v2 = vadd.f32 %v1550_v21, %v1549_v40  ;;  %v1747_v60 = vadd.f32 %v1746_v59, %v1745_v8  ;;  %v1637_v8 = vmul.f32 %v3757_v16, %v3757_v16  ;;  %v1558_v59 = vsel %vm770_vm0, %v3775_v55, 0.0 }
 0x1df   :  { %v1756_v52 = vsel %vm770_vm0, %v1636_v39, 0.0 }
 0x1e0   :  { %v1749_v63 = vadd.f32 %v1748_v14, %v1747_v60  ;;  %v1553_v28 = vadd.f32 %v1552_v31, %v1551_v2  ;;  %v1560_v60 = vsel %vm770_vm0, %v3757_v16, 0.0  ;;  %v1638_v31 = vmul.f32 %v3772_v20, %v3772_v20 }
 0x1e2   :  { %v1555_v30 = vadd.f32 %v1554_v38, %v1553_v28  ;;  %v1751_v7 = vadd.f32 %v1750_v43, %v1749_v63  ;;  %v1758_v28 = vsel %vm770_vm0, %v1637_v8, 0.0  ;;  %v1562_v43 = vsel %vm770_vm0, %v3772_v20, 0.0 }
 0x1e3   :  { %v1639_v38 = vmul.f32 %v3789_v27, %v3789_v27 }
 0x1e4   :  { %v1557_v48 = vadd.f32 %v1556_v45, %v1555_v30  ;;  %v1753_v40 = vadd.f32 %v1752_v18, %v1751_v7  ;;  %v1760_v7 = vsel %vm770_vm0, %v1638_v31, 0.0  ;;  %v1564_v18 = vsel %vm770_vm0, %v3789_v27, 0.0 }
 0x1e5   :  { %v1640_v45 = vmul.f32 %v3803_v17, %v3803_v17  ;;  %v1762_v8 = vsel %vm770_vm0, %v1639_v38, 0.0 }
 0x1e6   :  { %v1559_v21 = vadd.f32 %v1558_v59, %v1557_v48  ;;  %v1755_v2 = vadd.f32 %v1754_v24, %v1753_v40  ;;  %v1641_v40 = vmul.f32 %v3786_v32, %v3786_v32  ;;  %v1566_v24 = vsel %vm770_vm0, %v3803_v17, 0.0 }
 0x1e7   :  { %v1764_v31 = vsel %vm770_vm0, %v1640_v45, 0.0 }
 0x1e8   :  { %v1561_v14 = vadd.f32 %v1560_v60, %v1559_v21  ;;  %v1757_v63 = vadd.f32 %v1756_v52, %v1755_v2  ;;  %v1568_v2 = vsel %vm770_vm0, %v3786_v32, 0.0  ;;  %v1642_v60 = vmul.f32 %v3800_v36, %v3800_v36 }
 0x1ea   :  { %v1563_v61 = vadd.f32 %v1562_v43, %v1561_v14  ;;  %v1759_v30 = vadd.f32 %v1758_v28, %v1757_v63  ;;  %v1766_v63 = vsel %vm770_vm0, %v1641_v40, 0.0  ;;  %v1570_v28 = vsel %vm770_vm0, %v3800_v36, 0.0 }
 0x1ec   :  { %v1565_v39 = vadd.f32 %v1564_v18, %v1563_v61  ;;  %v1761_v48 = vadd.f32 %v1760_v7, %v1759_v30  ;;  %v1768_v61 = vsel %vm770_vm0, %v1642_v60, 0.0  ;;  %v1787_v60 = vlaneseq }
 0x1ee   :  { %v1567_v59 = vadd.f32 %v1566_v24, %v1565_v39  ;;  %v1763_v21 = vadd.f32 %v1762_v8, %v1761_v48 }
 0x1f0   :  { %v1569_v52 = vadd.f32 %v1568_v2, %v1567_v59  ;;  %v1765_v14 = vadd.f32 %v1764_v31, %v1763_v21 }
 0x1f2   :  { %v1571_v43 = vadd.f32 %v1570_v28, %v1569_v52  ;;  %v1767_v38 = vadd.f32 %v1766_v63, %v1765_v14  ;;  %v3890_v63 = vshrl.u32 %v1787_v60, 7  ;;  %v1779_v28 = vld [vmem:[%s4921_s2] sm:$0x1]  ;;  %v4999_v60 = vld [vmem:[#allocation11_spill] sm:$0xff] }
 0x1f4   :  { %v1572_v30 = vrot.slane %v1571_v43, 4  ;;  %v1769_v7 = vadd.f32 %v1768_v61, %v1767_v38  ;;  %v3899_v61 = vld [vmem:[%s4922_s3] sm:$0x1] }
 0x1f6   :  { %v1573_v18 = vadd.f32 %v1572_v30, %v1571_v43  ;;  %v1770_v39 = vrot.slane %v1769_v7, 4  ;;  %v4948_v43 = vsub.s32 0, %v3890_v63 }
 0x1f8   :  { %v1574_v48 = vrot.slane %v1573_v18, 2  ;;  %v1771_v8 = vadd.f32 %v1770_v39, %v1769_v7 }
 0x1fa   :  { %v1575_v24 = vadd.f32 %v1574_v48, %v1573_v18  ;;  %v1772_v55 = vrot.slane %v1771_v8, 2 }
 0x1fc   :  { %v1576_v45 = vrot.slane %v1575_v24, 1  ;;  %v1773_v59 = vadd.f32 %v1772_v55, %v1771_v8 }
 0x1fe   :  { %v1577_v21 = vadd.f32 %v1576_v45, %v1575_v24  ;;  %v1774_v2 = vrot.slane %v1773_v59, 1  ;;  %v4992_v24 = vld [vmem:[#allocation2_spill] sm:$0xff]  ;;  %v4993_v45 = vld [vmem:[#allocation3_spill] sm:$0xff] }
 0x200   :  { %v1578_v40 = vmul.f32 0.001953125, %v1577_v21  ;;  %v1775_v31 = vadd.f32 %v1774_v2, %v1773_v59  ;;  %v4994_v59 = vld [vmem:[#allocation5_spill] sm:$0xff]  ;;  %v4995_v21 = vld [vmem:[#allocation7_spill] sm:$0xff]  ;;  %v4996_v2 = vld [vmem:[#allocation4_spill] sm:$0xff] }
 0x202   :  { %v1776_v15 = vmul.f32 0.001953125, %v1775_v31  ;;  %v1777_v46 = vmul.f32 %v1578_v40, %v1578_v40 }
 0x204   :  { %v1778_v52 = vsub.f32 %v1776_v15, %v1777_v46 }
 0x206   :  { %v1780_v14 = vadd.f32 1e-05, %v1778_v52  ;;  %v4998_v52 = vld [vmem:[#allocation9_spill] sm:$0xff] }
 0x208   :  { %2870 = vrsqrt.f32 %v1780_v14 }
 0x212   :  { %v2871_v38 = vpop.eup %2870 }
 0x213   :  { %v1782_v55 = vmul.f32 %v2871_v38, %v1779_v28  ;;  %v5000_v38 = vld [vmem:[#allocation8_spill] sm:$0xff] }
 0x215   :  { %v3901_v30 = vmul.f32 %v1782_v55, %v1578_v40  ;;  %v3905_v46 = vrot.slane %v1782_v55, %v4948_v43  ;;  %v4997_v40 = vld [vmem:[#allocation6_spill] sm:$0xff]  ;;  %v5012_v43 = vld [vmem:[#allocation17_spill] sm:$0xff] }
 0x217   :  { %v1785_v15 = vsub.f32 %v3899_v61, %v3901_v30  ;;  %v3911_v7 = vmul.f32 %v3905_v46, %v3369_v62  ;;  %v3915_v18 = vmul.f32 %v3905_v46, %v3378_v13  ;;  %v3919_v39 = vmul.f32 %v3905_v46, %v3366_v57  ;;  %v5001_v61 = vld [vmem:[#allocation10_spill] sm:$0xff] }
 0x218   :  { %v3923_v48 = vmul.f32 %v3905_v46, %v3373_v5  ;;  %v3927_v8 = vmul.f32 %v3905_v46, %v3403_v42  ;;  %v3931_v62 = vmul.f32 %v3905_v46, %v3416_v3  ;;  %v3935_v13 = vmul.f32 %v3905_v46, %v3397_v33 }
 0x219   :  { %v3939_v57 = vmul.f32 %v3905_v46, %v3413_v6  ;;  %v3943_v5 = vmul.f32 %v3905_v46, %v3438_v41  ;;  %v3947_v42 = vmul.f32 %v3905_v46, %v3451_v19  ;;  %v3951_v3 = vmul.f32 %v3905_v46, %v3433_v29 }
 0x21a   :  { %v3955_v33 = vmul.f32 %v3905_v46, %v3444_v58  ;;  %v3959_v6 = vmul.f32 %v3905_v46, %v3474_v54  ;;  %v3963_v41 = vmul.f32 %v3905_v46, %v3487_v35  ;;  %v3967_v19 = vmul.f32 %v3905_v46, %v3469_v34 }
 0x21b   :  { %v3971_v29 = vmul.f32 %v3905_v46, %v3480_v9  ;;  %v3975_v58 = vmul.f32 %v3905_v46, %v3510_v10  ;;  %v3979_v54 = vmul.f32 %v3905_v46, %v3523_v53  ;;  %v3983_v35 = vmul.f32 %v3905_v46, %v4992_v24  ;;  %v5002_v24 = vld [vmem:[#allocation13_spill] sm:$0xff] }
 0x21c   :  { %v3987_v34 = vmul.f32 %v3905_v46, %v4993_v45  ;;  %v3991_v9 = vmul.f32 %v3905_v46, %v4994_v59  ;;  %v3995_v10 = vmul.f32 %v3905_v46, %v4995_v21  ;;  %v3999_v53 = vmul.f32 %v3905_v46, %v4996_v2  ;;  %v5004_v59 = vld [vmem:[#allocation15_spill] sm:$0xff]  ;;  %v5006_v2 = vld [vmem:[#allocation12_spill] sm:$0xff] }
 0x21d   :  { %v4003_v31 = vmul.f32 %v3905_v46, %v4997_v40  ;;  %v4007_v14 = vmul.f32 %v3905_v46, %v4998_v52  ;;  %v4011_v28 = vmul.f32 %v3905_v46, %v4999_v60  ;;  %v4015_v55 = vmul.f32 %v3905_v46, %v5000_v38  ;;  %v5008_v52 = vld [vmem:[#allocation14_spill] sm:$0xff]  ;;  %v5010_v38 = vld [vmem:[#allocation16_spill] sm:$0xff] }
 0x21e   :  { %v4019_v30 = vmul.f32 %v3905_v46, %v5001_v61  ;;  %v4023_v45 = vmul.f32 %v3905_v46, %v5002_v24  ;;  %v4027_v21 = vmul.f32 %v3905_v46, %v5004_v59  ;;  %v4031_v40 = vmul.f32 %v3905_v46, %v5006_v2 }
 0x21f   :  { %v4035_v60 = vmul.f32 %v3905_v46, %v5008_v52  ;;  %v4039_v61 = vmul.f32 %v3905_v46, %v5010_v38  ;;  %v4043_v24 = vmul.f32 %v3905_v46, %v5012_v43 }
 0x220   :  { %5003 = vst [vmem:[#allocation2_spill] sm:$0xff] %v4023_v45  ;;  %5005 = vst [vmem:[#allocation3_spill] sm:$0xff] %v4027_v21  ;;  %v5013_v45 = vld [vmem:[#allocation18_spill] sm:$0xff]  ;;  %v5014_v21 = vld [vmem:[#allocation19_spill] sm:$0xff] }
 0x221   :  { %5007 = vst [vmem:[#allocation5_spill] sm:$0xff] %v4031_v40  ;;  %5009 = vst [vmem:[#allocation7_spill] sm:$0xff] %v4035_v60  ;;  %v4047_v59 = vmul.f32 %v3905_v46, %v5013_v45  ;;  %v4051_v2 = vmul.f32 %v3905_v46, %v5014_v21  ;;  %v5015_v40 = vld [vmem:[#allocation20_spill] sm:$0xff]  ;;  %v5016_v60 = vld [vmem:[#allocation21_spill] sm:$0xff]  ;;  %v4067_v45 = vmul.f32 %v3905_v46, %v3680_v23 }
 0x222   :  { %5011 = vst [vmem:[#allocation4_spill] sm:$0xff] %v4039_v61  ;;  %v4055_v52 = vmul.f32 %v3905_v46, %v5015_v40  ;;  %v4059_v38 = vmul.f32 %v3905_v46, %v5016_v60  ;;  %v5017_v61 = vld [vmem:[#allocation22_spill] sm:$0xff]  ;;  %v4071_v21 = vmul.f32 %v3905_v46, %v3694_v26  ;;  %v4075_v40 = vmul.f32 %v3905_v46, %v3705_v50 }
 0x223   :  { %v4063_v43 = vmul.f32 %v3905_v46, %v5017_v61  ;;  %v4079_v60 = vmul.f32 %v3905_v46, %v3724_v0  ;;  %v4083_v61 = vmul.f32 %v3905_v46, %v3737_v12  ;;  %v4087_v23 = vmul.f32 %v3905_v46, %v3754_v11 }
 0x224   :  { %v4091_v26 = vmul.f32 %v3905_v46, %v3768_v4  ;;  %v4095_v50 = vmul.f32 %v3905_v46, %v3783_v22  ;;  %v4099_v0 = vmul.f32 %v3905_v46, %v3796_v44  ;;  %v4103_v12 = vmul.f32 %v3905_v46, %v3700_v1 }
 0x225   :  { %v4107_v11 = vmul.f32 %v3905_v46, %v3715_v51  ;;  %v4111_v4 = vmul.f32 %v3905_v46, %v3697_v49  ;;  %v4115_v22 = vmul.f32 %v3905_v46, %v3712_v25  ;;  %v4119_v44 = vmul.f32 %v3905_v46, %v3757_v16 }
 0x226   :  { %v4123_v1 = vmul.f32 %v3905_v46, %v3772_v20  ;;  %v4127_v51 = vmul.f32 %v3905_v46, %v3789_v27  ;;  %v4131_v49 = vmul.f32 %v3905_v46, %v3803_v17  ;;  %v4135_v25 = vmul.f32 %v3905_v46, %v3786_v32 }
 0x227   :  { %5018 = vst [vmem:[#allocation6_spill] sm:$0xff] %v4119_v44  ;;  %v1844_v16 = vmul.f32 %v3905_v46, %v3730_v47  ;;  %v1845_v44 = vmul.f32 %v3905_v46, %v3746_v37  ;;  %v4143_v20 = vmul.f32 %v3905_v46, %v3800_v36  ;;  %v5023_v27 = vsub.s32 0, %v3890_v63 }
 0x228   :  { %5019 = vst [vmem:[#allocation9_spill] sm:$0xff] %v4123_v1  ;;  %5020 = vst [vmem:[#allocation11_spill] sm:$0xff] %v4127_v51  ;;  %v1846_v17 = vmul.f32 %v3905_v46, %v3727_v56  ;;  %v5026_v1 = vld [vmem:[#allocation25_spill] sm:$0xff] }
 0x229   :  { %5021 = vst [vmem:[#allocation8_spill] sm:$0xff] %v4131_v49  ;;  %5022 = vst [vmem:[#allocation10_spill] sm:$0xff] %v4135_v25  ;;  %v4147_v51 = vrot.slane %v1785_v15, %v5023_v27  ;;  %v5024_v49 = vld [vmem:[#allocation23_spill] sm:$0xff]  ;;  %v5025_v25 = vld [vmem:[#allocation24_spill] sm:$0xff]  ;;  %v1849_v37 = vmul.f32 %v3905_v46, %v5026_v1 }
 0x22a   :  { %v1847_v32 = vmul.f32 %v3905_v46, %v5024_v49  ;;  %v1848_v47 = vmul.f32 %v3905_v46, %v5025_v25  ;;  %v5029_v1 = vld [vmem:[#allocation3_spill] sm:$0xff]  ;;  %v5030_v25 = vld [vmem:[#allocation5_spill] sm:$0xff] }
 0x22b   :  { %v4159_v36 = vadd.f32 %v4147_v51, %v3911_v7  ;;  %v4163_v63 = vadd.f32 %v4147_v51, %v3915_v18  ;;  %v4167_v56 = vadd.f32 %v4147_v51, %v3919_v39  ;;  %v4171_v15 = vadd.f32 %v4147_v51, %v3923_v48  ;;  %v5031_v27 = vld [vmem:[#allocation7_spill] sm:$0xff] }
 0x22c   :  { %v4175_v49 = vadd.f32 %v4147_v51, %v3927_v8  ;;  %v4179_v46 = vadd.f32 %v4147_v51, %v3931_v62  ;;  %v4183_v7 = vadd.f32 %v4147_v51, %v3935_v13  ;;  %v4187_v18 = vadd.f32 %v4147_v51, %v3939_v57 }
 0x22d   :  { %v4191_v39 = vadd.f32 %v4147_v51, %v3943_v5  ;;  %v4195_v48 = vadd.f32 %v4147_v51, %v3947_v42  ;;  %v4199_v8 = vadd.f32 %v4147_v51, %v3951_v3  ;;  %v4203_v62 = vadd.f32 %v4147_v51, %v3955_v33 }
 0x22e   :  { %v4207_v13 = vadd.f32 %v4147_v51, %v3959_v6  ;;  %v4211_v57 = vadd.f32 %v4147_v51, %v3963_v41  ;;  %v4215_v5 = vadd.f32 %v4147_v51, %v3967_v19  ;;  %v4219_v42 = vadd.f32 %v4147_v51, %v3971_v29 }
 0x22f   :  { %v4223_v3 = vadd.f32 %v4147_v51, %v3975_v58  ;;  %v4227_v33 = vadd.f32 %v4147_v51, %v3979_v54  ;;  %v4231_v6 = vadd.f32 %v4147_v51, %v3983_v35  ;;  %v4235_v41 = vadd.f32 %v4147_v51, %v3987_v34 }
 0x230   :  { %v4239_v19 = vadd.f32 %v4147_v51, %v3991_v9  ;;  %v4243_v29 = vadd.f32 %v4147_v51, %v3995_v10  ;;  %v4247_v58 = vadd.f32 %v4147_v51, %v3999_v53  ;;  %v4251_v54 = vadd.f32 %v4147_v51, %v4003_v31  ;;  %v5028_v53 = vld [vmem:[#allocation2_spill] sm:$0xff] }
 0x231   :  { %v4255_v35 = vadd.f32 %v4147_v51, %v4007_v14  ;;  %v4259_v34 = vadd.f32 %v4147_v51, %v4011_v28  ;;  %v4263_v9 = vadd.f32 %v4147_v51, %v4015_v55  ;;  %v4267_v10 = vadd.f32 %v4147_v51, %v4019_v30 }
 0x232   :  { %v4271_v31 = vadd.f32 %v4147_v51, %v5028_v53  ;;  %v4275_v14 = vadd.f32 %v4147_v51, %v5029_v1  ;;  %v4279_v28 = vadd.f32 %v4147_v51, %v5030_v25  ;;  %v4283_v55 = vadd.f32 %v4147_v51, %v5031_v27 }
 0x233   :  { %5027 = vst [vmem:[#allocation13_spill] sm:$0xff] %v4263_v9  ;;  %v5032_v9 = vld [vmem:[#allocation4_spill] sm:$0xff]  ;;  %v4291_v53 = vadd.f32 %v4147_v51, %v4043_v24  ;;  %v4295_v1 = vadd.f32 %v4147_v51, %v4047_v59  ;;  %v4299_v25 = vadd.f32 %v4147_v51, %v4051_v2  ;;  %v4303_v27 = vadd.f32 %v4147_v51, %v4055_v52 }
 0x234   :  { %v4287_v30 = vadd.f32 %v4147_v51, %v5032_v9  ;;  %v4307_v9 = vadd.f32 %v4147_v51, %v4059_v38  ;;  %v4311_v24 = vadd.f32 %v4147_v51, %v4063_v43  ;;  %v4315_v59 = vadd.f32 %v4147_v51, %v4067_v45 }
 0x235   :  { %5033 = vst [vmem:[#allocation15_spill] sm:$0xff] %v4299_v25  ;;  %v4319_v2 = vadd.f32 %v4147_v51, %v4071_v21  ;;  %v4323_v52 = vadd.f32 %v4147_v51, %v4075_v40  ;;  %v4327_v38 = vadd.f32 %v4147_v51, %v4079_v60  ;;  %v4331_v43 = vadd.f32 %v4147_v51, %v4083_v61 }
 0x236   :  { %5034 = vst [vmem:[#allocation12_spill] sm:$0xff] %v4311_v24  ;;  %v4335_v45 = vadd.f32 %v4147_v51, %v4087_v23  ;;  %v4339_v21 = vadd.f32 %v4147_v51, %v4091_v26  ;;  %v4343_v40 = vadd.f32 %v4147_v51, %v4095_v50  ;;  %v4347_v60 = vadd.f32 %v4147_v51, %v4099_v0 }
 0x237   :  { %5035 = vst [vmem:[#allocation14_spill] sm:$0xff] %v4319_v2  ;;  %5036 = vst [vmem:[#allocation16_spill] sm:$0xff] %v4327_v38  ;;  %v4351_v61 = vadd.f32 %v4147_v51, %v4103_v12  ;;  %v4355_v23 = vadd.f32 %v4147_v51, %v4107_v11  ;;  %v4359_v26 = vadd.f32 %v4147_v51, %v4111_v4 }
 0x238   :  { %5037 = vst [vmem:[#allocation17_spill] sm:$0xff] %v4335_v45  ;;  %5038 = vst [vmem:[#allocation18_spill] sm:$0xff] %v4343_v40  ;;  %v4363_v50 = vadd.f32 %v4147_v51, %v4115_v22  ;;  %v4366_v40 = vadd.f32 %v4147_v51, %v1844_v16  ;;  %v4369_v0 = vadd.f32 %v4147_v51, %v1845_v44  ;;  %v5046_v22 = vld [vmem:[#allocation6_spill] sm:$0xff]  ;;  %v5048_v16 = vld [vmem:[#allocation9_spill] sm:$0xff] }
 0x239   :  { %5039 = vst [vmem:[#allocation19_spill] sm:$0xff] %v4347_v60  ;;  %5040 = vst [vmem:[#allocation20_spill] sm:$0xff] %v4351_v61  ;;  %v4372_v12 = vadd.f32 %v4147_v51, %v1846_v17  ;;  %v4375_v11 = vadd.f32 %v4147_v51, %v1847_v32  ;;  %v4381_v4 = vadd.f32 %v4147_v51, %v1849_v37  ;;  %v5052_v32 = vld [vmem:[#allocation8_spill] sm:$0xff] }
 0x23a   :  { %5041 = vst [vmem:[#allocation21_spill] sm:$0xff] %v4355_v23  ;;  %5042 = vst [vmem:[#allocation22_spill] sm:$0xff] %v4359_v26  ;;  %v4378_v23 = vadd.f32 %v4147_v51, %v1848_v47  ;;  %v4389_v44 = vadd.f32 %v4147_v51, %v5048_v16  ;;  %v5054_v47 = vld [vmem:[#allocation10_spill] sm:$0xff] }
 0x23b   :  { %5043 = vst [vmem:[#allocation23_spill] sm:$0xff] %v4363_v50  ;;  %5044 = vst [vmem:[#allocation24_spill] sm:$0xff] %v4369_v0  ;;  %v4385_v50 = vadd.f32 %v4147_v51, %v5046_v22  ;;  %v5050_v0 = vld [vmem:[#allocation11_spill] sm:$0xff]  ;;  %v4401_v37 = vadd.f32 %v4147_v51, %v5054_v47  ;;  %v4405_v22 = vadd.f32 %v4147_v51, %v4143_v20  ;;  %v5070_v20 = vmax.f32 %v4171_v15, 0.0 }
 0x23c   :  { %5045 = vst [vmem:[#allocation25_spill] sm:$0xff] %v4375_v11  ;;  %5049 = vst [vmem:[#allocation3_spill] sm:$0xff] %v4389_v44  ;;  %v4393_v17 = vadd.f32 %v4147_v51, %v5050_v0  ;;  %v4397_v11 = vadd.f32 %v4147_v51, %v5052_v32  ;;  %v5063_v61 = vmov %v4389_v44  ;;  %v5071_v44 = vmax.f32 %v4175_v49, 0.0 }
 0x23d   :  { %5047 = vst [vmem:[#allocation2_spill] sm:$0xff] %v4385_v50  ;;  %5055 = vst [vmem:[#allocation4_spill] sm:$0xff] %v4401_v37  ;;  %v5056_v50 = vld [vmem:[#allocation13_spill] sm:$0xff]  ;;  %v5066_v2 = vmov %v4401_v37  ;;  %v5069_v37 = vmax.f32 %v4167_v56, 0.0  ;;  %v2528_v16 = vpack.c.bf16 %v5070_v20, %v5070_v20  ;;  %v5074_v56 = vmax.f32 %v4187_v18, 0.0 }
 0x23e   :  { %5051 = vst [vmem:[#allocation5_spill] sm:$0xff] %v4393_v17  ;;  %5053 = vst [vmem:[#allocation7_spill] sm:$0xff] %v4397_v11  ;;  %v5064_v24 = vmov %v4393_v17  ;;  %v5065_v26 = vmov %v4397_v11  ;;  %v5067_v17 = vmax.f32 %v4159_v36, 0.0  ;;  %v5068_v11 = vmax.f32 %v4163_v63, 0.0 }
 0x23f   :  { %v5057_v25 = vld [vmem:[#allocation18_spill] sm:$0xff]  ;;  %v2527_v51 = vpack.c.bf16 %v5069_v37, %v5069_v37  ;;  %v2529_v0 = vpack.c.bf16 %v5071_v44, %v5071_v44  ;;  %v5072_v36 = vmax.f32 %v4179_v46, 0.0  ;;  %v5073_v63 = vmax.f32 %v4183_v7, 0.0  ;;  %2250 = vst.msk [vmem:[%s4923_s4 + $0xc] sm:$0xf] %vm2246_vm1, %v2528_v16 }
 0x240   :  { %v2525_v32 = vpack.c.bf16 %v5067_v17, %v5067_v17  ;;  %v2526_v47 = vpack.c.bf16 %v5068_v11, %v5068_v11  ;;  %v2532_v37 = vpack.c.bf16 %v5074_v56, %v5074_v56  ;;  %v5075_v15 = vmax.f32 %v4191_v39, 0.0 }
 0x241   :  { %v2530_v17 = vpack.c.bf16 %v5072_v36, %v5072_v36  ;;  %v2531_v11 = vpack.c.bf16 %v5073_v63, %v5073_v63  ;;  %v5076_v49 = vmax.f32 %v4195_v48, 0.0  ;;  %v5077_v46 = vmax.f32 %v4199_v8, 0.0  ;;  %2249 = vst.msk [vmem:[%s4923_s4 + $0x8] sm:$0xf] %vm2246_vm1, %v2527_v51  ;;  %2251 = vst.msk [vmem:[%s4923_s4 + $0x10] sm:$0xf] %vm2246_vm1, %v2529_v0 }
 0x242   :  { %v5060_v38 = vld [vmem:[#allocation24_spill] sm:$0xff]  ;;  %v2533_v20 = vpack.c.bf16 %v5075_v15, %v5075_v15  ;;  %v5078_v7 = vmax.f32 %v4203_v62, 0.0  ;;  %2247 = vst.msk [vmem:[%s4923_s4] sm:$0xf] %vm2246_vm1, %v2525_v32  ;;  %2248 = vst.msk [vmem:[%s4923_s4 + $0x4] sm:$0xf] %vm2246_vm1, %v2526_v47 }
 0x243   :  { %v5061_v45 = vld [vmem:[#allocation25_spill] sm:$0xff]  ;;  %v2534_v44 = vpack.c.bf16 %v5076_v49, %v5076_v49  ;;  %v2535_v36 = vpack.c.bf16 %v5077_v46, %v5077_v46  ;;  %v5079_v18 = vmax.f32 %v4207_v13, 0.0  ;;  %v5080_v48 = vmax.f32 %v4211_v57, 0.0  ;;  %2252 = vst.msk [vmem:[%s4923_s4 + $0x14] sm:$0xf] %vm2246_vm1, %v2530_v17 }
 0x244   :  { %v5062_v60 = vld [vmem:[#allocation2_spill] sm:$0xff]  ;;  %v2536_v63 = vpack.c.bf16 %v5078_v7, %v5078_v7  ;;  %v5081_v62 = vmax.f32 %v4215_v5, 0.0  ;;  %v5082_v47 = vmax.f32 %v4219_v42, 0.0  ;;  %2253 = vst.msk [vmem:[%s4923_s4 + $0x18] sm:$0xf] %vm2246_vm1, %v2531_v11  ;;  %v5083_v13 = vmax.f32 %v4223_v3, 0.0 }
 0x245   :  { %v2537_v39 = vpack.c.bf16 %v5079_v18, %v5079_v18  ;;  %v2538_v8 = vpack.c.bf16 %v5080_v48, %v5080_v48  ;;  %2254 = vst.msk [vmem:[%s4923_s4 + $0x1c] sm:$0xf] %vm2246_vm1, %v2532_v37  ;;  %v5084_v5 = vmax.f32 %v4227_v33, 0.0  ;;  %v5085_v16 = vmax.f32 %v4231_v6, 0.0  ;;  %2255 = vst.msk [vmem:[%s4923_s4 + $0x20] sm:$0xf] %vm2246_vm1, %v2533_v20 }
 0x246   :  { %v2539_v32 = vpack.c.bf16 %v5081_v62, %v5081_v62  ;;  %v2540_v51 = vpack.c.bf16 %v5082_v47, %v5082_v47  ;;  %v2541_v57 = vpack.c.bf16 %v5083_v13, %v5083_v13  ;;  %v5086_v17 = vmax.f32 %v4235_v41, 0.0  ;;  %2256 = vst.msk [vmem:[%s4923_s4 + $0x24] sm:$0xf] %vm2246_vm1, %v2534_v44  ;;  %2257 = vst.msk [vmem:[%s4923_s4 + $0x28] sm:$0xf] %vm2246_vm1, %v2535_v36  ;;  %v5102_v62 = vld [vmem:[#allocation15_spill] sm:$0xff] }
 0x247   :  { %v2542_v42 = vpack.c.bf16 %v5084_v5, %v5084_v5  ;;  %v2543_v0 = vpack.c.bf16 %v5085_v16, %v5085_v16  ;;  %2258 = vst.msk [vmem:[%s4923_s4 + $0x2c] sm:$0xf] %vm2246_vm1, %v2536_v63  ;;  %v5087_v3 = vmax.f32 %v4239_v19, 0.0  ;;  %v5088_v6 = vmax.f32 %v4243_v29, 0.0  ;;  %2259 = vst.msk [vmem:[%s4923_s4 + $0x30] sm:$0xf] %vm2246_vm1, %v2537_v39 }
 0x248   :  { %v2544_v11 = vpack.c.bf16 %v5086_v17, %v5086_v17  ;;  %v5089_v56 = vmax.f32 %v4247_v58, 0.0  ;;  %v5090_v15 = vmax.f32 %v4251_v54, 0.0  ;;  %2260 = vst.msk [vmem:[%s4923_s4 + $0x34] sm:$0xf] %vm2246_vm1, %v2538_v8  ;;  %2261 = vst.msk [vmem:[%s4923_s4 + $0x38] sm:$0xf] %vm2246_vm1, %v2539_v32 }
 0x249   :  { %v2545_v33 = vpack.c.bf16 %v5087_v3, %v5087_v3  ;;  %v2546_v41 = vpack.c.bf16 %v5088_v6, %v5088_v6  ;;  %2262 = vst.msk [vmem:[%s4923_s4 + $0x3c] sm:$0xf] %vm2246_vm1, %v2540_v51  ;;  %v5091_v19 = vmax.f32 %v4255_v35, 0.0  ;;  %v5092_v58 = vmax.f32 %v4259_v34, 0.0  ;;  %2263 = vst.msk [vmem:[%s4923_s4 + $0x40] sm:$0xf] %vm2246_vm1, %v2541_v57 }
 0x24a   :  { %v2547_v37 = vpack.c.bf16 %v5089_v56, %v5089_v56  ;;  %v2548_v20 = vpack.c.bf16 %v5090_v15, %v5090_v15  ;;  %v5093_v49 = vmax.f32 %v5056_v50, 0.0  ;;  %v5094_v46 = vmax.f32 %v4267_v10, 0.0  ;;  %2264 = vst.msk [vmem:[%s4923_s4 + $0x44] sm:$0xf] %vm2246_vm1, %v2542_v42  ;;  %2265 = vst.msk [vmem:[%s4923_s4 + $0x48] sm:$0xf] %vm2246_vm1, %v2543_v0 }
 0x24b   :  { %v2549_v29 = vpack.c.bf16 %v5091_v19, %v5091_v19  ;;  %v2550_v54 = vpack.c.bf16 %v5092_v58, %v5092_v58  ;;  %2266 = vst.msk [vmem:[%s4923_s4 + $0x4c] sm:$0xf] %vm2246_vm1, %v2544_v11  ;;  %v5095_v35 = vmax.f32 %v4271_v31, 0.0  ;;  %v5096_v10 = vmax.f32 %v4275_v14, 0.0  ;;  %2267 = vst.msk [vmem:[%s4923_s4 + $0x50] sm:$0xf] %vm2246_vm1, %v2545_v33 }
 0x24c   :  { %v2551_v44 = vpack.c.bf16 %v5093_v49, %v5093_v49  ;;  %v2552_v36 = vpack.c.bf16 %v5094_v46, %v5094_v46  ;;  %v5097_v7 = vmax.f32 %v4279_v28, 0.0  ;;  %v5098_v18 = vmax.f32 %v4283_v55, 0.0  ;;  %2268 = vst.msk [vmem:[%s4923_s4 + $0x54] sm:$0xf] %vm2246_vm1, %v2546_v41  ;;  %2269 = vst.msk [vmem:[%s4923_s4 + $0x58] sm:$0xf] %vm2246_vm1, %v2547_v37 }
 0x24d   :  { %v2553_v34 = vpack.c.bf16 %v5095_v35, %v5095_v35  ;;  %v2554_v50 = vpack.c.bf16 %v5096_v10, %v5096_v10  ;;  %2270 = vst.msk [vmem:[%s4923_s4 + $0x5c] sm:$0xf] %vm2246_vm1, %v2548_v20  ;;  %v5099_v31 = vmax.f32 %v4287_v30, 0.0  ;;  %v5100_v28 = vmax.f32 %v4291_v53, 0.0  ;;  %2271 = vst.msk [vmem:[%s4923_s4 + $0x60] sm:$0xf] %vm2246_vm1, %v2549_v29 }
 0x24e   :  { %v2555_v63 = vpack.c.bf16 %v5097_v7, %v5097_v7  ;;  %v2556_v39 = vpack.c.bf16 %v5098_v18, %v5098_v18  ;;  %v5101_v48 = vmax.f32 %v4295_v1, 0.0  ;;  %v5103_v32 = vmax.f32 %v5102_v62, 0.0  ;;  %2272 = vst.msk [vmem:[%s4923_s4 + $0x64] sm:$0xf] %vm2246_vm1, %v2550_v54  ;;  %2273 = vst.msk [vmem:[%s4923_s4 + $0x68] sm:$0xf] %vm2246_vm1, %v2551_v44 }
 0x24f   :  { %v2557_v14 = vpack.c.bf16 %v5099_v31, %v5099_v31  ;;  %v2558_v55 = vpack.c.bf16 %v5100_v28, %v5100_v28  ;;  %2274 = vst.msk [vmem:[%s4923_s4 + $0x6c] sm:$0xf] %vm2246_vm1, %v2552_v36  ;;  %v5104_v30 = vmax.f32 %v4303_v27, 0.0  ;;  %v5105_v1 = vmax.f32 %v4307_v9, 0.0  ;;  %v5106_v13 = vld [vmem:[#allocation12_spill] sm:$0xff]  ;;  %v5109_v27 = vld [vmem:[#allocation14_spill] sm:$0xff] }
 0x250   :  { %v2559_v8 = vpack.c.bf16 %v5101_v48, %v5101_v48  ;;  %v2560_v47 = vpack.c.bf16 %v5103_v32, %v5103_v32  ;;  %v5107_v57 = vmax.f32 %v5106_v13, 0.0  ;;  %v5108_v42 = vmax.f32 %v4315_v59, 0.0  ;;  %2275 = vst.msk [vmem:[%s4923_s4 + $0x70] sm:$0xf] %vm2246_vm1, %v2553_v34  ;;  %2276 = vst.msk [vmem:[%s4923_s4 + $0x74] sm:$0xf] %vm2246_vm1, %v2554_v50 }
 0x251   :  { %v2561_v53 = vpack.c.bf16 %v5104_v30, %v5104_v30  ;;  %v2562_v51 = vpack.c.bf16 %v5105_v1, %v5105_v1  ;;  %2277 = vst.msk [vmem:[%s4923_s4 + $0x78] sm:$0xf] %vm2246_vm1, %v2555_v63  ;;  %2278 = vst.msk [vmem:[%s4923_s4 + $0x7c] sm:$0xf] %vm2246_vm1, %v2556_v39  ;;  %v5110_v9 = vmax.f32 %v5109_v27, 0.0  ;;  %v5111_v0 = vmax.f32 %v4323_v52, 0.0 }
 0x252   :  { %v2563_v5 = vpack.c.bf16 %v5107_v57, %v5107_v57  ;;  %v2564_v16 = vpack.c.bf16 %v5108_v42, %v5108_v42  ;;  %v5112_v11 = vld [vmem:[#allocation16_spill] sm:$0xff]  ;;  %v5114_v6 = vmax.f32 %v4331_v43, 0.0  ;;  %2279 = vst.msk [vmem:[%s4923_s4 + $0x80] sm:$0xf] %vm2246_vm1, %v2557_v14  ;;  %2280 = vst.msk [vmem:[%s4923_s4 + $0x84] sm:$0xf] %vm2246_vm1, %v2558_v55 }
 0x253   :  { %v2565_v59 = vpack.c.bf16 %v5110_v9, %v5110_v9  ;;  %v2566_v17 = vpack.c.bf16 %v5111_v0, %v5111_v0  ;;  %v5113_v3 = vmax.f32 %v5112_v11, 0.0  ;;  %2281 = vst.msk [vmem:[%s4923_s4 + $0x88] sm:$0xf] %vm2246_vm1, %v2559_v8  ;;  %2282 = vst.msk [vmem:[%s4923_s4 + $0x8c] sm:$0xf] %vm2246_vm1, %v2560_v47  ;;  %v5115_v52 = vld [vmem:[#allocation17_spill] sm:$0xff] }
 0x254   :  { %v2568_v41 = vpack.c.bf16 %v5114_v6, %v5114_v6  ;;  %v5116_v43 = vmax.f32 %v5115_v52, 0.0  ;;  %v5117_v37 = vmax.f32 %v4339_v21, 0.0  ;;  %v5118_v20 = vmax.f32 %v5057_v25, 0.0  ;;  %v5119_v29 = vld [vmem:[#allocation19_spill] sm:$0xff]  ;;  %2283 = vst.msk [vmem:[%s4923_s4 + $0x90] sm:$0xf] %vm2246_vm1, %v2561_v53 }
 0x255   :  { %v2567_v33 = vpack.c.bf16 %v5113_v3, %v5113_v3  ;;  %v5120_v58 = vmax.f32 %v5119_v29, 0.0  ;;  %2284 = vst.msk [vmem:[%s4923_s4 + $0x94] sm:$0xf] %vm2246_vm1, %v2562_v51  ;;  %2285 = vst.msk [vmem:[%s4923_s4 + $0x98] sm:$0xf] %vm2246_vm1, %v2563_v5  ;;  %v5121_v25 = vld [vmem:[#allocation20_spill] sm:$0xff] }
 0x256   :  { %v2569_v56 = vpack.c.bf16 %v5116_v43, %v5116_v43  ;;  %v2570_v15 = vpack.c.bf16 %v5117_v37, %v5117_v37  ;;  %v2571_v19 = vpack.c.bf16 %v5118_v20, %v5118_v20  ;;  %2286 = vst.msk [vmem:[%s4923_s4 + $0x9c] sm:$0xf] %vm2246_vm1, %v2564_v16  ;;  %v5122_v21 = vmax.f32 %v5121_v25, 0.0  ;;  %v5123_v44 = vld [vmem:[#allocation21_spill] sm:$0xff]  ;;  %v5125_v35 = vld [vmem:[#allocation22_spill] sm:$0xff]  ;;  %v5127_v50 = vld [vmem:[#allocation23_spill] sm:$0xff] }
 0x257   :  { %v2572_v54 = vpack.c.bf16 %v5120_v58, %v5120_v58  ;;  %v5124_v46 = vmax.f32 %v5123_v44, 0.0  ;;  %v5126_v34 = vmax.f32 %v5125_v35, 0.0  ;;  %v5128_v7 = vmax.f32 %v5127_v50, 0.0  ;;  %2287 = vst.msk [vmem:[%s4923_s4 + $0xa0] sm:$0xf] %vm2246_vm1, %v2565_v59 }
 0x258   :  { %v2573_v49 = vpack.c.bf16 %v5122_v21, %v5122_v21  ;;  %2288 = vst.msk [vmem:[%s4923_s4 + $0xa4] sm:$0xf] %vm2246_vm1, %v2566_v17  ;;  %2289 = vst.msk [vmem:[%s4923_s4 + $0xa8] sm:$0xf] %vm2246_vm1, %v2567_v33  ;;  %v5129_v18 = vmax.f32 %v4366_v40, 0.0  ;;  %v5130_v31 = vmax.f32 %v5060_v38, 0.0 }
 0x259   :  { %v2574_v36 = vpack.c.bf16 %v5124_v46, %v5124_v46  ;;  %v2575_v10 = vpack.c.bf16 %v5126_v34, %v5126_v34  ;;  %v2576_v63 = vpack.c.bf16 %v5128_v7, %v5128_v7  ;;  %2290 = vst.msk [vmem:[%s4923_s4 + $0xac] sm:$0xf] %vm2246_vm1, %v2568_v41  ;;  %v5131_v28 = vmax.f32 %v4372_v12, 0.0  ;;  %2291 = vst.msk [vmem:[%s4923_s4 + $0xb0] sm:$0xf] %vm2246_vm1, %v2569_v56 }
 0x25a   :  { %v2577_v39 = vpack.c.bf16 %v5129_v18, %v5129_v18  ;;  %v2578_v14 = vpack.c.bf16 %v5130_v31, %v5130_v31  ;;  %v5132_v48 = vmax.f32 %v5061_v45, 0.0  ;;  %2292 = vst.msk [vmem:[%s4923_s4 + $0xb4] sm:$0xf] %vm2246_vm1, %v2570_v15  ;;  %2293 = vst.msk [vmem:[%s4923_s4 + $0xb8] sm:$0xf] %vm2246_vm1, %v2571_v19  ;;  %v5133_v38 = vmax.f32 %v4378_v23, 0.0 }
 0x25b   :  { %v2579_v55 = vpack.c.bf16 %v5131_v28, %v5131_v28  ;;  %2294 = vst.msk [vmem:[%s4923_s4 + $0xbc] sm:$0xf] %vm2246_vm1, %v2572_v54  ;;  %v5134_v40 = vmax.f32 %v4381_v4, 0.0  ;;  %v5135_v62 = vmax.f32 %v5062_v60, 0.0  ;;  %v5136_v47 = vmax.f32 %v5063_v61, 0.0 }
 0x25c   :  { %v2580_v8 = vpack.c.bf16 %v5132_v48, %v5132_v48  ;;  %v2581_v45 = vpack.c.bf16 %v5133_v38, %v5133_v38  ;;  %2295 = vst.msk [vmem:[%s4923_s4 + $0xc0] sm:$0xf] %vm2246_vm1, %v2573_v49  ;;  %2296 = vst.msk [vmem:[%s4923_s4 + $0xc4] sm:$0xf] %vm2246_vm1, %v2574_v36  ;;  %v5137_v60 = vmax.f32 %v5064_v24, 0.0  ;;  %v5138_v23 = vmax.f32 %v5065_v26, 0.0 }
 0x25d   :  { %v2582_v12 = vpack.c.bf16 %v5134_v40, %v5134_v40  ;;  %v2583_v32 = vpack.c.bf16 %v5135_v62, %v5135_v62  ;;  %v2584_v30 = vpack.c.bf16 %v5136_v47, %v5136_v47  ;;  %2297 = vst.msk [vmem:[%s4923_s4 + $0xc8] sm:$0xf] %vm2246_vm1, %v2575_v10  ;;  %2298 = vst.msk [vmem:[%s4923_s4 + $0xcc] sm:$0xf] %vm2246_vm1, %v2576_v63  ;;  %v5139_v53 = vmax.f32 %v5066_v2, 0.0 }
 0x25e   :  { %v2585_v61 = vpack.c.bf16 %v5137_v60, %v5137_v60  ;;  %v2586_v4 = vpack.c.bf16 %v5138_v23, %v5138_v23  ;;  %v5140_v51 = vmax.f32 %v4405_v22, 0.0  ;;  %2299 = vst.msk [vmem:[%s4923_s4 + $0xd0] sm:$0xf] %vm2246_vm1, %v2577_v39  ;;  %2300 = vst.msk [vmem:[%s4923_s4 + $0xd4] sm:$0xf] %vm2246_vm1, %v2578_v14 }
 0x25f   :  { %v2587_v1 = vpack.c.bf16 %v5139_v53, %v5139_v53  ;;  %2301 = vst.msk [vmem:[%s4923_s4 + $0xd8] sm:$0xf] %vm2246_vm1, %v2579_v55  ;;  %2302 = vst.msk [vmem:[%s4923_s4 + $0xdc] sm:$0xf] %vm2246_vm1, %v2580_v8 }
 0x260   :  { %v2588_v13 = vpack.c.bf16 %v5140_v51, %v5140_v51  ;;  %2303 = vst.msk [vmem:[%s4923_s4 + $0xe0] sm:$0xf] %vm2246_vm1, %v2581_v45  ;;  %2304 = vst.msk [vmem:[%s4923_s4 + $0xe4] sm:$0xf] %vm2246_vm1, %v2582_v12 }
 0x261   :  { %2305 = vst.msk [vmem:[%s4923_s4 + $0xe8] sm:$0xf] %vm2246_vm1, %v2583_v32  ;;  %2306 = vst.msk [vmem:[%s4923_s4 + $0xec] sm:$0xf] %vm2246_vm1, %v2584_v30 }
 0x262   :  { %2307 = vst.msk [vmem:[%s4923_s4 + $0xf0] sm:$0xf] %vm2246_vm1, %v2585_v61  ;;  %2308 = vst.msk [vmem:[%s4923_s4 + $0xf4] sm:$0xf] %vm2246_vm1, %v2586_v4 }
 0x263   :  { %2309 = vst.msk [vmem:[%s4923_s4 + $0xf8] sm:$0xf] %vm2246_vm1, %v2587_v1  ;;  %2310 = vst.msk [vmem:[%s4923_s4 + $0xfc] sm:$0xf] %vm2246_vm1, %v2588_v13 }

// kernel: _lambda_.13
= control target key start
LH: loop header
LB: loop body
LE: loop exit
PB: predicated region body
PF: predicated region fallthrough
CT: control target
= control target key end

     0   :  { %vm314_vm0 = vcmask 261120   ;;  %vm533_vm1 = vcmask 523264   ;;  %vm759_vm2 = vcmask 519168   ;;  %s1393_s1 = inlined_call_operand.vmem [shape: bf16[288,64], index: 1, kind: input, shape index: {}]   ;;  %s1394_s0 = inlined_call_operand.vmem [shape: bf16[128,288], index: 0, kind: input, shape index: {}]   ;;  %s1395_s2 = inlined_call_operand.vmem [shape: f32[1,64], index: 2, kind: input, shape index: {}]   ;;  %s1396_s3 = inlined_call_operand.vmem [shape: f32[1,64], index: 3, kind: input, shape index: {}]   ;;  %s1397_s4 = inlined_call_operand.vmem [shape: bf16[128,64], index: 4, kind: output, shape index: {}]  }
   0x1   :  { %v972_v0 = vld [vmem:[%s1393_s1 + $0x40] sm:$0xff]   ;;  %v974_v2 = vld [vmem:[%s1393_s1 + $0x48] sm:$0xff]   ;;  %v976_v4 = vld [vmem:[%s1393_s1 + $0x50] sm:$0xff]  }
   0x2   :  { %v973_v1 = vld [vmem:[%s1393_s1] sm:$0xff]   ;;  %862 = vmatprep.subr.bf16.mxu0 %v972_v0  ;;  %956 = vmatprep.subr.bf16.mxu1 %v972_v0  ;;  %v975_v3 = vld [vmem:[%s1393_s1 + $0x8] sm:$0xff]   ;;  %v977_v5 = vld [vmem:[%s1393_s1 + $0x10] sm:$0xff]  }
   0x3   :  { %863 = vmatpush3.bf16.msra.mxu0 %v973_v1  ;;  %964 = vmatpush3.bf16.msra.mxu1 %v973_v1  ;;  %v978_v6 = vld [vmem:[%s1393_s1 + $0x58] sm:$0xff]   ;;  %v980_v8 = vld [vmem:[%s1393_s1 + $0x60] sm:$0xff]   ;;  %v982_v10 = vld [vmem:[%s1393_s1 + $0x68] sm:$0xff]  }
   0x4   :  { %864 = vmatprep.subr.bf16.mxu0 %v974_v2  ;;  %957 = vmatprep.subr.bf16.mxu1 %v974_v2  ;;  %v979_v7 = vld [vmem:[%s1393_s1 + $0x18] sm:$0xff]   ;;  %v981_v9 = vld [vmem:[%s1393_s1 + $0x20] sm:$0xff]   ;;  %v983_v13 = vld [vmem:[%s1393_s1 + $0x28] sm:$0xff]  }
   0x5   :  { %v990_v11 = vld [vmem:[%s1394_s0 + $0x4] ss:$12 sps:$4 sm:$0xff]   ;;  %v993_v12 = vld [vmem:[%s1394_s0 + $0x94] ss:$12 sps:$4 sm:$0xff]   ;;  %v986_v16 = vld [vmem:[%s1393_s1 + $0x78] sm:$0xff]  }
   0x6   :  { %v984_v14 = vld [vmem:[%s1393_s1 + $0x70] sm:$0xff]   ;;  %371 = vmatprep.mubr.bf16.mxu0 %v990_v11  ;;  %419 = vmatprep.mubr.bf16.mxu1 %v993_v12  ;;  %v987_v17 = vld [vmem:[%s1393_s1 + $0x38] sm:$0xff]   ;;  %v988_v18 = vld [vmem:[%s1394_s0] ss:$12 sps:$4 sm:$0xff]  }
   0x7   :  { %865 = vmatpush3.bf16.msra.mxu0 %v975_v3  ;;  %965 = vmatpush3.bf16.msra.mxu1 %v975_v3  ;;  %v985_v15 = vld [vmem:[%s1393_s1 + $0x30] sm:$0xff]   ;;  %v994_v19 = vld [vmem:[%s1393_s1 + $0x80] sm:$0xff]   ;;  %v995_v21 = vld [vmem:[%s1394_s0 + $0x1c] ss:$12 sps:$4 sm:$0xff]  }
   0x8   :  { %866 = vmatprep.subr.bf16.mxu0 %v976_v4  ;;  %958 = vmatprep.subr.bf16.mxu1 %v976_v4  ;;  %v991_v20 = vld [vmem:[%s1394_s0 + $0x90] ss:$12 sps:$4 sm:$0xff]   ;;  %v997_v22 = vld [vmem:[%s1394_s0 + $0xac] ss:$12 sps:$4 sm:$0xff]   ;;  %v1000_v25 = vld [vmem:[%s1394_s0 + $0xa8] ss:$12 sps:$4 sm:$0xff]  }
   0x9   :  { %v1001_v23 = vld [vmem:[%s1393_s1 + $0x88] sm:$0xff]   ;;  %v999_v24 = vld [vmem:[%s1394_s0 + $0x18] ss:$12 sps:$4 sm:$0xff]   ;;  %v1002_v26 = vld [vmem:[%s1394_s0 + $0x34] ss:$12 sps:$4 sm:$0xff]  }
   0xa   :  { %v1004_v27 = vld [vmem:[%s1394_s0 + $0x8] ss:$12 sps:$4 sm:$0xff]   ;;  %v1005_v28 = vld [vmem:[%s1394_s0 + $0x30] ss:$12 sps:$4 sm:$0xff]   ;;  %v1006_v29 = vld [vmem:[%s1394_s0 + $0x20] ss:$12 sps:$4 sm:$0xff]  }
   0xb   :  { %867 = vmatpush3.bf16.msra.mxu0 %v977_v5  ;;  %966 = vmatpush3.bf16.msra.mxu1 %v977_v5  ;;  %v1007_v30 = vld [vmem:[%s1394_s0 + $0x4c] ss:$12 sps:$4 sm:$0xff]   ;;  %v1010_v32 = vld [vmem:[%s1394_s0 + $0x48] ss:$12 sps:$4 sm:$0xff]   ;;  %v1011_v33 = vld [vmem:[%s1394_s0 + $0x50] ss:$12 sps:$4 sm:$0xff]  }
   0xc   :  { %868 = vmatprep.subr.bf16.mxu0 %v978_v6  ;;  %959 = vmatprep.subr.bf16.mxu1 %v978_v6  ;;  %v1009_v31 = vld [vmem:[%s1394_s0 + $0x38] ss:$12 sps:$4 sm:$0xff]   ;;  %v1014_v35 = vld [vmem:[%s1394_s0 + $0x68] ss:$12 sps:$4 sm:$0xff]   ;;  %v1015_v36 = vld [vmem:[%s1394_s0 + $0x60] ss:$12 sps:$4 sm:$0xff]  }
   0xd   :  { %v1012_v34 = vld [vmem:[%s1394_s0 + $0x64] ss:$12 sps:$4 sm:$0xff]   ;;  %v1016_v37 = vld [vmem:[%s1394_s0 + $0x80] ss:$12 sps:$4 sm:$0xff]   ;;  %v1017_v38 = vld [vmem:[%s1394_s0 + $0x7c] ss:$12 sps:$4 sm:$0xff]  }
   0xe   :  { %v1019_v39 = vld [vmem:[%s1394_s0 + $0x98] ss:$12 sps:$4 sm:$0xff]   ;;  %v1021_v41 = vld [vmem:[%s1394_s0 + $0xb0] ss:$12 sps:$4 sm:$0xff]  }
   0xf   :  { %869 = vmatpush3.bf16.msra.mxu0 %v979_v7  ;;  %967 = vmatpush3.bf16.msra.mxu1 %v979_v7  ;;  %v1020_v40 = vld [vmem:[%s1394_s0 + $0x78] ss:$12 sps:$4 sm:$0xff]  }
  0x10   :  { %870 = vmatprep.subr.bf16.mxu0 %v980_v8  ;;  %960 = vmatprep.subr.bf16.mxu1 %v980_v8 }
  0x13   :  { %871 = vmatpush3.bf16.msra.mxu0 %v981_v9  ;;  %968 = vmatpush3.bf16.msra.mxu1 %v981_v9 }
  0x14   :  { %872 = vmatprep.subr.bf16.mxu0 %v982_v10  ;;  %961 = vmatprep.subr.bf16.mxu1 %v982_v10 }
  0x17   :  { %873 = vmatpush3.bf16.msra.mxu0 %v983_v13  ;;  %969 = vmatpush3.bf16.msra.mxu1 %v983_v13 }
  0x18   :  { %874 = vmatprep.subr.bf16.mxu0 %v984_v14  ;;  %962 = vmatprep.subr.bf16.mxu1 %v984_v14 }
  0x1b   :  { %875 = vmatpush3.bf16.msra.mxu0 %v985_v15  ;;  %970 = vmatpush3.bf16.msra.mxu1 %v985_v15 }
  0x1c   :  { %876 = vmatprep.subr.bf16.mxu0 %v986_v16  ;;  %963 = vmatprep.subr.bf16.mxu1 %v986_v16 }
  0x1f   :  { %877 = vmatpush3.bf16.msra.mxu0 %v987_v17  ;;  %971 = vmatpush3.bf16.msra.mxu1 %v987_v17 }
  0x20   :  { %936 = vmatprep.subr.bf16.mxu1 %v994_v19 }
  0x22   :  { %372 = vmatmul.mubr.bf16.vlgmr.msra.gmra.mrb[0].mxu0 %v988_v18  ;;  %420 = vmatmul.mubr.bf16.vlgmr.msra.gmra.mrb[0].mxu1 %v991_v20 }
  0x23   :  { %937 = vmatpush3.bf16.msra.mxu1 %v994_v19  ;;  %379 = vmatprep.mubr.bf16.mxu0 %v995_v21 }
  0x24   :  { %427 = vmatprep.mubr.bf16.mxu1 %v997_v22  ;;  %938 = vmatprep.subr.bf16.mxu1 %v1001_v23 }
  0x27   :  { %939 = vmatpush3.bf16.msra.mxu1 %v1001_v23 }
  0x2a   :  { %380 = vmatmul.mubr.bf16.gmra.mrb[4].mxu0 %v999_v24  ;;  %428 = vmatmul.mubr.bf16.gmra.mrb[4].mxu1 %v1000_v25 }
  0x2b   :  { %387 = vmatprep.mubr.bf16.mxu0 %v1002_v26  ;;  %940 = vmatprep.mubr.msk.bf16.mxu1 %vm314_vm0, %v1004_v27 }
  0x32   :  { %388 = vmatmul.mubr.bf16.gmra.mrb[8].mxu0 %v1005_v28  ;;  %941 = vmatmul.mubr.msk.bf16.vlgmr.msra.gmra.mrb[8].mxu1 %vm314_vm0, %v1006_v29 }
  0x33   :  { %395 = vmatprep.mubr.bf16.mxu0 %v1007_v30  ;;  %944 = vmatprep.mubr.msk.bf16.mxu1 %vm314_vm0, %v1009_v31 }
  0x3a   :  { %396 = vmatmul.mubr.bf16.gmra.mrb[12].mxu0 %v1010_v32  ;;  %945 = vmatmul.mubr.msk.bf16.gmra.mrb[12].mxu1 %vm314_vm0, %v1011_v33 }
  0x3b   :  { %403 = vmatprep.mubr.bf16.mxu0 %v1012_v34  ;;  %948 = vmatprep.mubr.msk.bf16.mxu1 %vm314_vm0, %v1014_v35 }
  0x42   :  { %404 = vmatmul.mubr.bf16.gmra.mrb[16].mxu0 %v1015_v36  ;;  %949 = vmatmul.mubr.msk.bf16.gmra.mrb[16].mxu1 %vm314_vm0, %v1016_v37 }
  0x43   :  { %411 = vmatprep.mubr.bf16.mxu0 %v1017_v38  ;;  %952 = vmatprep.mubr.msk.bf16.mxu1 %vm314_vm0, %v1019_v39 }
  0x4a   :  { %412 = vmatmul.mubr.bf16.gmra.mrb[20].mxu0 %v1020_v40  ;;  %953 = vmatmul.mubr.msk.bf16.gmra.mrb[20].mxu1 %vm314_vm0, %v1021_v41 }
  0xf5   :  { %v878_v42 = vpop.f32.mrb[0].mxu0  ;;  %v914_v43 = vpop.f32.mrb[0].mxu1 }
  0xf6   :  { %v879_v44 = vpop.f32.mrb[1].mxu0  ;;  %v915_v45 = vpop.f32.mrb[1].mxu1 }
  0xf7   :  { %v880_v46 = vadd.f32 %v879_v44, %v878_v42  ;;  %v881_v47 = vpop.f32.mrb[2].mxu0  ;;  %v1183_v48 = vadd.f32 %v915_v45, %v914_v43  ;;  %v917_v49 = vpop.f32.mrb[2].mxu1 }
  0xf8   :  { %v882_v50 = vpop.f32.mrb[3].mxu0  ;;  %v918_v51 = vpop.f32.mrb[3].mxu1 }
  0xf9   :  { %v883_v52 = vadd.f32 %v882_v50, %v881_v47  ;;  %v1185_v53 = vadd.f32 %v918_v51, %v917_v49 }
  0xfd   :  { %v884_v54 = vpop.f32.mrb[4].mxu0  ;;  %v920_v55 = vpop.f32.mrb[4].mxu1 }
  0xfe   :  { %v885_v56 = vpop.f32.mrb[5].mxu0  ;;  %v921_v57 = vpop.f32.mrb[5].mxu1 }
  0xff   :  { %v886_v58 = vadd.f32 %v885_v56, %v884_v54  ;;  %v887_v59 = vpop.f32.mrb[6].mxu0  ;;  %v1187_v60 = vadd.f32 %v921_v57, %v920_v55  ;;  %v923_v61 = vpop.f32.mrb[6].mxu1 }
 0x100   :  { %v888_v62 = vpop.f32.mrb[7].mxu0  ;;  %v924_v63 = vpop.f32.mrb[7].mxu1 }
 0x101   :  { %v889_v0 = vadd.f32 %v888_v62, %v887_v59  ;;  %v1189_v1 = vadd.f32 %v924_v63, %v923_v61 }
 0x105   :  { %v890_v2 = vpop.f32.mrb[8].mxu0  ;;  %v942_v3 = vpop.f32.mrb[8].mxu1 }
 0x106   :  { %v1191_v4 = vadd.f32 %v942_v3, %v886_v58  ;;  %v891_v5 = vpop.f32.mrb[9].mxu0  ;;  %v470_v6 = vpop.f32.mrb[9].mxu1 }
 0x107   :  { %v892_v7 = vadd.f32 %v891_v5, %v890_v2  ;;  %v1193_v8 = vadd.f32 %v880_v46, %v470_v6  ;;  %v893_v9 = vpop.f32.mrb[10].mxu0  ;;  %v943_v10 = vpop.f32.mrb[10].mxu1 }
 0x108   :  { %v1195_v11 = vadd.f32 %v943_v10, %v889_v0  ;;  %v894_v12 = vpop.f32.mrb[11].mxu0  ;;  %v473_v13 = vpop.f32.mrb[11].mxu1  ;;  %v574_v17 = vmul.f32 %v1191_v4, %v1191_v4  ;;  %v537_v23 = vsel %vm533_vm1, %v1191_v4, 0.0 }
 0x109   :  { %v572_v14 = vmul.f32 %v1193_v8, %v1193_v8  ;;  %v895_v15 = vadd.f32 %v894_v12, %v893_v9  ;;  %v1199_v16 = vadd.f32 %v883_v52, %v473_v13  ;;  %v534_v18 = vsel %vm533_vm1, %v1193_v8, 0.0 }
 0x10a   :  { %v575_v21 = vmul.f32 %v1195_v11, %v1195_v11  ;;  %v591_v32 = vsel %vm533_vm1, %v574_v17, 0.0  ;;  %v539_v33 = vsel %vm533_vm1, %v1195_v11, 0.0 }
 0x10b   :  { %v535_v19 = vsel %vm533_vm1, %v1199_v16, 0.0  ;;  %v573_v20 = vmul.f32 %v1199_v16, %v1199_v16  ;;  %v588_v24 = vsel %vm533_vm1, %v572_v14, 0.0 }
 0x10c   :  { %v536_v22 = vadd.f32 %v535_v19, %v534_v18  ;;  %v593_v38 = vsel %vm533_vm1, %v575_v21, 0.0 }
 0x10d   :  { %v589_v25 = vsel %vm533_vm1, %v573_v20, 0.0  ;;  %v896_v26 = vpop.f32.mrb[12].mxu0  ;;  %v946_v27 = vpop.f32.mrb[12].mxu1 }
 0x10e   :  { %v538_v28 = vadd.f32 %v537_v23, %v536_v22  ;;  %v590_v29 = vadd.f32 %v589_v25, %v588_v24  ;;  %v897_v30 = vpop.f32.mrb[13].mxu0  ;;  %v486_v31 = vpop.f32.mrb[13].mxu1 }
 0x10f   :  { %v898_v34 = vadd.f32 %v897_v30, %v896_v26  ;;  %v1218_v35 = vadd.f32 %v892_v7, %v486_v31  ;;  %v899_v36 = vpop.f32.mrb[14].mxu0  ;;  %v947_v37 = vpop.f32.mrb[14].mxu1 }
 0x110   :  { %v592_v39 = vadd.f32 %v591_v32, %v590_v29  ;;  %v540_v40 = vadd.f32 %v539_v33, %v538_v28  ;;  %v900_v41 = vpop.f32.mrb[15].mxu0  ;;  %v489_v42 = vpop.f32.mrb[15].mxu1 }
 0x111   :  { %v1221_v43 = vadd.f32 %v946_v27, %v898_v34  ;;  %v541_v44 = vsel %vm533_vm1, %v1218_v35, 0.0  ;;  %v576_v45 = vmul.f32 %v1218_v35, %v1218_v35  ;;  %v901_v46 = vadd.f32 %v900_v41, %v899_v36 }
 0x112   :  { %v542_v47 = vadd.f32 %v541_v44, %v540_v40  ;;  %v594_v49 = vadd.f32 %v593_v38, %v592_v39  ;;  %v1227_v50 = vadd.f32 %v895_v15, %v489_v42 }
 0x113   :  { %v595_v51 = vsel %vm533_vm1, %v576_v45, 0.0  ;;  %v1230_v52 = vadd.f32 %v947_v37, %v901_v46  ;;  %v578_v54 = vmul.f32 %v1221_v43, %v1221_v43  ;;  %v545_v62 = vsel %vm533_vm1, %v1221_v43, 0.0 }
 0x114   :  { %v596_v55 = vadd.f32 %v595_v51, %v594_v49  ;;  %v543_v56 = vsel %vm533_vm1, %v1227_v50, 0.0  ;;  %v577_v57 = vmul.f32 %v1227_v50, %v1227_v50 }
 0x115   :  { %v544_v58 = vadd.f32 %v543_v56, %v542_v47  ;;  %v902_v59 = vpop.f32.mrb[16].mxu0  ;;  %v950_v61 = vpop.f32.mrb[16].mxu1  ;;  %v579_v63 = vmul.f32 %v1230_v52, %v1230_v52  ;;  %v599_v12 = vsel %vm533_vm1, %v578_v54, 0.0  ;;  %v547_v13 = vsel %vm533_vm1, %v1230_v52, 0.0 }
 0x116   :  { %v597_v0 = vsel %vm533_vm1, %v577_v57, 0.0  ;;  %v903_v2 = vpop.f32.mrb[17].mxu0  ;;  %v502_v3 = vpop.f32.mrb[17].mxu1 }
 0x117   :  { %v546_v5 = vadd.f32 %v545_v62, %v544_v58  ;;  %v598_v6 = vadd.f32 %v597_v0, %v596_v55  ;;  %v904_v7 = vadd.f32 %v903_v2, %v902_v59  ;;  %v905_v9 = vpop.f32.mrb[18].mxu0  ;;  %v951_v10 = vpop.f32.mrb[18].mxu1  ;;  %v601_v21 = vsel %vm533_vm1, %v579_v63, 0.0 }
 0x118   :  { %v906_v14 = vpop.f32.mrb[19].mxu0  ;;  %v505_v15 = vpop.f32.mrb[19].mxu1 }
 0x119   :  { %v600_v17 = vadd.f32 %v599_v12, %v598_v6  ;;  %v907_v18 = vadd.f32 %v906_v14, %v905_v9  ;;  %v1246_v19 = vadd.f32 %v904_v7, %v502_v3  ;;  %v548_v20 = vadd.f32 %v547_v13, %v546_v5 }
 0x11b   :  { %v549_v22 = vsel %vm533_vm1, %v1246_v19, 0.0  ;;  %v580_v23 = vmul.f32 %v1246_v19, %v1246_v19  ;;  %v602_v24 = vadd.f32 %v601_v21, %v600_v17  ;;  %v1253_v25 = vadd.f32 %v907_v18, %v505_v15 }
 0x11c   :  { %v550_v26 = vadd.f32 %v549_v22, %v548_v20 }
 0x11d   :  { %v603_v27 = vsel %vm533_vm1, %v580_v23, 0.0  ;;  %v551_v28 = vsel %vm533_vm1, %v1253_v25, 0.0  ;;  %v581_v29 = vmul.f32 %v1253_v25, %v1253_v25  ;;  %v908_v30 = vpop.f32.mrb[20].mxu0  ;;  %v954_v31 = vpop.f32.mrb[20].mxu1 }
 0x11e   :  { %v604_v32 = vadd.f32 %v603_v27, %v602_v24  ;;  %v552_v33 = vadd.f32 %v551_v28, %v550_v26  ;;  %v1261_v34 = vadd.f32 %v954_v31, %v1187_v60  ;;  %v909_v36 = vpop.f32.mrb[21].mxu0  ;;  %v518_v37 = vpop.f32.mrb[21].mxu1 }
 0x11f   :  { %v605_v38 = vsel %vm533_vm1, %v581_v29, 0.0  ;;  %v910_v39 = vadd.f32 %v909_v36, %v908_v30  ;;  %v1265_v40 = vadd.f32 %v1183_v48, %v518_v37  ;;  %v911_v41 = vpop.f32.mrb[22].mxu0  ;;  %v955_v42 = vpop.f32.mrb[22].mxu1 }
 0x120   :  { %v606_v44 = vadd.f32 %v605_v38, %v604_v32  ;;  %v1268_v45 = vadd.f32 %v955_v42, %v1189_v1  ;;  %v912_v46 = vpop.f32.mrb[23].mxu0  ;;  %v521_v47 = vpop.f32.mrb[23].mxu1  ;;  %v586_v5 = vmul.f32 %v1261_v34, %v1261_v34  ;;  %v561_v12 = vsel %vm533_vm1, %v1261_v34, 0.0 }
 0x121   :  { %v1270_v49 = vadd.f32 %v950_v61, %v910_v39  ;;  %v913_v60 = vadd.f32 %v912_v46, %v911_v41  ;;  %v1273_v51 = vadd.f32 %v1185_v53, %v521_v47  ;;  %v584_v57 = vmul.f32 %v1265_v40, %v1265_v40 }
 0x122   :  { %v557_v62 = vsel %vm533_vm1, %v1265_v40, 0.0  ;;  %v587_v13 = vmul.f32 %v1268_v45, %v1268_v45  ;;  %v615_v18 = vsel %vm533_vm1, %v586_v5, 0.0  ;;  %v563_v20 = vsel %vm533_vm1, %v1268_v45, 0.0 }
 0x123   :  { %v553_v54 = vsel %vm533_vm1, %v1270_v49, 0.0  ;;  %v582_v48 = vmul.f32 %v1270_v49, %v1270_v49  ;;  %v1279_v55 = vadd.f32 %v951_v10, %v913_v60  ;;  %v585_v0 = vmul.f32 %v1273_v51, %v1273_v51 }
 0x124   :  { %v554_v56 = vadd.f32 %v553_v54, %v552_v33  ;;  %v611_v6 = vsel %vm533_vm1, %v584_v57, 0.0  ;;  %v559_v7 = vsel %vm533_vm1, %v1273_v51, 0.0  ;;  %v617_v23 = vsel %vm533_vm1, %v587_v13, 0.0 }
 0x125   :  { %v607_v1 = vsel %vm533_vm1, %v582_v48, 0.0  ;;  %v555_v58 = vsel %vm533_vm1, %v1279_v55, 0.0  ;;  %v583_v53 = vmul.f32 %v1279_v55, %v1279_v55  ;;  %v613_v14 = vsel %vm533_vm1, %v585_v0, 0.0  ;;  %v628_v48 = vld [vmem:[%s1395_s2] sm:$0x1] }
 0x126   :  { %v608_v59 = vadd.f32 %v607_v1, %v606_v44  ;;  %v556_v61 = vadd.f32 %v555_v58, %v554_v56  ;;  %v636_v60 = vlaneseq  ;;  %v632_v58 = vld [vmem:[%s1396_s3] sm:$0x1] }
 0x127   :  { %v609_v63 = vsel %vm533_vm1, %v583_v53, 0.0 }
 0x128   :  { %v610_v2 = vadd.f32 %v609_v63, %v608_v59  ;;  %v558_v3 = vadd.f32 %v557_v62, %v556_v61  ;;  %v637_v54 = vshrl.u32 %v636_v60, 7 }
 0x12a   :  { %v560_v9 = vadd.f32 %v559_v7, %v558_v3  ;;  %v612_v10 = vadd.f32 %v611_v6, %v610_v2  ;;  %v638_v56 = vsub.s32 0, %v637_v54 }
 0x12c   :  { %v562_v15 = vadd.f32 %v561_v12, %v560_v9  ;;  %v614_v17 = vadd.f32 %v613_v14, %v612_v10 }
 0x12e   :  { %v564_v21 = vadd.f32 %v563_v20, %v562_v15  ;;  %v616_v22 = vadd.f32 %v615_v18, %v614_v17 }
 0x130   :  { %v565_v24 = vrot.slane %v564_v21, 4  ;;  %v618_v26 = vadd.f32 %v617_v23, %v616_v22 }
 0x132   :  { %v566_v27 = vadd.f32 %v565_v24, %v564_v21  ;;  %v619_v28 = vrot.slane %v618_v26, 4 }
 0x134   :  { %v567_v29 = vrot.slane %v566_v27, 2  ;;  %v620_v30 = vadd.f32 %v619_v28, %v618_v26 }
 0x136   :  { %v568_v31 = vadd.f32 %v567_v29, %v566_v27  ;;  %v621_v32 = vrot.slane %v620_v30, 2 }
 0x138   :  { %v569_v33 = vrot.slane %v568_v31, 1  ;;  %v622_v36 = vadd.f32 %v621_v32, %v620_v30 }
 0x13a   :  { %v570_v37 = vadd.f32 %v569_v33, %v568_v31  ;;  %v623_v38 = vrot.slane %v622_v36, 1 }
 0x13c   :  { %v571_v39 = vmul.f32 0.0078125, %v570_v37  ;;  %v624_v41 = vadd.f32 %v623_v38, %v622_v36 }
 0x13e   :  { %v625_v42 = vmul.f32 0.0078125, %v624_v41  ;;  %v626_v44 = vmul.f32 %v571_v39, %v571_v39 }
 0x140   :  { %v627_v46 = vsub.f32 %v625_v42, %v626_v44 }
 0x142   :  { %v629_v47 = vadd.f32 1e-05, %v627_v46 }
 0x144   :  { %1022 = vrsqrt.f32 %v629_v47 }
 0x14e   :  { %v1023_v1 = vpop.eup %1022 }
 0x14f   :  { %v631_v57 = vmul.f32 %v1023_v1, %v628_v48 }
 0x151   :  { %v633_v53 = vmul.f32 %v631_v57, %v571_v39  ;;  %v639_v59 = vrot.slane %v631_v57, %v638_v56 }
 0x153   :  { %v634_v61 = vsub.f32 %v632_v58, %v633_v53  ;;  %v641_v62 = vmul.f32 %v639_v59, %v1193_v8  ;;  %v644_v63 = vmul.f32 %v639_v59, %v1195_v11  ;;  %v645_v0 = vmul.f32 %v639_v59, %v1218_v35 }
 0x154   :  { %v646_v2 = vmul.f32 %v639_v59, %v1227_v50  ;;  %v647_v3 = vmul.f32 %v639_v59, %v1221_v43  ;;  %v648_v5 = vmul.f32 %v639_v59, %v1230_v52  ;;  %v649_v6 = vmul.f32 %v639_v59, %v1246_v19 }
 0x155   :  { %v650_v7 = vmul.f32 %v639_v59, %v1253_v25  ;;  %v651_v9 = vmul.f32 %v639_v59, %v1270_v49  ;;  %v652_v10 = vmul.f32 %v639_v59, %v1279_v55  ;;  %v653_v8 = vmul.f32 %v639_v59, %v1265_v40 }
 0x156   :  { %v654_v11 = vmul.f32 %v639_v59, %v1273_v51  ;;  %v655_v35 = vmul.f32 %v639_v59, %v1261_v34  ;;  %v642_v50 = vmul.f32 %v639_v59, %v1199_v16  ;;  %v643_v43 = vmul.f32 %v639_v59, %v1191_v4 }
 0x157   :  { %v656_v52 = vmul.f32 %v639_v59, %v1268_v45  ;;  %v661_v12 = vrot.slane %v634_v61, %v638_v56 }
 0x159   :  { %v663_v19 = vadd.f32 %v661_v12, %v641_v62  ;;  %v664_v25 = vadd.f32 %v661_v12, %v642_v50  ;;  %v665_v13 = vadd.f32 %v661_v12, %v643_v43  ;;  %v666_v49 = vadd.f32 %v661_v12, %v644_v63 }
 0x15a   :  { %v667_v14 = vadd.f32 %v661_v12, %v645_v0  ;;  %v668_v55 = vadd.f32 %v661_v12, %v646_v2  ;;  %v669_v15 = vadd.f32 %v661_v12, %v647_v3  ;;  %v670_v40 = vadd.f32 %v661_v12, %v648_v5 }
 0x15b   :  { %v671_v17 = vadd.f32 %v661_v12, %v649_v6  ;;  %v672_v51 = vadd.f32 %v661_v12, %v650_v7  ;;  %v673_v18 = vadd.f32 %v661_v12, %v651_v9  ;;  %v674_v34 = vadd.f32 %v661_v12, %v652_v10 }
 0x15c   :  { %v675_v20 = vadd.f32 %v661_v12, %v653_v8  ;;  %v676_v16 = vadd.f32 %v661_v12, %v654_v11  ;;  %v677_v21 = vadd.f32 %v661_v12, %v655_v35  ;;  %v678_v4 = vadd.f32 %v661_v12, %v656_v52 }
 0x15d   :  { %v679_v22 = vmax.f32 %v663_v19, 0.0  ;;  %v680_v45 = vmax.f32 %v664_v25, 0.0  ;;  %v681_v23 = vmax.f32 %v665_v13, 0.0  ;;  %v682_v24 = vmax.f32 %v666_v49, 0.0 }
 0x15e   :  { %v683_v26 = vmax.f32 %v667_v14, 0.0  ;;  %v684_v27 = vmax.f32 %v668_v55, 0.0  ;;  %v685_v28 = vmax.f32 %v669_v15, 0.0  ;;  %v686_v29 = vmax.f32 %v670_v40, 0.0 }
 0x15f   :  { %v687_v30 = vmax.f32 %v671_v17, 0.0  ;;  %v688_v31 = vmax.f32 %v672_v51, 0.0  ;;  %v689_v32 = vmax.f32 %v673_v18, 0.0  ;;  %v690_v33 = vmax.f32 %v674_v34, 0.0 }
 0x160   :  { %v691_v36 = vmax.f32 %v675_v20, 0.0  ;;  %v692_v37 = vmax.f32 %v676_v16, 0.0  ;;  %v693_v38 = vmax.f32 %v677_v21, 0.0  ;;  %v694_v39 = vmax.f32 %v678_v4, 0.0 }
 0x161   :  { %v846_v41 = vpack.c.bf16 %v679_v22, %v679_v22  ;;  %v847_v42 = vpack.c.bf16 %v680_v45, %v680_v45  ;;  %v848_v44 = vpack.c.bf16 %v681_v23, %v681_v23  ;;  %v849_v46 = vpack.c.bf16 %v682_v24, %v682_v24 }
 0x162   :  { %v850_v47 = vpack.c.bf16 %v683_v26, %v683_v26  ;;  %v851_v60 = vpack.c.bf16 %v684_v27, %v684_v27  ;;  %v852_v54 = vpack.c.bf16 %v685_v28, %v685_v28  ;;  %v853_v48 = vpack.c.bf16 %v686_v29, %v686_v29 }
 0x163   :  { %v854_v56 = vpack.c.bf16 %v687_v30, %v687_v30  ;;  %v855_v1 = vpack.c.bf16 %v688_v31, %v688_v31  ;;  %v856_v57 = vpack.c.bf16 %v689_v32, %v689_v32  ;;  %v857_v58 = vpack.c.bf16 %v690_v33, %v690_v33  ;;  %760 = vst.msk [vmem:[%s1397_s4] sm:$0xf] %vm759_vm2, %v846_v41 }
 0x164   :  { %761 = vst.msk [vmem:[%s1397_s4 + $0x4] sm:$0xf] %vm759_vm2, %v847_v42  ;;  %762 = vst.msk [vmem:[%s1397_s4 + $0x8] sm:$0xf] %vm759_vm2, %v848_v44  ;;  %v858_v53 = vpack.c.bf16 %v691_v36, %v691_v36  ;;  %v859_v59 = vpack.c.bf16 %v692_v37, %v692_v37  ;;  %v860_v61 = vpack.c.bf16 %v693_v38, %v693_v38 }
 0x165   :  { %763 = vst.msk [vmem:[%s1397_s4 + $0xc] sm:$0xf] %vm759_vm2, %v849_v46  ;;  %v861_v62 = vpack.c.bf16 %v694_v39, %v694_v39  ;;  %764 = vst.msk [vmem:[%s1397_s4 + $0x10] sm:$0xf] %vm759_vm2, %v850_v47 }
 0x166   :  { %765 = vst.msk [vmem:[%s1397_s4 + $0x14] sm:$0xf] %vm759_vm2, %v851_v60  ;;  %766 = vst.msk [vmem:[%s1397_s4 + $0x18] sm:$0xf] %vm759_vm2, %v852_v54 }
 0x167   :  { %767 = vst.msk [vmem:[%s1397_s4 + $0x1c] sm:$0xf] %vm759_vm2, %v853_v48  ;;  %768 = vst.msk [vmem:[%s1397_s4 + $0x20] sm:$0xf] %vm759_vm2, %v854_v56 }
 0x168   :  { %769 = vst.msk [vmem:[%s1397_s4 + $0x24] sm:$0xf] %vm759_vm2, %v855_v1  ;;  %770 = vst.msk [vmem:[%s1397_s4 + $0x28] sm:$0xf] %vm759_vm2, %v856_v57 }
 0x169   :  { %771 = vst.msk [vmem:[%s1397_s4 + $0x2c] sm:$0xf] %vm759_vm2, %v857_v58  ;;  %772 = vst.msk [vmem:[%s1397_s4 + $0x30] sm:$0xf] %vm759_vm2, %v858_v53 }
 0x16a   :  { %773 = vst.msk [vmem:[%s1397_s4 + $0x34] sm:$0xf] %vm759_vm2, %v859_v59  ;;  %774 = vst.msk [vmem:[%s1397_s4 + $0x38] sm:$0xf] %vm759_vm2, %v860_v61 }
 0x16b   :  { %775 = vst.msk [vmem:[%s1397_s4 + $0x3c] sm:$0xf] %vm759_vm2, %v861_v62 }

// kernel: _lambda_.14
= control target key start
LH: loop header
LB: loop body
LE: loop exit
PB: predicated region body
PF: predicated region fallthrough
CT: control target
= control target key end

     0   :  { %vm90_vm0 = vcmask 261120   ;;  %vm212_vm1 = vcmask 523264   ;;  %vm422_vm2 = vcmask 519168   ;;  %s800_s1 = inlined_call_operand.vmem [shape: bf16[32,64], index: 1, kind: input, shape index: {}]   ;;  %s801_s0 = inlined_call_operand.vmem [shape: bf16[128,32], index: 0, kind: input, shape index: {}]   ;;  %s802_s2 = inlined_call_operand.vmem [shape: f32[1,64], index: 2, kind: input, shape index: {}]   ;;  %s803_s3 = inlined_call_operand.vmem [shape: f32[1,64], index: 3, kind: input, shape index: {}]   ;;  %s804_s4 = inlined_call_operand.vmem [shape: bf16[128,64], index: 4, kind: output, shape index: {}]  }
   0x1   :  { %v527_v0 = vld [vmem:[%s800_s1] sm:$0xff]   ;;  %v528_v1 = vld [vmem:[%s800_s1 + $0x8] sm:$0xff]   ;;  %v531_v4 = vld [vmem:[%s801_s0 + $0x10] sm:$0xff]  }
   0x2   :  { %503 = vmatprep.subr.bf16.mxu0 %v527_v0  ;;  %v529_v2 = vld [vmem:[%s801_s0] sm:$0xff]   ;;  %523 = vmatprep.subr.bf16.mxu1 %v527_v0  ;;  %v530_v3 = vld [vmem:[%s801_s0 + $0x8] sm:$0xff]   ;;  %v535_v7 = vld [vmem:[%s801_s0 + $0x30] sm:$0xff]  }
   0x3   :  { %504 = vmatpush3.bf16.msra.mxu0 %v527_v0  ;;  %525 = vmatpush3.bf16.msra.mxu1 %v527_v0  ;;  %v533_v5 = vld [vmem:[%s801_s0 + $0x20] sm:$0xff]   ;;  %v534_v6 = vld [vmem:[%s801_s0 + $0x28] sm:$0xff]   ;;  %v532_v8 = vld [vmem:[%s801_s0 + $0x18] sm:$0xff]  }
   0x4   :  { %505 = vmatprep.subr.bf16.mxu0 %v528_v1  ;;  %507 = vmatprep.mubr.msk.bf16.mxu0 %vm90_vm0, %v529_v2  ;;  %v536_v9 = vld [vmem:[%s801_s0 + $0x38] sm:$0xff]  }
   0x5   :  { %524 = vmatprep.subr.bf16.mxu1 %v528_v1  ;;  %515 = vmatprep.mubr.msk.bf16.mxu1 %vm90_vm0, %v533_v5 }
   0x7   :  { %506 = vmatpush3.bf16.msra.mxu0 %v528_v1  ;;  %526 = vmatpush3.bf16.msra.mxu1 %v528_v1 }
   0xa   :  { %508 = vmatmul.mubr.msk.bf16.vlgmr.msra.gmra.mrb[0].mxu0 %vm90_vm0, %v530_v3  ;;  %516 = vmatmul.mubr.msk.bf16.vlgmr.msra.gmra.mrb[0].mxu1 %vm90_vm0, %v534_v6 }
   0xb   :  { %511 = vmatprep.mubr.msk.bf16.mxu0 %vm90_vm0, %v531_v4  ;;  %519 = vmatprep.mubr.msk.bf16.mxu1 %vm90_vm0, %v535_v7 }
  0x12   :  { %512 = vmatmul.mubr.msk.bf16.gmra.mrb[4].mxu0 %vm90_vm0, %v532_v8  ;;  %520 = vmatmul.mubr.msk.bf16.gmra.mrb[4].mxu1 %vm90_vm0, %v536_v9 }
  0xdd   :  { %v602_v10 = vpop.f32.mrb[0].mxu0  ;;  %v604_v11 = vpop.f32.mrb[0].mxu1 }
  0xde   :  { %v606_v12 = vpop.f32.mrb[1].mxu0  ;;  %v608_v13 = vpop.f32.mrb[1].mxu1  ;;  %v253_v19 = vmul.f32 %v602_v10, %v602_v10  ;;  %v216_v24 = vsel %vm212_vm1, %v602_v10, 0.0  ;;  %v261_v5 = vmul.f32 %v604_v11, %v604_v11  ;;  %v232_v9 = vsel %vm212_vm1, %v604_v11, 0.0 }
  0xdf   :  { %v251_v14 = vmul.f32 %v606_v12, %v606_v12  ;;  %v612_v15 = vpop.f32.mrb[2].mxu0  ;;  %v614_v16 = vpop.f32.mrb[2].mxu1  ;;  %v213_v20 = vsel %vm212_vm1, %v606_v12, 0.0  ;;  %v259_v56 = vmul.f32 %v608_v13, %v608_v13  ;;  %v228_v61 = vsel %vm212_vm1, %v608_v13, 0.0 }
  0xe0   :  { %v616_v17 = vpop.f32.mrb[3].mxu0  ;;  %v618_v18 = vpop.f32.mrb[3].mxu1  ;;  %v254_v26 = vmul.f32 %v612_v15, %v612_v15  ;;  %v270_v30 = vsel %vm212_vm1, %v253_v19, 0.0  ;;  %v218_v31 = vsel %vm212_vm1, %v612_v15, 0.0 }
  0xe1   :  { %v214_v21 = vsel %vm212_vm1, %v616_v17, 0.0  ;;  %v252_v22 = vmul.f32 %v616_v17, %v616_v17  ;;  %v267_v25 = vsel %vm212_vm1, %v251_v14, 0.0  ;;  %v282_v1 = vsel %vm212_vm1, %v259_v56, 0.0 }
  0xe2   :  { %v215_v23 = vadd.f32 %v214_v21, %v213_v20  ;;  %v272_v38 = vsel %vm212_vm1, %v254_v26, 0.0  ;;  %v260_v2 = vmul.f32 %v618_v18, %v618_v18  ;;  %v230_v6 = vsel %vm212_vm1, %v618_v18, 0.0 }
  0xe3   :  { %v268_v27 = vsel %vm212_vm1, %v252_v22, 0.0  ;;  %v262_v14 = vmul.f32 %v614_v16, %v614_v16 }
  0xe4   :  { %v217_v28 = vadd.f32 %v216_v24, %v215_v23  ;;  %v269_v29 = vadd.f32 %v268_v27, %v267_v25  ;;  %v284_v19 = vsel %vm212_vm1, %v260_v2, 0.0  ;;  %v286_v23 = vsel %vm212_vm1, %v261_v5, 0.0 }
  0xe5   :  { %v637_v32 = vpop.f32.mrb[4].mxu0  ;;  %v639_v33 = vpop.f32.mrb[4].mxu1  ;;  %v234_v24 = vsel %vm212_vm1, %v614_v16, 0.0 }
  0xe6   :  { %v271_v34 = vadd.f32 %v270_v30, %v269_v29  ;;  %v641_v35 = vpop.f32.mrb[5].mxu0  ;;  %v219_v36 = vadd.f32 %v218_v31, %v217_v28  ;;  %v643_v37 = vpop.f32.mrb[5].mxu1  ;;  %v257_v47 = vmul.f32 %v637_v32, %v637_v32  ;;  %v224_v53 = vsel %vm212_vm1, %v637_v32, 0.0 }
  0xe7   :  { %v220_v39 = vsel %vm212_vm1, %v641_v35, 0.0  ;;  %v255_v40 = vmul.f32 %v641_v35, %v641_v35  ;;  %v650_v41 = vpop.f32.mrb[6].mxu0  ;;  %v652_v42 = vpop.f32.mrb[6].mxu1  ;;  %v263_v20 = vmul.f32 %v643_v37, %v643_v37  ;;  %v236_v25 = vsel %vm212_vm1, %v643_v37, 0.0 }
  0xe8   :  { %v221_v43 = vadd.f32 %v220_v39, %v219_v36  ;;  %v273_v44 = vadd.f32 %v272_v38, %v271_v34  ;;  %v654_v45 = vpop.f32.mrb[7].mxu0  ;;  %v656_v46 = vpop.f32.mrb[7].mxu1  ;;  %v258_v54 = vmul.f32 %v650_v41, %v650_v41  ;;  %v278_v59 = vsel %vm212_vm1, %v257_v47, 0.0 }
  0xe9   :  { %v274_v48 = vsel %vm212_vm1, %v255_v40, 0.0  ;;  %v222_v49 = vsel %vm212_vm1, %v654_v45, 0.0  ;;  %v256_v50 = vmul.f32 %v654_v45, %v654_v45  ;;  %v226_v60 = vsel %vm212_vm1, %v650_v41, 0.0 }
  0xea   :  { %v275_v51 = vadd.f32 %v274_v48, %v273_v44  ;;  %v223_v52 = vadd.f32 %v222_v49, %v221_v43  ;;  %v280_v0 = vsel %vm212_vm1, %v258_v54, 0.0  ;;  %v288_v28 = vsel %vm212_vm1, %v262_v14, 0.0 }
  0xeb   :  { %v276_v55 = vsel %vm212_vm1, %v256_v50, 0.0  ;;  %v290_v29 = vsel %vm212_vm1, %v263_v20, 0.0  ;;  %v264_v30 = vmul.f32 %v656_v46, %v656_v46  ;;  %v265_v36 = vmul.f32 %v639_v33, %v639_v33 }
  0xec   :  { %v225_v57 = vadd.f32 %v224_v53, %v223_v52  ;;  %v277_v58 = vadd.f32 %v276_v55, %v275_v51  ;;  %v238_v38 = vsel %vm212_vm1, %v656_v46, 0.0  ;;  %v240_v43 = vsel %vm212_vm1, %v639_v33, 0.0 }
  0xed   :  { %v266_v44 = vmul.f32 %v652_v42, %v652_v42  ;;  %v292_v47 = vsel %vm212_vm1, %v264_v30, 0.0  ;;  %v294_v50 = vsel %vm212_vm1, %v265_v36, 0.0  ;;  %v242_v51 = vsel %vm212_vm1, %v652_v42, 0.0 }
  0xee   :  { %v279_v62 = vadd.f32 %v278_v59, %v277_v58  ;;  %v227_v63 = vadd.f32 %v226_v60, %v225_v57 }
  0xef   :  { %v296_v54 = vsel %vm212_vm1, %v266_v44, 0.0 }
  0xf0   :  { %v229_v3 = vadd.f32 %v228_v61, %v227_v63  ;;  %v281_v4 = vadd.f32 %v280_v0, %v279_v62 }
  0xf2   :  { %v283_v7 = vadd.f32 %v282_v1, %v281_v4  ;;  %v231_v8 = vadd.f32 %v230_v6, %v229_v3 }
  0xf4   :  { %v233_v21 = vadd.f32 %v232_v9, %v231_v8  ;;  %v285_v22 = vadd.f32 %v284_v19, %v283_v7  ;;  %v315_v9 = vlaneseq  ;;  %v307_v19 = vld [vmem:[%s802_s2] sm:$0x1] }
  0xf6   :  { %v287_v26 = vadd.f32 %v286_v23, %v285_v22  ;;  %v235_v27 = vadd.f32 %v234_v24, %v233_v21  ;;  %v316_v14 = vshrl.u32 %v315_v9, 7  ;;  %v311_v23 = vld [vmem:[%s803_s3] sm:$0x1] }
  0xf8   :  { %v237_v31 = vadd.f32 %v236_v25, %v235_v27  ;;  %v289_v34 = vadd.f32 %v288_v28, %v287_v26  ;;  %v317_v20 = vsub.s32 0, %v316_v14 }
  0xfa   :  { %v291_v39 = vadd.f32 %v290_v29, %v289_v34  ;;  %v239_v40 = vadd.f32 %v238_v38, %v237_v31 }
  0xfc   :  { %v241_v48 = vadd.f32 %v240_v43, %v239_v40  ;;  %v293_v49 = vadd.f32 %v292_v47, %v291_v39 }
  0xfe   :  { %v243_v52 = vadd.f32 %v242_v51, %v241_v48  ;;  %v295_v53 = vadd.f32 %v294_v50, %v293_v49 }
 0x100   :  { %v244_v55 = vrot.slane %v243_v52, 4  ;;  %v297_v56 = vadd.f32 %v296_v54, %v295_v53 }
 0x102   :  { %v245_v57 = vadd.f32 %v244_v55, %v243_v52  ;;  %v298_v58 = vrot.slane %v297_v56, 4 }
 0x104   :  { %v246_v59 = vrot.slane %v245_v57, 2  ;;  %v299_v60 = vadd.f32 %v298_v58, %v297_v56 }
 0x106   :  { %v247_v61 = vadd.f32 %v246_v59, %v245_v57  ;;  %v300_v62 = vrot.slane %v299_v60, 2 }
 0x108   :  { %v248_v63 = vrot.slane %v247_v61, 1  ;;  %v301_v0 = vadd.f32 %v300_v62, %v299_v60 }
 0x10a   :  { %v249_v1 = vadd.f32 %v248_v63, %v247_v61  ;;  %v302_v2 = vrot.slane %v301_v0, 1 }
 0x10c   :  { %v250_v3 = vmul.f32 0.0078125, %v249_v1  ;;  %v303_v4 = vadd.f32 %v302_v2, %v301_v0 }
 0x10e   :  { %v304_v5 = vmul.f32 0.0078125, %v303_v4  ;;  %v305_v6 = vmul.f32 %v250_v3, %v250_v3 }
 0x110   :  { %v306_v7 = vsub.f32 %v304_v5, %v305_v6 }
 0x112   :  { %v308_v8 = vadd.f32 1e-05, %v306_v7 }
 0x114   :  { %537 = vrsqrt.f32 %v308_v8 }
 0x11e   :  { %v538_v21 = vpop.eup %537 }
 0x11f   :  { %v310_v22 = vmul.f32 %v538_v21, %v307_v19 }
 0x121   :  { %v312_v24 = vmul.f32 %v310_v22, %v250_v3  ;;  %v318_v25 = vrot.slane %v310_v22, %v317_v20 }
 0x123   :  { %v313_v26 = vsub.f32 %v311_v23, %v312_v24  ;;  %v320_v27 = vmul.f32 %v318_v25, %v606_v12  ;;  %v321_v28 = vmul.f32 %v318_v25, %v616_v17  ;;  %v322_v29 = vmul.f32 %v602_v10, %v318_v25 }
 0x124   :  { %v323_v30 = vmul.f32 %v612_v15, %v318_v25  ;;  %v324_v31 = vmul.f32 %v318_v25, %v641_v35  ;;  %v325_v34 = vmul.f32 %v318_v25, %v654_v45  ;;  %v326_v36 = vmul.f32 %v637_v32, %v318_v25 }
 0x125   :  { %v327_v38 = vmul.f32 %v650_v41, %v318_v25  ;;  %v328_v39 = vmul.f32 %v318_v25, %v608_v13  ;;  %v329_v40 = vmul.f32 %v318_v25, %v618_v18  ;;  %v330_v12 = vmul.f32 %v604_v11, %v318_v25 }
 0x126   :  { %v331_v17 = vmul.f32 %v614_v16, %v318_v25  ;;  %v332_v10 = vmul.f32 %v318_v25, %v643_v37  ;;  %v333_v15 = vmul.f32 %v318_v25, %v656_v46  ;;  %v334_v35 = vmul.f32 %v639_v33, %v318_v25 }
 0x127   :  { %v335_v45 = vmul.f32 %v652_v42, %v318_v25  ;;  %v340_v43 = vrot.slane %v313_v26, %v317_v20 }
 0x129   :  { %v342_v32 = vadd.f32 %v340_v43, %v320_v27  ;;  %v343_v41 = vadd.f32 %v340_v43, %v321_v28  ;;  %v344_v44 = vadd.f32 %v340_v43, %v322_v29  ;;  %v345_v13 = vadd.f32 %v340_v43, %v323_v30 }
 0x12a   :  { %v346_v47 = vadd.f32 %v340_v43, %v324_v31  ;;  %v347_v18 = vadd.f32 %v340_v43, %v325_v34  ;;  %v348_v48 = vadd.f32 %v340_v43, %v326_v36  ;;  %v349_v11 = vadd.f32 %v340_v43, %v327_v38 }
 0x12b   :  { %v350_v49 = vadd.f32 %v340_v43, %v328_v39  ;;  %v351_v16 = vadd.f32 %v340_v43, %v329_v40  ;;  %v352_v50 = vadd.f32 %v340_v43, %v330_v12  ;;  %v353_v37 = vadd.f32 %v340_v43, %v331_v17 }
 0x12c   :  { %v354_v51 = vadd.f32 %v340_v43, %v332_v10  ;;  %v355_v46 = vadd.f32 %v340_v43, %v333_v15  ;;  %v356_v52 = vadd.f32 %v340_v43, %v334_v35  ;;  %v357_v33 = vadd.f32 %v340_v43, %v335_v45 }
 0x12d   :  { %v477_v53 = vpack.c.bf16 %v342_v32, %v342_v32  ;;  %v478_v42 = vpack.c.bf16 %v343_v41, %v343_v41  ;;  %v479_v54 = vpack.c.bf16 %v344_v44, %v344_v44  ;;  %v480_v55 = vpack.c.bf16 %v345_v13, %v345_v13 }
 0x12e   :  { %v481_v56 = vpack.c.bf16 %v346_v47, %v346_v47  ;;  %v482_v57 = vpack.c.bf16 %v347_v18, %v347_v18  ;;  %v483_v58 = vpack.c.bf16 %v348_v48, %v348_v48  ;;  %v484_v59 = vpack.c.bf16 %v349_v11, %v349_v11 }
 0x12f   :  { %v485_v60 = vpack.c.bf16 %v350_v49, %v350_v49  ;;  %v486_v61 = vpack.c.bf16 %v351_v16, %v351_v16  ;;  %v487_v62 = vpack.c.bf16 %v352_v50, %v352_v50  ;;  %v488_v63 = vpack.c.bf16 %v353_v37, %v353_v37  ;;  %423 = vst.msk [vmem:[%s804_s4] sm:$0xf] %vm422_vm2, %v477_v53 }
 0x130   :  { %424 = vst.msk [vmem:[%s804_s4 + $0x4] sm:$0xf] %vm422_vm2, %v478_v42  ;;  %425 = vst.msk [vmem:[%s804_s4 + $0x8] sm:$0xf] %vm422_vm2, %v479_v54  ;;  %v489_v0 = vpack.c.bf16 %v354_v51, %v354_v51  ;;  %v490_v1 = vpack.c.bf16 %v355_v46, %v355_v46  ;;  %v491_v2 = vpack.c.bf16 %v356_v52, %v356_v52 }
 0x131   :  { %426 = vst.msk [vmem:[%s804_s4 + $0xc] sm:$0xf] %vm422_vm2, %v480_v55  ;;  %v492_v3 = vpack.c.bf16 %v357_v33, %v357_v33  ;;  %427 = vst.msk [vmem:[%s804_s4 + $0x10] sm:$0xf] %vm422_vm2, %v481_v56 }
 0x132   :  { %428 = vst.msk [vmem:[%s804_s4 + $0x14] sm:$0xf] %vm422_vm2, %v482_v57  ;;  %429 = vst.msk [vmem:[%s804_s4 + $0x18] sm:$0xf] %vm422_vm2, %v483_v58 }
 0x133   :  { %430 = vst.msk [vmem:[%s804_s4 + $0x1c] sm:$0xf] %vm422_vm2, %v484_v59  ;;  %431 = vst.msk [vmem:[%s804_s4 + $0x20] sm:$0xf] %vm422_vm2, %v485_v60 }
 0x134   :  { %432 = vst.msk [vmem:[%s804_s4 + $0x24] sm:$0xf] %vm422_vm2, %v486_v61  ;;  %433 = vst.msk [vmem:[%s804_s4 + $0x28] sm:$0xf] %vm422_vm2, %v487_v62 }
 0x135   :  { %434 = vst.msk [vmem:[%s804_s4 + $0x2c] sm:$0xf] %vm422_vm2, %v488_v63  ;;  %435 = vst.msk [vmem:[%s804_s4 + $0x30] sm:$0xf] %vm422_vm2, %v489_v0 }
 0x136   :  { %436 = vst.msk [vmem:[%s804_s4 + $0x34] sm:$0xf] %vm422_vm2, %v490_v1  ;;  %437 = vst.msk [vmem:[%s804_s4 + $0x38] sm:$0xf] %vm422_vm2, %v491_v2 }
 0x137   :  { %438 = vst.msk [vmem:[%s804_s4 + $0x3c] sm:$0xf] %vm422_vm2, %v492_v3 }

// kernel: _lambda_.15
= control target key start
LH: loop header
LB: loop body
LE: loop exit
PB: predicated region body
PF: predicated region fallthrough
CT: control target
= control target key end

     0   :  { %vm557_vm0 = vcmask 523264   ;;  %vm1146_vm1 = vcmask 519168   ;;  %s2127_s1 = inlined_call_operand.vmem [shape: bf16[576,64], index: 1, kind: input, shape index: {}]   ;;  %s2128_s0 = inlined_call_operand.vmem [shape: bf16[128,576], index: 0, kind: input, shape index: {}]   ;;  %s2129_s2 = inlined_call_operand.vmem [shape: f32[1,64], index: 2, kind: input, shape index: {}]   ;;  %s2130_s4 = inlined_call_operand.vmem [shape: bf16[128,64], index: 4, kind: input, shape index: {}]   ;;  %s2131_s3 = inlined_call_operand.vmem [shape: f32[1,64], index: 3, kind: input, shape index: {}]   ;;  %s2132_s5 = inlined_call_operand.vmem [shape: bf16[128,64], index: 5, kind: output, shape index: {}]  }
   0x1   :  { %v1494_v0 = vld [vmem:[%s2127_s1 + $0x40] sm:$0xff]   ;;  %v1498_v4 = vld [vmem:[%s2127_s1 + $0x48] sm:$0xff]   ;;  %v1502_v8 = vld [vmem:[%s2127_s1 + $0x50] sm:$0xff]  }
   0x2   :  { %v1495_v1 = vld [vmem:[%s2127_s1 + $0xc0] sm:$0xff]   ;;  %1322 = vmatprep.subr.bf16.mxu0 %v1494_v0  ;;  %v1499_v5 = vld [vmem:[%s2127_s1 + $0xc8] sm:$0xff]   ;;  %v1503_v9 = vld [vmem:[%s2127_s1 + $0xd0] sm:$0xff]  }
   0x3   :  { %v1496_v2 = vld [vmem:[%s2127_s1] sm:$0xff]   ;;  %1386 = vmatprep.subr.bf16.mxu1 %v1495_v1  ;;  %v1500_v6 = vld [vmem:[%s2127_s1 + $0x8] sm:$0xff]   ;;  %v1504_v10 = vld [vmem:[%s2127_s1 + $0x10] sm:$0xff]  }
   0x4   :  { %v1497_v3 = vld [vmem:[%s2127_s1 + $0x80] sm:$0xff]   ;;  %1323 = vmatpush3.bf16.msra.mxu0 %v1496_v2  ;;  %v1501_v7 = vld [vmem:[%s2127_s1 + $0x88] sm:$0xff]   ;;  %v1505_v11 = vld [vmem:[%s2127_s1 + $0x90] sm:$0xff]  }
   0x5   :  { %1387 = vmatpush3.bf16.msra.mxu1 %v1497_v3  ;;  %1324 = vmatprep.subr.bf16.mxu0 %v1498_v4  ;;  %v1506_v12 = vld [vmem:[%s2127_s1 + $0x58] sm:$0xff]   ;;  %v1510_v16 = vld [vmem:[%s2127_s1 + $0x60] sm:$0xff]   ;;  %v1514_v20 = vld [vmem:[%s2127_s1 + $0x68] sm:$0xff]  }
   0x6   :  { %1388 = vmatprep.subr.bf16.mxu1 %v1499_v5  ;;  %v1507_v13 = vld [vmem:[%s2127_s1 + $0xd8] sm:$0xff]   ;;  %v1511_v17 = vld [vmem:[%s2127_s1 + $0xe0] sm:$0xff]   ;;  %v1515_v21 = vld [vmem:[%s2127_s1 + $0xe8] sm:$0xff]  }
   0x7   :  { %v1508_v14 = vld [vmem:[%s2127_s1 + $0x18] sm:$0xff]   ;;  %v1512_v18 = vld [vmem:[%s2127_s1 + $0x20] sm:$0xff]   ;;  %v1516_v22 = vld [vmem:[%s2127_s1 + $0x28] sm:$0xff]  }
   0x8   :  { %1325 = vmatpush3.bf16.msra.mxu0 %v1500_v6  ;;  %v1509_v15 = vld [vmem:[%s2127_s1 + $0x98] sm:$0xff]   ;;  %v1513_v19 = vld [vmem:[%s2127_s1 + $0xa0] sm:$0xff]   ;;  %v1517_v23 = vld [vmem:[%s2127_s1 + $0xa8] sm:$0xff]  }
   0x9   :  { %1389 = vmatpush3.bf16.msra.mxu1 %v1501_v7  ;;  %1326 = vmatprep.subr.bf16.mxu0 %v1502_v8  ;;  %v1518_v24 = vld [vmem:[%s2127_s1 + $0x70] sm:$0xff]   ;;  %v1522_v28 = vld [vmem:[%s2127_s1 + $0x78] sm:$0xff]   ;;  %v1531_v35 = vld [vmem:[%s2128_s0 + $0xc] ss:$20 sps:$4 sm:$0xff]  }
   0xa   :  { %1390 = vmatprep.subr.bf16.mxu1 %v1503_v9  ;;  %v1519_v25 = vld [vmem:[%s2127_s1 + $0xf0] sm:$0xff]   ;;  %v1523_v29 = vld [vmem:[%s2127_s1 + $0xf8] sm:$0xff]   ;;  %v1532_v36 = vld [vmem:[%s2127_s1 + $0x100] sm:$0xff]   ;;  %711 = vmatprep.mubr.bf16.mxu1 %v1531_v35 }
   0xb   :  { %v1520_v26 = vld [vmem:[%s2127_s1 + $0x30] sm:$0xff]   ;;  %v1524_v30 = vld [vmem:[%s2127_s1 + $0x38] sm:$0xff]   ;;  %v1533_v37 = vld [vmem:[%s2128_s0 + $0x2c] ss:$20 sps:$4 sm:$0xff]  }
   0xc   :  { %1327 = vmatpush3.bf16.msra.mxu0 %v1504_v10  ;;  %v1521_v27 = vld [vmem:[%s2127_s1 + $0xb0] sm:$0xff]   ;;  %v1525_v31 = vld [vmem:[%s2127_s1 + $0xb8] sm:$0xff]   ;;  %v1545_v42 = vld [vmem:[%s2127_s1 + $0x108] sm:$0xff]  }
   0xd   :  { %1391 = vmatpush3.bf16.msra.mxu1 %v1505_v11  ;;  %1328 = vmatprep.subr.bf16.mxu0 %v1506_v12  ;;  %v1526_v32 = vld [vmem:[%s2128_s0] ss:$20 sps:$4 sm:$0xff]   ;;  %v1528_v33 = vld [vmem:[%s2128_s0 + $0x4] ss:$20 sps:$4 sm:$0xff]   ;;  %v1529_v34 = vld [vmem:[%s2128_s0 + $0x8] ss:$20 sps:$4 sm:$0xff]  }
   0xe   :  { %1392 = vmatprep.subr.bf16.mxu1 %v1507_v13  ;;  %614 = vmatprep.mubr.bf16.mxu0 %v1528_v33  ;;  %v1535_v38 = vld [vmem:[%s2128_s0 + $0x34] ss:$20 sps:$4 sm:$0xff]   ;;  %v1538_v40 = vld [vmem:[%s2128_s0 + $0x30] ss:$20 sps:$4 sm:$0xff]   ;;  %v1544_v45 = vld [vmem:[%s2128_s0 + $0x58] ss:$20 sps:$4 sm:$0xff]  }
   0xf   :  { %v1537_v39 = vld [vmem:[%s2128_s0 + $0x28] ss:$20 sps:$4 sm:$0xff]   ;;  %v1543_v44 = vld [vmem:[%s2128_s0 + $0x50] ss:$20 sps:$4 sm:$0xff]   ;;  %v1550_v50 = vld [vmem:[%s2128_s0 + $0x78] ss:$20 sps:$4 sm:$0xff]  }
  0x10   :  { %1329 = vmatpush3.bf16.msra.mxu0 %v1508_v14  ;;  %v1539_v41 = vld [vmem:[%s2128_s0 + $0x54] ss:$20 sps:$4 sm:$0xff]   ;;  %v1541_v43 = vld [vmem:[%s2128_s0 + $0x5c] ss:$20 sps:$4 sm:$0xff]   ;;  %v1548_v48 = vld [vmem:[%s2128_s0 + $0x84] ss:$20 sps:$4 sm:$0xff]  }
  0x11   :  { %1393 = vmatpush3.bf16.msra.mxu1 %v1509_v15  ;;  %1330 = vmatprep.subr.bf16.mxu0 %v1510_v16  ;;  %v1558_v46 = vld [vmem:[%s2127_s1 + $0x110] sm:$0xff]   ;;  %v1571_v49 = vld [vmem:[%s2127_s1 + $0x118] sm:$0xff]   ;;  %v1554_v53 = vld [vmem:[%s2128_s0 + $0xac] ss:$20 sps:$4 sm:$0xff]  }
  0x12   :  { %1394 = vmatprep.subr.bf16.mxu1 %v1511_v17  ;;  %v1546_v47 = vld [vmem:[%s2128_s0 + $0x7c] ss:$20 sps:$4 sm:$0xff]   ;;  %v1551_v51 = vld [vmem:[%s2128_s0 + $0x80] ss:$20 sps:$4 sm:$0xff]   ;;  %v1552_v52 = vld [vmem:[%s2128_s0 + $0xa4] ss:$20 sps:$4 sm:$0xff]  }
  0x13   :  { %v1556_v54 = vld [vmem:[%s2128_s0 + $0xa0] ss:$20 sps:$4 sm:$0xff]   ;;  %v1557_v55 = vld [vmem:[%s2128_s0 + $0xa8] ss:$20 sps:$4 sm:$0xff]   ;;  %v1564_v59 = vld [vmem:[%s2128_s0 + $0xd0] ss:$20 sps:$4 sm:$0xff]  }
  0x14   :  { %1331 = vmatpush3.bf16.msra.mxu0 %v1512_v18  ;;  %v1559_v56 = vld [vmem:[%s2128_s0 + $0xcc] ss:$20 sps:$4 sm:$0xff]   ;;  %v1561_v57 = vld [vmem:[%s2128_s0 + $0xd4] ss:$20 sps:$4 sm:$0xff]   ;;  %v1567_v61 = vld [vmem:[%s2128_s0 + $0xfc] ss:$20 sps:$4 sm:$0xff]  }
  0x15   :  { %1395 = vmatpush3.bf16.msra.mxu1 %v1513_v19  ;;  %1332 = vmatprep.subr.bf16.mxu0 %v1514_v20  ;;  %v1563_v58 = vld [vmem:[%s2128_s0 + $0xc8] ss:$20 sps:$4 sm:$0xff]   ;;  %v1569_v62 = vld [vmem:[%s2128_s0 + $0xf0] ss:$20 sps:$4 sm:$0xff]   ;;  %v1570_v63 = vld [vmem:[%s2128_s0 + $0xf8] ss:$20 sps:$4 sm:$0xff]  }
  0x16   :  { %1396 = vmatprep.subr.bf16.mxu1 %v1515_v21  ;;  %v1565_v60 = vld [vmem:[%s2128_s0 + $0xf4] ss:$20 sps:$4 sm:$0xff]   ;;  %v1572_v0 = vld [vmem:[%s2128_s0 + $0x11c] ss:$20 sps:$4 sm:$0xff]   ;;  %v1574_v1 = vld [vmem:[%s2128_s0 + $0x124] ss:$20 sps:$4 sm:$0xff]  }
  0x17   :  { %v1576_v2 = vld [vmem:[%s2128_s0 + $0x118] ss:$20 sps:$4 sm:$0xff]   ;;  %v1577_v3 = vld [vmem:[%s2128_s0 + $0x120] ss:$20 sps:$4 sm:$0xff]   ;;  %v1578_v4 = vld [vmem:[%s2128_s0 + $0x10] ss:$20 sps:$4 sm:$0xff]  }
  0x18   :  { %1333 = vmatpush3.bf16.msra.mxu0 %v1516_v22  ;;  %v1579_v5 = vld [vmem:[%s2128_s0 + $0xb0] ss:$20 sps:$4 sm:$0xff]   ;;  %v1580_v6 = vld [vmem:[%s2128_s0 + $0x38] ss:$20 sps:$4 sm:$0xff]   ;;  %v1582_v8 = vld [vmem:[%s2128_s0 + $0x60] ss:$20 sps:$4 sm:$0xff]  }
  0x19   :  { %1397 = vmatpush3.bf16.msra.mxu1 %v1517_v23  ;;  %1334 = vmatprep.subr.bf16.mxu0 %v1518_v24  ;;  %v1581_v7 = vld [vmem:[%s2128_s0 + $0xd8] ss:$20 sps:$4 sm:$0xff]   ;;  %v1583_v9 = vld [vmem:[%s2128_s0 + $0x100] ss:$20 sps:$4 sm:$0xff]   ;;  %v1584_v10 = vld [vmem:[%s2128_s0 + $0x88] ss:$20 sps:$4 sm:$0xff]  }
  0x1a   :  { %1398 = vmatprep.subr.bf16.mxu1 %v1519_v25  ;;  %v1585_v11 = vld [vmem:[%s2128_s0 + $0x128] ss:$20 sps:$4 sm:$0xff]  }
  0x1c   :  { %1335 = vmatpush3.bf16.msra.mxu0 %v1520_v26 }
  0x1d   :  { %1399 = vmatpush3.bf16.msra.mxu1 %v1521_v27  ;;  %1336 = vmatprep.subr.bf16.mxu0 %v1522_v28 }
  0x1e   :  { %1400 = vmatprep.subr.bf16.mxu1 %v1523_v29 }
  0x20   :  { %1337 = vmatpush3.bf16.msra.mxu0 %v1524_v30 }
  0x21   :  { %1401 = vmatpush3.bf16.msra.mxu1 %v1525_v31  ;;  %1462 = vmatprep.subr.bf16.mxu0 %v1532_v36 }
  0x22   :  { %1486 = vmatprep.subr.bf16.mxu1 %v1532_v36 }
  0x23   :  { %615 = vmatmul.mubr.bf16.vlgmr.msra.gmra.mrb[0].mxu0 %v1526_v32 }
  0x24   :  { %712 = vmatmul.mubr.bf16.vlgmr.msra.gmra.mrb[0].mxu1 %v1529_v34  ;;  %1463 = vmatpush3.bf16.msra.mxu0 %v1532_v36 }
  0x25   :  { %622 = vmatprep.mubr.bf16.mxu0 %v1533_v37  ;;  %719 = vmatprep.mubr.bf16.mxu1 %v1535_v38 }
  0x26   :  { %1490 = vmatpush3.bf16.msra.mxu1 %v1532_v36  ;;  %1464 = vmatprep.subr.bf16.mxu0 %v1545_v42 }
  0x27   :  { %1487 = vmatprep.subr.bf16.mxu1 %v1545_v42 }
  0x28   :  { %1465 = vmatpush3.bf16.msra.mxu0 %v1545_v42 }
  0x29   :  { %1466 = vmatprep.subr.bf16.mxu0 %v1558_v46 }
  0x2a   :  { %1491 = vmatpush3.bf16.msra.mxu1 %v1545_v42 }
  0x2b   :  { %623 = vmatmul.mubr.bf16.gmra.mrb[4].mxu0 %v1537_v39  ;;  %1488 = vmatprep.subr.bf16.mxu1 %v1558_v46 }
  0x2c   :  { %720 = vmatmul.mubr.bf16.gmra.mrb[4].mxu1 %v1538_v40  ;;  %630 = vmatprep.mubr.bf16.mxu0 %v1539_v41 }
  0x2d   :  { %727 = vmatprep.mubr.bf16.mxu1 %v1541_v43  ;;  %1467 = vmatpush3.bf16.msra.mxu0 %v1558_v46 }
  0x2e   :  { %1492 = vmatpush3.bf16.msra.mxu1 %v1558_v46  ;;  %1468 = vmatprep.subr.bf16.mxu0 %v1571_v49 }
  0x2f   :  { %1489 = vmatprep.subr.bf16.mxu1 %v1571_v49 }
  0x31   :  { %1469 = vmatpush3.bf16.msra.mxu0 %v1571_v49 }
  0x32   :  { %1493 = vmatpush3.bf16.msra.mxu1 %v1571_v49 }
  0x33   :  { %631 = vmatmul.mubr.bf16.gmra.mrb[8].mxu0 %v1543_v44 }
  0x34   :  { %728 = vmatmul.mubr.bf16.gmra.mrb[8].mxu1 %v1544_v45  ;;  %638 = vmatprep.mubr.bf16.mxu0 %v1546_v47 }
  0x35   :  { %735 = vmatprep.mubr.bf16.mxu1 %v1548_v48 }
  0x3b   :  { %639 = vmatmul.mubr.bf16.gmra.mrb[12].mxu0 %v1550_v50 }
  0x3c   :  { %736 = vmatmul.mubr.bf16.gmra.mrb[12].mxu1 %v1551_v51  ;;  %646 = vmatprep.mubr.bf16.mxu0 %v1552_v52 }
  0x3d   :  { %743 = vmatprep.mubr.bf16.mxu1 %v1554_v53 }
  0x43   :  { %647 = vmatmul.mubr.bf16.gmra.mrb[16].mxu0 %v1556_v54 }
  0x44   :  { %744 = vmatmul.mubr.bf16.gmra.mrb[16].mxu1 %v1557_v55  ;;  %654 = vmatprep.mubr.bf16.mxu0 %v1559_v56 }
  0x45   :  { %751 = vmatprep.mubr.bf16.mxu1 %v1561_v57 }
  0x4b   :  { %655 = vmatmul.mubr.bf16.gmra.mrb[20].mxu0 %v1563_v58 }
  0x4c   :  { %752 = vmatmul.mubr.bf16.gmra.mrb[20].mxu1 %v1564_v59  ;;  %662 = vmatprep.mubr.bf16.mxu0 %v1565_v60 }
  0x4d   :  { %759 = vmatprep.mubr.bf16.mxu1 %v1567_v61 }
  0x53   :  { %663 = vmatmul.mubr.bf16.gmra.mrb[24].mxu0 %v1569_v62 }
  0x54   :  { %760 = vmatmul.mubr.bf16.gmra.mrb[24].mxu1 %v1570_v63  ;;  %670 = vmatprep.mubr.bf16.mxu0 %v1572_v0 }
  0x55   :  { %767 = vmatprep.mubr.bf16.mxu1 %v1574_v1 }
  0x5b   :  { %671 = vmatmul.mubr.bf16.gmra.mrb[28].mxu0 %v1576_v2 }
  0x5c   :  { %768 = vmatmul.mubr.bf16.gmra.mrb[28].mxu1 %v1577_v3  ;;  %1470 = vmatprep.mubr.msk.bf16.mxu0 %vm557_vm0, %v1578_v4 }
  0x5d   :  { %1478 = vmatprep.mubr.msk.bf16.mxu1 %vm557_vm0, %v1579_v5 }
  0x63   :  { %1471 = vmatmul.mubr.msk.bf16.vlgmr.msra.gmra.mrb[32].mxu0 %vm557_vm0, %v1580_v6 }
  0x64   :  { %1479 = vmatmul.mubr.msk.bf16.vlgmr.msra.gmra.mrb[32].mxu1 %vm557_vm0, %v1581_v7  ;;  %1474 = vmatprep.mubr.msk.bf16.mxu0 %vm557_vm0, %v1582_v8 }
  0x65   :  { %1482 = vmatprep.mubr.msk.bf16.mxu1 %vm557_vm0, %v1583_v9 }
  0x6b   :  { %1475 = vmatmul.mubr.msk.bf16.gmra.mrb[36].mxu0 %vm557_vm0, %v1584_v10 }
  0x6c   :  { %1483 = vmatmul.mubr.msk.bf16.gmra.mrb[36].mxu1 %vm557_vm0, %v1585_v11 }
  0xf6   :  { %v1338_v12 = vpop.f32.mrb[0].mxu0 }
  0xf7   :  { %v1402_v13 = vpop.f32.mrb[0].mxu1  ;;  %v1339_v14 = vpop.f32.mrb[1].mxu0 }
  0xf8   :  { %v1340_v15 = vadd.f32 %v1339_v14, %v1338_v12  ;;  %v1403_v16 = vpop.f32.mrb[1].mxu1  ;;  %v1341_v17 = vpop.f32.mrb[2].mxu0 }
  0xf9   :  { %v1404_v18 = vadd.f32 %v1403_v16, %v1402_v13  ;;  %v1405_v19 = vpop.f32.mrb[2].mxu1  ;;  %v1342_v20 = vpop.f32.mrb[3].mxu0 }
  0xfa   :  { %v1343_v21 = vadd.f32 %v1342_v20, %v1341_v17  ;;  %v1406_v22 = vpop.f32.mrb[3].mxu1 }
  0xfb   :  { %v1407_v23 = vadd.f32 %v1406_v22, %v1405_v19  ;;  %v1854_v24 = vadd.f32 %v1404_v18, %v1340_v15 }
  0xfd   :  { %v1856_v25 = vadd.f32 %v1407_v23, %v1343_v21 }
  0xfe   :  { %v1344_v26 = vpop.f32.mrb[4].mxu0 }
  0xff   :  { %v1408_v27 = vpop.f32.mrb[4].mxu1  ;;  %v1345_v28 = vpop.f32.mrb[5].mxu0 }
 0x100   :  { %v1346_v29 = vadd.f32 %v1345_v28, %v1344_v26  ;;  %v1409_v30 = vpop.f32.mrb[5].mxu1  ;;  %v1347_v31 = vpop.f32.mrb[6].mxu0 }
 0x101   :  { %v1410_v32 = vadd.f32 %v1409_v30, %v1408_v27  ;;  %v1411_v33 = vpop.f32.mrb[6].mxu1  ;;  %v1348_v34 = vpop.f32.mrb[7].mxu0 }
 0x102   :  { %v1349_v35 = vadd.f32 %v1348_v34, %v1347_v31  ;;  %v1412_v36 = vpop.f32.mrb[7].mxu1 }
 0x103   :  { %v1413_v37 = vadd.f32 %v1412_v36, %v1411_v33  ;;  %v1858_v38 = vadd.f32 %v1410_v32, %v1346_v29 }
 0x105   :  { %v1860_v39 = vadd.f32 %v1413_v37, %v1349_v35 }
 0x106   :  { %v1350_v40 = vpop.f32.mrb[8].mxu0 }
 0x107   :  { %v1414_v41 = vpop.f32.mrb[8].mxu1  ;;  %v1351_v42 = vpop.f32.mrb[9].mxu0 }
 0x108   :  { %v1352_v43 = vadd.f32 %v1351_v42, %v1350_v40  ;;  %v1415_v44 = vpop.f32.mrb[9].mxu1  ;;  %v1353_v45 = vpop.f32.mrb[10].mxu0 }
 0x109   :  { %v1416_v46 = vadd.f32 %v1415_v44, %v1414_v41  ;;  %v1417_v47 = vpop.f32.mrb[10].mxu1  ;;  %v1354_v48 = vpop.f32.mrb[11].mxu0 }
 0x10a   :  { %v1355_v49 = vadd.f32 %v1354_v48, %v1353_v45  ;;  %v1418_v50 = vpop.f32.mrb[11].mxu1 }
 0x10b   :  { %v1419_v51 = vadd.f32 %v1418_v50, %v1417_v47  ;;  %v1862_v52 = vadd.f32 %v1416_v46, %v1352_v43 }
 0x10d   :  { %v1864_v53 = vadd.f32 %v1419_v51, %v1355_v49 }
 0x10e   :  { %v1356_v54 = vpop.f32.mrb[12].mxu0 }
 0x10f   :  { %v1420_v55 = vpop.f32.mrb[12].mxu1  ;;  %v1357_v56 = vpop.f32.mrb[13].mxu0 }
 0x110   :  { %v1358_v57 = vadd.f32 %v1357_v56, %v1356_v54  ;;  %v1421_v58 = vpop.f32.mrb[13].mxu1  ;;  %v1359_v59 = vpop.f32.mrb[14].mxu0 }
 0x111   :  { %v1422_v60 = vadd.f32 %v1421_v58, %v1420_v55  ;;  %v1423_v61 = vpop.f32.mrb[14].mxu1  ;;  %v1360_v62 = vpop.f32.mrb[15].mxu0 }
 0x112   :  { %v1361_v63 = vadd.f32 %v1360_v62, %v1359_v59  ;;  %v1424_v0 = vpop.f32.mrb[15].mxu1 }
 0x113   :  { %v1425_v1 = vadd.f32 %v1424_v0, %v1423_v61  ;;  %v1866_v2 = vadd.f32 %v1422_v60, %v1358_v57 }
 0x115   :  { %v1868_v3 = vadd.f32 %v1425_v1, %v1361_v63 }
 0x116   :  { %v1362_v4 = vpop.f32.mrb[16].mxu0 }
 0x117   :  { %v1426_v5 = vpop.f32.mrb[16].mxu1  ;;  %v1363_v6 = vpop.f32.mrb[17].mxu0 }
 0x118   :  { %v1364_v7 = vadd.f32 %v1363_v6, %v1362_v4  ;;  %v1427_v8 = vpop.f32.mrb[17].mxu1  ;;  %v1365_v9 = vpop.f32.mrb[18].mxu0 }
 0x119   :  { %v1428_v10 = vadd.f32 %v1427_v8, %v1426_v5  ;;  %v1429_v11 = vpop.f32.mrb[18].mxu1  ;;  %v1366_v12 = vpop.f32.mrb[19].mxu0 }
 0x11a   :  { %v1367_v13 = vadd.f32 %v1366_v12, %v1365_v9  ;;  %v1430_v14 = vpop.f32.mrb[19].mxu1 }
 0x11b   :  { %v1431_v15 = vadd.f32 %v1430_v14, %v1429_v11  ;;  %v746_v16 = vadd.f32 %v1428_v10, %v1364_v7 }
 0x11d   :  { %v749_v17 = vadd.f32 %v1431_v15, %v1367_v13 }
 0x11e   :  { %v1368_v18 = vpop.f32.mrb[20].mxu0 }
 0x11f   :  { %v1432_v19 = vpop.f32.mrb[20].mxu1  ;;  %v1369_v20 = vpop.f32.mrb[21].mxu0 }
 0x120   :  { %v1370_v21 = vadd.f32 %v1369_v20, %v1368_v18  ;;  %v1433_v22 = vpop.f32.mrb[21].mxu1  ;;  %v1371_v23 = vpop.f32.mrb[22].mxu0 }
 0x121   :  { %v1434_v26 = vadd.f32 %v1433_v22, %v1432_v19  ;;  %v1435_v27 = vpop.f32.mrb[22].mxu1  ;;  %v1372_v28 = vpop.f32.mrb[23].mxu0 }
 0x122   :  { %v1373_v29 = vadd.f32 %v1372_v28, %v1371_v23  ;;  %v1436_v30 = vpop.f32.mrb[23].mxu1 }
 0x123   :  { %v1437_v31 = vadd.f32 %v1436_v30, %v1435_v27  ;;  %v754_v32 = vadd.f32 %v1434_v26, %v1370_v21 }
 0x125   :  { %v757_v33 = vadd.f32 %v1437_v31, %v1373_v29 }
 0x126   :  { %v1374_v34 = vpop.f32.mrb[24].mxu0 }
 0x127   :  { %v1438_v35 = vpop.f32.mrb[24].mxu1  ;;  %v1375_v36 = vpop.f32.mrb[25].mxu0 }
 0x128   :  { %v1376_v37 = vadd.f32 %v1375_v36, %v1374_v34  ;;  %v1439_v40 = vpop.f32.mrb[25].mxu1  ;;  %v1377_v41 = vpop.f32.mrb[26].mxu0 }
 0x129   :  { %v1440_v42 = vadd.f32 %v1439_v40, %v1438_v35  ;;  %v1441_v43 = vpop.f32.mrb[26].mxu1  ;;  %v1378_v44 = vpop.f32.mrb[27].mxu0 }
 0x12a   :  { %v1379_v45 = vadd.f32 %v1378_v44, %v1377_v41  ;;  %v1442_v46 = vpop.f32.mrb[27].mxu1 }
 0x12b   :  { %v1443_v47 = vadd.f32 %v1442_v46, %v1441_v43  ;;  %v762_v48 = vadd.f32 %v1440_v42, %v1376_v37 }
 0x12d   :  { %v1870_v49 = vadd.f32 %v1443_v47, %v1379_v45 }
 0x12e   :  { %v1380_v50 = vpop.f32.mrb[28].mxu0 }
 0x12f   :  { %v1444_v51 = vpop.f32.mrb[28].mxu1  ;;  %v1381_v54 = vpop.f32.mrb[29].mxu0 }
 0x130   :  { %v1382_v55 = vadd.f32 %v1381_v54, %v1380_v50  ;;  %v1445_v56 = vpop.f32.mrb[29].mxu1  ;;  %v1383_v57 = vpop.f32.mrb[30].mxu0 }
 0x131   :  { %v1446_v58 = vadd.f32 %v1445_v56, %v1444_v51  ;;  %v1447_v59 = vpop.f32.mrb[30].mxu1  ;;  %v1384_v60 = vpop.f32.mrb[31].mxu0 }
 0x132   :  { %v1385_v61 = vadd.f32 %v1384_v60, %v1383_v57  ;;  %v1448_v62 = vpop.f32.mrb[31].mxu1 }
 0x133   :  { %v1449_v63 = vadd.f32 %v1448_v62, %v1447_v59  ;;  %v770_v0 = vadd.f32 %v1446_v58, %v1382_v55 }
 0x135   :  { %v773_v1 = vadd.f32 %v1449_v63, %v1385_v61 }
 0x136   :  { %v1472_v4 = vpop.f32.mrb[32].mxu0 }
 0x137   :  { %v1873_v5 = vadd.f32 %v1472_v4, %v1858_v38  ;;  %v1480_v6 = vpop.f32.mrb[32].mxu1  ;;  %v810_v7 = vpop.f32.mrb[33].mxu0 }
 0x138   :  { %v1875_v8 = vadd.f32 %v1480_v6, %v754_v32  ;;  %v1878_v9 = vadd.f32 %v810_v7, %v1854_v24  ;;  %v842_v10 = vpop.f32.mrb[33].mxu1  ;;  %v1473_v11 = vpop.f32.mrb[34].mxu0 }
 0x139   :  { %v1880_v12 = vadd.f32 %v842_v10, %v746_v16  ;;  %v1883_v13 = vadd.f32 %v1473_v11, %v1860_v39  ;;  %v1481_v14 = vpop.f32.mrb[34].mxu1  ;;  %v813_v15 = vpop.f32.mrb[35].mxu0  ;;  %v876_v16 = vsel %vm557_vm0, %v1873_v5, 0.0  ;;  %v913_v39 = vmul.f32 %v1873_v5, %v1873_v5 }
 0x13a   :  { %v845_v18 = vpop.f32.mrb[35].mxu1  ;;  %v911_v38 = vmul.f32 %v1878_v9, %v1878_v9  ;;  %v1887_v19 = vadd.f32 %v1481_v14, %v757_v33  ;;  %v1890_v20 = vadd.f32 %v813_v15, %v1856_v25  ;;  %v873_v22 = vsel %vm557_vm0, %v1878_v9, 0.0 }
 0x13b   :  { %v1892_v24 = vadd.f32 %v845_v18, %v749_v17  ;;  %v914_v33 = vmul.f32 %v1883_v13, %v1883_v13  ;;  %v930_v43 = vsel %vm557_vm0, %v913_v39, 0.0  ;;  %v878_v44 = vsel %vm557_vm0, %v1883_v13, 0.0 }
 0x13c   :  { %v874_v23 = vsel %vm557_vm0, %v1890_v20, 0.0  ;;  %v912_v26 = vmul.f32 %v1890_v20, %v1890_v20  ;;  %v927_v17 = vsel %vm557_vm0, %v911_v38, 0.0  ;;  %v919_v6 = vmul.f32 %v1880_v12, %v1880_v12 }
 0x13d   :  { %v875_v28 = vadd.f32 %v874_v23, %v873_v22  ;;  %v888_v11 = vsel %vm557_vm0, %v1880_v12, 0.0  ;;  %v920_v15 = vmul.f32 %v1892_v24, %v1892_v24  ;;  %v921_v39 = vmul.f32 %v1875_v8, %v1875_v8 }
 0x13e   :  { %v1476_v21 = vpop.f32.mrb[36].mxu0  ;;  %v928_v34 = vsel %vm557_vm0, %v912_v26, 0.0  ;;  %v942_v22 = vsel %vm557_vm0, %v919_v6, 0.0  ;;  %v892_v26 = vsel %vm557_vm0, %v1875_v8, 0.0 }
 0x13f   :  { %v1484_v25 = vpop.f32.mrb[36].mxu1  ;;  %v826_v27 = vpop.f32.mrb[37].mxu0  ;;  %v1906_v29 = vadd.f32 %v1476_v21, %v1866_v2  ;;  %v877_v41 = vadd.f32 %v876_v16, %v875_v28  ;;  %v929_v42 = vadd.f32 %v928_v34, %v927_v17  ;;  %v890_v16 = vsel %vm557_vm0, %v1892_v24, 0.0 }
 0x140   :  { %v1908_v30 = vadd.f32 %v1484_v25, %v770_v0  ;;  %v858_v31 = vpop.f32.mrb[37].mxu1  ;;  %v1477_v32 = vpop.f32.mrb[38].mxu0  ;;  %v1914_v35 = vadd.f32 %v826_v27, %v1862_v52  ;;  %v922_v27 = vmul.f32 %v1887_v19, %v1887_v19  ;;  %v944_v17 = vsel %vm557_vm0, %v920_v15, 0.0 }
 0x141   :  { %v1916_v36 = vadd.f32 %v858_v31, %v762_v48  ;;  %v1485_v37 = vpop.f32.mrb[38].mxu1  ;;  %v829_v40 = vpop.f32.mrb[39].mxu0  ;;  %v931_v52 = vadd.f32 %v930_v43, %v929_v42  ;;  %v879_v47 = vadd.f32 %v878_v44, %v877_v41  ;;  %v932_v48 = vsel %vm557_vm0, %v914_v33, 0.0 }
 0x142   :  { %v861_v2 = vpop.f32.mrb[39].mxu1  ;;  %v880_v45 = vsel %vm557_vm0, %v1914_v35, 0.0  ;;  %v915_v46 = vmul.f32 %v1914_v35, %v1914_v35  ;;  %v1928_v51 = vadd.f32 %v1477_v32, %v1868_v3  ;;  %v1930_v56 = vadd.f32 %v1485_v37, %v773_v1 }
 0x143   :  { %v881_v54 = vadd.f32 %v880_v45, %v879_v47  ;;  %v933_v55 = vadd.f32 %v932_v48, %v931_v52  ;;  %v1933_v57 = vadd.f32 %v829_v40, %v1864_v53  ;;  %v1936_v58 = vadd.f32 %v861_v2, %v1870_v49 }
 0x144   :  { %v934_v50 = vsel %vm557_vm0, %v915_v46, 0.0  ;;  %v917_v61 = vmul.f32 %v1906_v29, %v1906_v29  ;;  %v884_v63 = vsel %vm557_vm0, %v1906_v29, 0.0  ;;  %v918_v53 = vmul.f32 %v1928_v51, %v1928_v51 }
 0x145   :  { %v935_v59 = vadd.f32 %v934_v50, %v933_v55  ;;  %v882_v60 = vsel %vm557_vm0, %v1933_v57, 0.0  ;;  %v916_v3 = vmul.f32 %v1933_v57, %v1933_v57  ;;  %v886_v1 = vsel %vm557_vm0, %v1928_v51, 0.0 }
 0x146   :  { %v883_v62 = vadd.f32 %v882_v60, %v881_v54  ;;  %v938_v7 = vsel %vm557_vm0, %v917_v61, 0.0  ;;  %v940_v18 = vsel %vm557_vm0, %v918_v53, 0.0  ;;  %v894_v31 = vsel %vm557_vm0, %v1887_v19, 0.0 }
 0x147   :  { %v936_v49 = vsel %vm557_vm0, %v916_v3, 0.0  ;;  %v946_v33 = vsel %vm557_vm0, %v921_v39, 0.0  ;;  %v923_v34 = vmul.f32 %v1916_v36, %v1916_v36  ;;  %v896_v40 = vsel %vm557_vm0, %v1916_v36, 0.0 }
 0x148   :  { %v885_v0 = vadd.f32 %v884_v63, %v883_v62  ;;  %v937_v4 = vadd.f32 %v936_v49, %v935_v59  ;;  %v948_v42 = vsel %vm557_vm0, %v922_v27, 0.0  ;;  %v924_v43 = vmul.f32 %v1936_v58, %v1936_v58 }
 0x149   :  { %v898_v44 = vsel %vm557_vm0, %v1936_v58, 0.0  ;;  %v925_v46 = vmul.f32 %v1908_v30, %v1908_v30  ;;  %v950_v52 = vsel %vm557_vm0, %v923_v34, 0.0  ;;  %v900_v48 = vsel %vm557_vm0, %v1908_v30, 0.0  ;;  %v2009_v34 = vld [vmem:[%s2130_s4 + $0x10] sm:$0xff]  }
 0x14a   :  { %v887_v10 = vadd.f32 %v886_v1, %v885_v0  ;;  %v939_v14 = vadd.f32 %v938_v7, %v937_v4  ;;  %v926_v54 = vmul.f32 %v1930_v56, %v1930_v56  ;;  %v952_v59 = vsel %vm557_vm0, %v924_v43, 0.0 }
 0x14b   :  { %v902_v60 = vsel %vm557_vm0, %v1930_v56, 0.0  ;;  %v954_v62 = vsel %vm557_vm0, %v925_v46, 0.0  ;;  %v2031_v46 = vld [vmem:[%s2130_s4 + $0x28] sm:$0xff]  }
 0x14c   :  { %v889_v38 = vadd.f32 %v888_v11, %v887_v10  ;;  %v941_v21 = vadd.f32 %v940_v18, %v939_v14  ;;  %v956_v53 = vsel %vm557_vm0, %v926_v54, 0.0 }
 0x14e   :  { %v891_v23 = vadd.f32 %v890_v16, %v889_v38  ;;  %v943_v25 = vadd.f32 %v942_v22, %v941_v21 }
 0x150   :  { %v893_v28 = vadd.f32 %v892_v26, %v891_v23  ;;  %v945_v32 = vadd.f32 %v944_v17, %v943_v25  ;;  %v975_v25 = vlaneseq  ;;  %v967_v17 = vld [vmem:[%s2129_s2] sm:$0x1] }
 0x152   :  { %v895_v37 = vadd.f32 %v894_v31, %v893_v28  ;;  %v947_v41 = vadd.f32 %v946_v33, %v945_v32  ;;  %v976_v27 = vshrl.u32 %v975_v25, 7  ;;  %v1999_v31 = vld [vmem:[%s2130_s4] sm:$0xff]   ;;  %v2004_v32 = vld [vmem:[%s2130_s4 + $0x8] sm:$0xff]  }
 0x153   :  { %v1286_v43 = vunpack.c.h.bf16 %v1999_v31 }
 0x154   :  { %v897_v2 = vadd.f32 %v896_v40, %v895_v37  ;;  %v949_v45 = vadd.f32 %v948_v42, %v947_v41  ;;  %v977_v28 = vsub.s32 0, %v976_v27  ;;  %v2014_v40 = vld [vmem:[%s2130_s4 + $0x18] sm:$0xff]   ;;  %v2019_v41 = vld [vmem:[%s2130_s4 + $0x20] sm:$0xff]  }
 0x155   :  { %v971_v42 = vld [vmem:[%s2131_s3] sm:$0x1]  ;;  %v1297_v54 = vunpack.c.l.bf16 %v2014_v40 }
 0x156   :  { %v899_v47 = vadd.f32 %v898_v44, %v897_v2  ;;  %v951_v50 = vadd.f32 %v950_v52, %v949_v45  ;;  %v1285_v2 = vunpack.c.l.bf16 %v1999_v31  ;;  %v1289_v44 = vunpack.c.l.bf16 %v2004_v32 }
 0x157   :  { %v1290_v45 = vunpack.c.h.bf16 %v2004_v32 }
 0x158   :  { %v901_v55 = vadd.f32 %v900_v48, %v899_v47  ;;  %v953_v61 = vadd.f32 %v952_v59, %v951_v50  ;;  %v1293_v48 = vunpack.c.l.bf16 %v2009_v34  ;;  %v1294_v50 = vunpack.c.h.bf16 %v2009_v34 }
 0x159   :  { %v1301_v59 = vunpack.c.l.bf16 %v2019_v41 }
 0x15a   :  { %v903_v3 = vadd.f32 %v902_v60, %v901_v55  ;;  %v955_v63 = vadd.f32 %v954_v62, %v953_v61  ;;  %v1298_v55 = vunpack.c.h.bf16 %v2014_v40  ;;  %v1302_v60 = vunpack.c.h.bf16 %v2019_v41 }
 0x15c   :  { %v904_v0 = vrot.slane %v903_v3, 4  ;;  %v957_v49 = vadd.f32 %v956_v53, %v955_v63  ;;  %v1306_v63 = vunpack.c.h.bf16 %v2031_v46 }
 0x15e   :  { %v905_v1 = vadd.f32 %v904_v0, %v903_v3  ;;  %v958_v4 = vrot.slane %v957_v49, 4  ;;  %v1305_v3 = vunpack.c.l.bf16 %v2031_v46 }
 0x160   :  { %v906_v6 = vrot.slane %v905_v1, 2  ;;  %v959_v7 = vadd.f32 %v958_v4, %v957_v49 }
 0x162   :  { %v907_v10 = vadd.f32 %v906_v6, %v905_v1  ;;  %v960_v11 = vrot.slane %v959_v7, 2 }
 0x164   :  { %v908_v14 = vrot.slane %v907_v10, 1  ;;  %v961_v15 = vadd.f32 %v960_v11, %v959_v7 }
 0x166   :  { %v909_v18 = vadd.f32 %v908_v14, %v907_v10  ;;  %v962_v38 = vrot.slane %v961_v15, 1  ;;  %v1320_v10 = vld [vmem:[%s2130_s4 + $0x30] sm:$0xff]  }
 0x167   :  { %v1309_v14 = vunpack.c.l.bf16 %v1320_v10 }
 0x168   :  { %v910_v16 = vmul.f32 0.0078125, %v909_v18  ;;  %v963_v21 = vadd.f32 %v962_v38, %v961_v15  ;;  %v1310_v15 = vunpack.c.h.bf16 %v1320_v10 }
 0x16a   :  { %v965_v39 = vmul.f32 %v910_v16, %v910_v16  ;;  %v964_v22 = vmul.f32 0.0078125, %v963_v21 }
 0x16c   :  { %v966_v23 = vsub.f32 %v964_v22, %v965_v39 }
 0x16e   :  { %v968_v26 = vadd.f32 1e-05, %v966_v23 }
 0x170   :  { %1586 = vrsqrt.f32 %v968_v26 }
 0x17a   :  { %v1587_v33 = vpop.eup %1586 }
 0x17b   :  { %v970_v37 = vmul.f32 %v1587_v33, %v967_v17 }
 0x17d   :  { %v972_v52 = vmul.f32 %v970_v37, %v910_v16  ;;  %v978_v47 = vrot.slane %v970_v37, %v977_v28 }
 0x17f   :  { %v973_v61 = vsub.f32 %v971_v42, %v972_v52  ;;  %v980_v62 = vmul.f32 %v978_v47, %v1878_v9  ;;  %v983_v53 = vmul.f32 %v978_v47, %v1883_v13  ;;  %v984_v0 = vmul.f32 %v978_v47, %v1914_v35  ;;  %v1321_v13 = vld [vmem:[%s2130_s4 + $0x38] sm:$0xff]  }
 0x180   :  { %v985_v49 = vmul.f32 %v978_v47, %v1933_v57  ;;  %v986_v1 = vmul.f32 %v978_v47, %v1906_v29  ;;  %v987_v4 = vmul.f32 %v978_v47, %v1928_v51  ;;  %v988_v6 = vmul.f32 %v978_v47, %v1880_v12 }
 0x181   :  { %v989_v7 = vmul.f32 %v978_v47, %v1892_v24  ;;  %v990_v9 = vmul.f32 %v978_v47, %v1875_v8  ;;  %v991_v35 = vmul.f32 %v978_v47, %v1887_v19  ;;  %v992_v29 = vmul.f32 %v978_v47, %v1916_v36 }
 0x182   :  { %v993_v51 = vmul.f32 %v978_v47, %v1936_v58  ;;  %v994_v12 = vmul.f32 %v978_v47, %v1908_v30  ;;  %v981_v24 = vmul.f32 %v978_v47, %v1890_v20  ;;  %v982_v8 = vmul.f32 %v978_v47, %v1873_v5 }
 0x183   :  { %v995_v57 = vmul.f32 %v978_v47, %v1930_v56  ;;  %v1000_v11 = vrot.slane %v973_v61, %v977_v28  ;;  %v1313_v18 = vunpack.c.l.bf16 %v1321_v13  ;;  %v1314_v38 = vunpack.c.h.bf16 %v1321_v13 }
 0x185   :  { %v1002_v16 = vadd.f32 %v1000_v11, %v980_v62  ;;  %v1003_v21 = vadd.f32 %v1000_v11, %v981_v24  ;;  %v1004_v19 = vadd.f32 %v1000_v11, %v982_v8  ;;  %v1005_v39 = vadd.f32 %v1000_v11, %v983_v53 }
 0x186   :  { %v1006_v36 = vadd.f32 %v1000_v11, %v984_v0  ;;  %v1007_v22 = vadd.f32 %v1000_v11, %v985_v49  ;;  %v1008_v58 = vadd.f32 %v1000_v11, %v986_v1  ;;  %v1009_v23 = vadd.f32 %v1000_v11, %v987_v4 }
 0x187   :  { %v1010_v30 = vadd.f32 %v1000_v11, %v988_v6  ;;  %v1011_v26 = vadd.f32 %v1000_v11, %v989_v7  ;;  %v1012_v20 = vadd.f32 %v1000_v11, %v990_v9  ;;  %v1013_v25 = vadd.f32 %v1000_v11, %v991_v35 }
 0x188   :  { %v1014_v5 = vadd.f32 %v1000_v11, %v992_v29  ;;  %v1015_v27 = vadd.f32 %v1000_v11, %v993_v51  ;;  %v1016_v56 = vadd.f32 %v1000_v11, %v994_v12  ;;  %v1017_v17 = vadd.f32 %v1000_v11, %v995_v57 }
 0x189   :  { %v1050_v28 = vadd.f32 %v1285_v2, %v1002_v16  ;;  %v1051_v31 = vadd.f32 %v1286_v43, %v1003_v21  ;;  %v1052_v32 = vadd.f32 %v1289_v44, %v1004_v19  ;;  %v1053_v33 = vadd.f32 %v1290_v45, %v1005_v39 }
 0x18a   :  { %v1054_v34 = vadd.f32 %v1293_v48, %v1006_v36  ;;  %v1055_v37 = vadd.f32 %v1294_v50, %v1007_v22  ;;  %v1056_v40 = vadd.f32 %v1297_v54, %v1008_v58  ;;  %v1057_v41 = vadd.f32 %v1298_v55, %v1009_v23 }
 0x18b   :  { %v1058_v42 = vadd.f32 %v1301_v59, %v1010_v30  ;;  %v1059_v46 = vadd.f32 %v1302_v60, %v1011_v26  ;;  %v1060_v52 = vadd.f32 %v1305_v3, %v1012_v20  ;;  %v1061_v47 = vadd.f32 %v1306_v63, %v1013_v25 }
 0x18c   :  { %v1062_v61 = vadd.f32 %v1309_v14, %v1014_v5  ;;  %v1063_v62 = vadd.f32 %v1310_v15, %v1015_v27  ;;  %v1064_v53 = vadd.f32 %v1313_v18, %v1016_v56  ;;  %v1065_v0 = vadd.f32 %v1314_v38, %v1017_v17 }
 0x18d   :  { %v1066_v49 = vmax.f32 %v1050_v28, 0.0  ;;  %v1067_v1 = vmax.f32 %v1051_v31, 0.0  ;;  %v1068_v4 = vmax.f32 %v1052_v32, 0.0  ;;  %v1069_v6 = vmax.f32 %v1053_v33, 0.0 }
 0x18e   :  { %v1070_v2 = vmax.f32 %v1054_v34, 0.0  ;;  %v1071_v43 = vmax.f32 %v1055_v37, 0.0  ;;  %v1072_v44 = vmax.f32 %v1056_v40, 0.0  ;;  %v1073_v45 = vmax.f32 %v1057_v41, 0.0 }
 0x18f   :  { %v1074_v48 = vmax.f32 %v1058_v42, 0.0  ;;  %v1075_v50 = vmax.f32 %v1059_v46, 0.0  ;;  %v1076_v54 = vmax.f32 %v1060_v52, 0.0  ;;  %v1077_v55 = vmax.f32 %v1061_v47, 0.0 }
 0x190   :  { %v1078_v59 = vmax.f32 %v1062_v61, 0.0  ;;  %v1079_v60 = vmax.f32 %v1063_v62, 0.0  ;;  %v1080_v3 = vmax.f32 %v1064_v53, 0.0  ;;  %v1081_v63 = vmax.f32 %v1065_v0, 0.0 }
 0x191   :  { %v1267_v7 = vpack.c.bf16 %v1066_v49, %v1066_v49  ;;  %v1268_v9 = vpack.c.bf16 %v1067_v1, %v1067_v1  ;;  %v1269_v10 = vpack.c.bf16 %v1068_v4, %v1068_v4  ;;  %v1270_v13 = vpack.c.bf16 %v1069_v6, %v1069_v6 }
 0x192   :  { %v1271_v35 = vpack.c.bf16 %v1070_v2, %v1070_v2  ;;  %v1272_v29 = vpack.c.bf16 %v1071_v43, %v1071_v43  ;;  %v1273_v51 = vpack.c.bf16 %v1072_v44, %v1072_v44  ;;  %v1274_v12 = vpack.c.bf16 %v1073_v45, %v1073_v45 }
 0x193   :  { %v1275_v24 = vpack.c.bf16 %v1074_v48, %v1074_v48  ;;  %v1276_v8 = vpack.c.bf16 %v1075_v50, %v1075_v50  ;;  %v1277_v57 = vpack.c.bf16 %v1076_v54, %v1076_v54  ;;  %v1278_v11 = vpack.c.bf16 %v1077_v55, %v1077_v55  ;;  %1147 = vst.msk [vmem:[%s2132_s5] sm:$0xf] %vm1146_vm1, %v1267_v7 }
 0x194   :  { %1148 = vst.msk [vmem:[%s2132_s5 + $0x4] sm:$0xf] %vm1146_vm1, %v1268_v9  ;;  %1149 = vst.msk [vmem:[%s2132_s5 + $0x8] sm:$0xf] %vm1146_vm1, %v1269_v10  ;;  %v1279_v14 = vpack.c.bf16 %v1078_v59, %v1078_v59  ;;  %v1280_v15 = vpack.c.bf16 %v1079_v60, %v1079_v60  ;;  %v1281_v18 = vpack.c.bf16 %v1080_v3, %v1080_v3 }
 0x195   :  { %1150 = vst.msk [vmem:[%s2132_s5 + $0xc] sm:$0xf] %vm1146_vm1, %v1270_v13  ;;  %v1282_v38 = vpack.c.bf16 %v1081_v63, %v1081_v63  ;;  %1151 = vst.msk [vmem:[%s2132_s5 + $0x10] sm:$0xf] %vm1146_vm1, %v1271_v35 }
 0x196   :  { %1152 = vst.msk [vmem:[%s2132_s5 + $0x14] sm:$0xf] %vm1146_vm1, %v1272_v29  ;;  %1153 = vst.msk [vmem:[%s2132_s5 + $0x18] sm:$0xf] %vm1146_vm1, %v1273_v51 }
 0x197   :  { %1154 = vst.msk [vmem:[%s2132_s5 + $0x1c] sm:$0xf] %vm1146_vm1, %v1274_v12  ;;  %1155 = vst.msk [vmem:[%s2132_s5 + $0x20] sm:$0xf] %vm1146_vm1, %v1275_v24 }
 0x198   :  { %1156 = vst.msk [vmem:[%s2132_s5 + $0x24] sm:$0xf] %vm1146_vm1, %v1276_v8  ;;  %1157 = vst.msk [vmem:[%s2132_s5 + $0x28] sm:$0xf] %vm1146_vm1, %v1277_v57 }
 0x199   :  { %1158 = vst.msk [vmem:[%s2132_s5 + $0x2c] sm:$0xf] %vm1146_vm1, %v1278_v11  ;;  %1159 = vst.msk [vmem:[%s2132_s5 + $0x30] sm:$0xf] %vm1146_vm1, %v1279_v14 }
 0x19a   :  { %1160 = vst.msk [vmem:[%s2132_s5 + $0x34] sm:$0xf] %vm1146_vm1, %v1280_v15  ;;  %1161 = vst.msk [vmem:[%s2132_s5 + $0x38] sm:$0xf] %vm1146_vm1, %v1281_v18 }
 0x19b   :  { %1162 = vst.msk [vmem:[%s2132_s5 + $0x3c] sm:$0xf] %vm1146_vm1, %v1282_v38 }

// kernel: _lambda_.12
= control target key start
LH: loop header
LB: loop body
LE: loop exit
PB: predicated region body
PF: predicated region fallthrough
CT: control target
= control target key end

     0   :  { %v3226_v0 = vmov 0   ;;  %vm773_vm0 = vcmask 261120   ;;  %vm2441_vm1 = vcmask 257024   ;;  %s5830_s1 = inlined_call_operand.vmem [shape: bf16[288,32], index: 1, kind: input, shape index: {}]   ;;  %s5831_s0 = inlined_call_operand.vmem [shape: bf16[512,288], index: 0, kind: input, shape index: {}]   ;;  %s5832_s4 = inlined_call_operand.vmem [shape: bf16[512,32], index: 4, kind: input, shape index: {}]   ;;  %s5833_s2 = inlined_call_operand.vmem [shape: f32[1,32], index: 2, kind: input, shape index: {}]   ;;  %s5834_s3 = inlined_call_operand.vmem [shape: f32[1,32], index: 3, kind: input, shape index: {}]   ;;  %s5835_s5 = inlined_call_operand.vmem [shape: bf16[512,32], index: 5, kind: output, shape index: {}]  }
   0x1   :  { %870 = vmatprep.subr.bf16.mxu0 %v3226_v0  ;;  %3045 = vmatprep.subr.bf16.mxu1 %v3226_v0  ;;  %v3078_v1 = vld [vmem:[%s5830_s1] sm:$0xff]   ;;  %v3079_v2 = vld [vmem:[%s5830_s1 + $0x8] sm:$0xff]   ;;  %v3080_v3 = vld [vmem:[%s5830_s1 + $0x10] sm:$0xff]  }
   0x2   :  { %871 = vmatpush1.bf16.msra.mxu0 %v3078_v1  ;;  %3061 = vmatpush1.bf16.msra.mxu1 %v3078_v1  ;;  %v3081_v4 = vld [vmem:[%s5830_s1 + $0x18] sm:$0xff]   ;;  %v3082_v5 = vld [vmem:[%s5830_s1 + $0x20] sm:$0xff]   ;;  %v3083_v7 = vld [vmem:[%s5830_s1 + $0x28] sm:$0xff]  }
   0x3   :  { %872 = vmatprep.subr.bf16.mxu0 %v3226_v0  ;;  %3046 = vmatprep.subr.bf16.mxu1 %v3226_v0  ;;  %v3096_v6 = vld [vmem:[%s5831_s0 + $0x4] ss:$12 sps:$4 sm:$0xff]   ;;  %v3085_v10 = vld [vmem:[%s5830_s1 + $0x38] sm:$0xff]   ;;  %v3087_v12 = vld [vmem:[%s5830_s1 + $0x48] sm:$0xff]  }
   0x4   :  { %v3099_v8 = vld [vmem:[%s5831_s0 + $0x244] ss:$12 sps:$4 sm:$0xff]   ;;  %902 = vmatprep.mubr.bf16.mxu0 %v3096_v6  ;;  %v3089_v14 = vld [vmem:[%s5830_s1 + $0x58] sm:$0xff]   ;;  %v3091_v16 = vld [vmem:[%s5830_s1 + $0x68] sm:$0xff]  }
   0x5   :  { %1094 = vmatprep.mubr.bf16.mxu1 %v3099_v8  ;;  %v3084_v9 = vld [vmem:[%s5830_s1 + $0x30] sm:$0xff]   ;;  %v3086_v11 = vld [vmem:[%s5830_s1 + $0x40] sm:$0xff]   ;;  %v3093_v18 = vld [vmem:[%s5830_s1 + $0x78] sm:$0xff]  }
   0x6   :  { %873 = vmatpush1.bf16.msra.mxu0 %v3079_v2  ;;  %3062 = vmatpush1.bf16.msra.mxu1 %v3079_v2  ;;  %v3088_v13 = vld [vmem:[%s5830_s1 + $0x50] sm:$0xff]   ;;  %v3090_v15 = vld [vmem:[%s5830_s1 + $0x60] sm:$0xff]   ;;  %v3100_v22 = vld [vmem:[%s5831_s0 + $0x1c] ss:$12 sps:$4 sm:$0xff]  }
   0x7   :  { %874 = vmatprep.subr.bf16.mxu0 %v3226_v0  ;;  %3047 = vmatprep.subr.bf16.mxu1 %v3226_v0  ;;  %v3092_v17 = vld [vmem:[%s5830_s1 + $0x70] sm:$0xff]   ;;  %v3118_v19 = vld [vmem:[%s5830_s1 + $0x80] sm:$0xff]   ;;  %v3102_v23 = vld [vmem:[%s5831_s0 + $0x25c] ss:$12 sps:$4 sm:$0xff]  }
   0x8   :  { %v3094_v20 = vld [vmem:[%s5831_s0] ss:$12 sps:$4 sm:$0xff]   ;;  %v3104_v25 = vld [vmem:[%s5831_s0 + $0x18] ss:$12 sps:$4 sm:$0xff]   ;;  %v3110_v29 = vld [vmem:[%s5831_s0 + $0x30] ss:$12 sps:$4 sm:$0xff]  }
   0x9   :  { %v3097_v21 = vld [vmem:[%s5831_s0 + $0x240] ss:$12 sps:$4 sm:$0xff]   ;;  %v3105_v26 = vld [vmem:[%s5831_s0 + $0x258] ss:$12 sps:$4 sm:$0xff]   ;;  %v3111_v30 = vld [vmem:[%s5831_s0 + $0x270] ss:$12 sps:$4 sm:$0xff]  }
   0xa   :  { %875 = vmatpush1.bf16.msra.mxu0 %v3080_v3  ;;  %3063 = vmatpush1.bf16.msra.mxu1 %v3080_v3  ;;  %v3143_v24 = vld [vmem:[%s5830_s1 + $0x88] sm:$0xff]   ;;  %v3106_v27 = vld [vmem:[%s5831_s0 + $0x34] ss:$12 sps:$4 sm:$0xff]   ;;  %v3119_v35 = vld [vmem:[%s5831_s0 + $0x64] ss:$12 sps:$4 sm:$0xff]  }
   0xb   :  { %876 = vmatprep.subr.bf16.mxu0 %v3226_v0  ;;  %3048 = vmatprep.subr.bf16.mxu1 %v3226_v0  ;;  %v3108_v28 = vld [vmem:[%s5831_s0 + $0x274] ss:$12 sps:$4 sm:$0xff]   ;;  %v3112_v31 = vld [vmem:[%s5831_s0 + $0x4c] ss:$12 sps:$4 sm:$0xff]   ;;  %v3121_v36 = vld [vmem:[%s5831_s0 + $0x2a4] ss:$12 sps:$4 sm:$0xff]  }
   0xc   :  { %v3114_v32 = vld [vmem:[%s5831_s0 + $0x28c] ss:$12 sps:$4 sm:$0xff]   ;;  %v3116_v33 = vld [vmem:[%s5831_s0 + $0x48] ss:$12 sps:$4 sm:$0xff]   ;;  %v3135_v45 = vld [vmem:[%s5831_s0 + $0x90] ss:$12 sps:$4 sm:$0xff]  }
   0xd   :  { %v3117_v34 = vld [vmem:[%s5831_s0 + $0x288] ss:$12 sps:$4 sm:$0xff]   ;;  %v3123_v37 = vld [vmem:[%s5831_s0 + $0x60] ss:$12 sps:$4 sm:$0xff]   ;;  %v3129_v41 = vld [vmem:[%s5831_s0 + $0x78] ss:$12 sps:$4 sm:$0xff]  }
   0xe   :  { %877 = vmatpush1.bf16.msra.mxu0 %v3081_v4  ;;  %3064 = vmatpush1.bf16.msra.mxu1 %v3081_v4  ;;  %v3124_v38 = vld [vmem:[%s5831_s0 + $0x2a0] ss:$12 sps:$4 sm:$0xff]   ;;  %v3125_v39 = vld [vmem:[%s5831_s0 + $0x7c] ss:$12 sps:$4 sm:$0xff]   ;;  %v3130_v42 = vld [vmem:[%s5831_s0 + $0x2b8] ss:$12 sps:$4 sm:$0xff]  }
   0xf   :  { %878 = vmatprep.subr.bf16.mxu0 %v3226_v0  ;;  %3049 = vmatprep.subr.bf16.mxu1 %v3226_v0  ;;  %v3127_v40 = vld [vmem:[%s5831_s0 + $0x2bc] ss:$12 sps:$4 sm:$0xff]   ;;  %v3131_v43 = vld [vmem:[%s5831_s0 + $0x94] ss:$12 sps:$4 sm:$0xff]   ;;  %v3137_v47 = vld [vmem:[%s5831_s0 + $0xac] ss:$12 sps:$4 sm:$0xff]  }
  0x10   :  { %v3133_v44 = vld [vmem:[%s5831_s0 + $0x2d4] ss:$12 sps:$4 sm:$0xff]   ;;  %v3136_v46 = vld [vmem:[%s5831_s0 + $0x2d0] ss:$12 sps:$4 sm:$0xff]   ;;  %v3139_v48 = vld [vmem:[%s5831_s0 + $0x2ec] ss:$12 sps:$4 sm:$0xff]  }
  0x11   :  { %v3141_v49 = vld [vmem:[%s5831_s0 + $0xa8] ss:$12 sps:$4 sm:$0xff]   ;;  %v3144_v51 = vld [vmem:[%s5831_s0 + $0xc4] ss:$12 sps:$4 sm:$0xff]   ;;  %v3147_v53 = vld [vmem:[%s5831_s0 + $0xc0] ss:$12 sps:$4 sm:$0xff]  }
  0x12   :  { %879 = vmatpush1.bf16.msra.mxu0 %v3082_v5  ;;  %3065 = vmatpush1.bf16.msra.mxu1 %v3082_v5  ;;  %v3142_v50 = vld [vmem:[%s5831_s0 + $0x2e8] ss:$12 sps:$4 sm:$0xff]   ;;  %v3148_v54 = vld [vmem:[%s5831_s0 + $0x20] ss:$12 sps:$4 sm:$0xff]   ;;  %v3151_v56 = vld [vmem:[%s5831_s0 + $0x38] ss:$12 sps:$4 sm:$0xff]  }
  0x13   :  { %880 = vmatprep.subr.bf16.mxu0 %v3226_v0  ;;  %3050 = vmatprep.subr.bf16.mxu1 %v3226_v0  ;;  %v3146_v52 = vld [vmem:[%s5831_s0 + $0x8] ss:$12 sps:$4 sm:$0xff]   ;;  %v3152_v57 = vld [vmem:[%s5831_s0 + $0xd8] ss:$12 sps:$4 sm:$0xff]   ;;  %v3153_v58 = vld [vmem:[%s5831_s0 + $0x50] ss:$12 sps:$4 sm:$0xff]  }
  0x14   :  { %v3149_v55 = vld [vmem:[%s5831_s0 + $0xdc] ss:$12 sps:$4 sm:$0xff]   ;;  %v3154_v59 = vld [vmem:[%s5831_s0 + $0xf4] ss:$12 sps:$4 sm:$0xff]   ;;  %v3159_v63 = vld [vmem:[%s5831_s0 + $0x10c] ss:$12 sps:$4 sm:$0xff]  }
  0x15   :  { %v3156_v60 = vld [vmem:[%s5831_s0 + $0x68] ss:$12 sps:$4 sm:$0xff]   ;;  %v3157_v61 = vld [vmem:[%s5831_s0 + $0xf0] ss:$12 sps:$4 sm:$0xff]   ;;  %v3158_v62 = vld [vmem:[%s5831_s0 + $0x80] ss:$12 sps:$4 sm:$0xff]  }
  0x16   :  { %881 = vmatpush1.bf16.msra.mxu0 %v3083_v7  ;;  %3066 = vmatpush1.bf16.msra.mxu1 %v3083_v7  ;;  %v3162_v1 = vld [vmem:[%s5831_s0 + $0x108] ss:$12 sps:$4 sm:$0xff]   ;;  %v3163_v2 = vld [vmem:[%s5831_s0 + $0xb0] ss:$12 sps:$4 sm:$0xff]   ;;  %v3167_v5 = vld [vmem:[%s5831_s0 + $0x120] ss:$12 sps:$4 sm:$0xff]  }
  0x17   :  { %882 = vmatprep.subr.bf16.mxu0 %v3226_v0  ;;  %3051 = vmatprep.subr.bf16.mxu1 %v3226_v0  ;;  %v3164_v3 = vld [vmem:[%s5831_s0 + $0x124] ss:$12 sps:$4 sm:$0xff]   ;;  %v3166_v4 = vld [vmem:[%s5831_s0 + $0xc8] ss:$12 sps:$4 sm:$0xff]   ;;  %v3168_v6 = vld [vmem:[%s5831_s0 + $0xe0] ss:$12 sps:$4 sm:$0xff]  }
  0x18   :  { %v3169_v7 = vld [vmem:[%s5831_s0 + $0x13c] ss:$12 sps:$4 sm:$0xff]   ;;  %v3171_v8 = vld [vmem:[%s5831_s0 + $0xf8] ss:$12 sps:$4 sm:$0xff]  }
  0x1a   :  { %883 = vmatpush1.bf16.msra.mxu0 %v3084_v9  ;;  %3067 = vmatpush1.bf16.msra.mxu1 %v3084_v9  ;;  %v3172_v9 = vld [vmem:[%s5831_s0 + $0x138] ss:$12 sps:$4 sm:$0xff]  }
  0x1b   :  { %884 = vmatprep.subr.bf16.mxu0 %v3226_v0  ;;  %3052 = vmatprep.subr.bf16.mxu1 %v3226_v0 }
  0x1e   :  { %885 = vmatpush1.bf16.msra.mxu0 %v3085_v10  ;;  %3068 = vmatpush1.bf16.msra.mxu1 %v3085_v10  ;;  %v3173_v10 = vld [vmem:[%s5831_s0 + $0x110] ss:$12 sps:$4 sm:$0xff]  }
  0x1f   :  { %886 = vmatprep.subr.bf16.mxu0 %v3226_v0  ;;  %3053 = vmatprep.subr.bf16.mxu1 %v3226_v0 }
  0x22   :  { %887 = vmatpush1.bf16.msra.mxu0 %v3086_v11  ;;  %3069 = vmatpush1.bf16.msra.mxu1 %v3086_v11  ;;  %v3174_v11 = vld [vmem:[%s5831_s0 + $0x154] ss:$12 sps:$4 sm:$0xff]  }
  0x23   :  { %888 = vmatprep.subr.bf16.mxu0 %v3226_v0  ;;  %3054 = vmatprep.subr.bf16.mxu1 %v3226_v0 }
  0x26   :  { %889 = vmatpush1.bf16.msra.mxu0 %v3087_v12  ;;  %3070 = vmatpush1.bf16.msra.mxu1 %v3087_v12  ;;  %v3176_v12 = vld [vmem:[%s5831_s0 + $0x128] ss:$12 sps:$4 sm:$0xff]  }
  0x27   :  { %890 = vmatprep.subr.bf16.mxu0 %v3226_v0  ;;  %3055 = vmatprep.subr.bf16.mxu1 %v3226_v0 }
  0x2a   :  { %891 = vmatpush1.bf16.msra.mxu0 %v3088_v13  ;;  %3071 = vmatpush1.bf16.msra.mxu1 %v3088_v13  ;;  %v3177_v13 = vld [vmem:[%s5831_s0 + $0x150] ss:$12 sps:$4 sm:$0xff]  }
  0x2b   :  { %892 = vmatprep.subr.bf16.mxu0 %v3226_v0  ;;  %3056 = vmatprep.subr.bf16.mxu1 %v3226_v0 }
  0x2e   :  { %893 = vmatpush1.bf16.msra.mxu0 %v3089_v14  ;;  %3072 = vmatpush1.bf16.msra.mxu1 %v3089_v14  ;;  %v3178_v14 = vld [vmem:[%s5831_s0 + $0x140] ss:$12 sps:$4 sm:$0xff]  }
  0x2f   :  { %894 = vmatprep.subr.bf16.mxu0 %v3226_v0  ;;  %3057 = vmatprep.subr.bf16.mxu1 %v3226_v0 }
  0x32   :  { %895 = vmatpush1.bf16.msra.mxu0 %v3090_v15  ;;  %3073 = vmatpush1.bf16.msra.mxu1 %v3090_v15  ;;  %v3179_v15 = vld [vmem:[%s5831_s0 + $0x16c] ss:$12 sps:$4 sm:$0xff]  }
  0x33   :  { %896 = vmatprep.subr.bf16.mxu0 %v3226_v0  ;;  %3058 = vmatprep.subr.bf16.mxu1 %v3226_v0 }
  0x36   :  { %897 = vmatpush1.bf16.msra.mxu0 %v3091_v16  ;;  %3074 = vmatpush1.bf16.msra.mxu1 %v3091_v16  ;;  %v3181_v16 = vld [vmem:[%s5831_s0 + $0x158] ss:$12 sps:$4 sm:$0xff]  }
  0x37   :  { %898 = vmatprep.subr.bf16.mxu0 %v3226_v0  ;;  %3059 = vmatprep.subr.bf16.mxu1 %v3226_v0 }
  0x3a   :  { %899 = vmatpush1.bf16.msra.mxu0 %v3092_v17  ;;  %3075 = vmatpush1.bf16.msra.mxu1 %v3092_v17  ;;  %v3182_v17 = vld [vmem:[%s5831_s0 + $0x168] ss:$12 sps:$4 sm:$0xff]  }
  0x3b   :  { %900 = vmatprep.subr.bf16.mxu0 %v3226_v0  ;;  %3060 = vmatprep.subr.bf16.mxu1 %v3226_v0  ;;  %v3161_v0 = vld [vmem:[%s5831_s0 + $0x98] ss:$12 sps:$4 sm:$0xff]  }
  0x3e   :  { %901 = vmatpush1.bf16.msra.mxu0 %v3093_v18  ;;  %3076 = vmatpush1.bf16.msra.mxu1 %v3093_v18  ;;  %v3183_v18 = vld [vmem:[%s5831_s0 + $0x170] ss:$12 sps:$4 sm:$0xff]  }
  0x3f   :  { %2977 = vmatprep.subr.bf16.mxu1 %v3118_v19 }
  0x41   :  { %903 = vmatmul.mubr.bf16.vlgmr.msra.gmra.mrb[0].mxu0 %v3094_v20  ;;  %1095 = vmatmul.mubr.bf16.vlgmr.msra.gmra.mrb[0].mxu1 %v3097_v21  ;;  %v3186_v20 = vld [vmem:[%s5831_s0 + $0x188] ss:$12 sps:$4 sm:$0xff]   ;;  %v3187_v21 = vld [vmem:[%s5831_s0 + $0x180] ss:$12 sps:$4 sm:$0xff]  }
  0x42   :  { %910 = vmatprep.mubr.bf16.mxu0 %v3100_v22  ;;  %1102 = vmatprep.mubr.bf16.mxu1 %v3102_v23  ;;  %v3188_v22 = vld [vmem:[%s5831_s0 + $0x1a0] ss:$12 sps:$4 sm:$0xff]   ;;  %v3189_v23 = vld [vmem:[%s5831_s0 + $0x19c] ss:$12 sps:$4 sm:$0xff]  }
  0x43   :  { %2978 = vmatpush3.bf16.msra.mxu1 %v3118_v19  ;;  %v3184_v19 = vld [vmem:[%s5831_s0 + $0x184] ss:$12 sps:$4 sm:$0xff]  }
  0x44   :  { %2979 = vmatprep.subr.bf16.mxu1 %v3143_v24 }
  0x47   :  { %2980 = vmatpush3.bf16.msra.mxu1 %v3143_v24  ;;  %v3191_v24 = vld [vmem:[%s5831_s0 + $0x1b8] ss:$12 sps:$4 sm:$0xff]  }
  0x49   :  { %911 = vmatmul.mubr.bf16.gmra.mrb[4].mxu0 %v3104_v25  ;;  %1103 = vmatmul.mubr.bf16.gmra.mrb[4].mxu1 %v3105_v26  ;;  %v3192_v25 = vld [vmem:[%s5831_s0 + $0x198] ss:$12 sps:$4 sm:$0xff]   ;;  %v3193_v26 = vld [vmem:[%s5831_s0 + $0x1d0] ss:$12 sps:$4 sm:$0xff]  }
  0x4a   :  { %918 = vmatprep.mubr.bf16.mxu0 %v3106_v27  ;;  %1110 = vmatprep.mubr.bf16.mxu1 %v3108_v28  ;;  %v3194_v27 = vld [vmem:[%s5831_s0 + $0x1b4] ss:$12 sps:$4 sm:$0xff]  }
  0x4b   :  { %v3196_v28 = vld [vmem:[%s5831_s0 + $0x1e8] ss:$12 sps:$4 sm:$0xff]  }
  0x51   :  { %919 = vmatmul.mubr.bf16.gmra.mrb[8].mxu0 %v3110_v29  ;;  %1111 = vmatmul.mubr.bf16.gmra.mrb[8].mxu1 %v3111_v30  ;;  %v3197_v29 = vld [vmem:[%s5831_s0 + $0x1b0] ss:$12 sps:$4 sm:$0xff]   ;;  %v3198_v30 = vld [vmem:[%s5831_s0 + $0x200] ss:$12 sps:$4 sm:$0xff]  }
  0x52   :  { %926 = vmatprep.mubr.bf16.mxu0 %v3112_v31  ;;  %1118 = vmatprep.mubr.bf16.mxu1 %v3114_v32  ;;  %v3199_v31 = vld [vmem:[%s5831_s0 + $0x1cc] ss:$12 sps:$4 sm:$0xff]  }
  0x53   :  { %v3201_v32 = vld [vmem:[%s5831_s0 + $0x218] ss:$12 sps:$4 sm:$0xff]  }
  0x59   :  { %927 = vmatmul.mubr.bf16.gmra.mrb[12].mxu0 %v3116_v33  ;;  %1119 = vmatmul.mubr.bf16.gmra.mrb[12].mxu1 %v3117_v34  ;;  %v3202_v33 = vld [vmem:[%s5831_s0 + $0x1c8] ss:$12 sps:$4 sm:$0xff]   ;;  %v3203_v34 = vld [vmem:[%s5831_s0 + $0x230] ss:$12 sps:$4 sm:$0xff]  }
  0x5a   :  { %934 = vmatprep.mubr.bf16.mxu0 %v3119_v35  ;;  %1126 = vmatprep.mubr.bf16.mxu1 %v3121_v36  ;;  %v3204_v35 = vld [vmem:[%s5831_s0 + $0x1e4] ss:$12 sps:$4 sm:$0xff]   ;;  %v3206_v36 = vld [vmem:[%s5831_s0 + $0x248] ss:$12 sps:$4 sm:$0xff]  }
  0x61   :  { %935 = vmatmul.mubr.bf16.gmra.mrb[16].mxu0 %v3123_v37  ;;  %1127 = vmatmul.mubr.bf16.gmra.mrb[16].mxu1 %v3124_v38  ;;  %v3207_v37 = vld [vmem:[%s5831_s0 + $0x1e0] ss:$12 sps:$4 sm:$0xff]  }
  0x62   :  { %942 = vmatprep.mubr.bf16.mxu0 %v3125_v39  ;;  %1134 = vmatprep.mubr.bf16.mxu1 %v3127_v40  ;;  %v3208_v38 = vld [vmem:[%s5831_s0 + $0x260] ss:$12 sps:$4 sm:$0xff]   ;;  %v3209_v39 = vld [vmem:[%s5831_s0 + $0x1fc] ss:$12 sps:$4 sm:$0xff]   ;;  %v3211_v40 = vld [vmem:[%s5831_s0 + $0x278] ss:$12 sps:$4 sm:$0xff]  }
  0x69   :  { %943 = vmatmul.mubr.bf16.gmra.mrb[20].mxu0 %v3129_v41  ;;  %1135 = vmatmul.mubr.bf16.gmra.mrb[20].mxu1 %v3130_v42  ;;  %v3212_v41 = vld [vmem:[%s5831_s0 + $0x1f8] ss:$12 sps:$4 sm:$0xff]   ;;  %v3213_v42 = vld [vmem:[%s5831_s0 + $0x290] ss:$12 sps:$4 sm:$0xff]  }
  0x6a   :  { %950 = vmatprep.mubr.bf16.mxu0 %v3131_v43  ;;  %1142 = vmatprep.mubr.bf16.mxu1 %v3133_v44  ;;  %v3214_v43 = vld [vmem:[%s5831_s0 + $0x214] ss:$12 sps:$4 sm:$0xff]  }
  0x6b   :  { %v3216_v44 = vld [vmem:[%s5831_s0 + $0x2a8] ss:$12 sps:$4 sm:$0xff]  }
  0x71   :  { %951 = vmatmul.mubr.bf16.gmra.mrb[24].mxu0 %v3135_v45  ;;  %1143 = vmatmul.mubr.bf16.gmra.mrb[24].mxu1 %v3136_v46  ;;  %v3217_v45 = vld [vmem:[%s5831_s0 + $0x210] ss:$12 sps:$4 sm:$0xff]   ;;  %v3218_v46 = vld [vmem:[%s5831_s0 + $0x2c0] ss:$12 sps:$4 sm:$0xff]  }
  0x72   :  { %958 = vmatprep.mubr.bf16.mxu0 %v3137_v47  ;;  %1150 = vmatprep.mubr.bf16.mxu1 %v3139_v48  ;;  %v3219_v47 = vld [vmem:[%s5831_s0 + $0x22c] ss:$12 sps:$4 sm:$0xff]  }
  0x73   :  { %v3221_v48 = vld [vmem:[%s5831_s0 + $0x2d8] ss:$12 sps:$4 sm:$0xff]  }
  0x79   :  { %959 = vmatmul.mubr.bf16.gmra.mrb[28].mxu0 %v3141_v49  ;;  %1151 = vmatmul.mubr.bf16.gmra.mrb[28].mxu1 %v3142_v50  ;;  %v3222_v49 = vld [vmem:[%s5831_s0 + $0x228] ss:$12 sps:$4 sm:$0xff]   ;;  %v3223_v50 = vld [vmem:[%s5831_s0 + $0x2f0] ss:$12 sps:$4 sm:$0xff]  }
  0x7a   :  { %966 = vmatprep.mubr.bf16.mxu0 %v3144_v51  ;;  %2981 = vmatprep.mubr.msk.bf16.mxu1 %vm773_vm0, %v3146_v52 }
  0x81   :  { %967 = vmatmul.mubr.bf16.gmra.mrb[32].mxu0 %v3147_v53  ;;  %2982 = vmatmul.mubr.msk.bf16.vlgmr.msra.gmra.mrb[32].mxu1 %vm773_vm0, %v3148_v54 }
  0x82   :  { %974 = vmatprep.mubr.bf16.mxu0 %v3149_v55  ;;  %2985 = vmatprep.mubr.msk.bf16.mxu1 %vm773_vm0, %v3151_v56 }
  0x89   :  { %975 = vmatmul.mubr.bf16.gmra.mrb[36].mxu0 %v3152_v57  ;;  %2986 = vmatmul.mubr.msk.bf16.gmra.mrb[36].mxu1 %vm773_vm0, %v3153_v58 }
  0x8a   :  { %982 = vmatprep.mubr.bf16.mxu0 %v3154_v59  ;;  %2989 = vmatprep.mubr.msk.bf16.mxu1 %vm773_vm0, %v3156_v60 }
  0x91   :  { %983 = vmatmul.mubr.bf16.gmra.mrb[40].mxu0 %v3157_v61  ;;  %2990 = vmatmul.mubr.msk.bf16.gmra.mrb[40].mxu1 %vm773_vm0, %v3158_v62 }
  0x92   :  { %990 = vmatprep.mubr.bf16.mxu0 %v3159_v63  ;;  %2993 = vmatprep.mubr.msk.bf16.mxu1 %vm773_vm0, %v3161_v0 }
  0x99   :  { %991 = vmatmul.mubr.bf16.gmra.mrb[44].mxu0 %v3162_v1  ;;  %2994 = vmatmul.mubr.msk.bf16.gmra.mrb[44].mxu1 %vm773_vm0, %v3163_v2 }
  0x9a   :  { %998 = vmatprep.mubr.bf16.mxu0 %v3164_v3  ;;  %2997 = vmatprep.mubr.msk.bf16.mxu1 %vm773_vm0, %v3166_v4 }
  0xa1   :  { %999 = vmatmul.mubr.bf16.gmra.mrb[48].mxu0 %v3167_v5  ;;  %2998 = vmatmul.mubr.msk.bf16.gmra.mrb[48].mxu1 %vm773_vm0, %v3168_v6 }
  0xa2   :  { %1006 = vmatprep.mubr.bf16.mxu0 %v3169_v7  ;;  %3001 = vmatprep.mubr.msk.bf16.mxu1 %vm773_vm0, %v3171_v8 }
  0xa9   :  { %1007 = vmatmul.mubr.bf16.gmra.mrb[52].mxu0 %v3172_v9  ;;  %3002 = vmatmul.mubr.msk.bf16.gmra.mrb[52].mxu1 %vm773_vm0, %v3173_v10 }
  0xaa   :  { %1014 = vmatprep.mubr.bf16.mxu0 %v3174_v11  ;;  %3005 = vmatprep.mubr.msk.bf16.mxu1 %vm773_vm0, %v3176_v12 }
  0xb1   :  { %1015 = vmatmul.mubr.bf16.gmra.mrb[56].mxu0 %v3177_v13  ;;  %3006 = vmatmul.mubr.msk.bf16.gmra.mrb[56].mxu1 %vm773_vm0, %v3178_v14 }
  0xb2   :  { %1022 = vmatprep.mubr.bf16.mxu0 %v3179_v15  ;;  %3009 = vmatprep.mubr.msk.bf16.mxu1 %vm773_vm0, %v3181_v16 }
  0xb9   :  { %1023 = vmatmul.mubr.bf16.gmra.mrb[60].mxu0 %v3182_v17  ;;  %3010 = vmatmul.mubr.msk.bf16.gmra.mrb[60].mxu1 %vm773_vm0, %v3183_v18 }
  0xba   :  { %1030 = vmatprep.mubr.bf16.mxu0 %v3184_v19  ;;  %3013 = vmatprep.mubr.msk.bf16.mxu1 %vm773_vm0, %v3186_v20 }
  0xc1   :  { %1031 = vmatmul.mubr.bf16.gmra.mrb[64].mxu0 %v3187_v21  ;;  %3014 = vmatmul.mubr.msk.bf16.gmra.mrb[64].mxu1 %vm773_vm0, %v3188_v22 }
  0xc2   :  { %1038 = vmatprep.mubr.bf16.mxu0 %v3189_v23  ;;  %3017 = vmatprep.mubr.msk.bf16.mxu1 %vm773_vm0, %v3191_v24 }
  0xc9   :  { %1039 = vmatmul.mubr.bf16.gmra.mrb[68].mxu0 %v3192_v25  ;;  %3018 = vmatmul.mubr.msk.bf16.gmra.mrb[68].mxu1 %vm773_vm0, %v3193_v26 }
  0xca   :  { %1046 = vmatprep.mubr.bf16.mxu0 %v3194_v27  ;;  %3021 = vmatprep.mubr.msk.bf16.mxu1 %vm773_vm0, %v3196_v28 }
  0xd1   :  { %1047 = vmatmul.mubr.bf16.gmra.mrb[72].mxu0 %v3197_v29  ;;  %3022 = vmatmul.mubr.msk.bf16.gmra.mrb[72].mxu1 %vm773_vm0, %v3198_v30 }
  0xd2   :  { %1054 = vmatprep.mubr.bf16.mxu0 %v3199_v31  ;;  %3025 = vmatprep.mubr.msk.bf16.mxu1 %vm773_vm0, %v3201_v32 }
  0xd9   :  { %1055 = vmatmul.mubr.bf16.gmra.mrb[76].mxu0 %v3202_v33  ;;  %3026 = vmatmul.mubr.msk.bf16.gmra.mrb[76].mxu1 %vm773_vm0, %v3203_v34 }
  0xda   :  { %1062 = vmatprep.mubr.bf16.mxu0 %v3204_v35  ;;  %3029 = vmatprep.mubr.msk.bf16.mxu1 %vm773_vm0, %v3206_v36 }
  0xe1   :  { %1063 = vmatmul.mubr.bf16.gmra.mrb[80].mxu0 %v3207_v37  ;;  %3030 = vmatmul.mubr.msk.bf16.gmra.mrb[80].mxu1 %vm773_vm0, %v3208_v38 }
  0xe2   :  { %1070 = vmatprep.mubr.bf16.mxu0 %v3209_v39  ;;  %3033 = vmatprep.mubr.msk.bf16.mxu1 %vm773_vm0, %v3211_v40 }
  0xe9   :  { %1071 = vmatmul.mubr.bf16.gmra.mrb[84].mxu0 %v3212_v41  ;;  %3034 = vmatmul.mubr.msk.bf16.gmra.mrb[84].mxu1 %vm773_vm0, %v3213_v42 }
  0xea   :  { %1078 = vmatprep.mubr.bf16.mxu0 %v3214_v43  ;;  %3037 = vmatprep.mubr.msk.bf16.mxu1 %vm773_vm0, %v3216_v44 }
  0xf1   :  { %1079 = vmatmul.mubr.bf16.gmra.mrb[88].mxu0 %v3217_v45  ;;  %3038 = vmatmul.mubr.msk.bf16.gmra.mrb[88].mxu1 %vm773_vm0, %v3218_v46 }
  0xf2   :  { %1086 = vmatprep.mubr.bf16.mxu0 %v3219_v47  ;;  %3041 = vmatprep.mubr.msk.bf16.mxu1 %vm773_vm0, %v3221_v48 }
  0xf9   :  { %1087 = vmatmul.mubr.bf16.gmra.mrb[92].mxu0 %v3222_v49  ;;  %3042 = vmatmul.mubr.msk.bf16.gmra.mrb[92].mxu1 %vm773_vm0, %v3223_v50 }
 0x114   :  { %v3663_v51 = vpop.f32.mrb[0].mxu0  ;;  %v3665_v52 = vpop.f32.mrb[0].mxu1 }
 0x115   :  { %v906_v53 = vpop.f32.mrb[1].mxu0  ;;  %v1098_v54 = vpop.f32.mrb[1].mxu1 }
 0x116   :  { %v3667_v55 = vpop.f32.mrb[2].mxu0  ;;  %v3669_v56 = vpop.f32.mrb[2].mxu1 }
 0x117   :  { %v909_v57 = vpop.f32.mrb[3].mxu0  ;;  %v1101_v58 = vpop.f32.mrb[3].mxu1 }
 0x11c   :  { %v912_v59 = vpop.f32.mrb[4].mxu0  ;;  %v3671_v60 = vpop.f32.mrb[4].mxu1 }
 0x11d   :  { %v914_v61 = vpop.f32.mrb[5].mxu0  ;;  %v1106_v62 = vpop.f32.mrb[5].mxu1 }
 0x11e   :  { %v915_v63 = vpop.f32.mrb[6].mxu0  ;;  %v3673_v0 = vpop.f32.mrb[6].mxu1 }
 0x11f   :  { %v917_v1 = vpop.f32.mrb[7].mxu0  ;;  %v1109_v2 = vpop.f32.mrb[7].mxu1 }
 0x124   :  { %v3675_v3 = vpop.f32.mrb[8].mxu0  ;;  %v3677_v4 = vpop.f32.mrb[8].mxu1 }
 0x125   :  { %v922_v5 = vpop.f32.mrb[9].mxu0  ;;  %v1114_v6 = vpop.f32.mrb[9].mxu1 }
 0x126   :  { %v3679_v7 = vpop.f32.mrb[10].mxu0  ;;  %v3681_v8 = vpop.f32.mrb[10].mxu1 }
 0x127   :  { %v925_v9 = vpop.f32.mrb[11].mxu0  ;;  %v1117_v10 = vpop.f32.mrb[11].mxu1 }
 0x12c   :  { %v3683_v11 = vpop.f32.mrb[12].mxu0  ;;  %v3685_v12 = vpop.f32.mrb[12].mxu1 }
 0x12d   :  { %v930_v13 = vpop.f32.mrb[13].mxu0  ;;  %v1122_v14 = vpop.f32.mrb[13].mxu1 }
 0x12e   :  { %v3687_v15 = vpop.f32.mrb[14].mxu0  ;;  %v3689_v16 = vpop.f32.mrb[14].mxu1 }
 0x12f   :  { %v933_v17 = vpop.f32.mrb[15].mxu0  ;;  %v1125_v18 = vpop.f32.mrb[15].mxu1 }
 0x134   :  { %v3691_v19 = vpop.f32.mrb[16].mxu0  ;;  %v3693_v20 = vpop.f32.mrb[16].mxu1 }
 0x135   :  { %v938_v21 = vpop.f32.mrb[17].mxu0  ;;  %v1130_v22 = vpop.f32.mrb[17].mxu1 }
 0x136   :  { %v3695_v23 = vpop.f32.mrb[18].mxu0  ;;  %v3697_v24 = vpop.f32.mrb[18].mxu1 }
 0x137   :  { %v941_v25 = vpop.f32.mrb[19].mxu0  ;;  %v1133_v26 = vpop.f32.mrb[19].mxu1 }
 0x13c   :  { %v3699_v27 = vpop.f32.mrb[20].mxu0  ;;  %v3701_v28 = vpop.f32.mrb[20].mxu1 }
 0x13d   :  { %v946_v29 = vpop.f32.mrb[21].mxu0  ;;  %v1138_v30 = vpop.f32.mrb[21].mxu1 }
 0x13e   :  { %v3703_v31 = vpop.f32.mrb[22].mxu0  ;;  %v3705_v32 = vpop.f32.mrb[22].mxu1 }
 0x13f   :  { %v949_v33 = vpop.f32.mrb[23].mxu0  ;;  %v1141_v34 = vpop.f32.mrb[23].mxu1 }
 0x144   :  { %v3707_v35 = vpop.f32.mrb[24].mxu0  ;;  %v3709_v36 = vpop.f32.mrb[24].mxu1 }
 0x145   :  { %v954_v37 = vpop.f32.mrb[25].mxu0  ;;  %v1146_v38 = vpop.f32.mrb[25].mxu1 }
 0x146   :  { %v3711_v39 = vpop.f32.mrb[26].mxu0  ;;  %v3713_v40 = vpop.f32.mrb[26].mxu1 }
 0x147   :  { %v957_v41 = vpop.f32.mrb[27].mxu0  ;;  %v1149_v42 = vpop.f32.mrb[27].mxu1 }
 0x14c   :  { %v3715_v43 = vpop.f32.mrb[28].mxu0  ;;  %v3717_v44 = vpop.f32.mrb[28].mxu1 }
 0x14d   :  { %v962_v45 = vpop.f32.mrb[29].mxu0  ;;  %v1154_v46 = vpop.f32.mrb[29].mxu1 }
 0x14e   :  { %v3719_v47 = vpop.f32.mrb[30].mxu0  ;;  %v3721_v48 = vpop.f32.mrb[30].mxu1 }
 0x14f   :  { %v965_v49 = vpop.f32.mrb[31].mxu0  ;;  %v1157_v50 = vpop.f32.mrb[31].mxu1 }
 0x154   :  { %v3723_v53 = vpop.f32.mrb[32].mxu0  ;;  %v2983_v54 = vpop.f32.mrb[32].mxu1 }
 0x155   :  { %v3725_v57 = vadd.f32 %v2983_v54, %v912_v59  ;;  %v970_v58 = vpop.f32.mrb[33].mxu0  ;;  %v1193_v61 = vpop.f32.mrb[33].mxu1 }
 0x156   :  { %v3728_v62 = vadd.f32 %v1193_v61, %v3663_v51  ;;  %v3730_v1 = vpop.f32.mrb[34].mxu0  ;;  %v2984_v2 = vpop.f32.mrb[34].mxu1 }
 0x157   :  { %v3732_v5 = vadd.f32 %v2984_v2, %v915_v63  ;;  %v973_v6 = vpop.f32.mrb[35].mxu0  ;;  %v1196_v9 = vpop.f32.mrb[35].mxu1  ;;  %v1584_v59 = vmul.f32 %v3725_v57, %v3725_v57 }
 0x158   :  { %v1582_v10 = vmul.f32 %v3728_v62, %v3728_v62  ;;  %v3737_v13 = vadd.f32 %v1196_v9, %v3667_v55  ;;  %v1448_v51 = vsel %vm773_vm0, %v3728_v62, 0.0  ;;  %v1451_v55 = vsel %vm773_vm0, %v3725_v57, 0.0 }
 0x159   :  { %v1585_v17 = vmul.f32 %v3732_v5, %v3732_v5  ;;  %v1649_v38 = vsel %vm773_vm0, %v1584_v59, 0.0  ;;  %v1453_v41 = vsel %vm773_vm0, %v3732_v5, 0.0 }
 0x15a   :  { %v1449_v14 = vsel %vm773_vm0, %v3737_v13, 0.0  ;;  %v1583_v63 = vmul.f32 %v3737_v13, %v3737_v13  ;;  %v1646_v21 = vsel %vm773_vm0, %v1582_v10, 0.0 }
 0x15b   :  { %v1450_v18 = vadd.f32 %v1449_v14, %v1448_v51  ;;  %v1651_v49 = vsel %vm773_vm0, %v1585_v17, 0.0 }
 0x15c   :  { %v1647_v22 = vsel %vm773_vm0, %v1583_v63, 0.0  ;;  %v3753_v25 = vpop.f32.mrb[36].mxu0  ;;  %v2987_v26 = vpop.f32.mrb[36].mxu1 }
 0x15d   :  { %v1452_v29 = vadd.f32 %v1451_v55, %v1450_v18  ;;  %v1648_v30 = vadd.f32 %v1647_v22, %v1646_v21  ;;  %v3756_v33 = vadd.f32 %v2987_v26, %v3683_v11  ;;  %v978_v34 = vpop.f32.mrb[37].mxu0  ;;  %v1209_v37 = vpop.f32.mrb[37].mxu1 }
 0x15e   :  { %v3762_v42 = vadd.f32 %v1209_v37, %v3675_v3  ;;  %v3764_v45 = vpop.f32.mrb[38].mxu0  ;;  %v2988_v46 = vpop.f32.mrb[38].mxu1 }
 0x15f   :  { %v1454_v50 = vadd.f32 %v1453_v41, %v1452_v29  ;;  %v1650_v54 = vadd.f32 %v1649_v38, %v1648_v30  ;;  %v981_v58 = vpop.f32.mrb[39].mxu0  ;;  %v1212_v11 = vpop.f32.mrb[39].mxu1  ;;  %v3772_v6 = vadd.f32 %v2988_v46, %v3687_v15  ;;  %v1588_v14 = vmul.f32 %v3756_v33, %v3756_v33 }
 0x160   :  { %v1455_v61 = vsel %vm773_vm0, %v3762_v42, 0.0  ;;  %v1586_v2 = vmul.f32 %v3762_v42, %v3762_v42  ;;  %v3775_v3 = vadd.f32 %v1212_v11, %v3679_v7  ;;  %v1459_v15 = vsel %vm773_vm0, %v3756_v33, 0.0 }
 0x161   :  { %v1652_v9 = vadd.f32 %v1651_v49, %v1650_v54  ;;  %v1456_v10 = vadd.f32 %v1455_v61, %v1454_v50  ;;  %v1589_v21 = vmul.f32 %v3772_v6, %v3772_v6  ;;  %v1461_v37 = vsel %vm773_vm0, %v3772_v6, 0.0 }
 0x162   :  { %v1653_v59 = vsel %vm773_vm0, %v1586_v2, 0.0  ;;  %v1457_v51 = vsel %vm773_vm0, %v3775_v3, 0.0  ;;  %v1587_v18 = vmul.f32 %v3775_v3, %v3775_v3  ;;  %v1657_v50 = vsel %vm773_vm0, %v1588_v14, 0.0 }
 0x163   :  { %v1654_v63 = vadd.f32 %v1653_v59, %v1652_v9  ;;  %v1458_v17 = vadd.f32 %v1457_v51, %v1456_v10  ;;  %v1659_v10 = vsel %vm773_vm0, %v1589_v21, 0.0 }
 0x164   :  { %v3786_v7 = vpop.f32.mrb[40].mxu0  ;;  %v2991_v55 = vpop.f32.mrb[40].mxu1  ;;  %v1655_v26 = vsel %vm773_vm0, %v1587_v18, 0.0 }
 0x165   :  { %v1460_v22 = vadd.f32 %v1459_v15, %v1458_v17  ;;  %v3792_v29 = vadd.f32 %v2991_v55, %v3699_v27  ;;  %v986_v30 = vpop.f32.mrb[41].mxu0  ;;  %v1225_v34 = vpop.f32.mrb[41].mxu1  ;;  %v1656_v38 = vadd.f32 %v1655_v26, %v1654_v63 }
 0x166   :  { %v3797_v41 = vadd.f32 %v1225_v34, %v3691_v19  ;;  %v3799_v46 = vpop.f32.mrb[42].mxu0  ;;  %v2992_v49 = vpop.f32.mrb[42].mxu1 }
 0x167   :  { %v1462_v54 = vadd.f32 %v1461_v37, %v1460_v22  ;;  %v3803_v58 = vadd.f32 %v2992_v49, %v3703_v31  ;;  %v989_v27 = vpop.f32.mrb[43].mxu0  ;;  %v1228_v11 = vpop.f32.mrb[43].mxu1  ;;  %v1658_v61 = vadd.f32 %v1657_v50, %v1656_v38  ;;  %v1592_v17 = vmul.f32 %v3792_v29, %v3792_v29 }
 0x168   :  { %v1463_v2 = vsel %vm773_vm0, %v3797_v41, 0.0  ;;  %v1590_v9 = vmul.f32 %v3797_v41, %v3797_v41  ;;  %v3810_v19 = vadd.f32 %v1228_v11, %v3695_v23  ;;  %v1467_v23 = vsel %vm773_vm0, %v3792_v29, 0.0 }
 0x169   :  { %v1464_v59 = vadd.f32 %v1463_v2, %v1462_v54  ;;  %v1660_v51 = vadd.f32 %v1659_v10, %v1658_v61  ;;  %v1593_v26 = vmul.f32 %v3803_v58, %v3803_v58  ;;  %v1469_v49 = vsel %vm773_vm0, %v3803_v58, 0.0 }
 0x16a   :  { %v1661_v14 = vsel %vm773_vm0, %v1590_v9, 0.0  ;;  %v1465_v31 = vsel %vm773_vm0, %v3810_v19, 0.0  ;;  %v1591_v63 = vmul.f32 %v3810_v19, %v3810_v19  ;;  %v1665_v61 = vsel %vm773_vm0, %v1592_v17, 0.0 }
 0x16b   :  { %v1466_v18 = vadd.f32 %v1465_v31, %v1464_v59  ;;  %v1662_v15 = vadd.f32 %v1661_v14, %v1660_v51  ;;  %v1667_v31 = vsel %vm773_vm0, %v1593_v26, 0.0 }
 0x16c   :  { %v1663_v55 = vsel %vm773_vm0, %v1591_v63, 0.0  ;;  %v3823_v21 = vpop.f32.mrb[44].mxu0  ;;  %v2995_v22 = vpop.f32.mrb[44].mxu1 }
 0x16d   :  { %v1468_v30 = vadd.f32 %v1467_v23, %v1466_v18  ;;  %v3828_v34 = vadd.f32 %v2995_v22, %v3715_v43  ;;  %v994_v37 = vpop.f32.mrb[45].mxu0  ;;  %v1241_v38 = vpop.f32.mrb[45].mxu1  ;;  %v1664_v50 = vadd.f32 %v1663_v55, %v1662_v15 }
 0x16e   :  { %v3833_v54 = vadd.f32 %v1241_v38, %v3707_v35  ;;  %v3835_v27 = vpop.f32.mrb[46].mxu0  ;;  %v2996_v11 = vpop.f32.mrb[46].mxu1 }
 0x16f   :  { %v1470_v2 = vadd.f32 %v1469_v49, %v1468_v30  ;;  %v3839_v9 = vadd.f32 %v2996_v11, %v3719_v47  ;;  %v997_v43 = vpop.f32.mrb[47].mxu0  ;;  %v1244_v10 = vpop.f32.mrb[47].mxu1  ;;  %v1666_v59 = vadd.f32 %v1665_v61, %v1664_v50  ;;  %v1596_v15 = vmul.f32 %v3828_v34, %v3828_v34 }
 0x170   :  { %v1471_v51 = vsel %vm773_vm0, %v3833_v54, 0.0  ;;  %v1594_v14 = vmul.f32 %v3833_v54, %v3833_v54  ;;  %v3846_v35 = vadd.f32 %v1244_v10, %v3711_v39  ;;  %v1475_v39 = vsel %vm773_vm0, %v3828_v34, 0.0 }
 0x171   :  { %v1472_v63 = vadd.f32 %v1471_v51, %v1470_v2  ;;  %v1668_v17 = vadd.f32 %v1667_v31, %v1666_v59  ;;  %v1597_v38 = vmul.f32 %v3839_v9, %v3839_v9  ;;  %v1477_v2 = vsel %vm773_vm0, %v3839_v9, 0.0 }
 0x172   :  { %v1669_v18 = vsel %vm773_vm0, %v1594_v14, 0.0  ;;  %v1473_v47 = vsel %vm773_vm0, %v3846_v35, 0.0  ;;  %v1595_v23 = vmul.f32 %v3846_v35, %v3846_v35  ;;  %v1673_v14 = vsel %vm773_vm0, %v1596_v15, 0.0 }
 0x173   :  { %v1474_v55 = vadd.f32 %v1473_v47, %v1472_v63  ;;  %v1670_v22 = vadd.f32 %v1669_v18, %v1668_v17 }
 0x174   :  { %v1671_v26 = vsel %vm773_vm0, %v1595_v23, 0.0  ;;  %v3859_v30 = vpop.f32.mrb[48].mxu0  ;;  %v2999_v37 = vpop.f32.mrb[48].mxu1 }
 0x175   :  { %v1476_v49 = vadd.f32 %v1475_v39, %v1474_v55  ;;  %v3864_v50 = vadd.f32 %v2999_v37, %v3753_v25  ;;  %v1002_v11 = vpop.f32.mrb[49].mxu0  ;;  %v1257_v61 = vpop.f32.mrb[49].mxu1  ;;  %v1672_v43 = vadd.f32 %v1671_v26, %v1670_v22  ;;  %v1675_v55 = vsel %vm773_vm0, %v1597_v38, 0.0 }
 0x176   :  { %v3869_v10 = vadd.f32 %v1257_v61, %v3723_v53  ;;  %v3871_v59 = vpop.f32.mrb[50].mxu0  ;;  %v3000_v51 = vpop.f32.mrb[50].mxu1 }
 0x177   :  { %5944 = vst [vmem:[#allocation2_spill] sm:$0xff] %v3864_v50  ;;  %v1478_v31 = vadd.f32 %v1477_v2, %v1476_v49  ;;  %v3875_v63 = vadd.f32 %v3000_v51, %v3764_v45  ;;  %v1005_v25 = vpop.f32.mrb[51].mxu0  ;;  %v1260_v17 = vpop.f32.mrb[51].mxu1  ;;  %v1674_v18 = vadd.f32 %v1673_v14, %v1672_v43  ;;  %v1600_v37 = vmul.f32 %v3864_v50, %v3864_v50 }
 0x178   :  { %v1479_v47 = vsel %vm773_vm0, %v3869_v10, 0.0  ;;  %v1598_v23 = vmul.f32 %v3869_v10, %v3869_v10  ;;  %v3882_v53 = vadd.f32 %v1260_v17, %v3730_v1  ;;  %v1483_v1 = vsel %vm773_vm0, %v3864_v50, 0.0 }
 0x179   :  { %5945 = vst [vmem:[#allocation3_spill] sm:$0xff] %v3875_v63  ;;  %v1480_v39 = vadd.f32 %v1479_v47, %v1478_v31  ;;  %v1676_v15 = vadd.f32 %v1675_v55, %v1674_v18  ;;  %v1601_v43 = vmul.f32 %v3875_v63, %v3875_v63  ;;  %v1485_v17 = vsel %vm773_vm0, %v3875_v63, 0.0 }
 0x17a   :  { %v1677_v22 = vsel %vm773_vm0, %v1598_v23, 0.0  ;;  %v1481_v45 = vsel %vm773_vm0, %v3882_v53, 0.0  ;;  %v1599_v26 = vmul.f32 %v3882_v53, %v3882_v53 }
 0x17b   :  { %v1482_v49 = vadd.f32 %v1481_v45, %v1480_v39  ;;  %v1678_v11 = vadd.f32 %v1677_v22, %v1676_v15  ;;  %v1681_v39 = vsel %vm773_vm0, %v1600_v37, 0.0 }
 0x17c   :  { %v1679_v38 = vsel %vm773_vm0, %v1599_v26, 0.0  ;;  %v1008_v61 = vpop.f32.mrb[52].mxu0  ;;  %v3003_v2 = vpop.f32.mrb[52].mxu1 }
 0x17d   :  { %v1484_v51 = vadd.f32 %v1483_v1, %v1482_v49  ;;  %v3898_v14 = vadd.f32 %v3003_v2, %v3823_v21  ;;  %v1010_v31 = vpop.f32.mrb[53].mxu0  ;;  %v1273_v25 = vpop.f32.mrb[53].mxu1  ;;  %v1680_v18 = vadd.f32 %v1679_v38, %v1678_v11  ;;  %v1683_v11 = vsel %vm773_vm0, %v1601_v43, 0.0 }
 0x17e   :  { %v3903_v47 = vadd.f32 %v1273_v25, %v3786_v7  ;;  %v1011_v23 = vpop.f32.mrb[54].mxu0  ;;  %v3004_v55 = vpop.f32.mrb[54].mxu1 }
 0x17f   :  { %5946 = vst [vmem:[#allocation4_spill] sm:$0xff] %v3898_v14  ;;  %v1486_v15 = vadd.f32 %v1485_v17, %v1484_v51  ;;  %v3907_v22 = vadd.f32 %v3004_v55, %v3835_v27  ;;  %v1013_v45 = vpop.f32.mrb[55].mxu0  ;;  %v1276_v21 = vpop.f32.mrb[55].mxu1  ;;  %v1682_v26 = vadd.f32 %v1681_v39, %v1680_v18  ;;  %v1604_v31 = vmul.f32 %v3898_v14, %v3898_v14 }
 0x180   :  { %5947 = vst [vmem:[#allocation5_spill] sm:$0xff] %v3903_v47  ;;  %v1487_v49 = vsel %vm773_vm0, %v3903_v47, 0.0  ;;  %v1602_v1 = vmul.f32 %v3903_v47, %v3903_v47  ;;  %v3914_v7 = vadd.f32 %v1276_v21, %v3799_v46  ;;  %v1491_v46 = vsel %vm773_vm0, %v3898_v14, 0.0 }
 0x181   :  { %5948 = vst [vmem:[#allocation6_spill] sm:$0xff] %v3907_v22  ;;  %v1488_v38 = vadd.f32 %v1487_v49, %v1486_v15  ;;  %v1684_v37 = vadd.f32 %v1683_v11, %v1682_v26  ;;  %v1605_v39 = vmul.f32 %v3907_v22, %v3907_v22  ;;  %v1493_v49 = vsel %vm773_vm0, %v3907_v22, 0.0 }
 0x182   :  { %5949 = vst [vmem:[#allocation7_spill] sm:$0xff] %v3914_v7  ;;  %v1685_v2 = vsel %vm773_vm0, %v1602_v1, 0.0  ;;  %v1489_v27 = vsel %vm773_vm0, %v3914_v7, 0.0  ;;  %v1603_v51 = vmul.f32 %v3914_v7, %v3914_v7 }
 0x183   :  { %v1490_v25 = vadd.f32 %v1489_v27, %v1488_v38  ;;  %v1686_v17 = vadd.f32 %v1685_v2, %v1684_v37  ;;  %v1689_v2 = vsel %vm773_vm0, %v1604_v31, 0.0 }
 0x184   :  { %v1687_v43 = vsel %vm773_vm0, %v1603_v51, 0.0  ;;  %v1016_v18 = vpop.f32.mrb[56].mxu0  ;;  %v3007_v55 = vpop.f32.mrb[56].mxu1 }
 0x185   :  { %v1492_v15 = vadd.f32 %v1491_v46, %v1490_v25  ;;  %v3929_v45 = vadd.f32 %v3007_v55, %v1008_v61  ;;  %v1018_v21 = vpop.f32.mrb[57].mxu0  ;;  %v1289_v26 = vpop.f32.mrb[57].mxu1  ;;  %v1688_v1 = vadd.f32 %v1687_v43, %v1686_v17 }
 0x186   :  { %v3934_v11 = vadd.f32 %v1289_v26, %v3859_v30  ;;  %v1019_v38 = vpop.f32.mrb[58].mxu0  ;;  %v3008_v37 = vpop.f32.mrb[58].mxu1  ;;  %v1691_v30 = vsel %vm773_vm0, %v1605_v39, 0.0 }
 0x187   :  { %5950 = vst [vmem:[#allocation8_spill] sm:$0xff] %v3929_v45  ;;  %v1494_v27 = vadd.f32 %v1493_v49, %v1492_v15  ;;  %v3937_v51 = vadd.f32 %v3008_v37, %v1011_v23  ;;  %v1021_v14 = vpop.f32.mrb[59].mxu0  ;;  %v1292_v25 = vpop.f32.mrb[59].mxu1  ;;  %v1690_v61 = vadd.f32 %v1689_v2, %v1688_v1  ;;  %v1608_v15 = vmul.f32 %v3929_v45, %v3929_v45 }
 0x188   :  { %5951 = vst [vmem:[#allocation9_spill] sm:$0xff] %v3934_v11  ;;  %v1495_v46 = vsel %vm773_vm0, %v3934_v11, 0.0  ;;  %v1606_v55 = vmul.f32 %v3934_v11, %v3934_v11  ;;  %v3944_v17 = vadd.f32 %v1292_v25, %v3871_v59  ;;  %v1499_v39 = vsel %vm773_vm0, %v3929_v45, 0.0 }
 0x189   :  { %5952 = vst [vmem:[#allocation10_spill] sm:$0xff] %v3937_v51  ;;  %v1496_v43 = vadd.f32 %v1495_v46, %v1494_v27  ;;  %v1692_v21 = vadd.f32 %v1691_v30, %v1690_v61 }
 0x18a   :  { %5953 = vst [vmem:[#allocation11_spill] sm:$0xff] %v3944_v17  ;;  %v1693_v31 = vsel %vm773_vm0, %v1606_v55, 0.0  ;;  %v1497_v14 = vsel %vm773_vm0, %v3944_v17, 0.0  ;;  %v1607_v23 = vmul.f32 %v3944_v17, %v3944_v17 }
 0x18b   :  { %v1498_v26 = vadd.f32 %v1497_v14, %v1496_v43  ;;  %v1694_v49 = vadd.f32 %v1693_v31, %v1692_v21  ;;  %v1697_v43 = vsel %vm773_vm0, %v1608_v15, 0.0  ;;  %v1609_v21 = vmul.f32 %v3937_v51, %v3937_v51 }
 0x18c   :  { %v1695_v59 = vsel %vm773_vm0, %v1607_v23, 0.0  ;;  %v1024_v1 = vpop.f32.mrb[60].mxu0  ;;  %v3011_v37 = vpop.f32.mrb[60].mxu1 }
 0x18d   :  { %v3957_v2 = vadd.f32 %v3011_v37, %v1024_v1  ;;  %v1026_v27 = vpop.f32.mrb[61].mxu0  ;;  %v1305_v25 = vpop.f32.mrb[61].mxu1  ;;  %v1500_v61 = vadd.f32 %v1499_v39, %v1498_v26  ;;  %v1696_v46 = vadd.f32 %v1695_v59, %v1694_v49  ;;  %v1501_v26 = vsel %vm773_vm0, %v3937_v51, 0.0 }
 0x18e   :  { %v3959_v55 = vadd.f32 %v1305_v25, %v1016_v18  ;;  %v1027_v30 = vpop.f32.mrb[62].mxu0  ;;  %v3012_v17 = vpop.f32.mrb[62].mxu1  ;;  %v1699_v59 = vsel %vm773_vm0, %v1609_v21, 0.0 }
 0x18f   :  { %5954 = vst [vmem:[#allocation12_spill] sm:$0xff] %v3957_v2  ;;  %v3964_v31 = vadd.f32 %v3012_v17, %v1027_v30  ;;  %v1029_v14 = vpop.f32.mrb[63].mxu0  ;;  %v1308_v23 = vpop.f32.mrb[63].mxu1  ;;  %v1698_v45 = vadd.f32 %v1697_v43, %v1696_v46  ;;  %v1502_v49 = vadd.f32 %v1501_v26, %v1500_v61 }
 0x190   :  { %5955 = vst [vmem:[#allocation13_spill] sm:$0xff] %v3959_v55  ;;  %v3966_v1 = vadd.f32 %v1308_v23, %v1019_v38  ;;  %v1610_v18 = vmul.f32 %v3959_v55, %v3959_v55  ;;  %v1503_v15 = vsel %vm773_vm0, %v3959_v55, 0.0 }
 0x191   :  { %5956 = vst [vmem:[#allocation14_spill] sm:$0xff] %v3964_v31  ;;  %v1700_v37 = vadd.f32 %v1699_v59, %v1698_v45  ;;  %v1504_v30 = vadd.f32 %v1503_v15, %v1502_v49 }
 0x192   :  { %5957 = vst [vmem:[#allocation15_spill] sm:$0xff] %v3966_v1  ;;  %v1701_v27 = vsel %vm773_vm0, %v1610_v18, 0.0  ;;  %v1611_v38 = vmul.f32 %v3966_v1, %v3966_v1  ;;  %v1505_v21 = vsel %vm773_vm0, %v3966_v1, 0.0 }
 0x193   :  { %v1702_v45 = vadd.f32 %v1701_v27, %v1700_v37  ;;  %v1506_v55 = vadd.f32 %v1505_v21, %v1504_v30 }
 0x194   :  { %v1032_v17 = vpop.f32.mrb[64].mxu0  ;;  %v3015_v39 = vpop.f32.mrb[64].mxu1  ;;  %v1703_v18 = vsel %vm773_vm0, %v1611_v38, 0.0  ;;  %v1613_v38 = vmul.f32 %v3964_v31, %v3964_v31 }
 0x195   :  { %v1034_v25 = vpop.f32.mrb[65].mxu0  ;;  %v1321_v46 = vpop.f32.mrb[65].mxu1  ;;  %v1704_v51 = vadd.f32 %v1703_v18, %v1702_v45  ;;  %v1509_v18 = vsel %vm773_vm0, %v3964_v31, 0.0 }
 0x196   :  { %v3978_v43 = vadd.f32 %v1321_v46, %v1032_v17  ;;  %v1035_v14 = vpop.f32.mrb[66].mxu0  ;;  %v3016_v61 = vpop.f32.mrb[66].mxu1  ;;  %v1612_v25 = vmul.f32 %v3957_v2, %v3957_v2  ;;  %v1507_v17 = vsel %vm773_vm0, %v3957_v2, 0.0 }
 0x197   :  { %v1037_v23 = vpop.f32.mrb[67].mxu0  ;;  %v1324_v26 = vpop.f32.mrb[67].mxu1  ;;  %v1508_v11 = vadd.f32 %v1507_v17, %v1506_v55  ;;  %v1707_v55 = vsel %vm773_vm0, %v1613_v38, 0.0 }
 0x198   :  { %5958 = vst [vmem:[#allocation16_spill] sm:$0xff] %v3978_v43  ;;  %v3982_v59 = vadd.f32 %v1324_v26, %v1035_v14  ;;  %v1705_v14 = vsel %vm773_vm0, %v1612_v25, 0.0  ;;  %v1511_v25 = vsel %vm773_vm0, %v3978_v43, 0.0 }
 0x199   :  { %v1706_v45 = vadd.f32 %v1705_v14, %v1704_v51 }
 0x19a   :  { %5959 = vst [vmem:[#allocation17_spill] sm:$0xff] %v3982_v59  ;;  %v1615_v51 = vmul.f32 %v3982_v59, %v3982_v59  ;;  %v1513_v38 = vsel %vm773_vm0, %v3982_v59, 0.0 }
 0x19c   :  { %v1040_v49 = vpop.f32.mrb[68].mxu0  ;;  %v3019_v15 = vpop.f32.mrb[68].mxu1 }
 0x19d   :  { %v3989_v46 = vadd.f32 %v3015_v39, %v1040_v49  ;;  %v1042_v1 = vpop.f32.mrb[69].mxu0  ;;  %v1337_v23 = vpop.f32.mrb[69].mxu1  ;;  %v1510_v39 = vadd.f32 %v1509_v18, %v1508_v11  ;;  %v1708_v49 = vadd.f32 %v1707_v55, %v1706_v45 }
 0x19e   :  { %v1043_v37 = vpop.f32.mrb[70].mxu0  ;;  %v3020_v27 = vpop.f32.mrb[70].mxu1  ;;  %v1614_v1 = vmul.f32 %v3978_v43, %v3978_v43 }
 0x19f   :  { %5960 = vst [vmem:[#allocation18_spill] sm:$0xff] %v3989_v46  ;;  %v3994_v30 = vadd.f32 %v3016_v61, %v1043_v37  ;;  %v1045_v21 = vpop.f32.mrb[71].mxu0  ;;  %v1340_v26 = vpop.f32.mrb[71].mxu1  ;;  %v1512_v31 = vadd.f32 %v1511_v25, %v1510_v39  ;;  %v1616_v45 = vmul.f32 %v3989_v46, %v3989_v46 }
 0x1a0   :  { %v1709_v61 = vsel %vm773_vm0, %v1614_v1, 0.0 }
 0x1a1   :  { %5961 = vst [vmem:[#allocation19_spill] sm:$0xff] %v3994_v30  ;;  %v1710_v22 = vadd.f32 %v1709_v61, %v1708_v49  ;;  %v1514_v39 = vadd.f32 %v1513_v38, %v1512_v31  ;;  %v1713_v25 = vsel %vm773_vm0, %v1616_v45, 0.0 }
 0x1a4   :  { %v1048_v17 = vpop.f32.mrb[72].mxu0  ;;  %v4003_v2 = vpop.f32.mrb[72].mxu1 }
 0x1a5   :  { %v4008_v37 = vadd.f32 %v1337_v23, %v1048_v17  ;;  %v1050_v14 = vpop.f32.mrb[73].mxu0  ;;  %v1353_v21 = vpop.f32.mrb[73].mxu1  ;;  %v1711_v23 = vsel %vm773_vm0, %v1615_v51, 0.0  ;;  %v1515_v17 = vsel %vm773_vm0, %v3989_v46, 0.0 }
 0x1a6   :  { %v1051_v11 = vpop.f32.mrb[74].mxu0  ;;  %v4010_v18 = vpop.f32.mrb[74].mxu1  ;;  %v1617_v14 = vmul.f32 %v3994_v30, %v3994_v30  ;;  %v1712_v59 = vadd.f32 %v1711_v23, %v1710_v22  ;;  %v1516_v7 = vadd.f32 %v1515_v17, %v1514_v39 }
 0x1a7   :  { %5962 = vst [vmem:[#allocation20_spill] sm:$0xff] %v4008_v37  ;;  %v4016_v55 = vadd.f32 %v1340_v26, %v1051_v11  ;;  %v1053_v1 = vpop.f32.mrb[75].mxu0  ;;  %v1356_v43 = vpop.f32.mrb[75].mxu1  ;;  %v1517_v26 = vsel %vm773_vm0, %v3994_v30, 0.0  ;;  %v1618_v49 = vmul.f32 %v4008_v37, %v4008_v37 }
 0x1a8   :  { %v1714_v11 = vadd.f32 %v1713_v25, %v1712_v59  ;;  %v1715_v22 = vsel %vm773_vm0, %v1617_v14, 0.0  ;;  %v1519_v1 = vsel %vm773_vm0, %v4008_v37, 0.0  ;;  %v1518_v30 = vadd.f32 %v1517_v26, %v1516_v7 }
 0x1a9   :  { %5963 = vst [vmem:[#allocation21_spill] sm:$0xff] %v4016_v55 }
 0x1aa   :  { %v1716_v59 = vadd.f32 %v1715_v22, %v1714_v11  ;;  %v1520_v25 = vadd.f32 %v1519_v1, %v1518_v30 }
 0x1ac   :  { %v1056_v47 = vpop.f32.mrb[76].mxu0  ;;  %v4024_v63 = vpop.f32.mrb[76].mxu1 }
 0x1ad   :  { %v4030_v61 = vadd.f32 %v3019_v15, %v1056_v47  ;;  %v1058_v51 = vpop.f32.mrb[77].mxu0  ;;  %v4032_v31 = vpop.f32.mrb[77].mxu1  ;;  %v1717_v47 = vsel %vm773_vm0, %v1618_v49, 0.0  ;;  %v1619_v15 = vmul.f32 %v4016_v55, %v4016_v55 }
 0x1ae   :  { %v1059_v38 = vpop.f32.mrb[78].mxu0  ;;  %v4034_v45 = vpop.f32.mrb[78].mxu1  ;;  %v1521_v51 = vsel %vm773_vm0, %v4016_v55, 0.0  ;;  %v1718_v37 = vadd.f32 %v1717_v47, %v1716_v59 }
 0x1af   :  { %5964 = vst [vmem:[#allocation22_spill] sm:$0xff] %v4030_v61  ;;  %v4039_v23 = vadd.f32 %v3020_v27, %v1059_v38  ;;  %v1061_v17 = vpop.f32.mrb[79].mxu0  ;;  %v4041_v39 = vpop.f32.mrb[79].mxu1  ;;  %v1620_v14 = vmul.f32 %v4030_v61, %v4030_v61  ;;  %v1523_v7 = vsel %vm773_vm0, %v4030_v61, 0.0  ;;  %v1522_v22 = vadd.f32 %v1521_v51, %v1520_v25 }
 0x1b0   :  { %v1719_v17 = vsel %vm773_vm0, %v1619_v15, 0.0 }
 0x1b1   :  { %v1721_v59 = vsel %vm773_vm0, %v1620_v14, 0.0  ;;  %v1621_v15 = vmul.f32 %v4039_v23, %v4039_v23 }
 0x1b4   :  { %v1064_v27 = vpop.f32.mrb[80].mxu0  ;;  %v3031_v38 = vpop.f32.mrb[80].mxu1 }
 0x1b5   :  { %v4053_v26 = vadd.f32 %v1353_v21, %v1064_v27  ;;  %v4056_v49 = vadd.f32 %v3031_v38, %v3671_v60  ;;  %v1066_v30 = vpop.f32.mrb[81].mxu0  ;;  %v1385_v11 = vpop.f32.mrb[81].mxu1  ;;  %v1720_v21 = vadd.f32 %v1719_v17, %v1718_v37  ;;  %v1524_v27 = vadd.f32 %v1523_v7, %v1522_v22 }
 0x1b6   :  { %v4059_v1 = vadd.f32 %v1385_v11, %v3665_v52  ;;  %v1067_v55 = vpop.f32.mrb[82].mxu0  ;;  %v3032_v47 = vpop.f32.mrb[82].mxu1  ;;  %v1525_v60 = vsel %vm773_vm0, %v4039_v23, 0.0 }
 0x1b7   :  { %v1069_v46 = vpop.f32.mrb[83].mxu0  ;;  %v1388_v61 = vpop.f32.mrb[83].mxu1  ;;  %v4064_v50 = vadd.f32 %v1356_v43, %v1067_v55  ;;  %v1622_v52 = vmul.f32 %v4053_v26, %v4053_v26  ;;  %v4071_v25 = vadd.f32 %v3032_v47, %v3673_v0  ;;  %v1722_v14 = vadd.f32 %v1721_v59, %v1720_v21 }
 0x1b8   :  { %v4074_v51 = vadd.f32 %v1388_v61, %v3669_v56  ;;  %v1723_v46 = vsel %vm773_vm0, %v1621_v15, 0.0  ;;  %v1527_v37 = vsel %vm773_vm0, %v4053_v26, 0.0  ;;  %v1526_v43 = vadd.f32 %v1525_v60, %v1524_v27 }
 0x1b9   :  { %v1725_v17 = vsel %vm773_vm0, %v1622_v52, 0.0  ;;  %v1623_v7 = vmul.f32 %v4064_v50, %v4064_v50  ;;  %v1724_v11 = vadd.f32 %v1723_v46, %v1722_v14  ;;  %v1529_v21 = vsel %vm773_vm0, %v4064_v50, 0.0 }
 0x1ba   :  { %v1528_v22 = vadd.f32 %v1527_v37, %v1526_v43 }
 0x1bb   :  { %v1726_v52 = vadd.f32 %v1725_v17, %v1724_v11  ;;  %v1727_v14 = vsel %vm773_vm0, %v1623_v7, 0.0 }
 0x1bc   :  { %v1072_v55 = vpop.f32.mrb[84].mxu0  ;;  %v3035_v38 = vpop.f32.mrb[84].mxu1  ;;  %v1530_v43 = vadd.f32 %v1529_v21, %v1528_v22 }
 0x1bd   :  { %v4083_v0 = vadd.f32 %v4003_v2, %v1072_v55  ;;  %v4086_v56 = vadd.f32 %v3035_v38, %v3685_v12  ;;  %v1074_v61 = vpop.f32.mrb[85].mxu0  ;;  %v1401_v30 = vpop.f32.mrb[85].mxu1  ;;  %v1728_v17 = vadd.f32 %v1727_v14, %v1726_v52 }
 0x1be   :  { %v4089_v47 = vadd.f32 %v1401_v30, %v3677_v4  ;;  %v1075_v59 = vpop.f32.mrb[86].mxu0  ;;  %v3036_v15 = vpop.f32.mrb[86].mxu1 }
 0x1bf   :  { %v1624_v27 = vmul.f32 %v4083_v0, %v4083_v0  ;;  %v1077_v2 = vpop.f32.mrb[87].mxu0  ;;  %v1404_v60 = vpop.f32.mrb[87].mxu1  ;;  %v4096_v12 = vadd.f32 %v4010_v18, %v1075_v59  ;;  %v1531_v4 = vsel %vm773_vm0, %v4083_v0, 0.0  ;;  %v4102_v46 = vadd.f32 %v3036_v15, %v3689_v16 }
 0x1c0   :  { %v4105_v37 = vadd.f32 %v1404_v60, %v3681_v8  ;;  %v1532_v18 = vadd.f32 %v1531_v4, %v1530_v43 }
 0x1c1   :  { %v1729_v55 = vsel %vm773_vm0, %v1624_v27, 0.0  ;;  %v1625_v38 = vmul.f32 %v4096_v12, %v4096_v12  ;;  %v1533_v7 = vsel %vm773_vm0, %v4096_v12, 0.0 }
 0x1c2   :  { %v1730_v59 = vadd.f32 %v1729_v55, %v1728_v17 }
 0x1c3   :  { %v1731_v2 = vsel %vm773_vm0, %v1625_v38, 0.0 }
 0x1c4   :  { %v1080_v61 = vpop.f32.mrb[88].mxu0  ;;  %v3039_v30 = vpop.f32.mrb[88].mxu1  ;;  %v1732_v38 = vadd.f32 %v1731_v2, %v1730_v59 }
 0x1c5   :  { %v4113_v11 = vadd.f32 %v4032_v31, %v1080_v61  ;;  %v4116_v16 = vadd.f32 %v3039_v30, %v3701_v28  ;;  %v1082_v8 = vpop.f32.mrb[89].mxu0  ;;  %v1417_v22 = vpop.f32.mrb[89].mxu1  ;;  %v1534_v28 = vadd.f32 %v1533_v7, %v1532_v18 }
 0x1c6   :  { %v4119_v15 = vadd.f32 %v1417_v22, %v3693_v20  ;;  %v1083_v21 = vpop.f32.mrb[90].mxu0  ;;  %v3040_v27 = vpop.f32.mrb[90].mxu1 }
 0x1c7   :  { %v1535_v60 = vsel %vm773_vm0, %v4113_v11, 0.0  ;;  %v1626_v31 = vmul.f32 %v4113_v11, %v4113_v11  ;;  %v1085_v52 = vpop.f32.mrb[91].mxu0  ;;  %v1420_v14 = vpop.f32.mrb[91].mxu1  ;;  %v4127_v4 = vadd.f32 %v4041_v39, %v1083_v21  ;;  %v4131_v20 = vadd.f32 %v3040_v27, %v3705_v32 }
 0x1c8   :  { %5965 = vst [vmem:[#allocation23_spill] sm:$0xff] %v4119_v15  ;;  %v4134_v55 = vadd.f32 %v1420_v14, %v3697_v24  ;;  %v1536_v17 = vadd.f32 %v1535_v60, %v1534_v28 }
 0x1c9   :  { %v1733_v43 = vsel %vm773_vm0, %v1626_v31, 0.0  ;;  %v1627_v61 = vmul.f32 %v4127_v4, %v4127_v4  ;;  %v1537_v30 = vsel %vm773_vm0, %v4127_v4, 0.0 }
 0x1ca   :  { %5966 = vst [vmem:[#allocation24_spill] sm:$0xff] %v4134_v55  ;;  %v1734_v18 = vadd.f32 %v1733_v43, %v1732_v38  ;;  %v1538_v21 = vadd.f32 %v1537_v30, %v1536_v17 }
 0x1cb   :  { %v1735_v8 = vsel %vm773_vm0, %v1627_v61, 0.0  ;;  %v1630_v61 = vmul.f32 %v4059_v1, %v4059_v1 }
 0x1cc   :  { %v1088_v7 = vpop.f32.mrb[92].mxu0  ;;  %v3043_v39 = vpop.f32.mrb[92].mxu1  ;;  %v1736_v28 = vadd.f32 %v1735_v8, %v1734_v18 }
 0x1cd   :  { %v4142_v22 = vadd.f32 %v4024_v63, %v1088_v7  ;;  %v4145_v32 = vadd.f32 %v3043_v39, %v3717_v44  ;;  %v1090_v24 = vpop.f32.mrb[93].mxu0  ;;  %v1433_v59 = vpop.f32.mrb[93].mxu1  ;;  %v1543_v39 = vsel %vm773_vm0, %v4059_v1, 0.0 }
 0x1ce   :  { %v4148_v27 = vadd.f32 %v1433_v59, %v3709_v36  ;;  %v1091_v2 = vpop.f32.mrb[94].mxu0  ;;  %v3044_v60 = vpop.f32.mrb[94].mxu1  ;;  %v1632_v59 = vmul.f32 %v4056_v49, %v4056_v49 }
 0x1cf   :  { %v1539_v31 = vsel %vm773_vm0, %v4142_v22, 0.0  ;;  %v1628_v52 = vmul.f32 %v4142_v22, %v4142_v22  ;;  %v1093_v14 = vpop.f32.mrb[95].mxu0  ;;  %v1436_v63 = vpop.f32.mrb[95].mxu1  ;;  %v4155_v44 = vadd.f32 %v4034_v45, %v1091_v2  ;;  %v4159_v36 = vadd.f32 %v3044_v60, %v3721_v48 }
 0x1d0   :  { %v1540_v43 = vadd.f32 %v1539_v31, %v1538_v21  ;;  %v4162_v17 = vadd.f32 %v1436_v63, %v3713_v40  ;;  %v1631_v48 = vmul.f32 %v4074_v51, %v4074_v51  ;;  %v1741_v21 = vsel %vm773_vm0, %v1630_v61, 0.0 }
 0x1d1   :  { %v1737_v38 = vsel %vm773_vm0, %v1628_v52, 0.0  ;;  %v1541_v7 = vsel %vm773_vm0, %v4155_v44, 0.0  ;;  %v1629_v18 = vmul.f32 %v4155_v44, %v4155_v44  ;;  %v1545_v2 = vsel %vm773_vm0, %v4074_v51, 0.0 }
 0x1d2   :  { %v1738_v30 = vadd.f32 %v1737_v38, %v1736_v28  ;;  %v1542_v45 = vadd.f32 %v1541_v7, %v1540_v43  ;;  %v1547_v52 = vsel %vm773_vm0, %v4056_v49, 0.0  ;;  %v1633_v14 = vmul.f32 %v4071_v25, %v4071_v25 }
 0x1d3   :  { %v1739_v40 = vsel %vm773_vm0, %v1629_v18, 0.0  ;;  %v1743_v63 = vsel %vm773_vm0, %v1631_v48, 0.0  ;;  %v1745_v38 = vsel %vm773_vm0, %v1632_v59, 0.0  ;;  %v1549_v61 = vsel %vm773_vm0, %v4071_v25, 0.0 }
 0x1d4   :  { %v1544_v8 = vadd.f32 %v1543_v39, %v1542_v45  ;;  %v1740_v24 = vadd.f32 %v1739_v40, %v1738_v30  ;;  %v1634_v30 = vmul.f32 %v4089_v47, %v4089_v47  ;;  %v1747_v45 = vsel %vm773_vm0, %v1633_v14, 0.0 }
 0x1d5   :  { %v1551_v39 = vsel %vm773_vm0, %v4089_v47, 0.0  ;;  %v1635_v48 = vmul.f32 %v4105_v37, %v4105_v37 }
 0x1d6   :  { %v1546_v60 = vadd.f32 %v1545_v2, %v1544_v8  ;;  %v1742_v31 = vadd.f32 %v1741_v21, %v1740_v24  ;;  %v1636_v24 = vmul.f32 %v4086_v56, %v4086_v56  ;;  %v1749_v59 = vsel %vm773_vm0, %v1634_v30, 0.0 }
 0x1d7   :  { %v1553_v21 = vsel %vm773_vm0, %v4105_v37, 0.0  ;;  %v1751_v14 = vsel %vm773_vm0, %v1635_v48, 0.0 }
 0x1d8   :  { %v1548_v28 = vadd.f32 %v1547_v52, %v1546_v60  ;;  %v1744_v43 = vadd.f32 %v1743_v63, %v1742_v31  ;;  %v1555_v31 = vsel %vm773_vm0, %v4086_v56, 0.0  ;;  %v1637_v52 = vmul.f32 %v4102_v46, %v4102_v46 }
 0x1da   :  { %v1550_v7 = vadd.f32 %v1549_v61, %v1548_v28  ;;  %v1746_v18 = vadd.f32 %v1745_v38, %v1744_v43  ;;  %v1753_v43 = vsel %vm773_vm0, %v1636_v24, 0.0  ;;  %v1557_v38 = vsel %vm773_vm0, %v4102_v46, 0.0 }
 0x1db   :  { %v1638_v61 = vmul.f32 %v4119_v15, %v4119_v15 }
 0x1dc   :  { %v1552_v40 = vadd.f32 %v1551_v39, %v1550_v7  ;;  %v1748_v8 = vadd.f32 %v1747_v45, %v1746_v18  ;;  %v1755_v18 = vsel %vm773_vm0, %v1637_v52, 0.0  ;;  %v1559_v45 = vsel %vm773_vm0, %v4119_v15, 0.0 }
 0x1dd   :  { %v1639_v39 = vmul.f32 %v4134_v55, %v4134_v55  ;;  %v1757_v24 = vsel %vm773_vm0, %v1638_v61, 0.0 }
 0x1de   :  { %v1554_v2 = vadd.f32 %v1553_v21, %v1552_v40  ;;  %v1750_v60 = vadd.f32 %v1749_v59, %v1748_v8  ;;  %v1640_v8 = vmul.f32 %v4116_v16, %v4116_v16  ;;  %v1561_v59 = vsel %vm773_vm0, %v4134_v55, 0.0 }
 0x1df   :  { %v1759_v52 = vsel %vm773_vm0, %v1639_v39, 0.0 }
 0x1e0   :  { %v1752_v63 = vadd.f32 %v1751_v14, %v1750_v60  ;;  %v1556_v28 = vadd.f32 %v1555_v31, %v1554_v2  ;;  %v1563_v60 = vsel %vm773_vm0, %v4116_v16, 0.0  ;;  %v1641_v31 = vmul.f32 %v4131_v20, %v4131_v20 }
 0x1e2   :  { %v1558_v30 = vadd.f32 %v1557_v38, %v1556_v28  ;;  %v1754_v7 = vadd.f32 %v1753_v43, %v1752_v63  ;;  %v1761_v28 = vsel %vm773_vm0, %v1640_v8, 0.0  ;;  %v1565_v43 = vsel %vm773_vm0, %v4131_v20, 0.0 }
 0x1e3   :  { %v1642_v38 = vmul.f32 %v4148_v27, %v4148_v27 }
 0x1e4   :  { %v1560_v48 = vadd.f32 %v1559_v45, %v1558_v30  ;;  %v1756_v40 = vadd.f32 %v1755_v18, %v1754_v7  ;;  %v1763_v7 = vsel %vm773_vm0, %v1641_v31, 0.0  ;;  %v1567_v18 = vsel %vm773_vm0, %v4148_v27, 0.0 }
 0x1e5   :  { %v1643_v45 = vmul.f32 %v4162_v17, %v4162_v17  ;;  %v1765_v8 = vsel %vm773_vm0, %v1642_v38, 0.0 }
 0x1e6   :  { %v1562_v21 = vadd.f32 %v1561_v59, %v1560_v48  ;;  %v1758_v2 = vadd.f32 %v1757_v24, %v1756_v40  ;;  %v1644_v40 = vmul.f32 %v4145_v32, %v4145_v32  ;;  %v1569_v24 = vsel %vm773_vm0, %v4162_v17, 0.0 }
 0x1e7   :  { %v1767_v31 = vsel %vm773_vm0, %v1643_v45, 0.0 }
 0x1e8   :  { %v1564_v14 = vadd.f32 %v1563_v60, %v1562_v21  ;;  %v1760_v63 = vadd.f32 %v1759_v52, %v1758_v2  ;;  %v1571_v2 = vsel %vm773_vm0, %v4145_v32, 0.0  ;;  %v1645_v60 = vmul.f32 %v4159_v36, %v4159_v36 }
 0x1ea   :  { %v1566_v61 = vadd.f32 %v1565_v43, %v1564_v14  ;;  %v1762_v30 = vadd.f32 %v1761_v28, %v1760_v63  ;;  %v1769_v63 = vsel %vm773_vm0, %v1644_v40, 0.0  ;;  %v1573_v28 = vsel %vm773_vm0, %v4159_v36, 0.0 }
 0x1eb   :  { %v1790_v40 = vlaneseq }
 0x1ec   :  { %v1568_v39 = vadd.f32 %v1567_v18, %v1566_v61  ;;  %v1764_v48 = vadd.f32 %v1763_v7, %v1762_v30  ;;  %v1771_v61 = vsel %vm773_vm0, %v1645_v60, 0.0 }
 0x1ee   :  { %v1570_v59 = vadd.f32 %v1569_v24, %v1568_v39  ;;  %v1766_v21 = vadd.f32 %v1765_v8, %v1764_v48 }
 0x1f0   :  { %v1572_v52 = vadd.f32 %v1571_v2, %v1570_v59  ;;  %v1768_v14 = vadd.f32 %v1767_v31, %v1766_v21 }
 0x1f2   :  { %v1574_v43 = vadd.f32 %v1573_v28, %v1572_v52  ;;  %v1770_v38 = vadd.f32 %v1769_v63, %v1768_v14  ;;  %v4253_v14 = vshrl.u32 %v1790_v40, 7  ;;  %v4258_v28 = vld [vmem:[%s5832_s4] sm:$0xff]   ;;  %v4355_v40 = vld [vmem:[%s5832_s4 + $0x78] sm:$0xff]  }
 0x1f3   :  { %5967 = vst [vmem:[#allocation25_spill] sm:$0xff] %v4258_v28  ;;  %5982 = vst [vmem:[#allocation40_spill] sm:$0xff] %v4355_v40  ;;  %v4428_v40 = vld [vmem:[%s5832_s4 + $0xc8] sm:$0xff]   ;;  %v6018_v28 = vld [vmem:[#allocation14_spill] sm:$0xff] }
 0x1f4   :  { %v1575_v30 = vrot.slane %v1574_v43, 4  ;;  %v1772_v7 = vadd.f32 %v1771_v61, %v1770_v38  ;;  %v4273_v38 = vld [vmem:[%s5832_s4 + $0x18] sm:$0xff]   ;;  %v4278_v61 = vld [vmem:[%s5832_s4 + $0x20] sm:$0xff]   ;;  %5992 = vst [vmem:[#allocation50_spill] sm:$0xff] %v4428_v40 }
 0x1f5   :  { %5970 = vst [vmem:[#allocation28_spill] sm:$0xff] %v4273_v38  ;;  %5971 = vst [vmem:[#allocation29_spill] sm:$0xff] %v4278_v61  ;;  %v4437_v61 = vld [vmem:[%s5832_s4 + $0xd0] sm:$0xff]   ;;  %v6012_v38 = vld [vmem:[#allocation13_spill] sm:$0xff] }
 0x1f6   :  { %v1576_v18 = vadd.f32 %v1575_v30, %v1574_v43  ;;  %v1773_v39 = vrot.slane %v1772_v7, 4  ;;  %v4360_v30 = vld [vmem:[%s5832_s4 + $0x80] sm:$0xff]   ;;  %5993 = vst [vmem:[#allocation51_spill] sm:$0xff] %v4437_v61  ;;  %v6003_v61 = vld [vmem:[#allocation7_spill] sm:$0xff] }
 0x1f7   :  { %5983 = vst [vmem:[#allocation41_spill] sm:$0xff] %v4360_v30  ;;  %v4459_v30 = vld [vmem:[%s5832_s4 + $0xe8] sm:$0xff]  }
 0x1f8   :  { %v1577_v48 = vrot.slane %v1576_v18, 2  ;;  %v1774_v8 = vadd.f32 %v1773_v39, %v1772_v7  ;;  %v4286_v39 = vld [vmem:[%s5832_s4 + $0x28] sm:$0xff]   ;;  %5996 = vst [vmem:[#allocation54_spill] sm:$0xff] %v4459_v30  ;;  %v6006_v30 = vld [vmem:[#allocation9_spill] sm:$0xff] }
 0x1f9   :  { %5972 = vst [vmem:[#allocation30_spill] sm:$0xff] %v4286_v39  ;;  %v4450_v39 = vld [vmem:[%s5832_s4 + $0xe0] sm:$0xff]  }
 0x1fa   :  { %v1578_v24 = vadd.f32 %v1577_v48, %v1576_v18  ;;  %v1775_v55 = vrot.slane %v1774_v8, 2  ;;  %v4291_v48 = vld [vmem:[%s5832_s4 + $0x30] sm:$0xff]   ;;  %5995 = vst [vmem:[#allocation53_spill] sm:$0xff] %v4450_v39  ;;  %v6007_v39 = vld [vmem:[#allocation11_spill] sm:$0xff] }
 0x1fb   :  { %5973 = vst [vmem:[#allocation31_spill] sm:$0xff] %v4291_v48  ;;  %v4346_v18 = vld [vmem:[%s5832_s4 + $0x70] sm:$0xff]   ;;  %v4469_v48 = vld [vmem:[%s5834_s3] sm:$0x1] }
 0x1fc   :  { %v1579_v45 = vrot.slane %v1578_v24, 1  ;;  %v1776_v59 = vadd.f32 %v1775_v55, %v1774_v8  ;;  %v4263_v55 = vld [vmem:[%s5832_s4 + $0x8] sm:$0xff]   ;;  %5981 = vst [vmem:[#allocation39_spill] sm:$0xff] %v4346_v18  ;;  %v4414_v18 = vld [vmem:[%s5832_s4 + $0xb8] sm:$0xff]  }
 0x1fd   :  { %5968 = vst [vmem:[#allocation26_spill] sm:$0xff] %v4263_v55  ;;  %v4397_v8 = vld [vmem:[%s5832_s4 + $0xa8] sm:$0xff]   ;;  %5990 = vst [vmem:[#allocation48_spill] sm:$0xff] %v4414_v18  ;;  %v6016_v55 = vld [vmem:[#allocation12_spill] sm:$0xff] }
 0x1fe   :  { %v1580_v21 = vadd.f32 %v1579_v45, %v1578_v24  ;;  %v1777_v2 = vrot.slane %v1776_v59, 1  ;;  %v4332_v24 = vld [vmem:[%s5832_s4 + $0x60] sm:$0xff]   ;;  %v4383_v45 = vld [vmem:[%s5832_s4 + $0x98] sm:$0xff]   ;;  %5988 = vst [vmem:[#allocation46_spill] sm:$0xff] %v4397_v8 }
 0x1ff   :  { %5979 = vst [vmem:[#allocation37_spill] sm:$0xff] %v4332_v24  ;;  %5986 = vst [vmem:[#allocation44_spill] sm:$0xff] %v4383_v45  ;;  %v4445_v24 = vld [vmem:[%s5832_s4 + $0xd8] sm:$0xff]  }
 0x200   :  { %v4249_v31 = vmul.f32 0.001953125, %v1580_v21  ;;  %v1778_v15 = vadd.f32 %v1777_v2, %v1776_v59  ;;  %v4299_v59 = vld [vmem:[%s5832_s4 + $0x38] sm:$0xff]   ;;  %v4304_v21 = vld [vmem:[%s5832_s4 + $0x40] sm:$0xff]   ;;  %v4369_v2 = vld [vmem:[%s5832_s4 + $0x88] sm:$0xff]   ;;  %5994 = vst [vmem:[#allocation52_spill] sm:$0xff] %v4445_v24 }
 0x201   :  { %5974 = vst [vmem:[#allocation32_spill] sm:$0xff] %v4299_v59  ;;  %5975 = vst [vmem:[#allocation33_spill] sm:$0xff] %v4304_v21  ;;  %v4423_v59 = vld [vmem:[%s5832_s4 + $0xc0] sm:$0xff]   ;;  %v6002_v8 = vld [vmem:[#allocation5_spill] sm:$0xff] }
 0x202   :  { %v1779_v52 = vmul.f32 0.001953125, %v1778_v15  ;;  %v1780_v60 = vmul.f32 %v4249_v31, %v4249_v31  ;;  %v4268_v15 = vld [vmem:[%s5832_s4 + $0x10] sm:$0xff]   ;;  %5984 = vst [vmem:[#allocation42_spill] sm:$0xff] %v4369_v2  ;;  %5991 = vst [vmem:[#allocation49_spill] sm:$0xff] %v4423_v59  ;;  %v5998_v2 = vsub.s32 0, %v4253_v14  ;;  %v4483_v59 = vld [vmem:[%s5832_s4 + $0xf8] sm:$0xff]  }
 0x203   :  { %5969 = vst [vmem:[#allocation27_spill] sm:$0xff] %v4268_v15  ;;  %5999 = vst [vmem:[#allocation56_spill] sm:$0xff] %v4483_v59  ;;  %v6004_v59 = vld [vmem:[#allocation4_spill] sm:$0xff]  ;;  %v6014_v15 = vld [vmem:[#allocation15_spill] sm:$0xff] }
 0x204   :  { %v1781_v63 = vsub.f32 %v1779_v52, %v1780_v60  ;;  %v4327_v60 = vld [vmem:[%s5832_s4 + $0x58] sm:$0xff]   ;;  %v4341_v52 = vld [vmem:[%s5832_s4 + $0x68] sm:$0xff]   ;;  %v6008_v24 = vld [vmem:[#allocation8_spill] sm:$0xff] }
 0x205   :  { %5978 = vst [vmem:[#allocation36_spill] sm:$0xff] %v4327_v60  ;;  %5980 = vst [vmem:[#allocation38_spill] sm:$0xff] %v4341_v52  ;;  %v4388_v60 = vld [vmem:[%s5832_s4 + $0xa0] sm:$0xff]   ;;  %v4402_v52 = vld [vmem:[%s5832_s4 + $0xb0] sm:$0xff]  }
 0x206   :  { %v1783_v43 = vadd.f32 1e-05, %v1781_v63  ;;  %v4313_v63 = vld [vmem:[%s5832_s4 + $0x48] sm:$0xff]   ;;  %5987 = vst [vmem:[#allocation45_spill] sm:$0xff] %v4388_v60  ;;  %5989 = vst [vmem:[#allocation47_spill] sm:$0xff] %v4402_v52  ;;  %v6010_v60 = vld [vmem:[#allocation10_spill] sm:$0xff] }
 0x207   :  { %5976 = vst [vmem:[#allocation34_spill] sm:$0xff] %v4313_v63  ;;  %v4374_v63 = vld [vmem:[%s5832_s4 + $0x90] sm:$0xff]  }
 0x208   :  { %3224 = vrsqrt.f32 %v1783_v43  ;;  %v4318_v43 = vld [vmem:[%s5832_s4 + $0x50] sm:$0xff]   ;;  %5985 = vst [vmem:[#allocation43_spill] sm:$0xff] %v4374_v63 }
 0x209   :  { %5977 = vst [vmem:[#allocation35_spill] sm:$0xff] %v4318_v43  ;;  %v1782_v43 = vld [vmem:[%s5833_s2] sm:$0x1]  ;;  %v4464_v63 = vld [vmem:[%s5832_s4 + $0xf0] sm:$0xff]  }
 0x20a   :  { %5997 = vst [vmem:[#allocation55_spill] sm:$0xff] %v4464_v63  ;;  %v6005_v63 = vld [vmem:[#allocation6_spill] sm:$0xff] }
 0x212   :  { %v3225_v7 = vpop.eup %3224 }
 0x213   :  { %v1785_v45 = vmul.f32 %v3225_v7, %v1782_v43 }
 0x215   :  { %v4472_v7 = vmul.f32 %v1785_v45, %v4249_v31  ;;  %v4476_v43 = vrot.slane %v1785_v45, %v5998_v2  ;;  %v6000_v31 = vld [vmem:[#allocation2_spill] sm:$0xff]  ;;  %v6001_v2 = vld [vmem:[#allocation3_spill] sm:$0xff] }
 0x217   :  { %v4497_v18 = vmul.f32 %v4476_v43, %v3728_v62  ;;  %v4503_v45 = vmul.f32 %v4476_v43, %v3737_v13  ;;  %v4507_v21 = vmul.f32 %v4476_v43, %v3725_v57  ;;  %v4511_v40 = vmul.f32 %v4476_v43, %v3732_v5 }
 0x218   :  { %v4515_v62 = vmul.f32 %v4476_v43, %v3762_v42  ;;  %v4519_v52 = vmul.f32 %v4476_v43, %v3775_v3  ;;  %v4523_v13 = vmul.f32 %v4476_v43, %v3756_v33  ;;  %v4527_v57 = vmul.f32 %v4476_v43, %v3772_v6 }
 0x219   :  { %v4531_v5 = vmul.f32 %v4476_v43, %v3797_v41  ;;  %v4535_v42 = vmul.f32 %v4476_v43, %v3810_v19  ;;  %v4539_v3 = vmul.f32 %v4476_v43, %v3792_v29  ;;  %v4543_v33 = vmul.f32 %v4476_v43, %v3803_v58 }
 0x21a   :  { %v4547_v6 = vmul.f32 %v4476_v43, %v3833_v54  ;;  %v4551_v41 = vmul.f32 %v4476_v43, %v3846_v35  ;;  %v4555_v19 = vmul.f32 %v4476_v43, %v3828_v34  ;;  %v4559_v29 = vmul.f32 %v4476_v43, %v3839_v9 }
 0x21b   :  { %v4563_v58 = vmul.f32 %v4476_v43, %v3869_v10  ;;  %v4567_v54 = vmul.f32 %v4476_v43, %v3882_v53  ;;  %v4571_v35 = vmul.f32 %v4476_v43, %v6000_v31  ;;  %v4575_v34 = vmul.f32 %v4476_v43, %v6001_v2 }
 0x21c   :  { %v4579_v9 = vmul.f32 %v4476_v43, %v6002_v8  ;;  %v4583_v10 = vmul.f32 %v4476_v43, %v6003_v61  ;;  %v4587_v53 = vmul.f32 %v4476_v43, %v6004_v59  ;;  %v4591_v31 = vmul.f32 %v4476_v43, %v6005_v63 }
 0x21d   :  { %v4595_v2 = vmul.f32 %v4476_v43, %v6006_v30  ;;  %v4599_v8 = vmul.f32 %v4476_v43, %v6007_v39  ;;  %v4603_v61 = vmul.f32 %v4476_v43, %v6008_v24  ;;  %v4607_v59 = vmul.f32 %v4476_v43, %v6010_v60 }
 0x21e   :  { %v4611_v63 = vmul.f32 %v4476_v43, %v6012_v38  ;;  %v4615_v30 = vmul.f32 %v4476_v43, %v6014_v15  ;;  %v4619_v39 = vmul.f32 %v4476_v43, %v6016_v55  ;;  %v4623_v24 = vmul.f32 %v4476_v43, %v6018_v28 }
 0x21f   :  { %6009 = vst [vmem:[#allocation2_spill] sm:$0xff] %v4603_v61  ;;  %6011 = vst [vmem:[#allocation3_spill] sm:$0xff] %v4607_v59  ;;  %v6020_v61 = vld [vmem:[#allocation16_spill] sm:$0xff]  ;;  %v6022_v59 = vld [vmem:[#allocation17_spill] sm:$0xff] }
 0x220   :  { %6013 = vst [vmem:[#allocation5_spill] sm:$0xff] %v4611_v63  ;;  %6015 = vst [vmem:[#allocation7_spill] sm:$0xff] %v4615_v30  ;;  %v4627_v60 = vmul.f32 %v4476_v43, %v6020_v61  ;;  %v4631_v38 = vmul.f32 %v4476_v43, %v6022_v59  ;;  %v6023_v63 = vld [vmem:[#allocation18_spill] sm:$0xff]  ;;  %v6024_v30 = vld [vmem:[#allocation19_spill] sm:$0xff] }
 0x221   :  { %6017 = vst [vmem:[#allocation4_spill] sm:$0xff] %v4619_v39  ;;  %6019 = vst [vmem:[#allocation6_spill] sm:$0xff] %v4623_v24  ;;  %v4635_v15 = vmul.f32 %v4476_v43, %v6023_v63  ;;  %v4639_v55 = vmul.f32 %v4476_v43, %v6024_v30  ;;  %v6025_v39 = vld [vmem:[#allocation20_spill] sm:$0xff]  ;;  %v6026_v24 = vld [vmem:[#allocation21_spill] sm:$0xff]  ;;  %v4655_v63 = vmul.f32 %v4476_v43, %v4039_v23 }
 0x222   :  { %6021 = vst [vmem:[#allocation9_spill] sm:$0xff] %v4627_v60  ;;  %v4643_v28 = vmul.f32 %v4476_v43, %v6025_v39  ;;  %v4647_v61 = vmul.f32 %v4476_v43, %v6026_v24  ;;  %v6027_v60 = vld [vmem:[#allocation22_spill] sm:$0xff]  ;;  %v4659_v30 = vmul.f32 %v4476_v43, %v4053_v26  ;;  %v4663_v39 = vmul.f32 %v4476_v43, %v4064_v50 }
 0x223   :  { %v4651_v59 = vmul.f32 %v4476_v43, %v6027_v60  ;;  %v4667_v24 = vmul.f32 %v4476_v43, %v4083_v0  ;;  %v4671_v60 = vmul.f32 %v4476_v43, %v4096_v12  ;;  %v4675_v23 = vmul.f32 %v4476_v43, %v4113_v11 }
 0x224   :  { %v4679_v26 = vmul.f32 %v4476_v43, %v4127_v4  ;;  %v4683_v50 = vmul.f32 %v4476_v43, %v4142_v22  ;;  %v4687_v0 = vmul.f32 %v4476_v43, %v4155_v44  ;;  %v4691_v12 = vmul.f32 %v4476_v43, %v4059_v1 }
 0x225   :  { %v4695_v11 = vmul.f32 %v4476_v43, %v4074_v51  ;;  %v4699_v4 = vmul.f32 %v4476_v43, %v4056_v49  ;;  %v4703_v22 = vmul.f32 %v4476_v43, %v4071_v25  ;;  %v4707_v44 = vmul.f32 %v4476_v43, %v4116_v16 }
 0x226   :  { %v4711_v1 = vmul.f32 %v4476_v43, %v4131_v20  ;;  %v4715_v51 = vmul.f32 %v4476_v43, %v4148_v27  ;;  %v4719_v49 = vmul.f32 %v4476_v43, %v4162_v17  ;;  %v4723_v25 = vmul.f32 %v4476_v43, %v4145_v32 }
 0x227   :  { %6028 = vst [vmem:[#allocation11_spill] sm:$0xff] %v4707_v44  ;;  %v1847_v16 = vmul.f32 %v4476_v43, %v4089_v47  ;;  %v1848_v44 = vmul.f32 %v4476_v43, %v4105_v37  ;;  %v4731_v20 = vmul.f32 %v4476_v43, %v4159_v36  ;;  %v6032_v27 = vsub.s32 0, %v4253_v14 }
 0x228   :  { %6029 = vst [vmem:[#allocation8_spill] sm:$0xff] %v4715_v51  ;;  %6030 = vst [vmem:[#allocation10_spill] sm:$0xff] %v4719_v49  ;;  %v6033_v17 = vsub.f32 %v4469_v48, %v4472_v7  ;;  %v1849_v32 = vmul.f32 %v4476_v43, %v4086_v56  ;;  %v1850_v47 = vmul.f32 %v4476_v43, %v4102_v46  ;;  %v6035_v51 = vld [vmem:[#allocation24_spill] sm:$0xff] }
 0x229   :  { %6031 = vst [vmem:[#allocation13_spill] sm:$0xff] %v4723_v25  ;;  %v6034_v25 = vld [vmem:[#allocation23_spill] sm:$0xff]  ;;  %v1852_v36 = vmul.f32 %v4476_v43, %v6035_v51 }
 0x22a   :  { %v4738_v49 = vrot.slane %v6033_v17, %v6032_v27  ;;  %v1851_v37 = vmul.f32 %v4476_v43, %v6034_v25  ;;  %v6039_v51 = vld [vmem:[#allocation3_spill] sm:$0xff]  ;;  %v6040_v25 = vld [vmem:[#allocation5_spill] sm:$0xff]  ;;  %v6042_v17 = vld [vmem:[#allocation4_spill] sm:$0xff] }
 0x22b   :  { %v6041_v27 = vld [vmem:[#allocation7_spill] sm:$0xff] }
 0x22c   :  { %v4750_v14 = vadd.f32 %v4738_v49, %v4497_v18  ;;  %v4754_v48 = vadd.f32 %v4738_v49, %v4503_v45  ;;  %v4758_v56 = vadd.f32 %v4738_v49, %v4507_v21  ;;  %v4762_v46 = vadd.f32 %v4738_v49, %v4511_v40 }
 0x22d   :  { %v4766_v7 = vadd.f32 %v4738_v49, %v4515_v62  ;;  %v4770_v18 = vadd.f32 %v4738_v49, %v4519_v52  ;;  %v4774_v43 = vadd.f32 %v4738_v49, %v4523_v13  ;;  %v4778_v21 = vadd.f32 %v4738_v49, %v4527_v57 }
 0x22e   :  { %v4782_v40 = vadd.f32 %v4738_v49, %v4531_v5  ;;  %v4786_v45 = vadd.f32 %v4738_v49, %v4535_v42  ;;  %v4790_v52 = vadd.f32 %v4738_v49, %v4539_v3  ;;  %v4794_v62 = vadd.f32 %v4738_v49, %v4543_v33 }
 0x22f   :  { %v4798_v13 = vadd.f32 %v4738_v49, %v4547_v6  ;;  %v4802_v57 = vadd.f32 %v4738_v49, %v4551_v41  ;;  %v4806_v5 = vadd.f32 %v4738_v49, %v4555_v19  ;;  %v4810_v42 = vadd.f32 %v4738_v49, %v4559_v29 }
 0x230   :  { %v4814_v3 = vadd.f32 %v4738_v49, %v4563_v58  ;;  %v4818_v33 = vadd.f32 %v4738_v49, %v4567_v54  ;;  %v4822_v6 = vadd.f32 %v4738_v49, %v4571_v35  ;;  %v4826_v41 = vadd.f32 %v4738_v49, %v4575_v34 }
 0x231   :  { %v4830_v19 = vadd.f32 %v4738_v49, %v4579_v9  ;;  %v4834_v29 = vadd.f32 %v4738_v49, %v4583_v10  ;;  %v4838_v58 = vadd.f32 %v4738_v49, %v4587_v53  ;;  %v4842_v54 = vadd.f32 %v4738_v49, %v4591_v31  ;;  %v6037_v9 = vld [vmem:[#allocation2_spill] sm:$0xff] }
 0x232   :  { %v4846_v35 = vadd.f32 %v4738_v49, %v4595_v2  ;;  %v4850_v34 = vadd.f32 %v4738_v49, %v4599_v8  ;;  %v4854_v10 = vadd.f32 %v4738_v49, %v6037_v9  ;;  %v4858_v53 = vadd.f32 %v4738_v49, %v6039_v51 }
 0x233   :  { %v4862_v31 = vadd.f32 %v4738_v49, %v6040_v25  ;;  %v4866_v2 = vadd.f32 %v4738_v49, %v6041_v27  ;;  %v4870_v8 = vadd.f32 %v4738_v49, %v6042_v17  ;;  %v4882_v25 = vadd.f32 %v4738_v49, %v4631_v38 }
 0x234   :  { %6036 = vst [vmem:[#allocation15_spill] sm:$0xff] %v4850_v34  ;;  %6038 = vst [vmem:[#allocation12_spill] sm:$0xff] %v4854_v10  ;;  %v6043_v34 = vld [vmem:[#allocation6_spill] sm:$0xff]  ;;  %v6044_v10 = vld [vmem:[#allocation9_spill] sm:$0xff]  ;;  %v4886_v27 = vadd.f32 %v4738_v49, %v4635_v15  ;;  %v4890_v17 = vadd.f32 %v4738_v49, %v4639_v55  ;;  %v4902_v38 = vadd.f32 %v4738_v49, %v4651_v59 }
 0x235   :  { %v4874_v9 = vadd.f32 %v4738_v49, %v6043_v34  ;;  %v4878_v51 = vadd.f32 %v4738_v49, %v6044_v10  ;;  %v4894_v34 = vadd.f32 %v4738_v49, %v4643_v28  ;;  %v4898_v10 = vadd.f32 %v4738_v49, %v4647_v61 }
 0x236   :  { %v4906_v15 = vadd.f32 %v4738_v49, %v4655_v63  ;;  %v4910_v55 = vadd.f32 %v4738_v49, %v4659_v30  ;;  %v4914_v28 = vadd.f32 %v4738_v49, %v4663_v39  ;;  %v4918_v61 = vadd.f32 %v4738_v49, %v4667_v24 }
 0x237   :  { %v4922_v59 = vadd.f32 %v4738_v49, %v4671_v60  ;;  %v4926_v63 = vadd.f32 %v4738_v49, %v4675_v23  ;;  %v4930_v30 = vadd.f32 %v4738_v49, %v4679_v26  ;;  %v4934_v39 = vadd.f32 %v4738_v49, %v4683_v50 }
 0x238   :  { %v4938_v24 = vadd.f32 %v4738_v49, %v4687_v0  ;;  %v4942_v60 = vadd.f32 %v4738_v49, %v4691_v12  ;;  %v4946_v23 = vadd.f32 %v4738_v49, %v4695_v11  ;;  %v4950_v26 = vadd.f32 %v4738_v49, %v4699_v4 }
 0x239   :  { %6045 = vst [vmem:[#allocation14_spill] sm:$0xff] %v4934_v39  ;;  %v4954_v50 = vadd.f32 %v4738_v49, %v4703_v22  ;;  %v4957_v39 = vadd.f32 %v4738_v49, %v1847_v16  ;;  %v4960_v0 = vadd.f32 %v4738_v49, %v1848_v44  ;;  %v4963_v12 = vadd.f32 %v4738_v49, %v1849_v32  ;;  %v6050_v22 = vld [vmem:[#allocation11_spill] sm:$0xff]  ;;  %v6053_v16 = vld [vmem:[#allocation8_spill] sm:$0xff] }
 0x23a   :  { %6046 = vst [vmem:[#allocation16_spill] sm:$0xff] %v4946_v23  ;;  %v4966_v11 = vadd.f32 %v4738_v49, %v1850_v47  ;;  %v4969_v23 = vadd.f32 %v4738_v49, %v1851_v37  ;;  %v4972_v4 = vadd.f32 %v4738_v49, %v1852_v36  ;;  %v4980_v44 = vadd.f32 %v4738_v49, %v4711_v1  ;;  %v6055_v47 = vld [vmem:[#allocation10_spill] sm:$0xff]  ;;  %v6057_v37 = vld [vmem:[#allocation13_spill] sm:$0xff] }
 0x23b   :  { %6047 = vst [vmem:[#allocation17_spill] sm:$0xff] %v4954_v50  ;;  %v4976_v50 = vadd.f32 %v4738_v49, %v6050_v22  ;;  %v4984_v32 = vadd.f32 %v4738_v49, %v6053_v16  ;;  %v4992_v36 = vadd.f32 %v4738_v49, %v6057_v37  ;;  %v4996_v22 = vadd.f32 %v4738_v49, %v4731_v20  ;;  %v6065_v20 = vld [vmem:[#allocation27_spill] sm:$0xff] }
 0x23c   :  { %6048 = vst [vmem:[#allocation18_spill] sm:$0xff] %v4966_v11  ;;  %6049 = vst [vmem:[#allocation19_spill] sm:$0xff] %v4972_v4  ;;  %v4988_v11 = vadd.f32 %v4738_v49, %v6055_v47  ;;  %v6062_v47 = vld [vmem:[#allocation26_spill] sm:$0xff] }
 0x23d   :  { %6051 = vst [vmem:[#allocation20_spill] sm:$0xff] %v4976_v50  ;;  %6052 = vst [vmem:[#allocation21_spill] sm:$0xff] %v4980_v44  ;;  %v6059_v50 = vld [vmem:[#allocation25_spill] sm:$0xff]  ;;  %v6064_v37 = vunpack.c.h.bf16 %v6062_v47 }
 0x23e   :  { %6054 = vst [vmem:[#allocation22_spill] sm:$0xff] %v4984_v32  ;;  %6056 = vst [vmem:[#allocation23_spill] sm:$0xff] %v4988_v11  ;;  %v6060_v1 = vunpack.c.l.bf16 %v6059_v50  ;;  %v6061_v16 = vunpack.c.h.bf16 %v6059_v50  ;;  %v6063_v11 = vunpack.c.l.bf16 %v6062_v47  ;;  %v6067_v50 = vunpack.c.h.bf16 %v6065_v20  ;;  %v6071_v47 = vld [vmem:[#allocation29_spill] sm:$0xff] }
 0x23f   :  { %6058 = vst [vmem:[#allocation24_spill] sm:$0xff] %v4996_v22  ;;  %v5016_v49 = vadd.f32 %v6064_v37, %v4762_v46  ;;  %v6066_v22 = vunpack.c.l.bf16 %v6065_v20  ;;  %v6072_v37 = vunpack.c.l.bf16 %v6071_v47  ;;  %v6074_v20 = vld [vmem:[#allocation30_spill] sm:$0xff] }
 0x240   :  { %v5001_v44 = vadd.f32 %v6060_v1, %v4750_v14  ;;  %v5006_v32 = vadd.f32 %v6061_v16, %v4754_v48  ;;  %v5011_v4 = vadd.f32 %v6063_v11, %v4758_v56  ;;  %v5026_v48 = vadd.f32 %v6067_v50, %v4770_v18  ;;  %v6068_v1 = vld [vmem:[#allocation28_spill] sm:$0xff] }
 0x241   :  { %v5021_v14 = vadd.f32 %v6066_v22, %v4766_v7  ;;  %v6069_v16 = vunpack.c.l.bf16 %v6068_v1  ;;  %v6070_v11 = vunpack.c.h.bf16 %v6068_v1  ;;  %v5041_v7 = vadd.f32 %v6072_v37, %v4782_v40  ;;  %v6081_v37 = vld [vmem:[#allocation32_spill] sm:$0xff] }
 0x242   :  { %v6073_v22 = vunpack.c.h.bf16 %v6071_v47  ;;  %v6075_v50 = vunpack.c.l.bf16 %v6074_v20  ;;  %v6077_v1 = vunpack.c.h.bf16 %v6074_v20  ;;  %v6083_v20 = vunpack.c.h.bf16 %v6081_v37 }
 0x243   :  { %v5031_v56 = vadd.f32 %v6069_v16, %v4774_v43  ;;  %v5036_v46 = vadd.f32 %v6070_v11, %v4778_v21  ;;  %v6078_v16 = vld [vmem:[#allocation31_spill] sm:$0xff] }
 0x244   :  { %v5046_v18 = vadd.f32 %v6073_v22, %v4786_v45  ;;  %v5051_v43 = vadd.f32 %v6075_v50, %v4790_v52  ;;  %v5056_v21 = vadd.f32 %v6077_v1, %v4794_v62  ;;  %v6079_v11 = vunpack.c.l.bf16 %v6078_v16  ;;  %v6084_v50 = vld [vmem:[#allocation33_spill] sm:$0xff] }
 0x245   :  { %v6080_v47 = vunpack.c.h.bf16 %v6078_v16  ;;  %v6082_v22 = vunpack.c.l.bf16 %v6081_v37  ;;  %v5076_v62 = vadd.f32 %v6083_v20, %v4810_v42  ;;  %v6085_v1 = vunpack.c.l.bf16 %v6084_v50 }
 0x246   :  { %6076 = vst [vmem:[#allocation2_spill] sm:$0xff] %v5051_v43  ;;  %v5061_v40 = vadd.f32 %v6079_v11, %v4798_v13  ;;  %v6086_v16 = vunpack.c.h.bf16 %v6084_v50  ;;  %v6087_v11 = vld [vmem:[#allocation34_spill] sm:$0xff] }
 0x247   :  { %v5066_v45 = vadd.f32 %v6080_v47, %v4802_v57  ;;  %v5071_v52 = vadd.f32 %v6082_v22, %v4806_v5  ;;  %v5081_v13 = vadd.f32 %v6085_v1, %v4814_v3  ;;  %v6088_v47 = vunpack.c.l.bf16 %v6087_v11  ;;  %v6090_v22 = vld [vmem:[#allocation35_spill] sm:$0xff]  ;;  %v6095_v1 = vld [vmem:[#allocation36_spill] sm:$0xff] }
 0x248   :  { %v5086_v57 = vadd.f32 %v6086_v16, %v4818_v33  ;;  %v6089_v37 = vunpack.c.h.bf16 %v6087_v11  ;;  %v6091_v20 = vunpack.c.l.bf16 %v6090_v22  ;;  %v6093_v50 = vunpack.c.h.bf16 %v6090_v22 }
 0x249   :  { %v5091_v5 = vadd.f32 %v6088_v47, %v4822_v6  ;;  %v6096_v16 = vunpack.c.l.bf16 %v6095_v1  ;;  %v6097_v11 = vunpack.c.h.bf16 %v6095_v1  ;;  %v6098_v47 = vld [vmem:[#allocation37_spill] sm:$0xff] }
 0x24a   :  { %v5096_v42 = vadd.f32 %v6089_v37, %v4826_v41  ;;  %v5101_v3 = vadd.f32 %v6091_v20, %v4830_v19  ;;  %v5106_v33 = vadd.f32 %v6093_v50, %v4834_v29  ;;  %v6099_v37 = vunpack.c.l.bf16 %v6098_v47  ;;  %v6100_v20 = vld [vmem:[#allocation15_spill] sm:$0xff]  ;;  %v6102_v50 = vld [vmem:[#allocation12_spill] sm:$0xff] }
 0x24b   :  { %v5111_v6 = vadd.f32 %v6096_v16, %v4838_v58  ;;  %v5116_v41 = vadd.f32 %v6097_v11, %v4842_v54  ;;  %v6101_v22 = vunpack.c.h.bf16 %v6098_v47  ;;  %v6106_v16 = vld [vmem:[#allocation39_spill] sm:$0xff] }
 0x24c   :  { %6092 = vst [vmem:[#allocation3_spill] sm:$0xff] %v5101_v3  ;;  %6094 = vst [vmem:[#allocation5_spill] sm:$0xff] %v5106_v33  ;;  %v5121_v19 = vadd.f32 %v6099_v37, %v4846_v35  ;;  %v6103_v33 = vld [vmem:[#allocation38_spill] sm:$0xff]  ;;  %v6107_v11 = vunpack.c.l.bf16 %v6106_v16  ;;  %v6108_v47 = vunpack.c.h.bf16 %v6106_v16 }
 0x24d   :  { %v5126_v29 = vadd.f32 %v6101_v22, %v6100_v20  ;;  %v6104_v3 = vunpack.c.l.bf16 %v6103_v33  ;;  %v6105_v1 = vunpack.c.h.bf16 %v6103_v33  ;;  %v6109_v20 = vld [vmem:[#allocation40_spill] sm:$0xff] }
 0x24e   :  { %v5141_v35 = vadd.f32 %v6107_v11, %v4862_v31  ;;  %v5146_v37 = vadd.f32 %v6108_v47, %v4866_v2  ;;  %v6110_v22 = vunpack.c.l.bf16 %v6109_v20  ;;  %v6111_v33 = vunpack.c.h.bf16 %v6109_v20  ;;  %v6116_v11 = vld [vmem:[#allocation42_spill] sm:$0xff] }
 0x24f   :  { %v5131_v58 = vadd.f32 %v6104_v3, %v6102_v50  ;;  %v5136_v54 = vadd.f32 %v6105_v1, %v4858_v53  ;;  %v6113_v50 = vld [vmem:[#allocation41_spill] sm:$0xff]  ;;  %v6117_v47 = vunpack.c.l.bf16 %v6116_v11  ;;  %v6119_v20 = vunpack.c.h.bf16 %v6116_v11 }
 0x250   :  { %v5151_v3 = vadd.f32 %v6110_v22, %v4870_v8  ;;  %v5156_v53 = vadd.f32 %v6111_v33, %v4874_v9  ;;  %v6114_v1 = vunpack.c.l.bf16 %v6113_v50  ;;  %v6115_v16 = vunpack.c.h.bf16 %v6113_v50  ;;  %v6120_v22 = vld [vmem:[#allocation43_spill] sm:$0xff] }
 0x251   :  { %v5171_v8 = vadd.f32 %v6117_v47, %v4886_v27  ;;  %v5176_v9 = vadd.f32 %v6119_v20, %v4890_v17  ;;  %v6121_v33 = vunpack.c.l.bf16 %v6120_v22  ;;  %v6123_v50 = vunpack.c.h.bf16 %v6120_v22  ;;  %v6127_v47 = vld [vmem:[#allocation45_spill] sm:$0xff] }
 0x252   :  { %6112 = vst [vmem:[#allocation7_spill] sm:$0xff] %v5156_v53  ;;  %v5161_v31 = vadd.f32 %v6114_v1, %v4878_v51  ;;  %v5166_v2 = vadd.f32 %v6115_v16, %v4882_v25  ;;  %v6124_v1 = vld [vmem:[#allocation44_spill] sm:$0xff]  ;;  %v6128_v20 = vunpack.c.l.bf16 %v6127_v47  ;;  %v6130_v22 = vunpack.c.h.bf16 %v6127_v47 }
 0x253   :  { %6118 = vst [vmem:[#allocation4_spill] sm:$0xff] %v5171_v8  ;;  %v5181_v51 = vadd.f32 %v6121_v33, %v4894_v34  ;;  %v5186_v25 = vadd.f32 %v6123_v50, %v4898_v10  ;;  %v6125_v16 = vunpack.c.l.bf16 %v6124_v1  ;;  %v6126_v11 = vunpack.c.h.bf16 %v6124_v1  ;;  %v6132_v33 = vld [vmem:[#allocation46_spill] sm:$0xff]  ;;  %v6189_v43 = vld [vmem:[#allocation5_spill] sm:$0xff] }
 0x254   :  { %v5201_v34 = vadd.f32 %v6128_v20, %v4910_v55  ;;  %v5206_v10 = vadd.f32 %v6130_v22, %v4914_v28  ;;  %v6133_v50 = vunpack.c.l.bf16 %v6132_v33  ;;  %v6135_v1 = vunpack.c.h.bf16 %v6132_v33  ;;  %v6142_v20 = vld [vmem:[#allocation14_spill] sm:$0xff]  ;;  %v6143_v22 = vld [vmem:[#allocation48_spill] sm:$0xff] }
 0x255   :  { %6122 = vst [vmem:[#allocation6_spill] sm:$0xff] %v5181_v51  ;;  %v5191_v27 = vadd.f32 %v6125_v16, %v4902_v38  ;;  %v5196_v17 = vadd.f32 %v6126_v11, %v4906_v15  ;;  %v6137_v16 = vld [vmem:[#allocation47_spill] sm:$0xff]  ;;  %v6146_v33 = vunpack.c.h.bf16 %v6143_v22 }
 0x256   :  { %6129 = vst [vmem:[#allocation9_spill] sm:$0xff] %v5201_v34  ;;  %6131 = vst [vmem:[#allocation11_spill] sm:$0xff] %v5206_v10  ;;  %v5211_v38 = vadd.f32 %v6133_v50, %v4918_v61  ;;  %v5216_v15 = vadd.f32 %v6135_v1, %v4922_v59  ;;  %v6138_v11 = vunpack.c.l.bf16 %v6137_v16  ;;  %v6140_v47 = vunpack.c.h.bf16 %v6137_v16  ;;  %v6148_v50 = vld [vmem:[#allocation49_spill] sm:$0xff] }
 0x257   :  { %v6144_v10 = vunpack.c.l.bf16 %v6143_v22  ;;  %v5236_v59 = vadd.f32 %v6146_v33, %v4938_v24  ;;  %v6149_v1 = vunpack.c.l.bf16 %v6148_v50  ;;  %v6151_v16 = vunpack.c.h.bf16 %v6148_v50  ;;  %v6157_v33 = vld [vmem:[#allocation51_spill] sm:$0xff] }
 0x258   :  { %6134 = vst [vmem:[#allocation8_spill] sm:$0xff] %v5211_v38  ;;  %6136 = vst [vmem:[#allocation10_spill] sm:$0xff] %v5216_v15  ;;  %v5221_v55 = vadd.f32 %v6138_v11, %v4926_v63  ;;  %v5226_v28 = vadd.f32 %v6140_v47, %v4930_v30  ;;  %v6150_v11 = vld [vmem:[#allocation16_spill] sm:$0xff]  ;;  %v6152_v47 = vld [vmem:[#allocation50_spill] sm:$0xff]  ;;  %v6160_v50 = vunpack.c.h.bf16 %v6157_v33 }
 0x259   :  { %v5231_v61 = vadd.f32 %v6144_v10, %v6142_v20  ;;  %6147 = vst [vmem:[#allocation27_spill] sm:$0xff] %v5236_v59  ;;  %v5241_v63 = vadd.f32 %v6149_v1, %v4942_v60  ;;  %v5246_v30 = vadd.f32 %v6151_v16, %v6150_v11  ;;  %v6154_v20 = vld [vmem:[#allocation17_spill] sm:$0xff]  ;;  %v6155_v22 = vunpack.c.h.bf16 %v6152_v47  ;;  %v6162_v11 = vld [vmem:[#allocation52_spill] sm:$0xff] }
 0x25a   :  { %6139 = vst [vmem:[#allocation13_spill] sm:$0xff] %v5221_v55  ;;  %6141 = vst [vmem:[#allocation25_spill] sm:$0xff] %v5226_v28  ;;  %v6153_v28 = vunpack.c.l.bf16 %v6152_v47  ;;  %v6158_v59 = vunpack.c.l.bf16 %v6157_v33  ;;  %v5266_v1 = vadd.f32 %v6160_v50, %v4960_v0  ;;  %v6163_v16 = vunpack.c.l.bf16 %v6162_v11  ;;  %v6173_v50 = vld [vmem:[#allocation20_spill] sm:$0xff] }
 0x25b   :  { %6145 = vst [vmem:[#allocation26_spill] sm:$0xff] %v5231_v61  ;;  %v5256_v24 = vadd.f32 %v6155_v22, %v6154_v20  ;;  %v6166_v47 = vunpack.c.h.bf16 %v6162_v11  ;;  %v6168_v22 = vld [vmem:[#allocation53_spill] sm:$0xff] }
 0x25c   :  { %v5251_v10 = vadd.f32 %v6153_v28, %v4950_v26  ;;  %v5261_v60 = vadd.f32 %v6158_v59, %v4957_v39  ;;  %6161 = vst [vmem:[#allocation30_spill] sm:$0xff] %v5266_v1  ;;  %v5271_v26 = vadd.f32 %v6163_v16, %v4963_v12  ;;  %v6165_v28 = vld [vmem:[#allocation18_spill] sm:$0xff]  ;;  %v6170_v59 = vld [vmem:[#allocation19_spill] sm:$0xff]  ;;  %v6171_v33 = vunpack.c.h.bf16 %v6168_v22  ;;  %v6176_v16 = vld [vmem:[#allocation21_spill] sm:$0xff] }
 0x25d   :  { %6156 = vst [vmem:[#allocation28_spill] sm:$0xff] %v5256_v24  ;;  %v5276_v20 = vadd.f32 %v6166_v47, %v6165_v28  ;;  %v6169_v24 = vunpack.c.l.bf16 %v6168_v22  ;;  %v6174_v1 = vld [vmem:[#allocation54_spill] sm:$0xff] }
 0x25e   :  { %6159 = vst [vmem:[#allocation29_spill] sm:$0xff] %v5261_v60  ;;  %6164 = vst [vmem:[#allocation31_spill] sm:$0xff] %v5271_v26  ;;  %v5286_v0 = vadd.f32 %v6171_v33, %v6170_v59  ;;  %v6175_v60 = vunpack.c.l.bf16 %v6174_v1  ;;  %v6177_v11 = vunpack.c.h.bf16 %v6174_v1  ;;  %v6178_v47 = vld [vmem:[#allocation22_spill] sm:$0xff]  ;;  %v6183_v33 = vld [vmem:[#allocation56_spill] sm:$0xff] }
 0x25f   :  { %6167 = vst [vmem:[#allocation32_spill] sm:$0xff] %v5276_v20  ;;  %v5281_v39 = vadd.f32 %v6169_v24, %v4969_v23  ;;  %v6179_v20 = vld [vmem:[#allocation55_spill] sm:$0xff]  ;;  %v6186_v1 = vunpack.c.h.bf16 %v6183_v33 }
 0x260   :  { %6172 = vst [vmem:[#allocation33_spill] sm:$0xff] %v5286_v0  ;;  %v5291_v12 = vadd.f32 %v6175_v60, %v6173_v50  ;;  %v5296_v28 = vadd.f32 %v6177_v11, %v6176_v16  ;;  %v6180_v26 = vunpack.c.l.bf16 %v6179_v20  ;;  %v6181_v24 = vld [vmem:[#allocation23_spill] sm:$0xff]  ;;  %v6182_v22 = vunpack.c.h.bf16 %v6179_v20  ;;  %v6185_v50 = vld [vmem:[#allocation24_spill] sm:$0xff] }
 0x261   :  { %v6184_v0 = vunpack.c.l.bf16 %v6183_v33  ;;  %v5316_v16 = vadd.f32 %v6186_v1, %v6185_v50  ;;  %v6188_v11 = vld [vmem:[#allocation3_spill] sm:$0xff]  ;;  %v6191_v8 = vld [vmem:[#allocation25_spill] sm:$0xff]  ;;  %v6201_v33 = vmax.f32 %v5011_v4, 0.0  ;;  %v6202_v1 = vmax.f32 %v5016_v49, 0.0 }
 0x262   :  { %v5301_v23 = vadd.f32 %v6180_v26, %v6178_v47  ;;  %v5306_v59 = vadd.f32 %v6182_v22, %v6181_v24  ;;  %v6192_v51 = vld [vmem:[#allocation27_spill] sm:$0xff]  ;;  %v6199_v24 = vmax.f32 %v5001_v44, 0.0  ;;  %v6203_v47 = vmax.f32 %v5021_v14, 0.0 }
 0x263   :  { %v5311_v60 = vadd.f32 %v6184_v0, %v4992_v36  ;;  %6187 = vst [vmem:[#allocation34_spill] sm:$0xff] %v5316_v16  ;;  %v6195_v38 = vld [vmem:[#allocation30_spill] sm:$0xff]  ;;  %v6200_v36 = vmax.f32 %v5006_v32, 0.0  ;;  %v2722_v50 = vpack.c.bf16 %v6201_v33, %v6201_v33  ;;  %v2723_v53 = vpack.c.bf16 %v6202_v1, %v6202_v1 }
 0x264   :  { %v6193_v34 = vld [vmem:[#allocation28_spill] sm:$0xff]  ;;  %v2720_v22 = vpack.c.bf16 %v6199_v24, %v6199_v24  ;;  %v2724_v20 = vpack.c.bf16 %v6203_v47, %v6203_v47  ;;  %v6204_v44 = vmax.f32 %v5026_v48, 0.0  ;;  %v6205_v32 = vmax.f32 %v5031_v56, 0.0  ;;  %v6209_v16 = vld [vmem:[#allocation2_spill] sm:$0xff] }
 0x265   :  { %v6194_v26 = vld [vmem:[#allocation29_spill] sm:$0xff]  ;;  %v6196_v15 = vld [vmem:[#allocation31_spill] sm:$0xff]  ;;  %v2721_v0 = vpack.c.bf16 %v6200_v36, %v6200_v36  ;;  %v6206_v4 = vmax.f32 %v5036_v46, 0.0  ;;  %v6207_v49 = vmax.f32 %v5041_v7, 0.0  ;;  %v6208_v14 = vmax.f32 %v5046_v18, 0.0 }
 0x266   :  { %v6197_v55 = vld [vmem:[#allocation32_spill] sm:$0xff]  ;;  %v2725_v24 = vpack.c.bf16 %v6204_v44, %v6204_v44  ;;  %v2726_v36 = vpack.c.bf16 %v6205_v32, %v6205_v32  ;;  %v6210_v48 = vmax.f32 %v6209_v16, 0.0  ;;  %v6211_v56 = vmax.f32 %v5056_v21, 0.0  ;;  %2442 = vst.msk [vmem:[%s5835_s5] sm:$0xf] %vm2441_vm1, %v2720_v22 }
 0x267   :  { %v6198_v61 = vld [vmem:[#allocation33_spill] sm:$0xff]  ;;  %v2727_v33 = vpack.c.bf16 %v6206_v4, %v6206_v4  ;;  %v2728_v1 = vpack.c.bf16 %v6207_v49, %v6207_v49  ;;  %v2729_v47 = vpack.c.bf16 %v6208_v14, %v6208_v14  ;;  %2443 = vst.msk [vmem:[%s5835_s5 + $0x4] sm:$0xf] %vm2441_vm1, %v2721_v0  ;;  %2444 = vst.msk [vmem:[%s5835_s5 + $0x8] sm:$0xf] %vm2441_vm1, %v2722_v50  ;;  %v6212_v46 = vmax.f32 %v5061_v40, 0.0 }
 0x268   :  { %v2730_v44 = vpack.c.bf16 %v6210_v48, %v6210_v48  ;;  %v2731_v32 = vpack.c.bf16 %v6211_v56, %v6211_v56  ;;  %2445 = vst.msk [vmem:[%s5835_s5 + $0xc] sm:$0xf] %vm2441_vm1, %v2723_v53  ;;  %v6213_v18 = vmax.f32 %v5066_v45, 0.0  ;;  %v6214_v16 = vmax.f32 %v5071_v52, 0.0  ;;  %2446 = vst.msk [vmem:[%s5835_s5 + $0x10] sm:$0xf] %vm2441_vm1, %v2724_v20 }
 0x269   :  { %v2732_v7 = vpack.c.bf16 %v6212_v46, %v6212_v46  ;;  %v6215_v0 = vmax.f32 %v5076_v62, 0.0  ;;  %2447 = vst.msk [vmem:[%s5835_s5 + $0x14] sm:$0xf] %vm2441_vm1, %v2725_v24  ;;  %2448 = vst.msk [vmem:[%s5835_s5 + $0x18] sm:$0xf] %vm2441_vm1, %v2726_v36  ;;  %v6216_v40 = vmax.f32 %v5081_v13, 0.0 }
 0x26a   :  { %v2733_v21 = vpack.c.bf16 %v6213_v18, %v6213_v18  ;;  %v2734_v22 = vpack.c.bf16 %v6214_v16, %v6214_v16  ;;  %2449 = vst.msk [vmem:[%s5835_s5 + $0x1c] sm:$0xf] %vm2441_vm1, %v2727_v33  ;;  %v6217_v52 = vmax.f32 %v5086_v57, 0.0  ;;  %v6218_v53 = vmax.f32 %v5091_v5, 0.0  ;;  %2450 = vst.msk [vmem:[%s5835_s5 + $0x20] sm:$0xf] %vm2441_vm1, %v2728_v1 }
 0x26b   :  { %v2735_v50 = vpack.c.bf16 %v6215_v0, %v6215_v0  ;;  %v2736_v45 = vpack.c.bf16 %v6216_v40, %v6216_v40  ;;  %v6219_v24 = vmax.f32 %v5096_v42, 0.0  ;;  %2451 = vst.msk [vmem:[%s5835_s5 + $0x24] sm:$0xf] %vm2441_vm1, %v2729_v47  ;;  %2452 = vst.msk [vmem:[%s5835_s5 + $0x28] sm:$0xf] %vm2441_vm1, %v2730_v44  ;;  %v6220_v13 = vmax.f32 %v6188_v11, 0.0 }
 0x26c   :  { %v2737_v62 = vpack.c.bf16 %v6217_v52, %v6217_v52  ;;  %v2738_v20 = vpack.c.bf16 %v6218_v53, %v6218_v53  ;;  %2453 = vst.msk [vmem:[%s5835_s5 + $0x2c] sm:$0xf] %vm2441_vm1, %v2731_v32  ;;  %v6221_v5 = vmax.f32 %v6189_v43, 0.0  ;;  %v6222_v4 = vmax.f32 %v5111_v6, 0.0  ;;  %2454 = vst.msk [vmem:[%s5835_s5 + $0x30] sm:$0xf] %vm2441_vm1, %v2732_v7 }
 0x26d   :  { %v2739_v36 = vpack.c.bf16 %v6219_v24, %v6219_v24  ;;  %v2740_v57 = vpack.c.bf16 %v6220_v13, %v6220_v13  ;;  %v6223_v49 = vmax.f32 %v5116_v41, 0.0  ;;  %2455 = vst.msk [vmem:[%s5835_s5 + $0x34] sm:$0xf] %vm2441_vm1, %v2733_v21  ;;  %2456 = vst.msk [vmem:[%s5835_s5 + $0x38] sm:$0xf] %vm2441_vm1, %v2734_v22  ;;  %v6224_v43 = vmax.f32 %v5121_v19, 0.0 }
 0x26e   :  { %v2741_v42 = vpack.c.bf16 %v6221_v5, %v6221_v5  ;;  %v2742_v33 = vpack.c.bf16 %v6222_v4, %v6222_v4  ;;  %2457 = vst.msk [vmem:[%s5835_s5 + $0x3c] sm:$0xf] %vm2441_vm1, %v2735_v50  ;;  %v6225_v41 = vmax.f32 %v5126_v29, 0.0  ;;  %v6226_v14 = vmax.f32 %v5131_v58, 0.0  ;;  %2458 = vst.msk [vmem:[%s5835_s5 + $0x40] sm:$0xf] %vm2441_vm1, %v2736_v45 }
 0x26f   :  { %v2743_v1 = vpack.c.bf16 %v6223_v49, %v6223_v49  ;;  %v2744_v6 = vpack.c.bf16 %v6224_v43, %v6224_v43  ;;  %v6227_v48 = vmax.f32 %v5136_v54, 0.0  ;;  %2459 = vst.msk [vmem:[%s5835_s5 + $0x44] sm:$0xf] %vm2441_vm1, %v2737_v62  ;;  %2460 = vst.msk [vmem:[%s5835_s5 + $0x48] sm:$0xf] %vm2441_vm1, %v2738_v20  ;;  %v6228_v19 = vmax.f32 %v5141_v35, 0.0 }
 0x270   :  { %v2745_v11 = vpack.c.bf16 %v6225_v41, %v6225_v41  ;;  %v2746_v47 = vpack.c.bf16 %v6226_v14, %v6226_v14  ;;  %2461 = vst.msk [vmem:[%s5835_s5 + $0x4c] sm:$0xf] %vm2441_vm1, %v2739_v36  ;;  %v6229_v58 = vmax.f32 %v5146_v37, 0.0  ;;  %v6230_v56 = vmax.f32 %v5151_v3, 0.0  ;;  %v6231_v46 = vld [vmem:[#allocation7_spill] sm:$0xff]  ;;  %v6235_v16 = vld [vmem:[#allocation4_spill] sm:$0xff] }
 0x271   :  { %v2747_v44 = vpack.c.bf16 %v6227_v48, %v6227_v48  ;;  %v2748_v29 = vpack.c.bf16 %v6228_v19, %v6228_v19  ;;  %v6232_v7 = vmax.f32 %v6231_v46, 0.0  ;;  %2462 = vst.msk [vmem:[%s5835_s5 + $0x50] sm:$0xf] %vm2441_vm1, %v2740_v57  ;;  %2463 = vst.msk [vmem:[%s5835_s5 + $0x54] sm:$0xf] %vm2441_vm1, %v2741_v42  ;;  %v6233_v35 = vmax.f32 %v5161_v31, 0.0 }
 0x272   :  { %v2749_v54 = vpack.c.bf16 %v6229_v58, %v6229_v58  ;;  %v2750_v32 = vpack.c.bf16 %v6230_v56, %v6230_v56  ;;  %2464 = vst.msk [vmem:[%s5835_s5 + $0x58] sm:$0xf] %vm2441_vm1, %v2742_v33  ;;  %2465 = vst.msk [vmem:[%s5835_s5 + $0x5c] sm:$0xf] %vm2441_vm1, %v2743_v1  ;;  %v6234_v3 = vmax.f32 %v5166_v2, 0.0  ;;  %v6236_v22 = vmax.f32 %v6235_v16, 0.0 }
 0x273   :  { %v2751_v18 = vpack.c.bf16 %v6232_v7, %v6232_v7  ;;  %v2752_v37 = vpack.c.bf16 %v6233_v35, %v6233_v35  ;;  %v6237_v50 = vmax.f32 %v5176_v9, 0.0  ;;  %2466 = vst.msk [vmem:[%s5835_s5 + $0x60] sm:$0xf] %vm2441_vm1, %v2744_v6  ;;  %2467 = vst.msk [vmem:[%s5835_s5 + $0x64] sm:$0xf] %vm2441_vm1, %v2745_v11  ;;  %v6238_v31 = vld [vmem:[#allocation6_spill] sm:$0xff] }
 0x274   :  { %v2753_v21 = vpack.c.bf16 %v6234_v3, %v6234_v3  ;;  %v2754_v0 = vpack.c.bf16 %v6236_v22, %v6236_v22  ;;  %2468 = vst.msk [vmem:[%s5835_s5 + $0x68] sm:$0xf] %vm2441_vm1, %v2746_v47  ;;  %2469 = vst.msk [vmem:[%s5835_s5 + $0x6c] sm:$0xf] %vm2441_vm1, %v2747_v44  ;;  %v6239_v2 = vmax.f32 %v6238_v31, 0.0  ;;  %v6240_v45 = vmax.f32 %v5186_v25, 0.0 }
 0x275   :  { %v2755_v40 = vpack.c.bf16 %v6237_v50, %v6237_v50  ;;  %v6241_v62 = vmax.f32 %v5191_v27, 0.0  ;;  %v6242_v20 = vmax.f32 %v5196_v17, 0.0  ;;  %2470 = vst.msk [vmem:[%s5835_s5 + $0x70] sm:$0xf] %vm2441_vm1, %v2748_v29  ;;  %2471 = vst.msk [vmem:[%s5835_s5 + $0x74] sm:$0xf] %vm2441_vm1, %v2749_v54 }
 0x276   :  { %v2756_v9 = vpack.c.bf16 %v6239_v2, %v6239_v2  ;;  %v2757_v52 = vpack.c.bf16 %v6240_v45, %v6240_v45  ;;  %2472 = vst.msk [vmem:[%s5835_s5 + $0x78] sm:$0xf] %vm2441_vm1, %v2750_v32  ;;  %2473 = vst.msk [vmem:[%s5835_s5 + $0x7c] sm:$0xf] %vm2441_vm1, %v2751_v18  ;;  %v6243_v25 = vld [vmem:[#allocation9_spill] sm:$0xff]  ;;  %v6245_v36 = vld [vmem:[#allocation11_spill] sm:$0xff] }
 0x277   :  { %v2758_v53 = vpack.c.bf16 %v6241_v62, %v6241_v62  ;;  %v2759_v24 = vpack.c.bf16 %v6242_v20, %v6242_v20  ;;  %v6244_v27 = vmax.f32 %v6243_v25, 0.0  ;;  %v6246_v13 = vmax.f32 %v6245_v36, 0.0  ;;  %v6247_v5 = vld [vmem:[#allocation8_spill] sm:$0xff]  ;;  %v6249_v33 = vld [vmem:[#allocation10_spill] sm:$0xff]  ;;  %2474 = vst.msk [vmem:[%s5835_s5 + $0x80] sm:$0xf] %vm2441_vm1, %v2752_v37 }
 0x278   :  { %v6248_v42 = vmax.f32 %v6247_v5, 0.0  ;;  %v6250_v49 = vmax.f32 %v6249_v33, 0.0  ;;  %2475 = vst.msk [vmem:[%s5835_s5 + $0x84] sm:$0xf] %vm2441_vm1, %v2753_v21  ;;  %2476 = vst.msk [vmem:[%s5835_s5 + $0x88] sm:$0xf] %vm2441_vm1, %v2754_v0 }
 0x279   :  { %v2760_v17 = vpack.c.bf16 %v6244_v27, %v6244_v27  ;;  %v2761_v57 = vpack.c.bf16 %v6246_v13, %v6246_v13  ;;  %2477 = vst.msk [vmem:[%s5835_s5 + $0x8c] sm:$0xf] %vm2441_vm1, %v2755_v40  ;;  %v6251_v43 = vld [vmem:[#allocation13_spill] sm:$0xff]  ;;  %v6253_v11 = vmax.f32 %v6191_v8, 0.0  ;;  %v6254_v47 = vld [vmem:[#allocation26_spill] sm:$0xff]  ;;  %v6256_v19 = vmax.f32 %v6192_v51, 0.0 }
 0x27a   :  { %v2762_v4 = vpack.c.bf16 %v6248_v42, %v6248_v42  ;;  %v2763_v1 = vpack.c.bf16 %v6250_v49, %v6250_v49  ;;  %v6252_v6 = vmax.f32 %v6251_v43, 0.0  ;;  %v6255_v48 = vmax.f32 %v6254_v47, 0.0  ;;  %2478 = vst.msk [vmem:[%s5835_s5 + $0x90] sm:$0xf] %vm2441_vm1, %v2756_v9  ;;  %2479 = vst.msk [vmem:[%s5835_s5 + $0x94] sm:$0xf] %vm2441_vm1, %v2757_v52 }
 0x27b   :  { %v2765_v14 = vpack.c.bf16 %v6253_v11, %v6253_v11  ;;  %v2767_v29 = vpack.c.bf16 %v6256_v19, %v6256_v19  ;;  %2480 = vst.msk [vmem:[%s5835_s5 + $0x98] sm:$0xf] %vm2441_vm1, %v2758_v53  ;;  %2481 = vst.msk [vmem:[%s5835_s5 + $0x9c] sm:$0xf] %vm2441_vm1, %v2759_v24  ;;  %v6257_v8 = vmax.f32 %v5241_v63, 0.0  ;;  %v6258_v58 = vmax.f32 %v5246_v30, 0.0 }
 0x27c   :  { %v2764_v41 = vpack.c.bf16 %v6252_v6, %v6252_v6  ;;  %v2766_v44 = vpack.c.bf16 %v6255_v48, %v6255_v48  ;;  %v6259_v56 = vmax.f32 %v5251_v10, 0.0  ;;  %v6260_v46 = vmax.f32 %v6193_v34, 0.0  ;;  %2482 = vst.msk [vmem:[%s5835_s5 + $0xa0] sm:$0xf] %vm2441_vm1, %v2760_v17  ;;  %2483 = vst.msk [vmem:[%s5835_s5 + $0xa4] sm:$0xf] %vm2441_vm1, %v2761_v57 }
 0x27d   :  { %v2768_v51 = vpack.c.bf16 %v6257_v8, %v6257_v8  ;;  %v2769_v54 = vpack.c.bf16 %v6258_v58, %v6258_v58  ;;  %2484 = vst.msk [vmem:[%s5835_s5 + $0xa8] sm:$0xf] %vm2441_vm1, %v2762_v4  ;;  %2485 = vst.msk [vmem:[%s5835_s5 + $0xac] sm:$0xf] %vm2441_vm1, %v2763_v1  ;;  %v6261_v34 = vmax.f32 %v6194_v26, 0.0  ;;  %v6262_v30 = vmax.f32 %v6195_v38, 0.0 }
 0x27e   :  { %v2770_v32 = vpack.c.bf16 %v6259_v56, %v6259_v56  ;;  %v2771_v7 = vpack.c.bf16 %v6260_v46, %v6260_v46  ;;  %v6263_v18 = vmax.f32 %v6196_v15, 0.0  ;;  %v6264_v37 = vmax.f32 %v6197_v55, 0.0  ;;  %2486 = vst.msk [vmem:[%s5835_s5 + $0xb0] sm:$0xf] %vm2441_vm1, %v2764_v41  ;;  %2487 = vst.msk [vmem:[%s5835_s5 + $0xb4] sm:$0xf] %vm2441_vm1, %v2765_v14 }
 0x27f   :  { %v2772_v63 = vpack.c.bf16 %v6261_v34, %v6261_v34  ;;  %v2773_v10 = vpack.c.bf16 %v6262_v30, %v6262_v30  ;;  %2488 = vst.msk [vmem:[%s5835_s5 + $0xb8] sm:$0xf] %vm2441_vm1, %v2766_v44  ;;  %2489 = vst.msk [vmem:[%s5835_s5 + $0xbc] sm:$0xf] %vm2441_vm1, %v2767_v29  ;;  %v6265_v38 = vmax.f32 %v5281_v39, 0.0  ;;  %v6266_v55 = vmax.f32 %v6198_v61, 0.0 }
 0x280   :  { %v2774_v35 = vpack.c.bf16 %v6263_v18, %v6263_v18  ;;  %v2775_v3 = vpack.c.bf16 %v6264_v37, %v6264_v37  ;;  %v6267_v21 = vmax.f32 %v5291_v12, 0.0  ;;  %v6268_v22 = vmax.f32 %v5296_v28, 0.0  ;;  %2490 = vst.msk [vmem:[%s5835_s5 + $0xc0] sm:$0xf] %vm2441_vm1, %v2768_v51  ;;  %2491 = vst.msk [vmem:[%s5835_s5 + $0xc4] sm:$0xf] %vm2441_vm1, %v2769_v54 }
 0x281   :  { %v2776_v15 = vpack.c.bf16 %v6265_v38, %v6265_v38  ;;  %v2777_v26 = vpack.c.bf16 %v6266_v55, %v6266_v55  ;;  %2492 = vst.msk [vmem:[%s5835_s5 + $0xc8] sm:$0xf] %vm2441_vm1, %v2770_v32  ;;  %2493 = vst.msk [vmem:[%s5835_s5 + $0xcc] sm:$0xf] %vm2441_vm1, %v2771_v7  ;;  %v6269_v61 = vmax.f32 %v5301_v23, 0.0  ;;  %v6270_v12 = vmax.f32 %v5306_v59, 0.0 }
 0x282   :  { %v2778_v16 = vpack.c.bf16 %v6267_v21, %v6267_v21  ;;  %v2779_v0 = vpack.c.bf16 %v6268_v22, %v6268_v22  ;;  %v6271_v50 = vmax.f32 %v5311_v60, 0.0  ;;  %v6272_v31 = vld [vmem:[#allocation34_spill] sm:$0xff]  ;;  %2494 = vst.msk [vmem:[%s5835_s5 + $0xd0] sm:$0xf] %vm2441_vm1, %v2772_v63  ;;  %2495 = vst.msk [vmem:[%s5835_s5 + $0xd4] sm:$0xf] %vm2441_vm1, %v2773_v10 }
 0x283   :  { %v2780_v39 = vpack.c.bf16 %v6269_v61, %v6269_v61  ;;  %v2781_v28 = vpack.c.bf16 %v6270_v12, %v6270_v12  ;;  %v6273_v2 = vmax.f32 %v6272_v31, 0.0  ;;  %2496 = vst.msk [vmem:[%s5835_s5 + $0xd8] sm:$0xf] %vm2441_vm1, %v2774_v35  ;;  %2497 = vst.msk [vmem:[%s5835_s5 + $0xdc] sm:$0xf] %vm2441_vm1, %v2775_v3 }
 0x284   :  { %v2782_v40 = vpack.c.bf16 %v6271_v50, %v6271_v50  ;;  %2498 = vst.msk [vmem:[%s5835_s5 + $0xe0] sm:$0xf] %vm2441_vm1, %v2776_v15  ;;  %2499 = vst.msk [vmem:[%s5835_s5 + $0xe4] sm:$0xf] %vm2441_vm1, %v2777_v26 }
 0x285   :  { %v2783_v9 = vpack.c.bf16 %v6273_v2, %v6273_v2  ;;  %2500 = vst.msk [vmem:[%s5835_s5 + $0xe8] sm:$0xf] %vm2441_vm1, %v2778_v16  ;;  %2501 = vst.msk [vmem:[%s5835_s5 + $0xec] sm:$0xf] %vm2441_vm1, %v2779_v0 }
 0x286   :  { %2502 = vst.msk [vmem:[%s5835_s5 + $0xf0] sm:$0xf] %vm2441_vm1, %v2780_v39  ;;  %2503 = vst.msk [vmem:[%s5835_s5 + $0xf4] sm:$0xf] %vm2441_vm1, %v2781_v28 }
 0x287   :  { %2504 = vst.msk [vmem:[%s5835_s5 + $0xf8] sm:$0xf] %vm2441_vm1, %v2782_v40  ;;  %2505 = vst.msk [vmem:[%s5835_s5 + $0xfc] sm:$0xf] %vm2441_vm1, %v2783_v9 }

// kernel: _lambda_.16
= control target key start
LH: loop header
LB: loop body
LE: loop exit
PB: predicated region body
PF: predicated region fallthrough
CT: control target
= control target key end

     0   :  { %vm368_vm0 = vcmask 523264   ;;  %s971_s1 = inlined_call_operand.vmem [shape: bf16[576,128], index: 1, kind: input, shape index: {}]   ;;  %s972_s0 = inlined_call_operand.vmem [shape: bf16[32,576], index: 0, kind: input, shape index: {}]   ;;  %s973_s2 = inlined_call_operand.vmem [shape: f32[1,128], index: 2, kind: input, shape index: {}]   ;;  %s974_s3 = inlined_call_operand.vmem [shape: f32[1,128], index: 3, kind: input, shape index: {}]   ;;  %s975_s4 = inlined_call_operand.vmem [shape: bf16[32,128], index: 4, kind: output, shape index: {}]  }
   0x1   :  { %v744_v0 = vld [vmem:[%s971_s1 + $0x40] sm:$0xff]   ;;  %v748_v4 = vld [vmem:[%s971_s1 + $0x48] sm:$0xff]   ;;  %v752_v8 = vld [vmem:[%s971_s1 + $0x50] sm:$0xff]  }
   0x2   :  { %v745_v1 = vld [vmem:[%s971_s1 + $0xc0] sm:$0xff]   ;;  %670 = vmatprep.subr.bf16.mxu0 %v744_v0  ;;  %v749_v5 = vld [vmem:[%s971_s1 + $0xc8] sm:$0xff]   ;;  %v753_v9 = vld [vmem:[%s971_s1 + $0xd0] sm:$0xff]  }
   0x3   :  { %v746_v2 = vld [vmem:[%s971_s1] sm:$0xff]   ;;  %698 = vmatprep.subr.bf16.mxu1 %v745_v1  ;;  %v750_v6 = vld [vmem:[%s971_s1 + $0x8] sm:$0xff]   ;;  %v754_v10 = vld [vmem:[%s971_s1 + $0x10] sm:$0xff]  }
   0x4   :  { %v747_v3 = vld [vmem:[%s971_s1 + $0x80] sm:$0xff]   ;;  %671 = vmatpush3.bf16.msra.mxu0 %v746_v2  ;;  %v751_v7 = vld [vmem:[%s971_s1 + $0x88] sm:$0xff]   ;;  %v755_v11 = vld [vmem:[%s971_s1 + $0x90] sm:$0xff]  }
   0x5   :  { %699 = vmatpush3.bf16.msra.mxu1 %v747_v3  ;;  %672 = vmatprep.subr.bf16.mxu0 %v748_v4  ;;  %v756_v12 = vld [vmem:[%s971_s1 + $0x58] sm:$0xff]   ;;  %v760_v16 = vld [vmem:[%s971_s1 + $0x60] sm:$0xff]   ;;  %v764_v20 = vld [vmem:[%s971_s1 + $0x68] sm:$0xff]  }
   0x6   :  { %700 = vmatprep.subr.bf16.mxu1 %v749_v5  ;;  %v757_v13 = vld [vmem:[%s971_s1 + $0xd8] sm:$0xff]   ;;  %v761_v17 = vld [vmem:[%s971_s1 + $0xe0] sm:$0xff]   ;;  %v765_v21 = vld [vmem:[%s971_s1 + $0xe8] sm:$0xff]  }
   0x7   :  { %v758_v14 = vld [vmem:[%s971_s1 + $0x18] sm:$0xff]   ;;  %v762_v18 = vld [vmem:[%s971_s1 + $0x20] sm:$0xff]   ;;  %v766_v22 = vld [vmem:[%s971_s1 + $0x28] sm:$0xff]  }
   0x8   :  { %673 = vmatpush3.bf16.msra.mxu0 %v750_v6  ;;  %v759_v15 = vld [vmem:[%s971_s1 + $0x98] sm:$0xff]   ;;  %v763_v19 = vld [vmem:[%s971_s1 + $0xa0] sm:$0xff]   ;;  %v767_v23 = vld [vmem:[%s971_s1 + $0xa8] sm:$0xff]  }
   0x9   :  { %701 = vmatpush3.bf16.msra.mxu1 %v751_v7  ;;  %674 = vmatprep.subr.bf16.mxu0 %v752_v8  ;;  %v768_v24 = vld [vmem:[%s971_s1 + $0x70] sm:$0xff]   ;;  %v772_v28 = vld [vmem:[%s971_s1 + $0x78] sm:$0xff]   ;;  %v781_v35 = vld [vmem:[%s972_s0 + $0xc] ss:$20 sps:$4 sm:$0xff]  }
   0xa   :  { %702 = vmatprep.subr.bf16.mxu1 %v753_v9  ;;  %v769_v25 = vld [vmem:[%s971_s1 + $0xf0] sm:$0xff]   ;;  %v773_v29 = vld [vmem:[%s971_s1 + $0xf8] sm:$0xff]   ;;  %v782_v36 = vld [vmem:[%s971_s1 + $0x100] sm:$0xff]   ;;  %456 = vmatprep.mubr.bf16.mxu1 %v781_v35 }
   0xb   :  { %v770_v26 = vld [vmem:[%s971_s1 + $0x30] sm:$0xff]   ;;  %v774_v30 = vld [vmem:[%s971_s1 + $0x38] sm:$0xff]   ;;  %v783_v37 = vld [vmem:[%s971_s1 + $0x108] sm:$0xff]  }
   0xc   :  { %675 = vmatpush3.bf16.msra.mxu0 %v754_v10  ;;  %v771_v27 = vld [vmem:[%s971_s1 + $0xb0] sm:$0xff]   ;;  %v775_v31 = vld [vmem:[%s971_s1 + $0xb8] sm:$0xff]   ;;  %v784_v38 = vld [vmem:[%s972_s0 + $0x2c] ss:$20 sps:$4 sm:$0xff]  }
   0xd   :  { %703 = vmatpush3.bf16.msra.mxu1 %v755_v11  ;;  %676 = vmatprep.subr.bf16.mxu0 %v756_v12  ;;  %v776_v32 = vld [vmem:[%s972_s0] ss:$20 sps:$4 sm:$0xff]   ;;  %v778_v33 = vld [vmem:[%s972_s0 + $0x4] ss:$20 sps:$4 sm:$0xff]   ;;  %v779_v34 = vld [vmem:[%s972_s0 + $0x8] ss:$20 sps:$4 sm:$0xff]  }
   0xe   :  { %704 = vmatprep.subr.bf16.mxu1 %v757_v13  ;;  %407 = vmatprep.mubr.bf16.mxu0 %v778_v33  ;;  %v786_v39 = vld [vmem:[%s972_s0 + $0x34] ss:$20 sps:$4 sm:$0xff]   ;;  %v789_v42 = vld [vmem:[%s972_s0 + $0x30] ss:$20 sps:$4 sm:$0xff]   ;;  %v791_v44 = vld [vmem:[%s971_s1 + $0x118] sm:$0xff]  }
   0xf   :  { %v788_v40 = vld [vmem:[%s972_s0 + $0x28] ss:$20 sps:$4 sm:$0xff]   ;;  %v790_v41 = vld [vmem:[%s971_s1 + $0x110] sm:$0xff]   ;;  %v793_v45 = vld [vmem:[%s972_s0 + $0x38] ss:$20 sps:$4 sm:$0xff]  }
  0x10   :  { %677 = vmatpush3.bf16.msra.mxu0 %v758_v14  ;;  %v792_v43 = vld [vmem:[%s972_s0 + $0x10] ss:$20 sps:$4 sm:$0xff]  }
  0x11   :  { %705 = vmatpush3.bf16.msra.mxu1 %v759_v15  ;;  %678 = vmatprep.subr.bf16.mxu0 %v760_v16 }
  0x12   :  { %706 = vmatprep.subr.bf16.mxu1 %v761_v17 }
  0x14   :  { %679 = vmatpush3.bf16.msra.mxu0 %v762_v18 }
  0x15   :  { %707 = vmatpush3.bf16.msra.mxu1 %v763_v19  ;;  %680 = vmatprep.subr.bf16.mxu0 %v764_v20 }
  0x16   :  { %708 = vmatprep.subr.bf16.mxu1 %v765_v21 }
  0x18   :  { %681 = vmatpush3.bf16.msra.mxu0 %v766_v22 }
  0x19   :  { %709 = vmatpush3.bf16.msra.mxu1 %v767_v23  ;;  %682 = vmatprep.subr.bf16.mxu0 %v768_v24 }
  0x1a   :  { %710 = vmatprep.subr.bf16.mxu1 %v769_v25 }
  0x1c   :  { %683 = vmatpush3.bf16.msra.mxu0 %v770_v26 }
  0x1d   :  { %711 = vmatpush3.bf16.msra.mxu1 %v771_v27  ;;  %684 = vmatprep.subr.bf16.mxu0 %v772_v28 }
  0x1e   :  { %712 = vmatprep.subr.bf16.mxu1 %v773_v29 }
  0x20   :  { %685 = vmatpush3.bf16.msra.mxu0 %v774_v30 }
  0x21   :  { %713 = vmatpush3.bf16.msra.mxu1 %v775_v31  ;;  %732 = vmatprep.subr.bf16.mxu0 %v782_v36 }
  0x23   :  { %408 = vmatmul.mubr.bf16.vlgmr.msra.gmra.mrb[0].mxu0 %v776_v32 }
  0x24   :  { %457 = vmatmul.mubr.bf16.vlgmr.msra.gmra.mrb[0].mxu1 %v779_v34  ;;  %733 = vmatpush3.bf16.msra.mxu0 %v782_v36 }
  0x25   :  { %734 = vmatprep.subr.bf16.mxu0 %v783_v37  ;;  %415 = vmatprep.mubr.bf16.mxu0 %v784_v38 }
  0x26   :  { %464 = vmatprep.mubr.bf16.mxu1 %v786_v39 }
  0x28   :  { %735 = vmatpush3.bf16.msra.mxu0 %v783_v37 }
  0x29   :  { %736 = vmatprep.subr.bf16.mxu0 %v790_v41 }
  0x2b   :  { %416 = vmatmul.mubr.bf16.gmra.mrb[4].mxu0 %v788_v40 }
  0x2c   :  { %465 = vmatmul.mubr.bf16.gmra.mrb[4].mxu1 %v789_v42  ;;  %740 = vmatprep.mubr.msk.bf16.mxu0 %vm368_vm0, %v792_v43 }
  0x2d   :  { %737 = vmatpush3.bf16.msra.mxu0 %v790_v41 }
  0x2e   :  { %738 = vmatprep.subr.bf16.mxu0 %v791_v44 }
  0x31   :  { %739 = vmatpush3.bf16.msra.mxu0 %v791_v44 }
  0x34   :  { %741 = vmatmul.mubr.msk.bf16.vlgmr.msra.gmra.mrb[8].mxu0 %vm368_vm0, %v793_v45  ;;  %v556_v45 = vlaneseq }
  0xf6   :  { %v686_v46 = vpop.f32.mrb[0].mxu0 }
  0xf7   :  { %v714_v47 = vpop.f32.mrb[0].mxu1  ;;  %v687_v48 = vpop.f32.mrb[1].mxu0 }
  0xf8   :  { %v688_v49 = vadd.f32 %v687_v48, %v686_v46  ;;  %v715_v50 = vpop.f32.mrb[1].mxu1  ;;  %v689_v51 = vpop.f32.mrb[2].mxu0  ;;  %v557_v46 = vshrl.u32 %v556_v45, 7 }
  0xf9   :  { %v716_v52 = vadd.f32 %v715_v50, %v714_v47  ;;  %v717_v53 = vpop.f32.mrb[2].mxu1  ;;  %v690_v54 = vpop.f32.mrb[3].mxu0  ;;  %v548_v47 = vld [vmem:[%s973_s2] sm:$0x1] }
  0xfa   :  { %v691_v55 = vadd.f32 %v690_v54, %v689_v51  ;;  %v718_v56 = vpop.f32.mrb[3].mxu1  ;;  %v558_v48 = vsub.s32 0, %v557_v46  ;;  %v552_v51 = vld [vmem:[%s974_s3] sm:$0x1] }
  0xfb   :  { %v719_v57 = vadd.f32 %v718_v56, %v717_v53  ;;  %v459_v58 = vadd.f32 %v716_v52, %v688_v49 }
  0xfd   :  { %v462_v59 = vadd.f32 %v719_v57, %v691_v55 }
  0xfe   :  { %v692_v60 = vpop.f32.mrb[4].mxu0 }
  0xff   :  { %v720_v61 = vpop.f32.mrb[4].mxu1  ;;  %v693_v62 = vpop.f32.mrb[5].mxu0 }
 0x100   :  { %v694_v63 = vadd.f32 %v693_v62, %v692_v60  ;;  %v721_v0 = vpop.f32.mrb[5].mxu1  ;;  %v695_v1 = vpop.f32.mrb[6].mxu0 }
 0x101   :  { %v722_v2 = vadd.f32 %v721_v0, %v720_v61  ;;  %v723_v3 = vpop.f32.mrb[6].mxu1  ;;  %v696_v4 = vpop.f32.mrb[7].mxu0 }
 0x102   :  { %v697_v5 = vadd.f32 %v696_v4, %v695_v1  ;;  %v724_v6 = vpop.f32.mrb[7].mxu1 }
 0x103   :  { %v725_v7 = vadd.f32 %v724_v6, %v723_v3  ;;  %v467_v8 = vadd.f32 %v722_v2, %v694_v63 }
 0x105   :  { %v470_v9 = vadd.f32 %v725_v7, %v697_v5 }
 0x107   :  { %v742_v10 = vpop.f32.mrb[8].mxu0 }
 0x108   :  { %v516_v11 = vadd.f32 %v742_v10, %v467_v8  ;;  %v507_v12 = vpop.f32.mrb[9].mxu0 }
 0x109   :  { %v508_v13 = vadd.f32 %v507_v12, %v459_v58  ;;  %v743_v14 = vpop.f32.mrb[10].mxu0 }
 0x10a   :  { %v519_v15 = vadd.f32 %v743_v14, %v470_v9  ;;  %v510_v16 = vpop.f32.mrb[11].mxu0  ;;  %v534_v21 = vmul.f32 %v516_v11, %v516_v11 }
 0x10b   :  { %v511_v17 = vadd.f32 %v510_v16, %v462_v59  ;;  %v532_v18 = vmul.f32 %v508_v13, %v508_v13 }
 0x10c   :  { %v535_v24 = vmul.f32 %v519_v15, %v519_v15 }
 0x10d   :  { %v522_v19 = vadd.f32 %v511_v17, %v508_v13  ;;  %v533_v20 = vmul.f32 %v511_v17, %v511_v17 }
 0x10f   :  { %v523_v22 = vadd.f32 %v522_v19, %v516_v11  ;;  %v536_v23 = vadd.f32 %v533_v20, %v532_v18 }
 0x111   :  { %v524_v25 = vadd.f32 %v523_v22, %v519_v15  ;;  %v537_v26 = vadd.f32 %v536_v23, %v534_v21 }
 0x113   :  { %v525_v27 = vrot.slane %v524_v25, 4  ;;  %v538_v28 = vadd.f32 %v537_v26, %v535_v24 }
 0x115   :  { %v526_v29 = vadd.f32 %v525_v27, %v524_v25  ;;  %v539_v30 = vrot.slane %v538_v28, 4 }
 0x117   :  { %v527_v31 = vrot.slane %v526_v29, 2  ;;  %v540_v32 = vadd.f32 %v539_v30, %v538_v28 }
 0x119   :  { %v528_v33 = vadd.f32 %v527_v31, %v526_v29  ;;  %v541_v34 = vrot.slane %v540_v32, 2 }
 0x11b   :  { %v529_v35 = vrot.slane %v528_v33, 1  ;;  %v542_v36 = vadd.f32 %v541_v34, %v540_v32 }
 0x11d   :  { %v530_v37 = vadd.f32 %v529_v35, %v528_v33  ;;  %v543_v38 = vrot.slane %v542_v36, 1 }
 0x11f   :  { %v531_v39 = vmul.f32 0.03125, %v530_v37  ;;  %v544_v40 = vadd.f32 %v543_v38, %v542_v36 }
 0x121   :  { %v545_v41 = vmul.f32 0.03125, %v544_v40  ;;  %v546_v42 = vmul.f32 %v531_v39, %v531_v39 }
 0x123   :  { %v547_v43 = vsub.f32 %v545_v41, %v546_v42 }
 0x125   :  { %v549_v44 = vadd.f32 1e-05, %v547_v43 }
 0x127   :  { %794 = vrsqrt.f32 %v549_v44 }
 0x131   :  { %v795_v49 = vpop.eup %794 }
 0x132   :  { %v551_v50 = vmul.f32 %v795_v49, %v548_v47 }
 0x134   :  { %v553_v52 = vmul.f32 %v551_v50, %v531_v39  ;;  %v559_v53 = vrot.slane %v551_v50, %v558_v48 }
 0x136   :  { %v554_v54 = vsub.f32 %v552_v51, %v553_v52  ;;  %v561_v55 = vmul.f32 %v559_v53, %v508_v13  ;;  %v562_v56 = vmul.f32 %v559_v53, %v511_v17  ;;  %v563_v57 = vmul.f32 %v559_v53, %v516_v11 }
 0x137   :  { %v564_v58 = vmul.f32 %v559_v53, %v519_v15 }
 0x138   :  { %v569_v59 = vrot.slane %v554_v54, %v558_v48 }
 0x13a   :  { %v571_v60 = vadd.f32 %v569_v59, %v561_v55  ;;  %v572_v61 = vadd.f32 %v569_v59, %v562_v56  ;;  %v573_v62 = vadd.f32 %v569_v59, %v563_v57  ;;  %v574_v63 = vadd.f32 %v569_v59, %v564_v58 }
 0x13c   :  { %v575_v0 = vmax.f32 %v571_v60, 0.0  ;;  %v576_v1 = vmax.f32 %v572_v61, 0.0  ;;  %v577_v2 = vmax.f32 %v573_v62, 0.0  ;;  %v578_v3 = vmax.f32 %v574_v63, 0.0 }
 0x13e   :  { %v662_v4 = vpack.c.bf16 %v576_v1, %v575_v0  ;;  %v667_v5 = vpack.c.bf16 %v578_v3, %v577_v2 }
 0x140   :  { %663 = vst [vmem:[%s975_s4] sm:$0xff] %v662_v4   ;;  %669 = vst [vmem:[%s975_s4 + $0x8] sm:$0xff] %v667_v5  }

// kernel: _lambda_.17
= control target key start
LH: loop header
LB: loop body
LE: loop exit
PB: predicated region body
PF: predicated region fallthrough
CT: control target
= control target key end

     0   :  { %vm64_vm0 = vcmask 523264   ;;  %v154_v37 = vlaneseq  ;;  %s305_s1 = inlined_call_operand.vmem [shape: bf16[64,128], index: 1, kind: input, shape index: {}]   ;;  %s306_s0 = inlined_call_operand.vmem [shape: bf16[32,64], index: 0, kind: input, shape index: {}]   ;;  %s307_s2 = inlined_call_operand.vmem [shape: f32[1,128], index: 2, kind: input, shape index: {}]   ;;  %s308_s3 = inlined_call_operand.vmem [shape: f32[1,128], index: 3, kind: input, shape index: {}]   ;;  %s309_s4 = inlined_call_operand.vmem [shape: bf16[32,128], index: 4, kind: output, shape index: {}]  }
   0x1   :  { %v242_v0 = vld [vmem:[%s305_s1] sm:$0xff]   ;;  %v243_v1 = vld [vmem:[%s305_s1 + $0x8] sm:$0xff]   ;;  %v244_v2 = vld [vmem:[%s305_s1 + $0x10] sm:$0xff]  }
   0x2   :  { %230 = vmatprep.subr.bf16.mxu0 %v242_v0  ;;  %v246_v3 = vld [vmem:[%s306_s0] sm:$0xff]   ;;  %v245_v4 = vld [vmem:[%s305_s1 + $0x18] sm:$0xff]   ;;  %v247_v5 = vld [vmem:[%s306_s0 + $0x8] sm:$0xff]   ;;  %v155_v38 = vshrl.u32 %v154_v37, 7 }
   0x3   :  { %231 = vmatpush3.bf16.msra.mxu0 %v242_v0  ;;  %238 = vmatprep.mubr.msk.bf16.mxu0 %vm64_vm0, %v246_v3  ;;  %v146_v39 = vld [vmem:[%s307_s2] sm:$0x1] }
   0x4   :  { %232 = vmatprep.subr.bf16.mxu0 %v243_v1  ;;  %v156_v40 = vsub.s32 0, %v155_v38  ;;  %v150_v43 = vld [vmem:[%s308_s3] sm:$0x1] }
   0x7   :  { %233 = vmatpush3.bf16.msra.mxu0 %v243_v1 }
   0x8   :  { %234 = vmatprep.subr.bf16.mxu0 %v244_v2 }
   0xb   :  { %235 = vmatpush3.bf16.msra.mxu0 %v244_v2 }
   0xc   :  { %236 = vmatprep.subr.bf16.mxu0 %v245_v4 }
   0xf   :  { %237 = vmatpush3.bf16.msra.mxu0 %v245_v4 }
  0x12   :  { %239 = vmatmul.mubr.msk.bf16.vlgmr.msra.gmra.mrb[0].mxu0 %vm64_vm0, %v247_v5 }
  0xe5   :  { %v240_v6 = vpop.f32.mrb[0].mxu0 }
  0xe6   :  { %v105_v7 = vpop.f32.mrb[1].mxu0  ;;  %v132_v13 = vmul.f32 %v240_v6, %v240_v6 }
  0xe7   :  { %v241_v8 = vpop.f32.mrb[2].mxu0  ;;  %v130_v10 = vmul.f32 %v105_v7, %v105_v7 }
  0xe8   :  { %v108_v9 = vpop.f32.mrb[3].mxu0  ;;  %v133_v16 = vmul.f32 %v241_v8, %v241_v8 }
  0xe9   :  { %v120_v11 = vadd.f32 %v108_v9, %v105_v7  ;;  %v131_v12 = vmul.f32 %v108_v9, %v108_v9 }
  0xeb   :  { %v121_v14 = vadd.f32 %v240_v6, %v120_v11  ;;  %v134_v15 = vadd.f32 %v131_v12, %v130_v10 }
  0xed   :  { %v122_v17 = vadd.f32 %v241_v8, %v121_v14  ;;  %v135_v18 = vadd.f32 %v134_v15, %v132_v13 }
  0xef   :  { %v123_v19 = vrot.slane %v122_v17, 4  ;;  %v136_v20 = vadd.f32 %v135_v18, %v133_v16 }
  0xf1   :  { %v124_v21 = vadd.f32 %v123_v19, %v122_v17  ;;  %v137_v22 = vrot.slane %v136_v20, 4 }
  0xf3   :  { %v125_v23 = vrot.slane %v124_v21, 2  ;;  %v138_v24 = vadd.f32 %v137_v22, %v136_v20 }
  0xf5   :  { %v126_v25 = vadd.f32 %v125_v23, %v124_v21  ;;  %v139_v26 = vrot.slane %v138_v24, 2 }
  0xf7   :  { %v127_v27 = vrot.slane %v126_v25, 1  ;;  %v140_v28 = vadd.f32 %v139_v26, %v138_v24 }
  0xf9   :  { %v128_v29 = vadd.f32 %v127_v27, %v126_v25  ;;  %v141_v30 = vrot.slane %v140_v28, 1 }
  0xfb   :  { %v129_v31 = vmul.f32 0.03125, %v128_v29  ;;  %v142_v32 = vadd.f32 %v141_v30, %v140_v28 }
  0xfd   :  { %v143_v33 = vmul.f32 0.03125, %v142_v32  ;;  %v144_v34 = vmul.f32 %v129_v31, %v129_v31 }
  0xff   :  { %v145_v35 = vsub.f32 %v143_v33, %v144_v34 }
 0x101   :  { %v147_v36 = vadd.f32 1e-05, %v145_v35 }
 0x103   :  { %248 = vrsqrt.f32 %v147_v36 }
 0x10d   :  { %v249_v41 = vpop.eup %248 }
 0x10e   :  { %v149_v42 = vmul.f32 %v249_v41, %v146_v39 }
 0x110   :  { %v151_v44 = vmul.f32 %v149_v42, %v129_v31  ;;  %v157_v45 = vrot.slane %v149_v42, %v156_v40 }
 0x112   :  { %v152_v46 = vsub.f32 %v150_v43, %v151_v44  ;;  %v159_v47 = vmul.f32 %v157_v45, %v105_v7  ;;  %v160_v48 = vmul.f32 %v157_v45, %v108_v9  ;;  %v161_v49 = vmul.f32 %v240_v6, %v157_v45 }
 0x113   :  { %v162_v50 = vmul.f32 %v241_v8, %v157_v45 }
 0x114   :  { %v167_v51 = vrot.slane %v152_v46, %v156_v40 }
 0x116   :  { %v169_v52 = vadd.f32 %v167_v51, %v159_v47  ;;  %v170_v53 = vadd.f32 %v167_v51, %v160_v48  ;;  %v171_v54 = vadd.f32 %v167_v51, %v161_v49  ;;  %v172_v55 = vadd.f32 %v167_v51, %v162_v50 }
 0x118   :  { %v216_v56 = vpack.c.bf16 %v170_v53, %v169_v52  ;;  %v221_v57 = vpack.c.bf16 %v172_v55, %v171_v54 }
 0x11a   :  { %217 = vst [vmem:[%s309_s4] sm:$0xff] %v216_v56   ;;  %223 = vst [vmem:[%s309_s4 + $0x8] sm:$0xff] %v221_v57  }

// kernel: _lambda_.19
= control target key start
LH: loop header
LB: loop body
LE: loop exit
PB: predicated region body
PF: predicated region fallthrough
CT: control target
= control target key end

     0   :  { %v267_v3 = vmov 0.0|0.0   ;;  %vm268_vm0 = vmmov 0   ;;  %v269_v6 = vmov 0.0   ;;  %s360_s0 = inlined_call_operand.vmem [shape: bf16[2,16,128], index: 0, kind: input, shape index: {}]   ;;  %s361_s1 = inlined_call_operand.vmem [shape: f32[128,128], index: 1, kind: input, shape index: {}]   ;;  %s362_s2 = inlined_call_operand.vmem [shape: f32[1,128], index: 2, kind: input, shape index: {}]   ;;  %s363_s3 = inlined_call_operand.hbm [shape: f32[2,128], index: 3, kind: output, shape index: {}]  }
   0x1   :  { %v40_v0 = vld [vmem:[%s361_s1] sm:$0xff]  ;;  %v41_v1 = vld [vmem:[%s361_s1 + $0x8] sm:$0xff]  ;;  %v42_v2 = vld [vmem:[%s361_s1 + $0x10] sm:$0xff]  ;;  %215 = vmatprep.subr.bf16.mxu0 %v267_v3  ;;  %212 = vmatprep.mubr.msk.f32.mxu0 %vm268_vm0, %v269_v6 }
   0x2   :  { %v216_v4 = vpack.c.bf16 %v41_v1, %v40_v0  ;;  %v43_v5 = vld [vmem:[%s361_s1 + $0x18] sm:$0xff]  ;;  %v44_v8 = vld [vmem:[%s361_s1 + $0x20] sm:$0xff]  ;;  %v45_v9 = vld [vmem:[%s361_s1 + $0x28] sm:$0xff] }
   0x3   :  { %v219_v7 = vpack.c.bf16 %v43_v5, %v42_v2  ;;  %v155_v10 = vld [vmem:[%s360_s0] sm:$0xff]   ;;  %v162_v11 = vld [vmem:[%s360_s0 + $0x8] sm:$0xff]  }
   0x4   :  { %217 = vmatpush3.bf16.msra.mxu0 %v216_v4  ;;  %v156_v12 = vunpack.c.l.bf16 %v155_v10  ;;  %v157_v13 = vunpack.c.h.bf16 %v155_v10  ;;  %v160_v14 = vunpack.c.l.bf16 %v162_v11 }
   0x5   :  { %218 = vmatprep.subr.bf16.mxu0 %v267_v3 }
   0x6   :  { %8 = vsyncpa [#allocation3], 0  ;;  %v222_v15 = vpack.c.bf16 %v45_v9, %v44_v8  ;;  %v161_v16 = vunpack.c.h.bf16 %v162_v11  ;;  %v46_v17 = vld [vmem:[%s361_s1 + $0x30] sm:$0xff]  ;;  %v47_v18 = vld [vmem:[%s361_s1 + $0x38] sm:$0xff]  ;;  %v23_v19 = vadd.f32 %v157_v13, %v156_v12  ;;  %vm65_vm1 = vcmask 1041409   ;;  %s270_s22 = smov [#allocation2]  }
   0x7   :  { %v225_v22 = vpack.c.bf16 %v47_v18, %v46_v17  ;;  %v48_v24 = vld [vmem:[%s361_s1 + $0x40] sm:$0xff]  ;;  %v49_v25 = vld [vmem:[%s361_s1 + $0x48] sm:$0xff]  ;;  %v50_v31 = vld [vmem:[%s361_s1 + $0x50] sm:$0xff]  ;;  %s145_s23 = sshll.u32 %s270_s22, 4  ;;  %s146_s23 = int_to_ptr.vmem [resolvable:$true] %s145_s23 }
   0x8   :  { %220 = vmatpush3.bf16.msra.mxu0 %v219_v7  ;;  %v30_v20 = vadd.f32 %v161_v16, %v160_v14  ;;  %v24_v21 = vrot.slane %v23_v19, 4  ;;  %v228_v29 = vpack.c.bf16 %v49_v25, %v48_v24  ;;  %v51_v32 = vld [vmem:[%s361_s1 + $0x58] sm:$0xff]  ;;  %v52_v38 = vld [vmem:[%s361_s1 + $0x60] sm:$0xff]  ;;  %v53_v39 = vld [vmem:[%s361_s1 + $0x68] sm:$0xff]  ;;  %p248_p1 = scmp.lt.s32.totalorder %s146_s23, %s146_s23 }
   0x9   :  { %221 = vmatprep.subr.bf16.mxu0 %v267_v3  ;;  %v231_v35 = vpack.c.bf16 %v51_v32, %v50_v31  ;;  %v234_v40 = vpack.c.bf16 %v53_v39, %v52_v38  ;;  %v54_v43 = vld [vmem:[%s361_s1 + $0x70] sm:$0xff]  ;;  %v55_v44 = vld [vmem:[%s361_s1 + $0x78] sm:$0xff]  ;;  %v153_v49 = vld [vmem:[%s362_s2] ss:$0 sm:$0xff]  ;;  %s243_s1 = scalar_lea.vmem %s146_s23, 32 }
   0xa   :  { %v31_v23 = vrot.slane %v30_v20, 4  ;;  %v25_v26 = vadd.f32 %v24_v21, %v23_v19  ;;  %v237_v45 = vpack.c.bf16 %v55_v44, %v54_v43  ;;  %p244_p0 = scmp.ne.s32.totalorder %s146_s23, %s243_s1  ;;  %p249_p2 = scmp.lt.s32.totalorder %s243_s1, %s243_s1 }
   0xc   :  { %223 = vmatpush3.bf16.msra.mxu0 %v222_v15  ;;  %v32_v27 = vadd.f32 %v31_v23, %v30_v20  ;;  %v26_v28 = vrot.slane %v25_v26, 2  ;;  %p250_p3 = por %p249_p2, %p248_p1 }
   0xd   :  { %224 = vmatprep.subr.bf16.mxu0 %v267_v3 }
   0xe   :  { %v33_v30 = vrot.slane %v32_v27, 2  ;;  %v27_v33 = vadd.f32 %v26_v28, %v25_v26  ;;  %p251_p4 = pnand %p250_p3, %p244_p0 }
  0x10   :  { %226 = vmatpush3.bf16.msra.mxu0 %v225_v22  ;;  %v34_v34 = vadd.f32 %v33_v30, %v32_v27  ;;  %v28_v36 = vrot.slane %v27_v33, 1 }
  0x11   :  { %227 = vmatprep.subr.bf16.mxu0 %v267_v3 }
  0x12   :  { %v35_v37 = vrot.slane %v34_v34, 1  ;;  %v29_v41 = vadd.f32 %v28_v36, %v27_v33 }
  0x14   :  { %229 = vmatpush3.bf16.msra.mxu0 %v228_v29  ;;  %v36_v42 = vadd.f32 %v35_v37, %v34_v34  ;;  %v38_v46 = vmul.f32 0.0625, %v29_v41 }
  0x15   :  { %230 = vmatprep.subr.bf16.mxu0 %v267_v3 }
  0x16   :  { %v39_v47 = vmul.f32 0.0625, %v36_v42 }
  0x18   :  { %232 = vmatpush3.bf16.msra.mxu0 %v231_v35  ;;  %v66_v48 = vsel %vm65_vm1, %v39_v47, %v38_v46 }
  0x19   :  { %233 = vmatprep.subr.bf16.mxu0 %v267_v3 }
  0x1c   :  { %235 = vmatpush3.bf16.msra.mxu0 %v234_v40 }
  0x1d   :  { %236 = vmatprep.subr.bf16.mxu0 %v267_v3 }
  0x20   :  { %238 = vmatpush3.bf16.msra.mxu0 %v237_v45 }
  0x23   :  { %213 = vmatmul.mubr.f32.vlgmr.msra.gmra.mrb[0].mxu0 %v66_v48 }
  0xf6   :  { %v134_v50 = vpop.f32.mrb[0].mxu0 }
  0xf7   :  { %v135_v51 = vadd.f32 %v153_v49, %v134_v50  ;;  %v214_v52 = vpop.f32.mrb[1].mxu0 }
  0xf9   :  { %138 = vst [vmem:[#allocation2] sm:$0x3] %v135_v51 }
  0xfa   :  { %254 = shalt.err (!%p251_p4)
}
  0xfb   :  { %s255_s26 = scalar_lea.hbm %s363_s3, 32 }
  0xfc   :  { %p256_p5 = scmp.ne.s32.totalorder %s363_s3, %s255_s26  ;;  %p259_p6 = scmp.lt.u32.totalorder %s255_s26, %s363_s3 }
  0xfe   :  { %p261_p7 = pnand %p259_p6, %p256_p5 }
 0x100   :  { %264 = shalt.err (!%p261_p7)
}
 0x101   :  { %148 = dma.vmem_to_hbm [thread:$0]  %s146_s23, 32, %s363_s3, [#allocation3]  }
 0x102   :  { %265 = dma.done.wait [#allocation3], 32  }
 0x103   :  { %266 = vsyncadd [#allocation3], 4294967264 }
 0x104   :  { %152 = vsyncpa [#allocation3], 1 }

// kernel: _lambda_.18
= control target key start
LH: loop header
LB: loop body
LE: loop exit
PB: predicated region body
PF: predicated region fallthrough
CT: control target
= control target key end

     0   :  { %s1725_s1 = inlined_call_operand.vmem [shape: bf16[1152,128], index: 1, kind: input, shape index: {}]   ;;  %s1726_s0 = inlined_call_operand.vmem [shape: bf16[32,1152], index: 0, kind: input, shape index: {}]   ;;  %s1727_s2 = inlined_call_operand.vmem [shape: f32[1,128], index: 2, kind: input, shape index: {}]   ;;  %s1728_s3 = inlined_call_operand.vmem [shape: f32[1,128], index: 3, kind: input, shape index: {}]   ;;  %s1729_s4 = inlined_call_operand.vmem [shape: bf16[32,128], index: 4, kind: input, shape index: {}]   ;;  %s1730_s5 = inlined_call_operand.vmem [shape: bf16[32,128], index: 5, kind: output, shape index: {}]  }
   0x1   :  { %v1307_v0 = vld [vmem:[%s1725_s1 + $0x40] sm:$0xff]   ;;  %v1311_v4 = vld [vmem:[%s1725_s1 + $0x48] sm:$0xff]   ;;  %v1315_v8 = vld [vmem:[%s1725_s1 + $0x50] sm:$0xff]  }
   0x2   :  { %v1308_v1 = vld [vmem:[%s1725_s1 + $0xc0] sm:$0xff]   ;;  %1165 = vmatprep.subr.bf16.mxu0 %v1307_v0  ;;  %v1312_v5 = vld [vmem:[%s1725_s1 + $0xc8] sm:$0xff]   ;;  %v1316_v9 = vld [vmem:[%s1725_s1 + $0xd0] sm:$0xff]  }
   0x3   :  { %v1309_v2 = vld [vmem:[%s1725_s1] sm:$0xff]   ;;  %1193 = vmatprep.subr.bf16.mxu1 %v1308_v1  ;;  %v1313_v6 = vld [vmem:[%s1725_s1 + $0x8] sm:$0xff]   ;;  %v1317_v10 = vld [vmem:[%s1725_s1 + $0x10] sm:$0xff]  }
   0x4   :  { %v1310_v3 = vld [vmem:[%s1725_s1 + $0x80] sm:$0xff]   ;;  %1166 = vmatpush3.bf16.msra.mxu0 %v1309_v2  ;;  %v1314_v7 = vld [vmem:[%s1725_s1 + $0x88] sm:$0xff]   ;;  %v1318_v11 = vld [vmem:[%s1725_s1 + $0x90] sm:$0xff]  }
   0x5   :  { %1194 = vmatpush3.bf16.msra.mxu1 %v1310_v3  ;;  %1167 = vmatprep.subr.bf16.mxu0 %v1311_v4  ;;  %v1319_v12 = vld [vmem:[%s1725_s1 + $0x58] sm:$0xff]   ;;  %v1323_v16 = vld [vmem:[%s1725_s1 + $0x60] sm:$0xff]   ;;  %v1327_v20 = vld [vmem:[%s1725_s1 + $0x68] sm:$0xff]  }
   0x6   :  { %1195 = vmatprep.subr.bf16.mxu1 %v1312_v5  ;;  %v1320_v13 = vld [vmem:[%s1725_s1 + $0xd8] sm:$0xff]   ;;  %v1324_v17 = vld [vmem:[%s1725_s1 + $0xe0] sm:$0xff]   ;;  %v1328_v21 = vld [vmem:[%s1725_s1 + $0xe8] sm:$0xff]  }
   0x7   :  { %v1321_v14 = vld [vmem:[%s1725_s1 + $0x18] sm:$0xff]   ;;  %v1325_v18 = vld [vmem:[%s1725_s1 + $0x20] sm:$0xff]   ;;  %v1329_v22 = vld [vmem:[%s1725_s1 + $0x28] sm:$0xff]  }
   0x8   :  { %1168 = vmatpush3.bf16.msra.mxu0 %v1313_v6  ;;  %v1322_v15 = vld [vmem:[%s1725_s1 + $0x98] sm:$0xff]   ;;  %v1326_v19 = vld [vmem:[%s1725_s1 + $0xa0] sm:$0xff]   ;;  %v1330_v23 = vld [vmem:[%s1725_s1 + $0xa8] sm:$0xff]  }
   0x9   :  { %1196 = vmatpush3.bf16.msra.mxu1 %v1314_v7  ;;  %1169 = vmatprep.subr.bf16.mxu0 %v1315_v8  ;;  %v1331_v24 = vld [vmem:[%s1725_s1 + $0x70] sm:$0xff]   ;;  %v1335_v28 = vld [vmem:[%s1725_s1 + $0x78] sm:$0xff]   ;;  %v1339_v32 = vld [vmem:[%s1726_s0] ss:$36 sps:$4 sm:$0xff]  }
   0xa   :  { %1197 = vmatprep.subr.bf16.mxu1 %v1316_v9  ;;  %v1332_v25 = vld [vmem:[%s1725_s1 + $0xf0] sm:$0xff]   ;;  %v1336_v29 = vld [vmem:[%s1725_s1 + $0xf8] sm:$0xff]   ;;  %v1341_v33 = vld [vmem:[%s1726_s0 + $0x4] ss:$36 sps:$4 sm:$0xff]  }
   0xb   :  { %v1333_v26 = vld [vmem:[%s1725_s1 + $0x30] sm:$0xff]   ;;  %v1337_v30 = vld [vmem:[%s1725_s1 + $0x38] sm:$0xff]   ;;  %v1342_v34 = vld [vmem:[%s1726_s0 + $0x8] ss:$36 sps:$4 sm:$0xff]   ;;  %741 = vmatprep.mubr.bf16.mxu0 %v1341_v33 }
   0xc   :  { %1170 = vmatpush3.bf16.msra.mxu0 %v1317_v10  ;;  %v1334_v27 = vld [vmem:[%s1725_s1 + $0xb0] sm:$0xff]   ;;  %v1338_v31 = vld [vmem:[%s1725_s1 + $0xb8] sm:$0xff]   ;;  %v1345_v36 = vld [vmem:[%s1725_s1 + $0x140] sm:$0xff]  }
   0xd   :  { %1198 = vmatpush3.bf16.msra.mxu1 %v1318_v11  ;;  %1171 = vmatprep.subr.bf16.mxu0 %v1319_v12  ;;  %v1344_v35 = vld [vmem:[%s1726_s0 + $0xc] ss:$36 sps:$4 sm:$0xff]   ;;  %v1346_v37 = vld [vmem:[%s1725_s1 + $0x100] sm:$0xff]   ;;  %v1357_v48 = vld [vmem:[%s1725_s1 + $0x158] sm:$0xff]  }
   0xe   :  { %1199 = vmatprep.subr.bf16.mxu1 %v1320_v13  ;;  %790 = vmatprep.mubr.bf16.mxu1 %v1344_v35  ;;  %v1347_v38 = vld [vmem:[%s1725_s1 + $0x1c0] sm:$0xff]   ;;  %v1349_v40 = vld [vmem:[%s1725_s1 + $0x148] sm:$0xff]   ;;  %v1353_v44 = vld [vmem:[%s1725_s1 + $0x150] sm:$0xff]  }
   0xf   :  { %v1348_v39 = vld [vmem:[%s1725_s1 + $0x180] sm:$0xff]   ;;  %v1350_v41 = vld [vmem:[%s1725_s1 + $0x108] sm:$0xff]   ;;  %v1354_v45 = vld [vmem:[%s1725_s1 + $0x110] sm:$0xff]  }
  0x10   :  { %1172 = vmatpush3.bf16.msra.mxu0 %v1321_v14  ;;  %v1351_v42 = vld [vmem:[%s1725_s1 + $0x1c8] sm:$0xff]   ;;  %v1355_v46 = vld [vmem:[%s1725_s1 + $0x1d0] sm:$0xff]   ;;  %v1358_v49 = vld [vmem:[%s1725_s1 + $0x118] sm:$0xff]  }
  0x11   :  { %1200 = vmatpush3.bf16.msra.mxu1 %v1322_v15  ;;  %1173 = vmatprep.subr.bf16.mxu0 %v1323_v16  ;;  %v1352_v43 = vld [vmem:[%s1725_s1 + $0x188] sm:$0xff]   ;;  %v1356_v47 = vld [vmem:[%s1725_s1 + $0x190] sm:$0xff]   ;;  %v1359_v50 = vld [vmem:[%s1725_s1 + $0x1d8] sm:$0xff]  }
  0x12   :  { %1201 = vmatprep.subr.bf16.mxu1 %v1324_v17  ;;  %v1360_v51 = vld [vmem:[%s1725_s1 + $0x198] sm:$0xff]   ;;  %v1361_v52 = vld [vmem:[%s1725_s1 + $0x160] sm:$0xff]   ;;  %v1365_v56 = vld [vmem:[%s1725_s1 + $0x168] sm:$0xff]  }
  0x13   :  { %v1362_v53 = vld [vmem:[%s1725_s1 + $0x120] sm:$0xff]   ;;  %v1366_v57 = vld [vmem:[%s1726_s0 + $0x4c] ss:$36 sps:$4 sm:$0xff]   ;;  %v1368_v58 = vld [vmem:[%s1726_s0 + $0x54] ss:$36 sps:$4 sm:$0xff]  }
  0x14   :  { %1174 = vmatpush3.bf16.msra.mxu0 %v1325_v18  ;;  %v1363_v54 = vld [vmem:[%s1725_s1 + $0x1e0] sm:$0xff]   ;;  %v1370_v59 = vld [vmem:[%s1725_s1 + $0x128] sm:$0xff]   ;;  %v1372_v61 = vld [vmem:[%s1726_s0 + $0x50] ss:$36 sps:$4 sm:$0xff]  }
  0x15   :  { %1202 = vmatpush3.bf16.msra.mxu1 %v1326_v19  ;;  %1175 = vmatprep.subr.bf16.mxu0 %v1327_v20  ;;  %v1364_v55 = vld [vmem:[%s1725_s1 + $0x1a0] sm:$0xff]   ;;  %v1371_v60 = vld [vmem:[%s1726_s0 + $0x48] ss:$36 sps:$4 sm:$0xff]   ;;  %v1375_v0 = vld [vmem:[%s1725_s1 + $0x170] sm:$0xff]  }
  0x16   :  { %1203 = vmatprep.subr.bf16.mxu1 %v1328_v21  ;;  %v1373_v62 = vld [vmem:[%s1725_s1 + $0x1e8] sm:$0xff]   ;;  %v1376_v1 = vld [vmem:[%s1725_s1 + $0x130] sm:$0xff]   ;;  %v1379_v4 = vld [vmem:[%s1725_s1 + $0x178] sm:$0xff]  }
  0x17   :  { %v1374_v63 = vld [vmem:[%s1725_s1 + $0x1a8] sm:$0xff]   ;;  %v1377_v2 = vld [vmem:[%s1725_s1 + $0x1f0] sm:$0xff]   ;;  %v1380_v5 = vld [vmem:[%s1725_s1 + $0x138] sm:$0xff]  }
  0x18   :  { %1176 = vmatpush3.bf16.msra.mxu0 %v1329_v22  ;;  %v1378_v3 = vld [vmem:[%s1725_s1 + $0x1b0] sm:$0xff]   ;;  %v1381_v6 = vld [vmem:[%s1725_s1 + $0x1f8] sm:$0xff]   ;;  %v1386_v10 = vld [vmem:[%s1725_s1 + $0x200] sm:$0xff]  }
  0x19   :  { %1204 = vmatpush3.bf16.msra.mxu1 %v1330_v23  ;;  %1177 = vmatprep.subr.bf16.mxu0 %v1331_v24  ;;  %v1382_v7 = vld [vmem:[%s1726_s0 + $0x10] ss:$36 sps:$4 sm:$0xff]   ;;  %v1385_v9 = vld [vmem:[%s1725_s1 + $0x1b8] sm:$0xff]   ;;  %v1390_v13 = vld [vmem:[%s1725_s1 + $0x208] sm:$0xff]  }
  0x1a   :  { %1205 = vmatprep.subr.bf16.mxu1 %v1332_v25  ;;  %v1384_v8 = vld [vmem:[%s1726_s0 + $0x14] ss:$36 sps:$4 sm:$0xff]   ;;  %v1389_v12 = vld [vmem:[%s1726_s0 + $0x1c] ss:$36 sps:$4 sm:$0xff]   ;;  %v1395_v17 = vld [vmem:[%s1726_s0 + $0x64] ss:$36 sps:$4 sm:$0xff]  }
  0x1b   :  { %v1387_v11 = vld [vmem:[%s1726_s0 + $0x18] ss:$36 sps:$4 sm:$0xff]   ;;  %v1394_v16 = vld [vmem:[%s1725_s1 + $0x210] sm:$0xff]   ;;  %v1397_v18 = vld [vmem:[%s1726_s0 + $0x60] ss:$36 sps:$4 sm:$0xff]  }
  0x1c   :  { %1178 = vmatpush3.bf16.msra.mxu0 %v1333_v26  ;;  %v1391_v14 = vld [vmem:[%s1726_s0 + $0x5c] ss:$36 sps:$4 sm:$0xff]   ;;  %v1400_v22 = vld [vmem:[%s1725_s1 + $0x228] sm:$0xff]   ;;  %v1401_v23 = vld [vmem:[%s1725_s1 + $0x230] sm:$0xff]  }
  0x1d   :  { %1206 = vmatpush3.bf16.msra.mxu1 %v1334_v27  ;;  %1179 = vmatprep.subr.bf16.mxu0 %v1335_v28  ;;  %v1393_v15 = vld [vmem:[%s1726_s0 + $0x58] ss:$36 sps:$4 sm:$0xff]   ;;  %v1399_v20 = vld [vmem:[%s1725_s1 + $0x220] sm:$0xff]   ;;  %v1404_v25 = vld [vmem:[%s1726_s0 + $0x68] ss:$36 sps:$4 sm:$0xff]  }
  0x1e   :  { %1207 = vmatprep.subr.bf16.mxu1 %v1336_v29  ;;  %v1398_v19 = vld [vmem:[%s1725_s1 + $0x218] sm:$0xff]   ;;  %v1403_v21 = vld [vmem:[%s1726_s0 + $0x20] ss:$36 sps:$4 sm:$0xff]  }
  0x1f   :  { %v1402_v24 = vld [vmem:[%s1725_s1 + $0x238] sm:$0xff]  }
  0x20   :  { %1180 = vmatpush3.bf16.msra.mxu0 %v1337_v30 }
  0x21   :  { %1208 = vmatpush3.bf16.msra.mxu1 %v1338_v31  ;;  %1221 = vmatprep.subr.bf16.mxu0 %v1345_v36 }
  0x22   :  { %1249 = vmatprep.subr.bf16.mxu1 %v1347_v38 }
  0x23   :  { %742 = vmatmul.mubr.bf16.vlgmr.msra.gmra.mrb[0].mxu0 %v1339_v32 }
  0x24   :  { %791 = vmatmul.mubr.bf16.vlgmr.msra.gmra.mrb[0].mxu1 %v1342_v34  ;;  %1222 = vmatpush3.bf16.msra.mxu0 %v1346_v37 }
  0x25   :  { %1250 = vmatpush3.bf16.msra.mxu1 %v1348_v39  ;;  %1223 = vmatprep.subr.bf16.mxu0 %v1349_v40 }
  0x26   :  { %1251 = vmatprep.subr.bf16.mxu1 %v1351_v42  ;;  %749 = vmatprep.mubr.bf16.mxu0 %v1366_v57 }
  0x27   :  { %798 = vmatprep.mubr.bf16.mxu1 %v1368_v58 }
  0x28   :  { %1224 = vmatpush3.bf16.msra.mxu0 %v1350_v41 }
  0x29   :  { %1252 = vmatpush3.bf16.msra.mxu1 %v1352_v43  ;;  %1225 = vmatprep.subr.bf16.mxu0 %v1353_v44 }
  0x2a   :  { %1253 = vmatprep.subr.bf16.mxu1 %v1355_v46 }
  0x2b   :  { %750 = vmatmul.mubr.bf16.gmra.mrb[4].mxu0 %v1371_v60 }
  0x2c   :  { %1226 = vmatpush3.bf16.msra.mxu0 %v1354_v45  ;;  %799 = vmatmul.mubr.bf16.gmra.mrb[4].mxu1 %v1372_v61 }
  0x2d   :  { %1254 = vmatpush3.bf16.msra.mxu1 %v1356_v47  ;;  %1227 = vmatprep.subr.bf16.mxu0 %v1357_v48 }
  0x2e   :  { %1255 = vmatprep.subr.bf16.mxu1 %v1359_v50  ;;  %839 = vmatprep.mubr.bf16.mxu0 %v1384_v8 }
  0x2f   :  { %888 = vmatprep.mubr.bf16.mxu1 %v1389_v12 }
  0x30   :  { %1228 = vmatpush3.bf16.msra.mxu0 %v1358_v49 }
  0x31   :  { %1256 = vmatpush3.bf16.msra.mxu1 %v1360_v51  ;;  %1229 = vmatprep.subr.bf16.mxu0 %v1361_v52 }
  0x32   :  { %1257 = vmatprep.subr.bf16.mxu1 %v1363_v54 }
  0x34   :  { %1230 = vmatpush3.bf16.msra.mxu0 %v1362_v53 }
  0x35   :  { %1258 = vmatpush3.bf16.msra.mxu1 %v1364_v55  ;;  %1231 = vmatprep.subr.bf16.mxu0 %v1365_v56 }
  0x36   :  { %1259 = vmatprep.subr.bf16.mxu1 %v1373_v62 }
  0x38   :  { %1232 = vmatpush3.bf16.msra.mxu0 %v1370_v59 }
  0x39   :  { %1260 = vmatpush3.bf16.msra.mxu1 %v1374_v63  ;;  %1233 = vmatprep.subr.bf16.mxu0 %v1375_v0 }
  0x3a   :  { %1261 = vmatprep.subr.bf16.mxu1 %v1377_v2 }
  0x3c   :  { %1234 = vmatpush3.bf16.msra.mxu0 %v1376_v1 }
  0x3d   :  { %1262 = vmatpush3.bf16.msra.mxu1 %v1378_v3  ;;  %1235 = vmatprep.subr.bf16.mxu0 %v1379_v4 }
  0x3e   :  { %1263 = vmatprep.subr.bf16.mxu1 %v1381_v6 }
  0x40   :  { %1236 = vmatpush3.bf16.msra.mxu0 %v1380_v5 }
  0x41   :  { %1264 = vmatpush3.bf16.msra.mxu1 %v1385_v9  ;;  %1287 = vmatprep.subr.bf16.mxu0 %v1386_v10 }
  0x43   :  { %840 = vmatmul.mubr.bf16.vlgmr.msra.gmra.mrb[8].mxu0 %v1382_v7 }
  0x44   :  { %1288 = vmatpush3.bf16.msra.mxu0 %v1386_v10  ;;  %889 = vmatmul.mubr.bf16.vlgmr.msra.gmra.mrb[8].mxu1 %v1387_v11 }
  0x45   :  { %1289 = vmatprep.subr.bf16.mxu0 %v1390_v13  ;;  %847 = vmatprep.mubr.bf16.mxu0 %v1391_v14 }
  0x46   :  { %896 = vmatprep.mubr.bf16.mxu1 %v1395_v17 }
  0x48   :  { %1290 = vmatpush3.bf16.msra.mxu0 %v1390_v13 }
  0x49   :  { %1291 = vmatprep.subr.bf16.mxu0 %v1394_v16 }
  0x4b   :  { %848 = vmatmul.mubr.bf16.gmra.mrb[12].mxu0 %v1393_v15 }
  0x4c   :  { %1292 = vmatpush3.bf16.msra.mxu0 %v1394_v16  ;;  %897 = vmatmul.mubr.bf16.gmra.mrb[12].mxu1 %v1397_v18 }
  0x4d   :  { %1293 = vmatprep.subr.bf16.mxu0 %v1398_v19  ;;  %1303 = vmatprep.mubr.bf16.mxu0 %v1403_v21 }
  0x50   :  { %1294 = vmatpush3.bf16.msra.mxu0 %v1398_v19 }
  0x51   :  { %1295 = vmatprep.subr.bf16.mxu0 %v1399_v20 }
  0x54   :  { %1296 = vmatpush3.bf16.msra.mxu0 %v1399_v20 }
  0x55   :  { %1297 = vmatprep.subr.bf16.mxu0 %v1400_v22 }
  0x58   :  { %1298 = vmatpush3.bf16.msra.mxu0 %v1400_v22 }
  0x59   :  { %1299 = vmatprep.subr.bf16.mxu0 %v1401_v23 }
  0x5c   :  { %1300 = vmatpush3.bf16.msra.mxu0 %v1401_v23 }
  0x5d   :  { %1301 = vmatprep.subr.bf16.mxu0 %v1402_v24 }
  0x60   :  { %1302 = vmatpush3.bf16.msra.mxu0 %v1402_v24 }
  0x63   :  { %1304 = vmatmul.mubr.bf16.vlgmr.msra.gmra.mrb[16].mxu0 %v1404_v25 }
  0xf6   :  { %v1181_v26 = vpop.f32.mrb[0].mxu0 }
  0xf7   :  { %v1209_v27 = vpop.f32.mrb[0].mxu1  ;;  %v1182_v28 = vpop.f32.mrb[1].mxu0 }
  0xf8   :  { %v1183_v29 = vadd.f32 %v1182_v28, %v1181_v26  ;;  %v1210_v30 = vpop.f32.mrb[1].mxu1  ;;  %v1184_v31 = vpop.f32.mrb[2].mxu0 }
  0xf9   :  { %v1211_v32 = vadd.f32 %v1210_v30, %v1209_v27  ;;  %v1212_v33 = vpop.f32.mrb[2].mxu1  ;;  %v1185_v34 = vpop.f32.mrb[3].mxu0 }
  0xfa   :  { %v1186_v35 = vadd.f32 %v1185_v34, %v1184_v31  ;;  %v1213_v36 = vpop.f32.mrb[3].mxu1 }
  0xfb   :  { %v793_v37 = vadd.f32 %v1211_v32, %v1183_v29  ;;  %v1214_v38 = vadd.f32 %v1213_v36, %v1212_v33 }
  0xfd   :  { %v796_v39 = vadd.f32 %v1214_v38, %v1186_v35 }
  0xfe   :  { %v1187_v40 = vpop.f32.mrb[4].mxu0 }
  0xff   :  { %v1215_v41 = vpop.f32.mrb[4].mxu1  ;;  %v1188_v42 = vpop.f32.mrb[5].mxu0 }
 0x100   :  { %v1216_v43 = vpop.f32.mrb[5].mxu1  ;;  %v1189_v44 = vadd.f32 %v1188_v42, %v1187_v40  ;;  %v1190_v46 = vpop.f32.mrb[6].mxu0 }
 0x101   :  { %v1217_v45 = vadd.f32 %v1216_v43, %v1215_v41  ;;  %v1218_v47 = vpop.f32.mrb[6].mxu1  ;;  %v1191_v48 = vpop.f32.mrb[7].mxu0 }
 0x102   :  { %v1219_v49 = vpop.f32.mrb[7].mxu1  ;;  %v1192_v51 = vadd.f32 %v1191_v48, %v1190_v46 }
 0x103   :  { %v801_v50 = vadd.f32 %v1217_v45, %v1189_v44  ;;  %v1220_v52 = vadd.f32 %v1219_v49, %v1218_v47 }
 0x105   :  { %v804_v53 = vadd.f32 %v1220_v52, %v1192_v51 }
 0x116   :  { %v1237_v54 = vpop.f32.mrb[8].mxu0 }
 0x117   :  { %v1238_v55 = vpop.f32.mrb[9].mxu0  ;;  %v1265_v58 = vpop.f32.mrb[8].mxu1 }
 0x118   :  { %v1239_v56 = vadd.f32 %v1238_v55, %v1237_v54  ;;  %v1240_v57 = vpop.f32.mrb[10].mxu0  ;;  %v1266_v62 = vpop.f32.mrb[9].mxu1 }
 0x119   :  { %v1241_v59 = vpop.f32.mrb[11].mxu0  ;;  %v1267_v63 = vadd.f32 %v1266_v62, %v1265_v58  ;;  %v1268_v0 = vpop.f32.mrb[10].mxu1 }
 0x11a   :  { %v842_v60 = vadd.f32 %v1239_v56, %v793_v37  ;;  %v1242_v61 = vadd.f32 %v1241_v59, %v1240_v57  ;;  %v1269_v2 = vpop.f32.mrb[11].mxu1  ;;  %v988_v57 = vlaneseq  ;;  %v980_v59 = vld [vmem:[%s1727_s2] sm:$0x1] }
 0x11b   :  { %v1270_v3 = vadd.f32 %v1269_v2, %v1268_v0  ;;  %v1146_v2 = vld [vmem:[%s1729_s4] sm:$0xff]  }
 0x11c   :  { %v845_v1 = vadd.f32 %v1242_v61, %v796_v39  ;;  %v891_v4 = vadd.f32 %v1267_v63, %v842_v60  ;;  %v989_v58 = vshrl.u32 %v988_v57, 7  ;;  %v984_v63 = vld [vmem:[%s1728_s3] sm:$0x1] }
 0x11e   :  { %v1243_v5 = vpop.f32.mrb[12].mxu0  ;;  %v894_v7 = vadd.f32 %v1270_v3, %v845_v1  ;;  %v990_v60 = vsub.s32 0, %v989_v58  ;;  %v1163_v3 = vld [vmem:[%s1729_s4 + $0x8] sm:$0xff]  }
 0x11f   :  { %v1244_v6 = vpop.f32.mrb[13].mxu0  ;;  %v1271_v10 = vpop.f32.mrb[12].mxu1 }
 0x120   :  { %v1245_v8 = vadd.f32 %v1244_v6, %v1243_v5  ;;  %v1246_v9 = vpop.f32.mrb[14].mxu0  ;;  %v1272_v14 = vpop.f32.mrb[13].mxu1 }
 0x121   :  { %v1247_v11 = vpop.f32.mrb[15].mxu0  ;;  %v1273_v15 = vadd.f32 %v1272_v14, %v1271_v10  ;;  %v1274_v16 = vpop.f32.mrb[14].mxu1 }
 0x122   :  { %v850_v12 = vadd.f32 %v1245_v8, %v801_v50  ;;  %v1248_v13 = vadd.f32 %v1247_v11, %v1246_v9  ;;  %v1275_v18 = vpop.f32.mrb[15].mxu1  ;;  %v1147_v9 = vunpack.c.l.bf16 %v1146_v2  ;;  %v1148_v11 = vunpack.c.h.bf16 %v1146_v2 }
 0x123   :  { %v1276_v19 = vadd.f32 %v1275_v18, %v1274_v16 }
 0x124   :  { %v853_v17 = vadd.f32 %v1248_v13, %v804_v53  ;;  %v899_v20 = vadd.f32 %v1273_v15, %v850_v12  ;;  %v1151_v12 = vunpack.c.l.bf16 %v1163_v3  ;;  %v1152_v13 = vunpack.c.h.bf16 %v1163_v3 }
 0x126   :  { %v902_v21 = vadd.f32 %v1276_v19, %v853_v17 }
 0x136   :  { %v1305_v22 = vpop.f32.mrb[16].mxu0 }
 0x137   :  { %v948_v23 = vadd.f32 %v1305_v22, %v899_v20  ;;  %v939_v24 = vpop.f32.mrb[17].mxu0 }
 0x138   :  { %v940_v25 = vadd.f32 %v939_v24, %v891_v4  ;;  %v1306_v26 = vpop.f32.mrb[18].mxu0 }
 0x139   :  { %v951_v27 = vadd.f32 %v1306_v26, %v902_v21  ;;  %v942_v28 = vpop.f32.mrb[19].mxu0  ;;  %v966_v33 = vmul.f32 %v948_v23, %v948_v23 }
 0x13a   :  { %v943_v29 = vadd.f32 %v942_v28, %v894_v7  ;;  %v964_v30 = vmul.f32 %v940_v25, %v940_v25 }
 0x13b   :  { %v967_v36 = vmul.f32 %v951_v27, %v951_v27 }
 0x13c   :  { %v954_v31 = vadd.f32 %v943_v29, %v940_v25  ;;  %v965_v32 = vmul.f32 %v943_v29, %v943_v29 }
 0x13e   :  { %v955_v34 = vadd.f32 %v954_v31, %v948_v23  ;;  %v968_v35 = vadd.f32 %v965_v32, %v964_v30 }
 0x140   :  { %v956_v37 = vadd.f32 %v955_v34, %v951_v27  ;;  %v969_v38 = vadd.f32 %v968_v35, %v966_v33 }
 0x142   :  { %v957_v39 = vrot.slane %v956_v37, 4  ;;  %v970_v40 = vadd.f32 %v969_v38, %v967_v36 }
 0x144   :  { %v958_v41 = vadd.f32 %v957_v39, %v956_v37  ;;  %v971_v42 = vrot.slane %v970_v40, 4 }
 0x146   :  { %v959_v43 = vrot.slane %v958_v41, 2  ;;  %v972_v44 = vadd.f32 %v971_v42, %v970_v40 }
 0x148   :  { %v960_v45 = vadd.f32 %v959_v43, %v958_v41  ;;  %v973_v46 = vrot.slane %v972_v44, 2 }
 0x14a   :  { %v961_v47 = vrot.slane %v960_v45, 1  ;;  %v974_v48 = vadd.f32 %v973_v46, %v972_v44 }
 0x14c   :  { %v962_v49 = vadd.f32 %v961_v47, %v960_v45  ;;  %v975_v50 = vrot.slane %v974_v48, 1 }
 0x14e   :  { %v963_v51 = vmul.f32 0.03125, %v962_v49  ;;  %v976_v52 = vadd.f32 %v975_v50, %v974_v48 }
 0x150   :  { %v977_v53 = vmul.f32 0.03125, %v976_v52  ;;  %v978_v54 = vmul.f32 %v963_v51, %v963_v51 }
 0x152   :  { %v979_v55 = vsub.f32 %v977_v53, %v978_v54 }
 0x154   :  { %v981_v56 = vadd.f32 1e-05, %v979_v55 }
 0x156   :  { %1405 = vrsqrt.f32 %v981_v56 }
 0x160   :  { %v1406_v61 = vpop.eup %1405 }
 0x161   :  { %v983_v62 = vmul.f32 %v1406_v61, %v980_v59 }
 0x163   :  { %v985_v0 = vmul.f32 %v983_v62, %v963_v51  ;;  %v991_v1 = vrot.slane %v983_v62, %v990_v60 }
 0x165   :  { %v986_v4 = vsub.f32 %v984_v63, %v985_v0  ;;  %v993_v5 = vmul.f32 %v991_v1, %v940_v25  ;;  %v994_v6 = vmul.f32 %v991_v1, %v943_v29  ;;  %v995_v7 = vmul.f32 %v991_v1, %v948_v23 }
 0x166   :  { %v996_v8 = vmul.f32 %v991_v1, %v951_v27 }
 0x167   :  { %v1001_v10 = vrot.slane %v986_v4, %v990_v60 }
 0x169   :  { %v1003_v14 = vadd.f32 %v1001_v10, %v993_v5  ;;  %v1004_v15 = vadd.f32 %v1001_v10, %v994_v6  ;;  %v1005_v16 = vadd.f32 %v1001_v10, %v995_v7  ;;  %v1006_v17 = vadd.f32 %v1001_v10, %v996_v8 }
 0x16b   :  { %v1015_v18 = vadd.f32 %v1147_v9, %v1003_v14  ;;  %v1016_v19 = vadd.f32 %v1148_v11, %v1004_v15  ;;  %v1017_v20 = vadd.f32 %v1151_v12, %v1005_v16  ;;  %v1018_v21 = vadd.f32 %v1152_v13, %v1006_v17 }
 0x16d   :  { %v1019_v22 = vmax.f32 %v1015_v18, 0.0  ;;  %v1020_v24 = vmax.f32 %v1016_v19, 0.0  ;;  %v1021_v26 = vmax.f32 %v1017_v20, 0.0  ;;  %v1022_v25 = vmax.f32 %v1018_v21, 0.0 }
 0x16f   :  { %v1156_v28 = vpack.c.bf16 %v1020_v24, %v1019_v22  ;;  %v1161_v23 = vpack.c.bf16 %v1022_v25, %v1021_v26 }
 0x171   :  { %1157 = vst [vmem:[%s1730_s5] sm:$0xff] %v1156_v28   ;;  %1164 = vst [vmem:[%s1730_s5 + $0x8] sm:$0xff] %v1161_v23  }

</bundles_post_ra>
